<compile_context>
chip_gen: v5e
topology: v5e:2x2
jax: 0.10.0
libtpu: 0.0.40
codegen_flags: <defaults>
</compile_context>

<pallas_src>
import functools
import math

import numpy as np

import jax
import jax.numpy as jnp
from jax.experimental import pallas as pl
from jax.experimental.pallas import tpu as pltpu


LANE = 128          # TPU lane width; channel dims are padded to this.
CONV_TM = 128       # flattened pixels per conv grid step -> 64 KiB f32 acc.

_VMEM = pl.BlockSpec(memory_space=pltpu.MemorySpace.VMEM)
_PARAMS_GRID1D = pltpu.CompilerParams(
    dimension_semantics=("parallel",), vmem_limit_bytes=32 * 1024 * 1024)
_PARAMS_NOGRID = pltpu.CompilerParams(vmem_limit_bytes=32 * 1024 * 1024)


def _round_up(v, m):
    return (v + m - 1) // m * m


# ----------------------------------------------------------------------------
# Pallas kernels
# ----------------------------------------------------------------------------
def _conv3x3_relu_kernel(x_ref, w_ref, b_ref, o_ref, *, tm):
    """Fused 3x3 conv (pad=1, stride=1) + bias + ReLU for one tile of rows.

    x_ref: (Mt+8, 3*Cin) bf16, resident across the grid.  Row m is the
           flattened (n, h, xq) position over the padded width Wp = W+2, with
           the three vertical taps (dy) already concatenated on channels.
    w_ref: (3, 3*Cin, 128) bf16 -- one (K, Cout_pad) slab per horizontal tap.
    b_ref: (1, 128) f32.
    o_ref: (tm, 128) bf16 lane-dense output tile.
    """
    i = pl.program_id(0)
    base = pl.multiple_of(i * tm, 8)
    slab = x_ref[pl.ds(base, tm + 8), :]                  # aligned bf16 load
    # dx = 0, 1, 2 taps: same LHS slab, per-dx weights; shifts applied to the
    # f32 full-lane products (cheap, well-supported sublane slices).
    acc = jnp.dot(slab, w_ref[0], preferred_element_type=jnp.float32)[0:tm]
    acc = acc + jnp.dot(slab, w_ref[1],
                        preferred_element_type=jnp.float32)[1:tm + 1]
    acc = acc + jnp.dot(slab, w_ref[2],
                        preferred_element_type=jnp.float32)[2:tm + 2]
    o_ref[...] = jnp.maximum(acc + b_ref[...], 0.0).astype(o_ref.dtype)


def _maxpool2x2_kernel(a_ref, b_ref, c_ref, d_ref, o_ref):
    # Four lane-dense (M, 128) window views -> 3 VPU maximums (no XLU reduce).
    o_ref[...] = jnp.maximum(jnp.maximum(a_ref[...], b_ref[...]),
                             jnp.maximum(c_ref[...], d_ref[...]))


def _head_kernel(x_ref, w1_ref, b1_ref, w2_ref, b2_ref, w3_ref, b3_ref,
                 fc1_ref, fc2_ref, fc3_ref):
    # Fused fc1(+ReLU) -> fc2(+ReLU) -> fc3 -> softmax in one pallas_call.
    h1 = jnp.dot(x_ref[...], w1_ref[...],
                 preferred_element_type=jnp.float32) + b1_ref[...]
    h1 = jnp.maximum(h1, 0.0)
    fc1_ref[...] = h1
    h2 = jnp.dot(h1.astype(w2_ref.dtype), w2_ref[...],
                 preferred_element_type=jnp.float32) + b2_ref[...]
    h2 = jnp.maximum(h2, 0.0)
    fc2_ref[...] = h2
    logits = jnp.dot(h2.astype(w3_ref.dtype), w3_ref[...],
                     preferred_element_type=jnp.float32) + b3_ref[...]
    m = jnp.max(logits, axis=-1, keepdims=True)
    e = jnp.exp(logits - m)                # padded logits have -1e30 bias -> 0
    fc3_ref[...] = e / jnp.sum(e, axis=-1, keepdims=True)


# ----------------------------------------------------------------------------
# Pallas-backed ops (wrapper glue = layout only)
# ----------------------------------------------------------------------------
def conv3x3_relu(x_nhwc, w_hwio, b, *, tm=CONV_TM):
    """3x3 conv, padding=1, stride=1, bias, ReLU (PyTorch cross-correlation).

    Returns the raw kernel output (Mt, 128) plus geometry.  The raw layout
    keeps channels padded to 128 lanes and W+2 columns per image row; the two
    garbage columns per row are sliced off lazily by consumers.
    """
    N, H, W, Cin = x_nhwc.shape
    Cout = w_hwio.shape[-1]
    assert Cout <= LANE
    Wp = W + 2
    K3 = 3 * Cin

    # Pad once, concatenate the 3 vertical taps on channels (3x bf16 copy,
    # vs the previous 9x f32 im2col blowup).
    xp = jnp.pad(x_nhwc, ((0, 0), (1, 1), (1, 1), (0, 0)))
    x3 = jnp.concatenate([xp[:, dy:dy + H] for dy in range(3)], axis=-1)

    M = N * H * Wp
    tm = min(tm, _round_up(M, 8))
    Mt = _round_up(M, tm)
    x2 = x3.reshape(M, K3).astype(jnp.bfloat16)
    # +8 halo rows so tile i can load rows [i*tm, i*tm + tm + 8) aligned.
    x2 = jnp.pad(x2, ((0, Mt - M + 8), (0, 0)))

    # (dy, dx, Cin, Cout) -> per-dx (3*Cin, Cout) slabs, Cout padded to 128.
    wk = jnp.transpose(w_hwio, (1, 0, 2, 3)).reshape(3, K3, Cout)
    wk = jnp.pad(wk, ((0, 0), (0, 0), (0, LANE - Cout))).astype(jnp.bfloat16)
    bk = jnp.pad(b, (0, LANE - Cout)).reshape(1, LANE).astype(jnp.float32)

    raw = pl.pallas_call(
        functools.partial(_conv3x3_relu_kernel, tm=tm),
        grid=(Mt // tm,),
        in_specs=[
            pl.BlockSpec((Mt + 8, K3), lambda i: (0, 0)),       # resident input
            pl.BlockSpec((3, K3, LANE), lambda i: (0, 0, 0)),   # weights
            pl.BlockSpec((1, LANE), lambda i: (0, 0)),          # bias
        ],
        out_specs=pl.BlockSpec((tm, LANE), lambda i: (i, 0)),
        out_shape=jax.ShapeDtypeStruct((Mt, LANE), jnp.bfloat16),
        compiler_params=_PARAMS_GRID1D,
    )(x2, wk, bk)
    return raw, (N, H, W, Wp, Cout)


def raw_to_nhwc(raw, geom):
    N, H, W, Wp, C = geom
    return raw[:N * H * Wp].reshape(N, H, Wp, LANE)[:, :, :W, :C]


def maxpool2(raw, geom):
    """MaxPool2d(2, 2) on a conv layer's raw output; returns NHWC (true C)."""
    N, H, W, Wp, C = geom
    Ho, Wo = H // 2, W // 2
    y4 = raw[:N * H * Wp].reshape(N, H, Wp, LANE)
    # Four lane-dense window views (XLA strided slices; padded channels are 0
    # after ReLU so the max is unaffected and they are sliced off below).
    views = [y4[:, dy::2, dx:W:2, :].reshape(N * Ho * Wo, LANE)
             for dy in (0, 1) for dx in (0, 1)]
    M = N * Ho * Wo
    Mp = _round_up(M, 8)
    views = [jnp.pad(v, ((0, Mp - M), (0, 0))) for v in views]
    pooled = pl.pallas_call(
        _maxpool2x2_kernel,
        out_shape=jax.ShapeDtypeStruct((Mp, LANE), raw.dtype),
        in_specs=[_VMEM] * 4,
        out_specs=_VMEM,
        compiler_params=_PARAMS_NOGRID,
    )(*views)
    return pooled[:M].reshape(N, Ho, Wo, LANE)[:, :, :, :C]


def adaptive_avg_pool_7(x_nhwc):
    """AdaptiveAvgPool2d((7,7)) as two static averaging contractions.

    TODO(synk): tiny layout-only glue kept in XLA (2 einsums); could be folded
    into the head kernel if it ever shows up in profiles.
    """
    N, H, W, C = x_nhwc.shape

    def pool_mat(size):
        m = np.zeros((7, size), np.float32)
        for i in range(7):
            s = math.floor(i * size / 7)
            e = math.ceil((i + 1) * size / 7)
            m[i, s:e] = 1.0 / (e - s)
        return jnp.asarray(m)

    x = x_nhwc.astype(jnp.float32)
    return jnp.einsum("iy,nyxc,jx->nijc", pool_mat(H), x, pool_mat(W))


def head(adavg_nhwc, params):
    """Fused fc1(+ReLU) -> fc2(+ReLU) -> fc3 -> softmax (single pallas_call)."""
    N, _, _, C = adavg_nhwc.shape
    # PyTorch flattens NCHW (channel-major) before the first FC layer.
    flat = jnp.transpose(adavg_nhwc, (0, 3, 1, 2)).reshape(N, C * 49)
    flat = flat.astype(jnp.bfloat16)

    w1, b1 = params["fc1"]
    w2, b2 = params["fc2"]
    w3, b3 = params["fc3"]
    nc = w3.shape[-1]
    assert w1.shape[-1] == LANE and w2.shape[-1] == LANE and nc <= LANE
    # Pad fc3 to 128 lanes; padded logits get a huge negative bias so they
    # contribute exactly 0 to the softmax.
    w3p = jnp.pad(w3, ((0, 0), (0, LANE - nc))).astype(jnp.bfloat16)
    b3p = jnp.concatenate(
        [b3.astype(jnp.float32),
         jnp.full((LANE - nc,), -1e30, jnp.float32)]).reshape(1, LANE)

    fc1, fc2, fc3p = pl.pallas_call(
        _head_kernel,
        out_shape=(jax.ShapeDtypeStruct((N, LANE), jnp.float32),
                   jax.ShapeDtypeStruct((N, LANE), jnp.float32),
                   jax.ShapeDtypeStruct((N, LANE), jnp.float32)),
        in_specs=[_VMEM] * 7,
        out_specs=(_VMEM, _VMEM, _VMEM),
        compiler_params=_PARAMS_NOGRID,
    )(flat,
      w1.astype(jnp.bfloat16), b1.reshape(1, LANE).astype(jnp.float32),
      w2.astype(jnp.bfloat16), b2.reshape(1, LANE).astype(jnp.float32),
      w3p, b3p)
    return fc1, fc2, fc3p[:, :nc]


# ----------------------------------------------------------------------------
# Parameters (deterministic synthetic init; scaled-down VGG16 topology)
# ----------------------------------------------------------------------------
CONV_CFG = [
    ("conv1_1", 3, 16), ("conv1_2", 16, 16),
    ("conv2_1", 16, 32), ("conv2_2", 32, 32),
    ("conv3_1", 32, 64), ("conv3_2", 64, 64), ("conv3_3", 64, 64),
    ("conv4_1", 64, 64), ("conv4_2", 64, 64), ("conv4_3", 64, 64),
    ("conv5_1", 64, 64), ("conv5_2", 64, 64), ("conv5_3", 64, 64),
]
FC_HIDDEN = 128
NUM_CLASSES = 16


def init_params(key):
    params = {}
    for name, cin, cout in CONV_CFG:
        key, kw, kb = jax.random.split(key, 3)
        std = math.sqrt(2.0 / (9 * cin))
        params[name] = (
            jax.random.normal(kw, (3, 3, cin, cout), jnp.float32) * std,
            jax.random.normal(kb, (cout,), jnp.float32) * 0.01)
    c_last = CONV_CFG[-1][2]
    fc_cfg = [("fc1", c_last * 7 * 7, FC_HIDDEN),
              ("fc2", FC_HIDDEN, FC_HIDDEN),
              ("fc3", FC_HIDDEN, NUM_CLASSES)]
    for name, cin, cout in fc_cfg:
        key, kw, kb = jax.random.split(key, 3)
        std = math.sqrt(2.0 / cin)
        params[name] = (
            jax.random.normal(kw, (cin, cout), jnp.float32) * std,
            jax.random.normal(kb, (cout,), jnp.float32) * 0.01)
    return params


# ----------------------------------------------------------------------------
# Forward pass (mirrors VGG16FeaturesNVIDIA.forward)
# ----------------------------------------------------------------------------
@functools.partial(jax.jit, static_argnames=("layers", "normed"))
def vgg16_features(x_nchw, params, layers, normed=True):
    assert layers is not None
    wanted = set(layers)
    feats = {}

    x = jnp.transpose(x_nchw.astype(jnp.float32), (0, 2, 3, 1))  # NCHW -> NHWC
    x = x.astype(jnp.bfloat16)

    def conv(name, x_in, pool):
        raw, geom = conv3x3_relu(x_in, *params[name])
        nhwc = raw_to_nhwc(raw, geom)
        if name in wanted:   # return conv features in NCHW f32 like PyTorch
            feats[name] = jnp.transpose(nhwc.astype(jnp.float32), (0, 3, 1, 2))
        return maxpool2(raw, geom) if pool else nhwc

    x = conv("conv1_1", x, pool=False)
    x = conv("conv1_2", x, pool=True)
    x = conv("conv2_1", x, pool=False)
    x = conv("conv2_2", x, pool=True)
    x = conv("conv3_1", x, pool=False)
    x = conv("conv3_2", x, pool=False)
    x = conv("conv3_3", x, pool=True)
    x = conv("conv4_1", x, pool=False)
    x = conv("conv4_2", x, pool=False)
    x = conv("conv4_3", x, pool=True)
    x = conv("conv5_1", x, pool=False)
    x = conv("conv5_2", x, pool=False)
    x = conv("conv5_3", x, pool=True)

    ad = adaptive_avg_pool_7(x)                       # (N, 7, 7, C) f32
    if "adavgpool" in wanted:
        feats["adavgpool"] = jnp.transpose(ad, (0, 3, 1, 2))
    fc1, fc2, fc3 = head(ad, params)
    feats["fc1"], feats["fc2"], feats["fc3"] = fc1, fc2, fc3

    result_list = []
    for name in layers:            # replaces the PyTorch eval(layer) lookup
        f = feats[name]
        if normed:
            f = f / f.size         # == tensor / torch.numel(tensor)
        result_list.append(f)
    return result_list


# ----------------------------------------------------------------------------
if __name__ == "__main__":
    root = jax.random.PRNGKey(0)
    k_params, k_x = jax.random.split(root)

    params = init_params(k_params)
    # Small NCHW input consistent with the module (3 channels, 5 pools -> 1x1).
    x = jax.random.normal(k_x, (2, 3, 32, 32), jnp.float32)

    layers = ("conv1_1", "conv1_2", "conv3_3", "conv3_3", "fc3")
    feats = vgg16_features(x, params, layers, normed=True)
    feats = jax.block_until_ready(feats)

    # Sanity checks.
    assert feats[0].shape == (2, 16, 32, 32)
    assert feats[1].shape == (2, 16, 32, 32)
    assert feats[2].shape == (2, 64, 8, 8)
    assert feats[3].shape == (2, 64, 8, 8)
    assert feats[4].shape == (2, NUM_CLASSES)
    assert all(bool(jnp.all(jnp.isfinite(f))) for f in feats)
    # Un-normed fc3 rows are a softmax -> must sum to ~1.
    probs = feats[4] * feats[4].size
    assert bool(jnp.all(jnp.abs(jnp.sum(probs, axis=-1) - 1.0) < 1e-2))

    print("KERNEL_OK")
</pallas_src>

<mosaic_0001>
module attributes {stable_mosaic.version = 11 : i64} {
  func.func @_conv3x3_relu_kernel(%arg0: i32, %arg1: memref<2184x9xbf16, #tpu.memory_space<vmem>>, %arg2: memref<3x9x128xbf16, #tpu.memory_space<vmem>>, %arg3: memref<1x128xf32, #tpu.memory_space<vmem>>, %arg4: memref<128x128xbf16, #tpu.memory_space<vmem>>) attributes {dimension_semantics = [#tpu.dimension_semantics<parallel>], iteration_bounds = array<i64: 17>, scalar_prefetch = 0 : i64, scratch_operands = 0 : i64, tpu.core_type = #tpu.core_type<tc>, window_params = [{pipeline_mode = #tpu.pipeline_mode<synchronous>, transform_indices = @transform_0, window_bounds = array<i64: 2184, 9>}, {pipeline_mode = #tpu.pipeline_mode<synchronous>, transform_indices = @transform_1, window_bounds = array<i64: 3, 9, 128>}, {pipeline_mode = #tpu.pipeline_mode<synchronous>, transform_indices = @transform_2, window_bounds = array<i64: 1, 128>}, {transform_indices = @transform_3, window_bounds = array<i64: 128, 128>}]} {
    %c128_i32 = arith.constant 128 : i32
    %0 = arith.muli %arg0, %c128_i32 : i32
    %1 = tpu.assume_multiple %0, 8 : i32
    %2 = arith.index_cast %1 : i32 to index
    %c0 = arith.constant 0 : index
    %3 = vector.load %arg1[%2, %c0] : memref<2184x9xbf16, #tpu.memory_space<vmem>>, vector<136x9xbf16>
    %c0_0 = arith.constant 0 : index
    %c0_1 = arith.constant 0 : index
    %c0_2 = arith.constant 0 : index
    %4 = vector.load %arg2[%c0_0, %c0_1, %c0_2] : memref<3x9x128xbf16, #tpu.memory_space<vmem>>, vector<1x9x128xbf16>
    %5 = vector.shape_cast %4 : vector<1x9x128xbf16> to vector<9x128xbf16>
    %cst = arith.constant dense<0.000000e+00> : vector<136x128xf32>
    %6 = tpu.matmul %3, %5, %cst {dimension_numbers = #tpu.dot_dimension_numbers<[1], [0], [0], [1], [0, 0, 1, 1], [], []>} : vector<136x9xbf16>, vector<9x128xbf16>, vector<136x128xf32> -> vector<136x128xf32>
    %7 = vector.extract_strided_slice %6 {offsets = [0, 0], sizes = [128, 128], strides = [1, 1]} : vector<136x128xf32> to vector<128x128xf32>
    %c1 = arith.constant 1 : index
    %c0_3 = arith.constant 0 : index
    %c0_4 = arith.constant 0 : index
    %8 = vector.load %arg2[%c1, %c0_3, %c0_4] : memref<3x9x128xbf16, #tpu.memory_space<vmem>>, vector<1x9x128xbf16>
    %9 = vector.shape_cast %8 : vector<1x9x128xbf16> to vector<9x128xbf16>
    %cst_5 = arith.constant dense<0.000000e+00> : vector<136x128xf32>
    %10 = tpu.matmul %3, %9, %cst_5 {dimension_numbers = #tpu.dot_dimension_numbers<[1], [0], [0], [1], [0, 0, 1, 1], [], []>} : vector<136x9xbf16>, vector<9x128xbf16>, vector<136x128xf32> -> vector<136x128xf32>
    %11 = vector.extract_strided_slice %10 {offsets = [1, 0], sizes = [128, 128], strides = [1, 1]} : vector<136x128xf32> to vector<128x128xf32>
    %12 = arith.addf %7, %11 : vector<128x128xf32>
    %c2 = arith.constant 2 : index
    %c0_6 = arith.constant 0 : index
    %c0_7 = arith.constant 0 : index
    %13 = vector.load %arg2[%c2, %c0_6, %c0_7] : memref<3x9x128xbf16, #tpu.memory_space<vmem>>, vector<1x9x128xbf16>
    %14 = vector.shape_cast %13 : vector<1x9x128xbf16> to vector<9x128xbf16>
    %cst_8 = arith.constant dense<0.000000e+00> : vector<136x128xf32>
    %15 = tpu.matmul %3, %14, %cst_8 {dimension_numbers = #tpu.dot_dimension_numbers<[1], [0], [0], [1], [0, 0, 1, 1], [], []>} : vector<136x9xbf16>, vector<9x128xbf16>, vector<136x128xf32> -> vector<136x128xf32>
    %16 = vector.extract_strided_slice %15 {offsets = [2, 0], sizes = [128, 128], strides = [1, 1]} : vector<136x128xf32> to vector<128x128xf32>
    %17 = arith.addf %12, %16 : vector<128x128xf32>
    %c0_9 = arith.constant 0 : index
    %c0_10 = arith.constant 0 : index
    %18 = vector.load %arg3[%c0_9, %c0_10] : memref<1x128xf32, #tpu.memory_space<vmem>>, vector<1x128xf32>
    %19 = vector.broadcast %18 : vector<1x128xf32> to vector<128x128xf32>
    %20 = arith.addf %17, %19 : vector<128x128xf32>
    %cst_11 = arith.constant 0.000000e+00 : f32
    %21 = vector.broadcast %cst_11 : f32 to vector<128x128xf32>
    %22 = arith.maximumf %20, %21 : vector<128x128xf32>
    %23 = arith.truncf %22 : vector<128x128xf32> to vector<128x128xbf16>
    %c0_12 = arith.constant 0 : index
    %c0_13 = arith.constant 0 : index
    %24 = vector.load %arg4[%c0_12, %c0_13] : memref<128x128xbf16, #tpu.memory_space<vmem>>, vector<128x128xbf16>
    tpu.vector_store %arg4[%c0_12, %c0_13], %23 {strides = array<i32>} : memref<128x128xbf16, #tpu.memory_space<vmem>>, vector<128x128xbf16>,
    return
  }
  func.func @transform_0(%arg0: i32) -> (i32, i32) {
    %c0_i32 = arith.constant 0 : i32
    %c0_i32_0 = arith.constant 0 : i32
    %c0_i32_1 = arith.constant 0 : i32
    return %c0_i32, %c0_i32_0 : i32, i32
  }
  func.func @transform_1(%arg0: i32) -> (i32, i32, i32) {
    %c0_i32 = arith.constant 0 : i32
    %c0_i32_0 = arith.constant 0 : i32
    %c0_i32_1 = arith.constant 0 : i32
    %c0_i32_2 = arith.constant 0 : i32
    return %c0_i32, %c0_i32_0, %c0_i32_1 : i32, i32, i32
  }
  func.func @transform_2(%arg0: i32) -> (i32, i32) {
    %c0_i32 = arith.constant 0 : i32
    %c0_i32_0 = arith.constant 0 : i32
    %c0_i32_1 = arith.constant 0 : i32
    return %c0_i32, %c0_i32_0 : i32, i32
  }
  func.func @transform_3(%arg0: i32) -> (i32, i32) {
    %c0_i32 = arith.constant 0 : i32
    %c0_i32_0 = arith.constant 0 : i32
    return %arg0, %c0_i32 : i32, i32
  }
}

module attributes {stable_mosaic.version = 11 : i64} {
  func.func @_conv3x3_relu_kernel(%arg0: i32, %arg1: memref<2184x48xbf16, #tpu.memory_space<vmem>>, %arg2: memref<3x48x128xbf16, #tpu.memory_space<vmem>>, %arg3: memref<1x128xf32, #tpu.memory_space<vmem>>, %arg4: memref<128x128xbf16, #tpu.memory_space<vmem>>) attributes {dimension_semantics = [#tpu.dimension_semantics<parallel>], iteration_bounds = array<i64: 17>, scalar_prefetch = 0 : i64, scratch_operands = 0 : i64, tpu.core_type = #tpu.core_type<tc>, window_params = [{pipeline_mode = #tpu.pipeline_mode<synchronous>, transform_indices = @transform_0, window_bounds = array<i64: 2184, 48>}, {pipeline_mode = #tpu.pipeline_mode<synchronous>, transform_indices = @transform_1, window_bounds = array<i64: 3, 48, 128>}, {pipeline_mode = #tpu.pipeline_mode<synchronous>, transform_indices = @transform_2, window_bounds = array<i64: 1, 128>}, {transform_indices = @transform_3, window_bounds = array<i64: 128, 128>}]} {
    %c128_i32 = arith.constant 128 : i32
    %0 = arith.muli %arg0, %c128_i32 : i32
    %1 = tpu.assume_multiple %0, 8 : i32
    %2 = arith.index_cast %1 : i32 to index
    %c0 = arith.constant 0 : index
    %3 = vector.load %arg1[%2, %c0] : memref<2184x48xbf16, #tpu.memory_space<vmem>>, vector<136x48xbf16>
    %c0_0 = arith.constant 0 : index
    %c0_1 = arith.constant 0 : index
    %c0_2 = arith.constant 0 : index
    %4 = vector.load %arg2[%c0_0, %c0_1, %c0_2] : memref<3x48x128xbf16, #tpu.memory_space<vmem>>, vector<1x48x128xbf16>
    %5 = vector.shape_cast %4 : vector<1x48x128xbf16> to vector<48x128xbf16>
    %cst = arith.constant dense<0.000000e+00> : vector<136x128xf32>
    %6 = tpu.matmul %3, %5, %cst {dimension_numbers = #tpu.dot_dimension_numbers<[1], [0], [0], [1], [0, 0, 1, 1], [], []>} : vector<136x48xbf16>, vector<48x128xbf16>, vector<136x128xf32> -> vector<136x128xf32>
    %7 = vector.extract_strided_slice %6 {offsets = [0, 0], sizes = [128, 128], strides = [1, 1]} : vector<136x128xf32> to vector<128x128xf32>
    %c1 = arith.constant 1 : index
    %c0_3 = arith.constant 0 : index
    %c0_4 = arith.constant 0 : index
    %8 = vector.load %arg2[%c1, %c0_3, %c0_4] : memref<3x48x128xbf16, #tpu.memory_space<vmem>>, vector<1x48x128xbf16>
    %9 = vector.shape_cast %8 : vector<1x48x128xbf16> to vector<48x128xbf16>
    %cst_5 = arith.constant dense<0.000000e+00> : vector<136x128xf32>
    %10 = tpu.matmul %3, %9, %cst_5 {dimension_numbers = #tpu.dot_dimension_numbers<[1], [0], [0], [1], [0, 0, 1, 1], [], []>} : vector<136x48xbf16>, vector<48x128xbf16>, vector<136x128xf32> -> vector<136x128xf32>
    %11 = vector.extract_strided_slice %10 {offsets = [1, 0], sizes = [128, 128], strides = [1, 1]} : vector<136x128xf32> to vector<128x128xf32>
    %12 = arith.addf %7, %11 : vector<128x128xf32>
    %c2 = arith.constant 2 : index
    %c0_6 = arith.constant 0 : index
    %c0_7 = arith.constant 0 : index
    %13 = vector.load %arg2[%c2, %c0_6, %c0_7] : memref<3x48x128xbf16, #tpu.memory_space<vmem>>, vector<1x48x128xbf16>
    %14 = vector.shape_cast %13 : vector<1x48x128xbf16> to vector<48x128xbf16>
    %cst_8 = arith.constant dense<0.000000e+00> : vector<136x128xf32>
    %15 = tpu.matmul %3, %14, %cst_8 {dimension_numbers = #tpu.dot_dimension_numbers<[1], [0], [0], [1], [0, 0, 1, 1], [], []>} : vector<136x48xbf16>, vector<48x128xbf16>, vector<136x128xf32> -> vector<136x128xf32>
    %16 = vector.extract_strided_slice %15 {offsets = [2, 0], sizes = [128, 128], strides = [1, 1]} : vector<136x128xf32> to vector<128x128xf32>
    %17 = arith.addf %12, %16 : vector<128x128xf32>
    %c0_9 = arith.constant 0 : index
    %c0_10 = arith.constant 0 : index
    %18 = vector.load %arg3[%c0_9, %c0_10] : memref<1x128xf32, #tpu.memory_space<vmem>>, vector<1x128xf32>
    %19 = vector.broadcast %18 : vector<1x128xf32> to vector<128x128xf32>
    %20 = arith.addf %17, %19 : vector<128x128xf32>
    %cst_11 = arith.constant 0.000000e+00 : f32
    %21 = vector.broadcast %cst_11 : f32 to vector<128x128xf32>
    %22 = arith.maximumf %20, %21 : vector<128x128xf32>
    %23 = arith.truncf %22 : vector<128x128xf32> to vector<128x128xbf16>
    %c0_12 = arith.constant 0 : index
    %c0_13 = arith.constant 0 : index
    %24 = vector.load %arg4[%c0_12, %c0_13] : memref<128x128xbf16, #tpu.memory_space<vmem>>, vector<128x128xbf16>
    tpu.vector_store %arg4[%c0_12, %c0_13], %23 {strides = array<i32>} : memref<128x128xbf16, #tpu.memory_space<vmem>>, vector<128x128xbf16>,
    return
  }
  func.func @transform_0(%arg0: i32) -> (i32, i32) {
    %c0_i32 = arith.constant 0 : i32
    %c0_i32_0 = arith.constant 0 : i32
    %c0_i32_1 = arith.constant 0 : i32
    return %c0_i32, %c0_i32_0 : i32, i32
  }
  func.func @transform_1(%arg0: i32) -> (i32, i32, i32) {
    %c0_i32 = arith.constant 0 : i32
    %c0_i32_0 = arith.constant 0 : i32
    %c0_i32_1 = arith.constant 0 : i32
    %c0_i32_2 = arith.constant 0 : i32
    return %c0_i32, %c0_i32_0, %c0_i32_1 : i32, i32, i32
  }
  func.func @transform_2(%arg0: i32) -> (i32, i32) {
    %c0_i32 = arith.constant 0 : i32
    %c0_i32_0 = arith.constant 0 : i32
    %c0_i32_1 = arith.constant 0 : i32
    return %c0_i32, %c0_i32_0 : i32, i32
  }
  func.func @transform_3(%arg0: i32) -> (i32, i32) {
    %c0_i32 = arith.constant 0 : i32
    %c0_i32_0 = arith.constant 0 : i32
    return %arg0, %c0_i32 : i32, i32
  }
}

module attributes {stable_mosaic.version = 11 : i64} {
  func.func @_maxpool2x2_kernel(%arg0: memref<512x128xbf16, #tpu.memory_space<vmem>>, %arg1: memref<512x128xbf16, #tpu.memory_space<vmem>>, %arg2: memref<512x128xbf16, #tpu.memory_space<vmem>>, %arg3: memref<512x128xbf16, #tpu.memory_space<vmem>>, %arg4: memref<512x128xbf16, #tpu.memory_space<vmem>>) attributes {dimension_semantics = [], scalar_prefetch = 0 : i64, scratch_operands = 0 : i64, tpu.core_type = #tpu.core_type<tc>} {
    %c0 = arith.constant 0 : index
    %c0_0 = arith.constant 0 : index
    %0 = vector.load %arg0[%c0, %c0_0] : memref<512x128xbf16, #tpu.memory_space<vmem>>, vector<512x128xbf16>
    %c0_1 = arith.constant 0 : index
    %c0_2 = arith.constant 0 : index
    %1 = vector.load %arg1[%c0_1, %c0_2] : memref<512x128xbf16, #tpu.memory_space<vmem>>, vector<512x128xbf16>
    %2 = arith.maximumf %0, %1 : vector<512x128xbf16>
    %c0_3 = arith.constant 0 : index
    %c0_4 = arith.constant 0 : index
    %3 = vector.load %arg2[%c0_3, %c0_4] : memref<512x128xbf16, #tpu.memory_space<vmem>>, vector<512x128xbf16>
    %c0_5 = arith.constant 0 : index
    %c0_6 = arith.constant 0 : index
    %4 = vector.load %arg3[%c0_5, %c0_6] : memref<512x128xbf16, #tpu.memory_space<vmem>>, vector<512x128xbf16>
    %5 = arith.maximumf %3, %4 : vector<512x128xbf16>
    %6 = arith.maximumf %2, %5 : vector<512x128xbf16>
    %c0_7 = arith.constant 0 : index
    %c0_8 = arith.constant 0 : index
    %7 = vector.load %arg4[%c0_7, %c0_8] : memref<512x128xbf16, #tpu.memory_space<vmem>>, vector<512x128xbf16>
    tpu.vector_store %arg4[%c0_7, %c0_8], %6 {strides = array<i32>} : memref<512x128xbf16, #tpu.memory_space<vmem>>, vector<512x128xbf16>,
    return
  }
}

module attributes {stable_mosaic.version = 11 : i64} {
  func.func @_conv3x3_relu_kernel(%arg0: i32, %arg1: memref<648x48xbf16, #tpu.memory_space<vmem>>, %arg2: memref<3x48x128xbf16, #tpu.memory_space<vmem>>, %arg3: memref<1x128xf32, #tpu.memory_space<vmem>>, %arg4: memref<128x128xbf16, #tpu.memory_space<vmem>>) attributes {dimension_semantics = [#tpu.dimension_semantics<parallel>], iteration_bounds = array<i64: 5>, scalar_prefetch = 0 : i64, scratch_operands = 0 : i64, tpu.core_type = #tpu.core_type<tc>, window_params = [{pipeline_mode = #tpu.pipeline_mode<synchronous>, transform_indices = @transform_0, window_bounds = array<i64: 648, 48>}, {pipeline_mode = #tpu.pipeline_mode<synchronous>, transform_indices = @transform_1, window_bounds = array<i64: 3, 48, 128>}, {pipeline_mode = #tpu.pipeline_mode<synchronous>, transform_indices = @transform_2, window_bounds = array<i64: 1, 128>}, {transform_indices = @transform_3, window_bounds = array<i64: 128, 128>}]} {
    %c128_i32 = arith.constant 128 : i32
    %0 = arith.muli %arg0, %c128_i32 : i32
    %1 = tpu.assume_multiple %0, 8 : i32
    %2 = arith.index_cast %1 : i32 to index
    %c0 = arith.constant 0 : index
    %3 = vector.load %arg1[%2, %c0] : memref<648x48xbf16, #tpu.memory_space<vmem>>, vector<136x48xbf16>
    %c0_0 = arith.constant 0 : index
    %c0_1 = arith.constant 0 : index
    %c0_2 = arith.constant 0 : index
    %4 = vector.load %arg2[%c0_0, %c0_1, %c0_2] : memref<3x48x128xbf16, #tpu.memory_space<vmem>>, vector<1x48x128xbf16>
    %5 = vector.shape_cast %4 : vector<1x48x128xbf16> to vector<48x128xbf16>
    %cst = arith.constant dense<0.000000e+00> : vector<136x128xf32>
    %6 = tpu.matmul %3, %5, %cst {dimension_numbers = #tpu.dot_dimension_numbers<[1], [0], [0], [1], [0, 0, 1, 1], [], []>} : vector<136x48xbf16>, vector<48x128xbf16>, vector<136x128xf32> -> vector<136x128xf32>
    %7 = vector.extract_strided_slice %6 {offsets = [0, 0], sizes = [128, 128], strides = [1, 1]} : vector<136x128xf32> to vector<128x128xf32>
    %c1 = arith.constant 1 : index
    %c0_3 = arith.constant 0 : index
    %c0_4 = arith.constant 0 : index
    %8 = vector.load %arg2[%c1, %c0_3, %c0_4] : memref<3x48x128xbf16, #tpu.memory_space<vmem>>, vector<1x48x128xbf16>
    %9 = vector.shape_cast %8 : vector<1x48x128xbf16> to vector<48x128xbf16>
    %cst_5 = arith.constant dense<0.000000e+00> : vector<136x128xf32>
    %10 = tpu.matmul %3, %9, %cst_5 {dimension_numbers = #tpu.dot_dimension_numbers<[1], [0], [0], [1], [0, 0, 1, 1], [], []>} : vector<136x48xbf16>, vector<48x128xbf16>, vector<136x128xf32> -> vector<136x128xf32>
    %11 = vector.extract_strided_slice %10 {offsets = [1, 0], sizes = [128, 128], strides = [1, 1]} : vector<136x128xf32> to vector<128x128xf32>
    %12 = arith.addf %7, %11 : vector<128x128xf32>
    %c2 = arith.constant 2 : index
    %c0_6 = arith.constant 0 : index
    %c0_7 = arith.constant 0 : index
    %13 = vector.load %arg2[%c2, %c0_6, %c0_7] : memref<3x48x128xbf16, #tpu.memory_space<vmem>>, vector<1x48x128xbf16>
    %14 = vector.shape_cast %13 : vector<1x48x128xbf16> to vector<48x128xbf16>
    %cst_8 = arith.constant dense<0.000000e+00> : vector<136x128xf32>
    %15 = tpu.matmul %3, %14, %cst_8 {dimension_numbers = #tpu.dot_dimension_numbers<[1], [0], [0], [1], [0, 0, 1, 1], [], []>} : vector<136x48xbf16>, vector<48x128xbf16>, vector<136x128xf32> -> vector<136x128xf32>
    %16 = vector.extract_strided_slice %15 {offsets = [2, 0], sizes = [128, 128], strides = [1, 1]} : vector<136x128xf32> to vector<128x128xf32>
    %17 = arith.addf %12, %16 : vector<128x128xf32>
    %c0_9 = arith.constant 0 : index
    %c0_10 = arith.constant 0 : index
    %18 = vector.load %arg3[%c0_9, %c0_10] : memref<1x128xf32, #tpu.memory_space<vmem>>, vector<1x128xf32>
    %19 = vector.broadcast %18 : vector<1x128xf32> to vector<128x128xf32>
    %20 = arith.addf %17, %19 : vector<128x128xf32>
    %cst_11 = arith.constant 0.000000e+00 : f32
    %21 = vector.broadcast %cst_11 : f32 to vector<128x128xf32>
    %22 = arith.maximumf %20, %21 : vector<128x128xf32>
    %23 = arith.truncf %22 : vector<128x128xf32> to vector<128x128xbf16>
    %c0_12 = arith.constant 0 : index
    %c0_13 = arith.constant 0 : index
    %24 = vector.load %arg4[%c0_12, %c0_13] : memref<128x128xbf16, #tpu.memory_space<vmem>>, vector<128x128xbf16>
    tpu.vector_store %arg4[%c0_12, %c0_13], %23 {strides = array<i32>} : memref<128x128xbf16, #tpu.memory_space<vmem>>, vector<128x128xbf16>,
    return
  }
  func.func @transform_0(%arg0: i32) -> (i32, i32) {
    %c0_i32 = arith.constant 0 : i32
    %c0_i32_0 = arith.constant 0 : i32
    %c0_i32_1 = arith.constant 0 : i32
    return %c0_i32, %c0_i32_0 : i32, i32
  }
  func.func @transform_1(%arg0: i32) -> (i32, i32, i32) {
    %c0_i32 = arith.constant 0 : i32
    %c0_i32_0 = arith.constant 0 : i32
    %c0_i32_1 = arith.constant 0 : i32
    %c0_i32_2 = arith.constant 0 : i32
    return %c0_i32, %c0_i32_0, %c0_i32_1 : i32, i32, i32
  }
  func.func @transform_2(%arg0: i32) -> (i32, i32) {
    %c0_i32 = arith.constant 0 : i32
    %c0_i32_0 = arith.constant 0 : i32
    %c0_i32_1 = arith.constant 0 : i32
    return %c0_i32, %c0_i32_0 : i32, i32
  }
  func.func @transform_3(%arg0: i32) -> (i32, i32) {
    %c0_i32 = arith.constant 0 : i32
    %c0_i32_0 = arith.constant 0 : i32
    return %arg0, %c0_i32 : i32, i32
  }
}

module attributes {stable_mosaic.version = 11 : i64} {
  func.func @_conv3x3_relu_kernel(%arg0: i32, %arg1: memref<648x96xbf16, #tpu.memory_space<vmem>>, %arg2: memref<3x96x128xbf16, #tpu.memory_space<vmem>>, %arg3: memref<1x128xf32, #tpu.memory_space<vmem>>, %arg4: memref<128x128xbf16, #tpu.memory_space<vmem>>) attributes {dimension_semantics = [#tpu.dimension_semantics<parallel>], iteration_bounds = array<i64: 5>, scalar_prefetch = 0 : i64, scratch_operands = 0 : i64, tpu.core_type = #tpu.core_type<tc>, window_params = [{pipeline_mode = #tpu.pipeline_mode<synchronous>, transform_indices = @transform_0, window_bounds = array<i64: 648, 96>}, {pipeline_mode = #tpu.pipeline_mode<synchronous>, transform_indices = @transform_1, window_bounds = array<i64: 3, 96, 128>}, {pipeline_mode = #tpu.pipeline_mode<synchronous>, transform_indices = @transform_2, window_bounds = array<i64: 1, 128>}, {transform_indices = @transform_3, window_bounds = array<i64: 128, 128>}]} {
    %c128_i32 = arith.constant 128 : i32
    %0 = arith.muli %arg0, %c128_i32 : i32
    %1 = tpu.assume_multiple %0, 8 : i32
    %2 = arith.index_cast %1 : i32 to index
    %c0 = arith.constant 0 : index
    %3 = vector.load %arg1[%2, %c0] : memref<648x96xbf16, #tpu.memory_space<vmem>>, vector<136x96xbf16>
    %c0_0 = arith.constant 0 : index
    %c0_1 = arith.constant 0 : index
    %c0_2 = arith.constant 0 : index
    %4 = vector.load %arg2[%c0_0, %c0_1, %c0_2] : memref<3x96x128xbf16, #tpu.memory_space<vmem>>, vector<1x96x128xbf16>
    %5 = vector.shape_cast %4 : vector<1x96x128xbf16> to vector<96x128xbf16>
    %cst = arith.constant dense<0.000000e+00> : vector<136x128xf32>
    %6 = tpu.matmul %3, %5, %cst {dimension_numbers = #tpu.dot_dimension_numbers<[1], [0], [0], [1], [0, 0, 1, 1], [], []>} : vector<136x96xbf16>, vector<96x128xbf16>, vector<136x128xf32> -> vector<136x128xf32>
    %7 = vector.extract_strided_slice %6 {offsets = [0, 0], sizes = [128, 128], strides = [1, 1]} : vector<136x128xf32> to vector<128x128xf32>
    %c1 = arith.constant 1 : index
    %c0_3 = arith.constant 0 : index
    %c0_4 = arith.constant 0 : index
    %8 = vector.load %arg2[%c1, %c0_3, %c0_4] : memref<3x96x128xbf16, #tpu.memory_space<vmem>>, vector<1x96x128xbf16>
    %9 = vector.shape_cast %8 : vector<1x96x128xbf16> to vector<96x128xbf16>
    %cst_5 = arith.constant dense<0.000000e+00> : vector<136x128xf32>
    %10 = tpu.matmul %3, %9, %cst_5 {dimension_numbers = #tpu.dot_dimension_numbers<[1], [0], [0], [1], [0, 0, 1, 1], [], []>} : vector<136x96xbf16>, vector<96x128xbf16>, vector<136x128xf32> -> vector<136x128xf32>
    %11 = vector.extract_strided_slice %10 {offsets = [1, 0], sizes = [128, 128], strides = [1, 1]} : vector<136x128xf32> to vector<128x128xf32>
    %12 = arith.addf %7, %11 : vector<128x128xf32>
    %c2 = arith.constant 2 : index
    %c0_6 = arith.constant 0 : index
    %c0_7 = arith.constant 0 : index
    %13 = vector.load %arg2[%c2, %c0_6, %c0_7] : memref<3x96x128xbf16, #tpu.memory_space<vmem>>, vector<1x96x128xbf16>
    %14 = vector.shape_cast %13 : vector<1x96x128xbf16> to vector<96x128xbf16>
    %cst_8 = arith.constant dense<0.000000e+00> : vector<136x128xf32>
    %15 = tpu.matmul %3, %14, %cst_8 {dimension_numbers = #tpu.dot_dimension_numbers<[1], [0], [0], [1], [0, 0, 1, 1], [], []>} : vector<136x96xbf16>, vector<96x128xbf16>, vector<136x128xf32> -> vector<136x128xf32>
    %16 = vector.extract_strided_slice %15 {offsets = [2, 0], sizes = [128, 128], strides = [1, 1]} : vector<136x128xf32> to vector<128x128xf32>
    %17 = arith.addf %12, %16 : vector<128x128xf32>
    %c0_9 = arith.constant 0 : index
    %c0_10 = arith.constant 0 : index
    %18 = vector.load %arg3[%c0_9, %c0_10] : memref<1x128xf32, #tpu.memory_space<vmem>>, vector<1x128xf32>
    %19 = vector.broadcast %18 : vector<1x128xf32> to vector<128x128xf32>
    %20 = arith.addf %17, %19 : vector<128x128xf32>
    %cst_11 = arith.constant 0.000000e+00 : f32
    %21 = vector.broadcast %cst_11 : f32 to vector<128x128xf32>
    %22 = arith.maximumf %20, %21 : vector<128x128xf32>
    %23 = arith.truncf %22 : vector<128x128xf32> to vector<128x128xbf16>
    %c0_12 = arith.constant 0 : index
    %c0_13 = arith.constant 0 : index
    %24 = vector.load %arg4[%c0_12, %c0_13] : memref<128x128xbf16, #tpu.memory_space<vmem>>, vector<128x128xbf16>
    tpu.vector_store %arg4[%c0_12, %c0_13], %23 {strides = array<i32>} : memref<128x128xbf16, #tpu.memory_space<vmem>>, vector<128x128xbf16>,
    return
  }
  func.func @transform_0(%arg0: i32) -> (i32, i32) {
    %c0_i32 = arith.constant 0 : i32
    %c0_i32_0 = arith.constant 0 : i32
    %c0_i32_1 = arith.constant 0 : i32
    return %c0_i32, %c0_i32_0 : i32, i32
  }
  func.func @transform_1(%arg0: i32) -> (i32, i32, i32) {
    %c0_i32 = arith.constant 0 : i32
    %c0_i32_0 = arith.constant 0 : i32
    %c0_i32_1 = arith.constant 0 : i32
    %c0_i32_2 = arith.constant 0 : i32
    return %c0_i32, %c0_i32_0, %c0_i32_1 : i32, i32, i32
  }
  func.func @transform_2(%arg0: i32) -> (i32, i32) {
    %c0_i32 = arith.constant 0 : i32
    %c0_i32_0 = arith.constant 0 : i32
    %c0_i32_1 = arith.constant 0 : i32
    return %c0_i32, %c0_i32_0 : i32, i32
  }
  func.func @transform_3(%arg0: i32) -> (i32, i32) {
    %c0_i32 = arith.constant 0 : i32
    %c0_i32_0 = arith.constant 0 : i32
    return %arg0, %c0_i32 : i32, i32
  }
}

module attributes {stable_mosaic.version = 11 : i64} {
  func.func @_maxpool2x2_kernel(%arg0: memref<128x128xbf16, #tpu.memory_space<vmem>>, %arg1: memref<128x128xbf16, #tpu.memory_space<vmem>>, %arg2: memref<128x128xbf16, #tpu.memory_space<vmem>>, %arg3: memref<128x128xbf16, #tpu.memory_space<vmem>>, %arg4: memref<128x128xbf16, #tpu.memory_space<vmem>>) attributes {dimension_semantics = [], scalar_prefetch = 0 : i64, scratch_operands = 0 : i64, tpu.core_type = #tpu.core_type<tc>} {
    %c0 = arith.constant 0 : index
    %c0_0 = arith.constant 0 : index
    %0 = vector.load %arg0[%c0, %c0_0] : memref<128x128xbf16, #tpu.memory_space<vmem>>, vector<128x128xbf16>
    %c0_1 = arith.constant 0 : index
    %c0_2 = arith.constant 0 : index
    %1 = vector.load %arg1[%c0_1, %c0_2] : memref<128x128xbf16, #tpu.memory_space<vmem>>, vector<128x128xbf16>
    %2 = arith.maximumf %0, %1 : vector<128x128xbf16>
    %c0_3 = arith.constant 0 : index
    %c0_4 = arith.constant 0 : index
    %3 = vector.load %arg2[%c0_3, %c0_4] : memref<128x128xbf16, #tpu.memory_space<vmem>>, vector<128x128xbf16>
    %c0_5 = arith.constant 0 : index
    %c0_6 = arith.constant 0 : index
    %4 = vector.load %arg3[%c0_5, %c0_6] : memref<128x128xbf16, #tpu.memory_space<vmem>>, vector<128x128xbf16>
    %5 = arith.maximumf %3, %4 : vector<128x128xbf16>
    %6 = arith.maximumf %2, %5 : vector<128x128xbf16>
    %c0_7 = arith.constant 0 : index
    %c0_8 = arith.constant 0 : index
    %7 = vector.load %arg4[%c0_7, %c0_8] : memref<128x128xbf16, #tpu.memory_space<vmem>>, vector<128x128xbf16>
    tpu.vector_store %arg4[%c0_7, %c0_8], %6 {strides = array<i32>} : memref<128x128xbf16, #tpu.memory_space<vmem>>, vector<128x128xbf16>,
    return
  }
}

module attributes {stable_mosaic.version = 11 : i64} {
  func.func @_conv3x3_relu_kernel(%arg0: i32, %arg1: memref<264x96xbf16, #tpu.memory_space<vmem>>, %arg2: memref<3x96x128xbf16, #tpu.memory_space<vmem>>, %arg3: memref<1x128xf32, #tpu.memory_space<vmem>>, %arg4: memref<128x128xbf16, #tpu.memory_space<vmem>>) attributes {dimension_semantics = [#tpu.dimension_semantics<parallel>], iteration_bounds = array<i64: 2>, scalar_prefetch = 0 : i64, scratch_operands = 0 : i64, tpu.core_type = #tpu.core_type<tc>, window_params = [{pipeline_mode = #tpu.pipeline_mode<synchronous>, transform_indices = @transform_0, window_bounds = array<i64: 264, 96>}, {pipeline_mode = #tpu.pipeline_mode<synchronous>, transform_indices = @transform_1, window_bounds = array<i64: 3, 96, 128>}, {pipeline_mode = #tpu.pipeline_mode<synchronous>, transform_indices = @transform_2, window_bounds = array<i64: 1, 128>}, {transform_indices = @transform_3, window_bounds = array<i64: 128, 128>}]} {
    %c128_i32 = arith.constant 128 : i32
    %0 = arith.muli %arg0, %c128_i32 : i32
    %1 = tpu.assume_multiple %0, 8 : i32
    %2 = arith.index_cast %1 : i32 to index
    %c0 = arith.constant 0 : index
    %3 = vector.load %arg1[%2, %c0] : memref<264x96xbf16, #tpu.memory_space<vmem>>, vector<136x96xbf16>
    %c0_0 = arith.constant 0 : index
    %c0_1 = arith.constant 0 : index
    %c0_2 = arith.constant 0 : index
    %4 = vector.load %arg2[%c0_0, %c0_1, %c0_2] : memref<3x96x128xbf16, #tpu.memory_space<vmem>>, vector<1x96x128xbf16>
    %5 = vector.shape_cast %4 : vector<1x96x128xbf16> to vector<96x128xbf16>
    %cst = arith.constant dense<0.000000e+00> : vector<136x128xf32>
    %6 = tpu.matmul %3, %5, %cst {dimension_numbers = #tpu.dot_dimension_numbers<[1], [0], [0], [1], [0, 0, 1, 1], [], []>} : vector<136x96xbf16>, vector<96x128xbf16>, vector<136x128xf32> -> vector<136x128xf32>
    %7 = vector.extract_strided_slice %6 {offsets = [0, 0], sizes = [128, 128], strides = [1, 1]} : vector<136x128xf32> to vector<128x128xf32>
    %c1 = arith.constant 1 : index
    %c0_3 = arith.constant 0 : index
    %c0_4 = arith.constant 0 : index
    %8 = vector.load %arg2[%c1, %c0_3, %c0_4] : memref<3x96x128xbf16, #tpu.memory_space<vmem>>, vector<1x96x128xbf16>
    %9 = vector.shape_cast %8 : vector<1x96x128xbf16> to vector<96x128xbf16>
    %cst_5 = arith.constant dense<0.000000e+00> : vector<136x128xf32>
    %10 = tpu.matmul %3, %9, %cst_5 {dimension_numbers = #tpu.dot_dimension_numbers<[1], [0], [0], [1], [0, 0, 1, 1], [], []>} : vector<136x96xbf16>, vector<96x128xbf16>, vector<136x128xf32> -> vector<136x128xf32>
    %11 = vector.extract_strided_slice %10 {offsets = [1, 0], sizes = [128, 128], strides = [1, 1]} : vector<136x128xf32> to vector<128x128xf32>
    %12 = arith.addf %7, %11 : vector<128x128xf32>
    %c2 = arith.constant 2 : index
    %c0_6 = arith.constant 0 : index
    %c0_7 = arith.constant 0 : index
    %13 = vector.load %arg2[%c2, %c0_6, %c0_7] : memref<3x96x128xbf16, #tpu.memory_space<vmem>>, vector<1x96x128xbf16>
    %14 = vector.shape_cast %13 : vector<1x96x128xbf16> to vector<96x128xbf16>
    %cst_8 = arith.constant dense<0.000000e+00> : vector<136x128xf32>
    %15 = tpu.matmul %3, %14, %cst_8 {dimension_numbers = #tpu.dot_dimension_numbers<[1], [0], [0], [1], [0, 0, 1, 1], [], []>} : vector<136x96xbf16>, vector<96x128xbf16>, vector<136x128xf32> -> vector<136x128xf32>
    %16 = vector.extract_strided_slice %15 {offsets = [2, 0], sizes = [128, 128], strides = [1, 1]} : vector<136x128xf32> to vector<128x128xf32>
    %17 = arith.addf %12, %16 : vector<128x128xf32>
    %c0_9 = arith.constant 0 : index
    %c0_10 = arith.constant 0 : index
    %18 = vector.load %arg3[%c0_9, %c0_10] : memref<1x128xf32, #tpu.memory_space<vmem>>, vector<1x128xf32>
    %19 = vector.broadcast %18 : vector<1x128xf32> to vector<128x128xf32>
    %20 = arith.addf %17, %19 : vector<128x128xf32>
    %cst_11 = arith.constant 0.000000e+00 : f32
    %21 = vector.broadcast %cst_11 : f32 to vector<128x128xf32>
    %22 = arith.maximumf %20, %21 : vector<128x128xf32>
    %23 = arith.truncf %22 : vector<128x128xf32> to vector<128x128xbf16>
    %c0_12 = arith.constant 0 : index
    %c0_13 = arith.constant 0 : index
    %24 = vector.load %arg4[%c0_12, %c0_13] : memref<128x128xbf16, #tpu.memory_space<vmem>>, vector<128x128xbf16>
    tpu.vector_store %arg4[%c0_12, %c0_13], %23 {strides = array<i32>} : memref<128x128xbf16, #tpu.memory_space<vmem>>, vector<128x128xbf16>,
    return
  }
  func.func @transform_0(%arg0: i32) -> (i32, i32) {
    %c0_i32 = arith.constant 0 : i32
    %c0_i32_0 = arith.constant 0 : i32
    %c0_i32_1 = arith.constant 0 : i32
    return %c0_i32, %c0_i32_0 : i32, i32
  }
  func.func @transform_1(%arg0: i32) -> (i32, i32, i32) {
    %c0_i32 = arith.constant 0 : i32
    %c0_i32_0 = arith.constant 0 : i32
    %c0_i32_1 = arith.constant 0 : i32
    %c0_i32_2 = arith.constant 0 : i32
    return %c0_i32, %c0_i32_0, %c0_i32_1 : i32, i32, i32
  }
  func.func @transform_2(%arg0: i32) -> (i32, i32) {
    %c0_i32 = arith.constant 0 : i32
    %c0_i32_0 = arith.constant 0 : i32
    %c0_i32_1 = arith.constant 0 : i32
    return %c0_i32, %c0_i32_0 : i32, i32
  }
  func.func @transform_3(%arg0: i32) -> (i32, i32) {
    %c0_i32 = arith.constant 0 : i32
    %c0_i32_0 = arith.constant 0 : i32
    return %arg0, %c0_i32 : i32, i32
  }
}

module attributes {stable_mosaic.version = 11 : i64} {
  func.func @_maxpool2x2_kernel(%arg0: memref<32x128xbf16, #tpu.memory_space<vmem>>, %arg1: memref<32x128xbf16, #tpu.memory_space<vmem>>, %arg2: memref<32x128xbf16, #tpu.memory_space<vmem>>, %arg3: memref<32x128xbf16, #tpu.memory_space<vmem>>, %arg4: memref<32x128xbf16, #tpu.memory_space<vmem>>) attributes {dimension_semantics = [], scalar_prefetch = 0 : i64, scratch_operands = 0 : i64, tpu.core_type = #tpu.core_type<tc>} {
    %c0 = arith.constant 0 : index
    %c0_0 = arith.constant 0 : index
    %0 = vector.load %arg0[%c0, %c0_0] : memref<32x128xbf16, #tpu.memory_space<vmem>>, vector<32x128xbf16>
    %c0_1 = arith.constant 0 : index
    %c0_2 = arith.constant 0 : index
    %1 = vector.load %arg1[%c0_1, %c0_2] : memref<32x128xbf16, #tpu.memory_space<vmem>>, vector<32x128xbf16>
    %2 = arith.maximumf %0, %1 : vector<32x128xbf16>
    %c0_3 = arith.constant 0 : index
    %c0_4 = arith.constant 0 : index
    %3 = vector.load %arg2[%c0_3, %c0_4] : memref<32x128xbf16, #tpu.memory_space<vmem>>, vector<32x128xbf16>
    %c0_5 = arith.constant 0 : index
    %c0_6 = arith.constant 0 : index
    %4 = vector.load %arg3[%c0_5, %c0_6] : memref<32x128xbf16, #tpu.memory_space<vmem>>, vector<32x128xbf16>
    %5 = arith.maximumf %3, %4 : vector<32x128xbf16>
    %6 = arith.maximumf %2, %5 : vector<32x128xbf16>
    %c0_7 = arith.constant 0 : index
    %c0_8 = arith.constant 0 : index
    %7 = vector.load %arg4[%c0_7, %c0_8] : memref<32x128xbf16, #tpu.memory_space<vmem>>, vector<32x128xbf16>
    tpu.vector_store %arg4[%c0_7, %c0_8], %6 {strides = array<i32>} : memref<32x128xbf16, #tpu.memory_space<vmem>>, vector<32x128xbf16>,
    return
  }
}

module attributes {stable_mosaic.version = 11 : i64} {
  func.func @_conv3x3_relu_kernel(%arg0: i32, %arg1: memref<264x192xbf16, #tpu.memory_space<vmem>>, %arg2: memref<3x192x128xbf16, #tpu.memory_space<vmem>>, %arg3: memref<1x128xf32, #tpu.memory_space<vmem>>, %arg4: memref<128x128xbf16, #tpu.memory_space<vmem>>) attributes {dimension_semantics = [#tpu.dimension_semantics<parallel>], iteration_bounds = array<i64: 2>, scalar_prefetch = 0 : i64, scratch_operands = 0 : i64, tpu.core_type = #tpu.core_type<tc>, window_params = [{pipeline_mode = #tpu.pipeline_mode<synchronous>, transform_indices = @transform_0, window_bounds = array<i64: 264, 192>}, {pipeline_mode = #tpu.pipeline_mode<synchronous>, transform_indices = @transform_1, window_bounds = array<i64: 3, 192, 128>}, {pipeline_mode = #tpu.pipeline_mode<synchronous>, transform_indices = @transform_2, window_bounds = array<i64: 1, 128>}, {transform_indices = @transform_3, window_bounds = array<i64: 128, 128>}]} {
    %c128_i32 = arith.constant 128 : i32
    %0 = arith.muli %arg0, %c128_i32 : i32
    %1 = tpu.assume_multiple %0, 8 : i32
    %2 = arith.index_cast %1 : i32 to index
    %c0 = arith.constant 0 : index
    %3 = vector.load %arg1[%2, %c0] : memref<264x192xbf16, #tpu.memory_space<vmem>>, vector<136x192xbf16>
    %c0_0 = arith.constant 0 : index
    %c0_1 = arith.constant 0 : index
    %c0_2 = arith.constant 0 : index
    %4 = vector.load %arg2[%c0_0, %c0_1, %c0_2] : memref<3x192x128xbf16, #tpu.memory_space<vmem>>, vector<1x192x128xbf16>
    %5 = vector.shape_cast %4 : vector<1x192x128xbf16> to vector<192x128xbf16>
    %cst = arith.constant dense<0.000000e+00> : vector<136x128xf32>
    %6 = tpu.matmul %3, %5, %cst {dimension_numbers = #tpu.dot_dimension_numbers<[1], [0], [0], [1], [0, 0, 1, 1], [], []>} : vector<136x192xbf16>, vector<192x128xbf16>, vector<136x128xf32> -> vector<136x128xf32>
    %7 = vector.extract_strided_slice %6 {offsets = [0, 0], sizes = [128, 128], strides = [1, 1]} : vector<136x128xf32> to vector<128x128xf32>
    %c1 = arith.constant 1 : index
    %c0_3 = arith.constant 0 : index
    %c0_4 = arith.constant 0 : index
    %8 = vector.load %arg2[%c1, %c0_3, %c0_4] : memref<3x192x128xbf16, #tpu.memory_space<vmem>>, vector<1x192x128xbf16>
    %9 = vector.shape_cast %8 : vector<1x192x128xbf16> to vector<192x128xbf16>
    %cst_5 = arith.constant dense<0.000000e+00> : vector<136x128xf32>
    %10 = tpu.matmul %3, %9, %cst_5 {dimension_numbers = #tpu.dot_dimension_numbers<[1], [0], [0], [1], [0, 0, 1, 1], [], []>} : vector<136x192xbf16>, vector<192x128xbf16>, vector<136x128xf32> -> vector<136x128xf32>
    %11 = vector.extract_strided_slice %10 {offsets = [1, 0], sizes = [128, 128], strides = [1, 1]} : vector<136x128xf32> to vector<128x128xf32>
    %12 = arith.addf %7, %11 : vector<128x128xf32>
    %c2 = arith.constant 2 : index
    %c0_6 = arith.constant 0 : index
    %c0_7 = arith.constant 0 : index
    %13 = vector.load %arg2[%c2, %c0_6, %c0_7] : memref<3x192x128xbf16, #tpu.memory_space<vmem>>, vector<1x192x128xbf16>
    %14 = vector.shape_cast %13 : vector<1x192x128xbf16> to vector<192x128xbf16>
    %cst_8 = arith.constant dense<0.000000e+00> : vector<136x128xf32>
    %15 = tpu.matmul %3, %14, %cst_8 {dimension_numbers = #tpu.dot_dimension_numbers<[1], [0], [0], [1], [0, 0, 1, 1], [], []>} : vector<136x192xbf16>, vector<192x128xbf16>, vector<136x128xf32> -> vector<136x128xf32>
    %16 = vector.extract_strided_slice %15 {offsets = [2, 0], sizes = [128, 128], strides = [1, 1]} : vector<136x128xf32> to vector<128x128xf32>
    %17 = arith.addf %12, %16 : vector<128x128xf32>
    %c0_9 = arith.constant 0 : index
    %c0_10 = arith.constant 0 : index
    %18 = vector.load %arg3[%c0_9, %c0_10] : memref<1x128xf32, #tpu.memory_space<vmem>>, vector<1x128xf32>
    %19 = vector.broadcast %18 : vector<1x128xf32> to vector<128x128xf32>
    %20 = arith.addf %17, %19 : vector<128x128xf32>
    %cst_11 = arith.constant 0.000000e+00 : f32
    %21 = vector.broadcast %cst_11 : f32 to vector<128x128xf32>
    %22 = arith.maximumf %20, %21 : vector<128x128xf32>
    %23 = arith.truncf %22 : vector<128x128xf32> to vector<128x128xbf16>
    %c0_12 = arith.constant 0 : index
    %c0_13 = arith.constant 0 : index
    %24 = vector.load %arg4[%c0_12, %c0_13] : memref<128x128xbf16, #tpu.memory_space<vmem>>, vector<128x128xbf16>
    tpu.vector_store %arg4[%c0_12, %c0_13], %23 {strides = array<i32>} : memref<128x128xbf16, #tpu.memory_space<vmem>>, vector<128x128xbf16>,
    return
  }
  func.func @transform_0(%arg0: i32) -> (i32, i32) {
    %c0_i32 = arith.constant 0 : i32
    %c0_i32_0 = arith.constant 0 : i32
    %c0_i32_1 = arith.constant 0 : i32
    return %c0_i32, %c0_i32_0 : i32, i32
  }
  func.func @transform_1(%arg0: i32) -> (i32, i32, i32) {
    %c0_i32 = arith.constant 0 : i32
    %c0_i32_0 = arith.constant 0 : i32
    %c0_i32_1 = arith.constant 0 : i32
    %c0_i32_2 = arith.constant 0 : i32
    return %c0_i32, %c0_i32_0, %c0_i32_1 : i32, i32, i32
  }
  func.func @transform_2(%arg0: i32) -> (i32, i32) {
    %c0_i32 = arith.constant 0 : i32
    %c0_i32_0 = arith.constant 0 : i32
    %c0_i32_1 = arith.constant 0 : i32
    return %c0_i32, %c0_i32_0 : i32, i32
  }
  func.func @transform_3(%arg0: i32) -> (i32, i32) {
    %c0_i32 = arith.constant 0 : i32
    %c0_i32_0 = arith.constant 0 : i32
    return %arg0, %c0_i32 : i32, i32
  }
}

module attributes {stable_mosaic.version = 11 : i64} {
  func.func @_conv3x3_relu_kernel(%arg0: i32, %arg1: memref<56x192xbf16, #tpu.memory_space<vmem>>, %arg2: memref<3x192x128xbf16, #tpu.memory_space<vmem>>, %arg3: memref<1x128xf32, #tpu.memory_space<vmem>>, %arg4: memref<48x128xbf16, #tpu.memory_space<vmem>>) attributes {dimension_semantics = [#tpu.dimension_semantics<parallel>], iteration_bounds = array<i64: 1>, scalar_prefetch = 0 : i64, scratch_operands = 0 : i64, tpu.core_type = #tpu.core_type<tc>, window_params = [{pipeline_mode = #tpu.pipeline_mode<synchronous>, transform_indices = @transform_0, window_bounds = array<i64: 56, 192>}, {pipeline_mode = #tpu.pipeline_mode<synchronous>, transform_indices = @transform_1, window_bounds = array<i64: 3, 192, 128>}, {pipeline_mode = #tpu.pipeline_mode<synchronous>, transform_indices = @transform_2, window_bounds = array<i64: 1, 128>}, {transform_indices = @transform_3, window_bounds = array<i64: 48, 128>}]} {
    %c48_i32 = arith.constant 48 : i32
    %0 = arith.muli %arg0, %c48_i32 : i32
    %1 = tpu.assume_multiple %0, 8 : i32
    %2 = arith.index_cast %1 : i32 to index
    %c0 = arith.constant 0 : index
    %3 = vector.load %arg1[%2, %c0] : memref<56x192xbf16, #tpu.memory_space<vmem>>, vector<56x192xbf16>
    %c0_0 = arith.constant 0 : index
    %c0_1 = arith.constant 0 : index
    %c0_2 = arith.constant 0 : index
    %4 = vector.load %arg2[%c0_0, %c0_1, %c0_2] : memref<3x192x128xbf16, #tpu.memory_space<vmem>>, vector<1x192x128xbf16>
    %5 = vector.shape_cast %4 : vector<1x192x128xbf16> to vector<192x128xbf16>
    %cst = arith.constant dense<0.000000e+00> : vector<56x128xf32>
    %6 = tpu.matmul %3, %5, %cst {dimension_numbers = #tpu.dot_dimension_numbers<[1], [0], [0], [1], [0, 0, 1, 1], [], []>} : vector<56x192xbf16>, vector<192x128xbf16>, vector<56x128xf32> -> vector<56x128xf32>
    %7 = vector.extract_strided_slice %6 {offsets = [0, 0], sizes = [48, 128], strides = [1, 1]} : vector<56x128xf32> to vector<48x128xf32>
    %c1 = arith.constant 1 : index
    %c0_3 = arith.constant 0 : index
    %c0_4 = arith.constant 0 : index
    %8 = vector.load %arg2[%c1, %c0_3, %c0_4] : memref<3x192x128xbf16, #tpu.memory_space<vmem>>, vector<1x192x128xbf16>
    %9 = vector.shape_cast %8 : vector<1x192x128xbf16> to vector<192x128xbf16>
    %cst_5 = arith.constant dense<0.000000e+00> : vector<56x128xf32>
    %10 = tpu.matmul %3, %9, %cst_5 {dimension_numbers = #tpu.dot_dimension_numbers<[1], [0], [0], [1], [0, 0, 1, 1], [], []>} : vector<56x192xbf16>, vector<192x128xbf16>, vector<56x128xf32> -> vector<56x128xf32>
    %11 = vector.extract_strided_slice %10 {offsets = [1, 0], sizes = [48, 128], strides = [1, 1]} : vector<56x128xf32> to vector<48x128xf32>
    %12 = arith.addf %7, %11 : vector<48x128xf32>
    %c2 = arith.constant 2 : index
    %c0_6 = arith.constant 0 : index
    %c0_7 = arith.constant 0 : index
    %13 = vector.load %arg2[%c2, %c0_6, %c0_7] : memref<3x192x128xbf16, #tpu.memory_space<vmem>>, vector<1x192x128xbf16>
    %14 = vector.shape_cast %13 : vector<1x192x128xbf16> to vector<192x128xbf16>
    %cst_8 = arith.constant dense<0.000000e+00> : vector<56x128xf32>
    %15 = tpu.matmul %3, %14, %cst_8 {dimension_numbers = #tpu.dot_dimension_numbers<[1], [0], [0], [1], [0, 0, 1, 1], [], []>} : vector<56x192xbf16>, vector<192x128xbf16>, vector<56x128xf32> -> vector<56x128xf32>
    %16 = vector.extract_strided_slice %15 {offsets = [2, 0], sizes = [48, 128], strides = [1, 1]} : vector<56x128xf32> to vector<48x128xf32>
    %17 = arith.addf %12, %16 : vector<48x128xf32>
    %c0_9 = arith.constant 0 : index
    %c0_10 = arith.constant 0 : index
    %18 = vector.load %arg3[%c0_9, %c0_10] : memref<1x128xf32, #tpu.memory_space<vmem>>, vector<1x128xf32>
    %19 = vector.broadcast %18 : vector<1x128xf32> to vector<48x128xf32>
    %20 = arith.addf %17, %19 : vector<48x128xf32>
    %cst_11 = arith.constant 0.000000e+00 : f32
    %21 = vector.broadcast %cst_11 : f32 to vector<48x128xf32>
    %22 = arith.maximumf %20, %21 : vector<48x128xf32>
    %23 = arith.truncf %22 : vector<48x128xf32> to vector<48x128xbf16>
    %c0_12 = arith.constant 0 : index
    %c0_13 = arith.constant 0 : index
    %24 = vector.load %arg4[%c0_12, %c0_13] : memref<48x128xbf16, #tpu.memory_space<vmem>>, vector<48x128xbf16>
    tpu.vector_store %arg4[%c0_12, %c0_13], %23 {strides = array<i32>} : memref<48x128xbf16, #tpu.memory_space<vmem>>, vector<48x128xbf16>,
    return
  }
  func.func @transform_0(%arg0: i32) -> (i32, i32) {
    %c0_i32 = arith.constant 0 : i32
    %c0_i32_0 = arith.constant 0 : i32
    %c0_i32_1 = arith.constant 0 : i32
    return %c0_i32, %c0_i32_0 : i32, i32
  }
  func.func @transform_1(%arg0: i32) -> (i32, i32, i32) {
    %c0_i32 = arith.constant 0 : i32
    %c0_i32_0 = arith.constant 0 : i32
    %c0_i32_1 = arith.constant 0 : i32
    %c0_i32_2 = arith.constant 0 : i32
    return %c0_i32, %c0_i32_0, %c0_i32_1 : i32, i32, i32
  }
  func.func @transform_2(%arg0: i32) -> (i32, i32) {
    %c0_i32 = arith.constant 0 : i32
    %c0_i32_0 = arith.constant 0 : i32
    %c0_i32_1 = arith.constant 0 : i32
    return %c0_i32, %c0_i32_0 : i32, i32
  }
  func.func @transform_3(%arg0: i32) -> (i32, i32) {
    %c0_i32 = arith.constant 0 : i32
    %c0_i32_0 = arith.constant 0 : i32
    return %arg0, %c0_i32 : i32, i32
  }
}

module attributes {stable_mosaic.version = 11 : i64} {
  func.func @_maxpool2x2_kernel(%arg0: memref<8x128xbf16, #tpu.memory_space<vmem>>, %arg1: memref<8x128xbf16, #tpu.memory_space<vmem>>, %arg2: memref<8x128xbf16, #tpu.memory_space<vmem>>, %arg3: memref<8x128xbf16, #tpu.memory_space<vmem>>, %arg4: memref<8x128xbf16, #tpu.memory_space<vmem>>) attributes {dimension_semantics = [], scalar_prefetch = 0 : i64, scratch_operands = 0 : i64, tpu.core_type = #tpu.core_type<tc>} {
    %c0 = arith.constant 0 : index
    %c0_0 = arith.constant 0 : index
    %0 = vector.load %arg0[%c0, %c0_0] : memref<8x128xbf16, #tpu.memory_space<vmem>>, vector<8x128xbf16>
    %c0_1 = arith.constant 0 : index
    %c0_2 = arith.constant 0 : index
    %1 = vector.load %arg1[%c0_1, %c0_2] : memref<8x128xbf16, #tpu.memory_space<vmem>>, vector<8x128xbf16>
    %2 = arith.maximumf %0, %1 : vector<8x128xbf16>
    %c0_3 = arith.constant 0 : index
    %c0_4 = arith.constant 0 : index
    %3 = vector.load %arg2[%c0_3, %c0_4] : memref<8x128xbf16, #tpu.memory_space<vmem>>, vector<8x128xbf16>
    %c0_5 = arith.constant 0 : index
    %c0_6 = arith.constant 0 : index
    %4 = vector.load %arg3[%c0_5, %c0_6] : memref<8x128xbf16, #tpu.memory_space<vmem>>, vector<8x128xbf16>
    %5 = arith.maximumf %3, %4 : vector<8x128xbf16>
    %6 = arith.maximumf %2, %5 : vector<8x128xbf16>
    %c0_7 = arith.constant 0 : index
    %c0_8 = arith.constant 0 : index
    %7 = vector.load %arg4[%c0_7, %c0_8] : memref<8x128xbf16, #tpu.memory_space<vmem>>, vector<8x128xbf16>
    tpu.vector_store %arg4[%c0_7, %c0_8], %6 {strides = array<i32>} : memref<8x128xbf16, #tpu.memory_space<vmem>>, vector<8x128xbf16>,
    return
  }
}

module attributes {stable_mosaic.version = 11 : i64} {
  func.func @_conv3x3_relu_kernel(%arg0: i32, %arg1: memref<24x192xbf16, #tpu.memory_space<vmem>>, %arg2: memref<3x192x128xbf16, #tpu.memory_space<vmem>>, %arg3: memref<1x128xf32, #tpu.memory_space<vmem>>, %arg4: memref<16x128xbf16, #tpu.memory_space<vmem>>) attributes {dimension_semantics = [#tpu.dimension_semantics<parallel>], iteration_bounds = array<i64: 1>, scalar_prefetch = 0 : i64, scratch_operands = 0 : i64, tpu.core_type = #tpu.core_type<tc>, window_params = [{pipeline_mode = #tpu.pipeline_mode<synchronous>, transform_indices = @transform_0, window_bounds = array<i64: 24, 192>}, {pipeline_mode = #tpu.pipeline_mode<synchronous>, transform_indices = @transform_1, window_bounds = array<i64: 3, 192, 128>}, {pipeline_mode = #tpu.pipeline_mode<synchronous>, transform_indices = @transform_2, window_bounds = array<i64: 1, 128>}, {transform_indices = @transform_3, window_bounds = array<i64: 16, 128>}]} {
    %c16_i32 = arith.constant 16 : i32
    %0 = arith.muli %arg0, %c16_i32 : i32
    %1 = tpu.assume_multiple %0, 8 : i32
    %2 = arith.index_cast %1 : i32 to index
    %c0 = arith.constant 0 : index
    %3 = vector.load %arg1[%2, %c0] : memref<24x192xbf16, #tpu.memory_space<vmem>>, vector<24x192xbf16>
    %c0_0 = arith.constant 0 : index
    %c0_1 = arith.constant 0 : index
    %c0_2 = arith.constant 0 : index
    %4 = vector.load %arg2[%c0_0, %c0_1, %c0_2] : memref<3x192x128xbf16, #tpu.memory_space<vmem>>, vector<1x192x128xbf16>
    %5 = vector.shape_cast %4 : vector<1x192x128xbf16> to vector<192x128xbf16>
    %cst = arith.constant dense<0.000000e+00> : vector<24x128xf32>
    %6 = tpu.matmul %3, %5, %cst {dimension_numbers = #tpu.dot_dimension_numbers<[1], [0], [0], [1], [0, 0, 1, 1], [], []>} : vector<24x192xbf16>, vector<192x128xbf16>, vector<24x128xf32> -> vector<24x128xf32>
    %7 = vector.extract_strided_slice %6 {offsets = [0, 0], sizes = [16, 128], strides = [1, 1]} : vector<24x128xf32> to vector<16x128xf32>
    %c1 = arith.constant 1 : index
    %c0_3 = arith.constant 0 : index
    %c0_4 = arith.constant 0 : index
    %8 = vector.load %arg2[%c1, %c0_3, %c0_4] : memref<3x192x128xbf16, #tpu.memory_space<vmem>>, vector<1x192x128xbf16>
    %9 = vector.shape_cast %8 : vector<1x192x128xbf16> to vector<192x128xbf16>
    %cst_5 = arith.constant dense<0.000000e+00> : vector<24x128xf32>
    %10 = tpu.matmul %3, %9, %cst_5 {dimension_numbers = #tpu.dot_dimension_numbers<[1], [0], [0], [1], [0, 0, 1, 1], [], []>} : vector<24x192xbf16>, vector<192x128xbf16>, vector<24x128xf32> -> vector<24x128xf32>
    %11 = vector.extract_strided_slice %10 {offsets = [1, 0], sizes = [16, 128], strides = [1, 1]} : vector<24x128xf32> to vector<16x128xf32>
    %12 = arith.addf %7, %11 : vector<16x128xf32>
    %c2 = arith.constant 2 : index
    %c0_6 = arith.constant 0 : index
    %c0_7 = arith.constant 0 : index
    %13 = vector.load %arg2[%c2, %c0_6, %c0_7] : memref<3x192x128xbf16, #tpu.memory_space<vmem>>, vector<1x192x128xbf16>
    %14 = vector.shape_cast %13 : vector<1x192x128xbf16> to vector<192x128xbf16>
    %cst_8 = arith.constant dense<0.000000e+00> : vector<24x128xf32>
    %15 = tpu.matmul %3, %14, %cst_8 {dimension_numbers = #tpu.dot_dimension_numbers<[1], [0], [0], [1], [0, 0, 1, 1], [], []>} : vector<24x192xbf16>, vector<192x128xbf16>, vector<24x128xf32> -> vector<24x128xf32>
    %16 = vector.extract_strided_slice %15 {offsets = [2, 0], sizes = [16, 128], strides = [1, 1]} : vector<24x128xf32> to vector<16x128xf32>
    %17 = arith.addf %12, %16 : vector<16x128xf32>
    %c0_9 = arith.constant 0 : index
    %c0_10 = arith.constant 0 : index
    %18 = vector.load %arg3[%c0_9, %c0_10] : memref<1x128xf32, #tpu.memory_space<vmem>>, vector<1x128xf32>
    %19 = vector.broadcast %18 : vector<1x128xf32> to vector<16x128xf32>
    %20 = arith.addf %17, %19 : vector<16x128xf32>
    %cst_11 = arith.constant 0.000000e+00 : f32
    %21 = vector.broadcast %cst_11 : f32 to vector<16x128xf32>
    %22 = arith.maximumf %20, %21 : vector<16x128xf32>
    %23 = arith.truncf %22 : vector<16x128xf32> to vector<16x128xbf16>
    %c0_12 = arith.constant 0 : index
    %c0_13 = arith.constant 0 : index
    %24 = vector.load %arg4[%c0_12, %c0_13] : memref<16x128xbf16, #tpu.memory_space<vmem>>, vector<16x128xbf16>
    tpu.vector_store %arg4[%c0_12, %c0_13], %23 {strides = array<i32>} : memref<16x128xbf16, #tpu.memory_space<vmem>>, vector<16x128xbf16>,
    return
  }
  func.func @transform_0(%arg0: i32) -> (i32, i32) {
    %c0_i32 = arith.constant 0 : i32
    %c0_i32_0 = arith.constant 0 : i32
    %c0_i32_1 = arith.constant 0 : i32
    return %c0_i32, %c0_i32_0 : i32, i32
  }
  func.func @transform_1(%arg0: i32) -> (i32, i32, i32) {
    %c0_i32 = arith.constant 0 : i32
    %c0_i32_0 = arith.constant 0 : i32
    %c0_i32_1 = arith.constant 0 : i32
    %c0_i32_2 = arith.constant 0 : i32
    return %c0_i32, %c0_i32_0, %c0_i32_1 : i32, i32, i32
  }
  func.func @transform_2(%arg0: i32) -> (i32, i32) {
    %c0_i32 = arith.constant 0 : i32
    %c0_i32_0 = arith.constant 0 : i32
    %c0_i32_1 = arith.constant 0 : i32
    return %c0_i32, %c0_i32_0 : i32, i32
  }
  func.func @transform_3(%arg0: i32) -> (i32, i32) {
    %c0_i32 = arith.constant 0 : i32
    %c0_i32_0 = arith.constant 0 : i32
    return %arg0, %c0_i32 : i32, i32
  }
}

module attributes {stable_mosaic.version = 11 : i64} {
  func.func @_head_kernel(%arg0: memref<2x3136xbf16, #tpu.memory_space<vmem>>, %arg1: memref<3136x128xbf16, #tpu.memory_space<vmem>>, %arg2: memref<1x128xf32, #tpu.memory_space<vmem>>, %arg3: memref<128x128xbf16, #tpu.memory_space<vmem>>, %arg4: memref<1x128xf32, #tpu.memory_space<vmem>>, %arg5: memref<128x128xbf16, #tpu.memory_space<vmem>>, %arg6: memref<1x128xf32, #tpu.memory_space<vmem>>, %arg7: memref<2x128xf32, #tpu.memory_space<vmem>>, %arg8: memref<2x128xf32, #tpu.memory_space<vmem>>, %arg9: memref<2x128xf32, #tpu.memory_space<vmem>>) attributes {dimension_semantics = [], scalar_prefetch = 0 : i64, scratch_operands = 0 : i64, tpu.core_type = #tpu.core_type<tc>} {
    %c0 = arith.constant 0 : index
    %c0_0 = arith.constant 0 : index
    %0 = vector.load %arg0[%c0, %c0_0] : memref<2x3136xbf16, #tpu.memory_space<vmem>>, vector<2x3136xbf16>
    %c0_1 = arith.constant 0 : index
    %c0_2 = arith.constant 0 : index
    %1 = vector.load %arg1[%c0_1, %c0_2] : memref<3136x128xbf16, #tpu.memory_space<vmem>>, vector<3136x128xbf16>
    %cst = arith.constant dense<0.000000e+00> : vector<2x128xf32>
    %2 = tpu.matmul %0, %1, %cst {dimension_numbers = #tpu.dot_dimension_numbers<[1], [0], [0], [1], [0, 0, 1, 1], [], []>} : vector<2x3136xbf16>, vector<3136x128xbf16>, vector<2x128xf32> -> vector<2x128xf32>
    %c0_3 = arith.constant 0 : index
    %c0_4 = arith.constant 0 : index
    %3 = vector.load %arg2[%c0_3, %c0_4] : memref<1x128xf32, #tpu.memory_space<vmem>>, vector<1x128xf32>
    %4 = vector.broadcast %3 : vector<1x128xf32> to vector<2x128xf32>
    %5 = arith.addf %2, %4 : vector<2x128xf32>
    %cst_5 = arith.constant 0.000000e+00 : f32
    %6 = vector.broadcast %cst_5 : f32 to vector<2x128xf32>
    %7 = arith.maximumf %5, %6 : vector<2x128xf32>
    %c0_6 = arith.constant 0 : index
    %c0_7 = arith.constant 0 : index
    %8 = vector.load %arg7[%c0_6, %c0_7] : memref<2x128xf32, #tpu.memory_space<vmem>>, vector<2x128xf32>
    tpu.vector_store %arg7[%c0_6, %c0_7], %7 {strides = array<i32>} : memref<2x128xf32, #tpu.memory_space<vmem>>, vector<2x128xf32>,
    %9 = arith.truncf %7 : vector<2x128xf32> to vector<2x128xbf16>
    %c0_8 = arith.constant 0 : index
    %c0_9 = arith.constant 0 : index
    %10 = vector.load %arg3[%c0_8, %c0_9] : memref<128x128xbf16, #tpu.memory_space<vmem>>, vector<128x128xbf16>
    %cst_10 = arith.constant dense<0.000000e+00> : vector<2x128xf32>
    %11 = tpu.matmul %9, %10, %cst_10 {dimension_numbers = #tpu.dot_dimension_numbers<[1], [0], [0], [1], [0, 0, 1, 1], [], []>} : vector<2x128xbf16>, vector<128x128xbf16>, vector<2x128xf32> -> vector<2x128xf32>
    %c0_11 = arith.constant 0 : index
    %c0_12 = arith.constant 0 : index
    %12 = vector.load %arg4[%c0_11, %c0_12] : memref<1x128xf32, #tpu.memory_space<vmem>>, vector<1x128xf32>
    %13 = vector.broadcast %12 : vector<1x128xf32> to vector<2x128xf32>
    %14 = arith.addf %11, %13 : vector<2x128xf32>
    %cst_13 = arith.constant 0.000000e+00 : f32
    %15 = vector.broadcast %cst_13 : f32 to vector<2x128xf32>
    %16 = arith.maximumf %14, %15 : vector<2x128xf32>
    %c0_14 = arith.constant 0 : index
    %c0_15 = arith.constant 0 : index
    %17 = vector.load %arg8[%c0_14, %c0_15] : memref<2x128xf32, #tpu.memory_space<vmem>>, vector<2x128xf32>
    tpu.vector_store %arg8[%c0_14, %c0_15], %16 {strides = array<i32>} : memref<2x128xf32, #tpu.memory_space<vmem>>, vector<2x128xf32>,
    %18 = arith.truncf %16 : vector<2x128xf32> to vector<2x128xbf16>
    %c0_16 = arith.constant 0 : index
    %c0_17 = arith.constant 0 : index
    %19 = vector.load %arg5[%c0_16, %c0_17] : memref<128x128xbf16, #tpu.memory_space<vmem>>, vector<128x128xbf16>
    %cst_18 = arith.constant dense<0.000000e+00> : vector<2x128xf32>
    %20 = tpu.matmul %18, %19, %cst_18 {dimension_numbers = #tpu.dot_dimension_numbers<[1], [0], [0], [1], [0, 0, 1, 1], [], []>} : vector<2x128xbf16>, vector<128x128xbf16>, vector<2x128xf32> -> vector<2x128xf32>
    %c0_19 = arith.constant 0 : index
    %c0_20 = arith.constant 0 : index
    %21 = vector.load %arg6[%c0_19, %c0_20] : memref<1x128xf32, #tpu.memory_space<vmem>>, vector<1x128xf32>
    %22 = vector.broadcast %21 : vector<1x128xf32> to vector<2x128xf32>
    %23 = arith.addf %20, %22 : vector<2x128xf32>
    %cst_21 = arith.constant dense<0xFF800000> : vector<2xf32>
    %24 = vector.multi_reduction <maximumf>, %23, %cst_21 [1] : vector<2x128xf32> to vector<2xf32>
    %25 = vector.shape_cast %24 : vector<2xf32> to vector<2x1xf32>
    %26 = vector.broadcast %25 : vector<2x1xf32> to vector<2x128xf32>
    %27 = arith.subf %23, %26 : vector<2x128xf32>
    %28 = math.exp %27 : vector<2x128xf32>
    %cst_22 = arith.constant dense<0.000000e+00> : vector<2xf32>
    %29 = vector.multi_reduction <add>, %28, %cst_22 [1] : vector<2x128xf32> to vector<2xf32>
    %30 = vector.shape_cast %29 : vector<2xf32> to vector<2x1xf32>
    %31 = vector.broadcast %30 : vector<2x1xf32> to vector<2x128xf32>
    %32 = arith.divf %28, %31 : vector<2x128xf32>
    %c0_23 = arith.constant 0 : index
    %c0_24 = arith.constant 0 : index
    %33 = vector.load %arg9[%c0_23, %c0_24] : memref<2x128xf32, #tpu.memory_space<vmem>>, vector<2x128xf32>
    tpu.vector_store %arg9[%c0_23, %c0_24], %32 {strides = array<i32>} : memref<2x128xf32, #tpu.memory_space<vmem>>, vector<2x128xf32>,
    return
  }
}

</mosaic_0001>

<bundles_post_ra>
// kernel: vgg16_features.19
= control target key start
LH: loop header
LB: loop body
LE: loop exit
PB: predicated region body
PF: predicated region fallthrough
CT: control target
= control target key end

     0   :  { %s905_s12 = smov 0   ;;  %s1068_s0 = inlined_call_operand.vmem [shape: bf16[2184,9], index: 0, kind: input, shape index: {}]   ;;  %s1069_s1 = inlined_call_operand.vmem [shape: bf16[3,9,128], index: 1, kind: input, shape index: {}]   ;;  %s1070_s2 = inlined_call_operand.vmem [shape: f32[1,128], index: 2, kind: input, shape index: {}]   ;;  %s1071_s3 = inlined_call_operand.vmem [shape: bf16[2176,128], index: 3, kind: output, shape index: {}]  }
   0x1 LB: > { %s720_s13 = sadd.s32 4294967295, %s882_s12   ;;  %p723_p0 = scmp.ge.s32.totalorder %s882_s12, 1  ;;  %s882_s12 = sphi %s905_s12, %s13_s12  }
   0x2   : > { %p127_p1 = scmp.lt.s32.totalorder %s882_s12, 18 }
   0x4   : > { %p128_p2 = pnand %p723_p0, %p127_p1 }
   0x5   : > { %s726_s22 = sshll.u32 (!%p128_p2), %s720_s13, 7  ;;  %s724_s5 = sshll.u32 (!%p128_p2), %s720_s13, 4 }
   0x6   : > { %131 = sbr.rel (%p128_p2) target bundleno = 270 (0x10e), region = 32  ;;  %s154_s27 = sshra.s32 (!%p128_p2), %s726_s22, 3 }
   0x7   : > { %s727_s28 = sshll.u32 (!%p128_p2), %s154_s27, 2  ;;  %p147_p3 = scmp.lt.s32.totalorder (!%p128_p2), %s724_s5, 271 }
   0x8   : > { %s936_s4 = scalar_lea.vmem (!%p128_p2), %s1068_s0, %s727_s28 }
   0xb   : > { %v762_v0 = vld [vmem:[%s1069_s1] sm:$0xf]  ;;  %v813_v1 = vld [vmem:[%s1069_s1] sm:$0x10]  ;;  %vm253_vm0 = vcmask 1043456   ;;  %vm254_vm1 = vcmask 1044480  }
   0xc   : > { %v763_v2 = vor.u32 %v813_v1, %v762_v0  ;;  %v777_v3 = vld [vmem:[%s1069_s1 + $0x8] sm:$0xf]  ;;  %v814_v4 = vld [vmem:[%s1069_s1 + $0x8] sm:$0x10]  ;;  %v884_v5 = vmov 65535   ;;  %v805_v15 = vld [vmem:[%s936_s4] sm:$0xff] }
   0xd   : > { %v255_v6 = vsel %vm253_vm0, 4294967295, %v884_v5  ;;  %v778_v7 = vor.u32 %v814_v4, %v777_v3  ;;  %v792_v8 = vld [vmem:[%s1069_s1 + $0x10] sm:$0xf]  ;;  %v815_v9 = vld [vmem:[%s1069_s1 + $0x10] sm:$0x10]  ;;  %v812_v16 = vld [vmem:[%s936_s4 + $0x38] sm:$0xff] }
   0xe   : > { %v256_v10 = vsel %vm254_vm1, %v255_v6, 0  ;;  %v793_v11 = vor.u32 %v815_v9, %v792_v8  ;;  %vm225_vm2 = vcmask 72704   ;;  %v174_v17 = vld [vmem:[%s936_s4 + $0x40] sm:$0xf]  ;;  %v806_v19 = vld [vmem:[%s936_s4 + $0x8] sm:$0xff]  ;;  %v807_v21 = vld [vmem:[%s936_s4 + $0x10] sm:$0xff] }
   0xf   : > { %v258_v12 = vand.u32 %v763_v2, %v256_v10  ;;  %v321_v13 = vand.u32 %v778_v7, %v256_v10  ;;  %v210_v18 = vunpack.c.l.b16 %v174_v17  ;;  %v808_v22 = vld [vmem:[%s936_s4 + $0x18] sm:$0xff]  ;;  %v809_v23 = vld [vmem:[%s936_s4 + $0x20] sm:$0xff]  ;;  %v810_v24 = vld [vmem:[%s936_s4 + $0x28] sm:$0xff]  ;;  %vm393_vm3 = vcmask 1046528   ;;  %s1073_s5 = smov (!%p147_p3, %s724_s5), 271 }
  0x10   : > { %v468_v14 = vand.u32 %v793_v11, %v256_v10  ;;  %v811_v25 = vld [vmem:[%s936_s4 + $0x30] sm:$0xff]  ;;  %vm540_vm4 = vcmask 1045504   ;;  %v986_v47 = vld [vmem:[%s1070_s2] ss:$0 sm:$0xff]  ;;  %s725_s8 = sshll.u32 %s1073_s5, 2 }
  0x11   : > { %267 = vmatpush.bf16.msra.mxu0 %v258_v12  ;;  %863 = vmatpush.bf16.msra.mxu3 %v258_v12  ;;  %v219_v20 = vpack.c.b16 %v210_v18, %v210_v18  ;;  %s994_s11 = scalar_lea.vmem %s1071_s3, %s725_s8 }
  0x12   : > { %330 = vmatpush.bf16.msra.mxu1 %v321_v13  ;;  %477 = vmatpush.bf16.msra.mxu2 %v468_v14 }
  0x14   : > { %764 = vmatmul.msk.bf16.vlgmr.msra.gmra.mxu0 %vm225_vm2, %v805_v15  ;;  %771 = vmatmul.msk.bf16.vlgmr.msra.gmra.mxu3 %vm225_vm2, %v812_v16 }
  0x15   : > { %864 = vmatpush.bf16.msrb.mxu3 %v321_v13  ;;  %779 = vmatmul.msk.bf16.vlgmr.msra.gmra.mxu1 %vm225_vm2, %v805_v15 }
  0x16   : > { %794 = vmatmul.msk.bf16.vlgmr.msra.gmra.mxu2 %vm225_vm2, %v805_v15 }
  0x19   : > { %865 = vmatpush.bf16.msra.mxu3 %v468_v14 }
  0x24   : > { %765 = vmatmul.msk.bf16.gmra.mxu0 %vm225_vm2, %v806_v19  ;;  %772 = vmatmul.msk.bf16.gmra.mxu3 %vm225_vm2, %v219_v20 }
  0x25   : > { %780 = vmatmul.msk.bf16.gmra.mxu1 %vm225_vm2, %v806_v19 }
  0x26   : > { %795 = vmatmul.msk.bf16.gmra.mxu2 %vm225_vm2, %v806_v19 }
  0x34   : > { %766 = vmatmul.msk.bf16.gmra.mxu0 %vm225_vm2, %v807_v21  ;;  %786 = vmatmul.msk.bf16.vlgmr.msrb.gmra.mxu3 %vm225_vm2, %v812_v16 }
  0x35   : > { %781 = vmatmul.msk.bf16.gmra.mxu1 %vm225_vm2, %v807_v21 }
  0x36   : > { %796 = vmatmul.msk.bf16.gmra.mxu2 %vm225_vm2, %v807_v21 }
  0x44   : > { %767 = vmatmul.msk.bf16.gmra.mxu0 %vm225_vm2, %v808_v22  ;;  %787 = vmatmul.msk.bf16.gmra.mxu3 %vm225_vm2, %v219_v20 }
  0x45   : > { %782 = vmatmul.msk.bf16.gmra.mxu1 %vm225_vm2, %v808_v22 }
  0x46   : > { %797 = vmatmul.msk.bf16.gmra.mxu2 %vm225_vm2, %v808_v22 }
  0x54   : > { %768 = vmatmul.msk.bf16.gmra.mxu0 %vm225_vm2, %v809_v23  ;;  %801 = vmatmul.msk.bf16.vlgmr.msra.gmra.mxu3 %vm225_vm2, %v812_v16 }
  0x55   : > { %783 = vmatmul.msk.bf16.gmra.mxu1 %vm225_vm2, %v809_v23 }
  0x56   : > { %798 = vmatmul.msk.bf16.gmra.mxu2 %vm225_vm2, %v809_v23 }
  0x64   : > { %769 = vmatmul.msk.bf16.gmra.mxu0 %vm225_vm2, %v810_v24  ;;  %802 = vmatmul.msk.bf16.gmra.mxu3 %vm225_vm2, %v219_v20 }
  0x65   : > { %784 = vmatmul.msk.bf16.gmra.mxu1 %vm225_vm2, %v810_v24 }
  0x66   : > { %799 = vmatmul.msk.bf16.gmra.mxu2 %vm225_vm2, %v810_v24 }
  0x74   : > { %770 = vmatmul.msk.bf16.gmra.mxu0 %vm225_vm2, %v811_v25 }
  0x75   : > { %785 = vmatmul.msk.bf16.gmra.mxu1 %vm225_vm2, %v811_v25 }
  0x76   : > { %800 = vmatmul.msk.bf16.gmra.mxu2 %vm225_vm2, %v811_v25 }
  0x91   : > { %v269_v26 = vpop.f32.mrf.mxu0 }
  0x92   : > { %v332_v27 = vpop.f32.mrf.mxu1 }
  0x93   : > { %v394_v35 = vrot.slane %v332_v27, 1 }
  0x97   : > { %v974_v28 = vpop.f32.mrf.mxu3 }
  0x99   : > { %v479_v29 = vpop.f32.mrf.mxu2  ;;  %v271_v30 = vpop.f32.mrf.mxu0 }
  0x9a   : > { %v334_v31 = vpop.f32.mrf.mxu1  ;;  %v541_v39 = vrot.slane %v479_v29, 2 }
  0x9b   : > { %v395_v32 = vrot.slane %v334_v31, 1 }
  0x9d   : > { %v396_v40 = vsel %vm393_vm3, %v394_v35, %v395_v32 }
  0x9e   : > { %v443_v43 = vadd.f32 %v396_v40, %v269_v26 }
  0x9f   : > { %v976_v33 = vpop.f32.mrf.mxu3 }
  0xa1   : > { %v481_v34 = vpop.f32.mrf.mxu2  ;;  %v274_v37 = vpop.f32.mrf.mxu0 }
  0xa2   : > { %v542_v36 = vrot.slane %v481_v34, 2  ;;  %v337_v38 = vpop.f32.mrf.mxu1 }
  0xa3   : > { %v397_v41 = vrot.slane %v337_v38, 1 }
  0xa4   : > { %v543_v42 = vsel %vm540_vm4, %v541_v39, %v542_v36 }
  0xa5   : > { %v398_v44 = vsel %vm393_vm3, %v395_v32, %v397_v41  ;;  %v590_v46 = vadd.f32 %v543_v42, %v443_v43 }
  0xa6   : > { %v444_v51 = vadd.f32 %v398_v44, %v271_v30 }
  0xa7   : > { %v309_v45 = vpop.f32.mrf.mxu3  ;;  %v610_v54 = vadd.f32 %v986_v47, %v590_v46 }
  0xa9   : > { %v484_v48 = vpop.f32.mrf.mxu2  ;;  %v276_v50 = vpop.f32.mrf.mxu0  ;;  %v626_v59 = vmax.f32 %v610_v54, 0.0 }
  0xaa   : > { %v544_v49 = vrot.slane %v484_v48, 2  ;;  %v339_v52 = vpop.f32.mrf.mxu1 }
  0xab   : > { %v399_v57 = vrot.slane %v339_v52, 1 }
  0xac   : > { %v545_v53 = vsel %vm540_vm4, %v542_v36, %v544_v49 }
  0xad   : > { %v591_v55 = vadd.f32 %v545_v53, %v444_v51  ;;  %v400_v2 = vsel %vm393_vm3, %v397_v41, %v399_v57 }
  0xae   : > { %v445_v5 = vadd.f32 %v400_v2, %v274_v37 }
  0xaf   : > { %v611_v56 = vadd.f32 %v986_v47, %v591_v55  ;;  %v310_v58 = vpop.f32.mrf.mxu3 }
  0xb1   : > { %v627_v60 = vmax.f32 %v611_v56, 0.0  ;;  %v486_v61 = vpop.f32.mrf.mxu2  ;;  %v279_v63 = vpop.f32.mrf.mxu0 }
  0xb2   : > { %v546_v62 = vrot.slane %v486_v61, 2  ;;  %v342_v1 = vpop.f32.mrf.mxu1 }
  0xb3   : > { %v819_v0 = vpack.c.bf16 %v627_v60, %v626_v59  ;;  %v401_v3 = vrot.slane %v342_v1, 1 }
  0xb4   : > { %v547_v4 = vsel %vm540_vm4, %v544_v49, %v546_v62 }
  0xb5   : > { %820 = vst [vmem:[%s994_s11] sm:$0xff] %v819_v0   ;;  %v402_v6 = vsel %vm393_vm3, %v399_v57, %v401_v3  ;;  %v592_v8 = vadd.f32 %v547_v4, %v445_v5 }
  0xb6   : > { %v446_v12 = vadd.f32 %v402_v6, %v276_v50 }
  0xb7   : > { %v1000_v7 = vpop.f32.mrf.mxu3  ;;  %v612_v15 = vadd.f32 %v986_v47, %v592_v8 }
  0xb8   : > { %v421_v6 = vrot.slane %v1000_v7, 1 }
  0xb9   : > { %v489_v9 = vpop.f32.mrf.mxu2  ;;  %v281_v11 = vpop.f32.mrf.mxu0  ;;  %v628_v20 = vmax.f32 %v612_v15, 0.0 }
  0xba   : > { %v548_v10 = vrot.slane %v489_v9, 2  ;;  %v344_v13 = vpop.f32.mrf.mxu1 }
  0xbb   : > { %v403_v18 = vrot.slane %v344_v13, 1 }
  0xbc   : > { %v549_v14 = vsel %vm540_vm4, %v546_v62, %v548_v10 }
  0xbd   : > { %v593_v16 = vadd.f32 %v549_v14, %v446_v12  ;;  %v404_v27 = vsel %vm393_vm3, %v401_v3, %v403_v18 }
  0xbe   : > { %v447_v31 = vadd.f32 %v404_v27, %v279_v63 }
  0xbf   : > { %v613_v17 = vadd.f32 %v986_v47, %v593_v16  ;;  %v1005_v19 = vpop.f32.mrf.mxu3 }
  0xc0   : > { %v423_v8 = vrot.slane %v1005_v19, 1 }
  0xc1   : > { %v629_v21 = vmax.f32 %v613_v17, 0.0  ;;  %v491_v22 = vpop.f32.mrf.mxu2  ;;  %v284_v24 = vpop.f32.mrf.mxu0 }
  0xc2   : > { %v550_v23 = vrot.slane %v491_v22, 2  ;;  %v347_v26 = vpop.f32.mrf.mxu1 }
  0xc3   : > { %v824_v25 = vpack.c.bf16 %v629_v21, %v628_v20  ;;  %v405_v29 = vrot.slane %v347_v26, 1 }
  0xc4   : > { %v551_v30 = vsel %vm540_vm4, %v548_v10, %v550_v23 }
  0xc5   : > { %856 = vst [vmem:[%s994_s11 + $0x8] sm:$0xff] %v824_v25   ;;  %v406_v32 = vsel %vm393_vm3, %v403_v18, %v405_v29  ;;  %v594_v35 = vadd.f32 %v551_v30, %v447_v31  ;;  %v424_v18 = vsel %vm393_vm3, %v421_v6, %v423_v8 }
  0xc6   : > { %v448_v39 = vadd.f32 %v406_v32, %v281_v11  ;;  %v457_v26 = vadd.f32 %v424_v18, %v974_v28 }
  0xc7   : > { %v372_v34 = vpop.f32.mrf.mxu3  ;;  %v614_v42 = vadd.f32 %v986_v47, %v594_v35 }
  0xc8   : > { %v425_v20 = vrot.slane %v372_v34, 1 }
  0xc9   : > { %v494_v36 = vpop.f32.mrf.mxu2  ;;  %v286_v38 = vpop.f32.mrf.mxu0  ;;  %v630_v48 = vmax.f32 %v614_v42, 0.0 }
  0xca   : > { %v552_v37 = vrot.slane %v494_v36, 2  ;;  %v349_v40 = vpop.f32.mrf.mxu1 }
  0xcb   : > { %v407_v45 = vrot.slane %v349_v40, 1 }
  0xcc   : > { %v553_v41 = vsel %vm540_vm4, %v550_v23, %v552_v37 }
  0xcd   : > { %v595_v43 = vadd.f32 %v553_v41, %v448_v39  ;;  %v408_v55 = vsel %vm393_vm3, %v405_v29, %v407_v45  ;;  %v426_v29 = vsel %vm393_vm3, %v423_v8, %v425_v20 }
  0xce   : > { %v449_v58 = vadd.f32 %v408_v55, %v284_v24 }
  0xcf   : > { %v615_v44 = vadd.f32 %v986_v47, %v595_v43  ;;  %v374_v46 = vpop.f32.mrf.mxu3 }
  0xd1   : > { %v631_v49 = vmax.f32 %v615_v44, 0.0  ;;  %v496_v50 = vpop.f32.mrf.mxu2  ;;  %v289_v52 = vpop.f32.mrf.mxu0 }
  0xd2   : > { %v554_v51 = vrot.slane %v496_v50, 2  ;;  %v352_v54 = vpop.f32.mrf.mxu1 }
  0xd3   : > { %v829_v53 = vpack.c.bf16 %v631_v49, %v630_v48  ;;  %v409_v56 = vrot.slane %v352_v54, 1 }
  0xd4   : > { %v555_v57 = vsel %vm540_vm4, %v552_v37, %v554_v51 }
  0xd5   : > { %857 = vst [vmem:[%s994_s11 + $0x10] sm:$0xff] %v829_v53   ;;  %v410_v59 = vsel %vm393_vm3, %v407_v45, %v409_v56  ;;  %v596_v61 = vadd.f32 %v555_v57, %v449_v58 }
  0xd6   : > { %v450_v1 = vadd.f32 %v410_v59, %v286_v38  ;;  %v458_v38 = vadd.f32 %v426_v29, %v976_v33 }
  0xd7   : > { %v1018_v60 = vpop.f32.mrf.mxu3  ;;  %v616_v4 = vadd.f32 %v986_v47, %v596_v61 }
  0xd8   : > { %v568_v14 = vrot.slane %v1018_v60, 2 }
  0xd9   : > { %v499_v62 = vpop.f32.mrf.mxu2  ;;  %v291_v0 = vpop.f32.mrf.mxu0  ;;  %v632_v12 = vmax.f32 %v616_v4, 0.0 }
  0xda   : > { %v556_v63 = vrot.slane %v499_v62, 2  ;;  %v354_v2 = vpop.f32.mrf.mxu1 }
  0xdb   : > { %v411_v10 = vrot.slane %v354_v2, 1 }
  0xdc   : > { %v557_v3 = vsel %vm540_vm4, %v554_v51, %v556_v63 }
  0xdd   : > { %v597_v5 = vadd.f32 %v557_v3, %v450_v1  ;;  %v412_v19 = vsel %vm393_vm3, %v409_v56, %v411_v10 }
  0xde   : > { %v451_v30 = vadd.f32 %v412_v19, %v289_v52 }
  0xdf   : > { %v617_v9 = vadd.f32 %v986_v47, %v597_v5  ;;  %v516_v11 = vpop.f32.mrf.mxu3 }
  0xe0   : > { %v570_v16 = vrot.slane %v516_v11, 2 }
  0xe1   : > { %v633_v13 = vmax.f32 %v617_v9, 0.0  ;;  %v501_v15 = vpop.f32.mrf.mxu2  ;;  %v294_v23 = vpop.f32.mrf.mxu0 }
  0xe2   : > { %v558_v17 = vrot.slane %v501_v15, 2  ;;  %v357_v22 = vpop.f32.mrf.mxu1  ;;  %v571_v25 = vsel %vm540_vm4, %v568_v14, %v570_v16 }
  0xe3   : > { %v834_v21 = vpack.c.bf16 %v633_v13, %v632_v12  ;;  %v413_v24 = vrot.slane %v357_v22, 1  ;;  %v604_v31 = vadd.f32 %v571_v25, %v457_v26 }
  0xe4   : > { %v559_v27 = vsel %vm540_vm4, %v556_v63, %v558_v17 }
  0xe5   : > { %858 = vst [vmem:[%s994_s11 + $0x18] sm:$0xff] %v834_v21   ;;  %v414_v32 = vsel %vm393_vm3, %v411_v10, %v413_v24  ;;  %v598_v35 = vadd.f32 %v559_v27, %v451_v30  ;;  %v624_v28 = vadd.f32 %v986_v47, %v604_v31 }
  0xe6   : > { %v452_v40 = vadd.f32 %v414_v32, %v291_v0 }
  0xe7   : > { %v519_v34 = vpop.f32.mrf.mxu3  ;;  %v618_v45 = vadd.f32 %v986_v47, %v598_v35  ;;  %v640_v50 = vmax.f32 %v624_v28, 0.0 }
  0xe8   : > { %v572_v37 = vrot.slane %v519_v34, 2 }
  0xe9   : > { %v504_v36 = vpop.f32.mrf.mxu2  ;;  %v296_v49 = vpop.f32.mrf.mxu0  ;;  %v634_v54 = vmax.f32 %v618_v45, 0.0 }
  0xea   : > { %v560_v39 = vrot.slane %v504_v36, 2  ;;  %v573_v41 = vsel %vm540_vm4, %v570_v16, %v572_v37  ;;  %v359_v42 = vpop.f32.mrf.mxu1 }
  0xeb   : > { %v605_v44 = vadd.f32 %v573_v41, %v458_v38  ;;  %v415_v52 = vrot.slane %v359_v42, 1 }
  0xec   : > { %v561_v43 = vsel %vm540_vm4, %v558_v17, %v560_v39 }
  0xed   : > { %v599_v46 = vadd.f32 %v561_v43, %v452_v40  ;;  %v625_v48 = vadd.f32 %v986_v47, %v605_v44  ;;  %v416_v62 = vsel %vm393_vm3, %v413_v24, %v415_v52 }
  0xee   : > { %v453_v1 = vadd.f32 %v416_v62, %v294_v23 }
  0xef   : > { %v619_v33 = vadd.f32 %v986_v47, %v599_v46  ;;  %v641_v51 = vmax.f32 %v625_v48, 0.0  ;;  %v521_v53 = vpop.f32.mrf.mxu3 }
  0xf1   : > { %v635_v55 = vmax.f32 %v619_v33, 0.0  ;;  %v506_v56 = vpop.f32.mrf.mxu2  ;;  %v854_v57 = vpack.c.bf16 %v641_v51, %v640_v50  ;;  %v299_v2 = vpop.f32.mrf.mxu0 }
  0xf2   : > { %v562_v58 = vrot.slane %v506_v56, 2  ;;  %v362_v61 = vpop.f32.mrf.mxu1 }
  0xf3   : > { %v839_v59 = vpack.c.bf16 %v635_v55, %v634_v54  ;;  %862 = vst [vmem:[%s994_s11 + $0x38] sm:$0xff] %v854_v57   ;;  %v417_v63 = vrot.slane %v362_v61, 1 }
  0xf4   : > { %v563_v0 = vsel %vm540_vm4, %v560_v39, %v562_v58 }
  0xf5   : > { %859 = vst [vmem:[%s994_s11 + $0x20] sm:$0xff] %v839_v59   ;;  %v418_v3 = vsel %vm393_vm3, %v415_v52, %v417_v63  ;;  %v600_v4 = vadd.f32 %v563_v0, %v453_v1 }
  0xf6   : > { %v454_v9 = vadd.f32 %v418_v3, %v296_v49 }
  0xf7   : > { %v620_v13 = vadd.f32 %v986_v47, %v600_v4 }
  0xf9   : > { %v509_v5 = vpop.f32.mrf.mxu2  ;;  %v636_v20 = vmax.f32 %v620_v13, 0.0  ;;  %v301_v19 = vpop.f32.mrf.mxu0 }
  0xfa   : > { %v564_v8 = vrot.slane %v509_v5, 2  ;;  %v364_v10 = vpop.f32.mrf.mxu1 }
  0xfb   : > { %v419_v12 = vrot.slane %v364_v10, 1 }
  0xfc   : > { %v565_v11 = vsel %vm540_vm4, %v562_v58, %v564_v8 }
  0xfd   : > { %v601_v15 = vadd.f32 %v565_v11, %v454_v9  ;;  %v420_v17 = vsel %vm393_vm3, %v417_v63, %v419_v12  ;;  %v422_v18 = vsel %vm393_vm3, %v419_v12, %v421_v6 }
  0xfe   : > { %v455_v25 = vadd.f32 %v420_v17, %v299_v2  ;;  %v456_v26 = vadd.f32 %v422_v18, %v301_v19 }
  0xff   : > { %v621_v16 = vadd.f32 %v986_v47, %v601_v15 }
 0x101   : > { %v637_v21 = vmax.f32 %v621_v16, 0.0  ;;  %v511_v22 = vpop.f32.mrf.mxu2 }
 0x102   : > { %v566_v23 = vrot.slane %v511_v22, 2 }
 0x103   : > { %v844_v24 = vpack.c.bf16 %v637_v21, %v636_v20 }
 0x104   : > { %v567_v27 = vsel %vm540_vm4, %v564_v8, %v566_v23  ;;  %v569_v29 = vsel %vm540_vm4, %v566_v23, %v568_v14 }
 0x105   : > { %860 = vst [vmem:[%s994_s11 + $0x28] sm:$0xff] %v844_v24   ;;  %v602_v30 = vadd.f32 %v567_v27, %v455_v25  ;;  %v603_v7 = vadd.f32 %v569_v29, %v456_v26 }
 0x107   : > { %v622_v6 = vadd.f32 %v986_v47, %v602_v30  ;;  %v623_v31 = vadd.f32 %v986_v47, %v603_v7 }
 0x109   : > { %v638_v32 = vmax.f32 %v622_v6, 0.0  ;;  %v639_v34 = vmax.f32 %v623_v31, 0.0 }
 0x10b   : > { %v849_v35 = vpack.c.bf16 %v639_v34, %v638_v32 }
 0x10d   : > { %861 = vst [vmem:[%s994_s11 + $0x30] sm:$0xff] %v849_v35  }
 0x10e PF: > { %s13_s12 = sadd.s32 1, %s882_s12  }
 0x10f   : > { %p10_p4 = scmp.ge.s32.totalorder %s13_s12, 19  }
 0x111   :  { %12 = sbr.rel (!%p10_p4) target bundleno = 1 (0x1), region = 62 }

// kernel: vgg16_features.20
= control target key start
LH: loop header
LB: loop body
LE: loop exit
PB: predicated region body
PF: predicated region fallthrough
CT: control target
= control target key end

     0   :  { %s985_s12 = smov 0   ;;  %s1157_s0 = inlined_call_operand.vmem [shape: bf16[2184,48], index: 0, kind: input, shape index: {}]   ;;  %s1158_s1 = inlined_call_operand.vmem [shape: bf16[3,48,128], index: 1, kind: input, shape index: {}]   ;;  %s1159_s2 = inlined_call_operand.vmem [shape: f32[1,128], index: 2, kind: input, shape index: {}]   ;;  %s1160_s3 = inlined_call_operand.vmem [shape: bf16[2176,128], index: 3, kind: output, shape index: {}]  }
   0x1 LB: > { %s758_s13 = sadd.s32 4294967295, %s963_s12   ;;  %p761_p0 = scmp.ge.s32.totalorder %s963_s12, 1  ;;  %s963_s12 = sphi %s985_s12, %s13_s12  }
   0x2   : > { %p127_p1 = scmp.lt.s32.totalorder %s963_s12, 18 }
   0x4   : > { %p128_p2 = pnand %p761_p0, %p127_p1 }
   0x5   : > { %s764_s20 = sshll.u32 (!%p128_p2), %s758_s13, 7  ;;  %s762_s11 = sshll.u32 (!%p128_p2), %s758_s13, 4 }
   0x6   : > { %131 = sbr.rel (%p128_p2) target bundleno = 273 (0x111), region = 32  ;;  %s154_s21 = sshra.s32 (!%p128_p2), %s764_s20, 3 }
   0x7   : > { %s765_s28 = sshll.u32 (!%p128_p2), %s154_s21, 2  ;;  %p147_p3 = scmp.lt.s32.totalorder (!%p128_p2), %s762_s11, 271 }
   0x8   : > { %s1019_s6 = scalar_lea.vmem (!%p128_p2), %s1157_s0, %s765_s28 }
   0xb   : > { %v885_v0 = vld [vmem:[%s1158_s1 + $0x10] sm:$0xff]  ;;  %v888_v1 = vld [vmem:[%s1158_s1 + $0x28] sm:$0xff]  ;;  %v891_v2 = vld [vmem:[%s1158_s1 + $0x40] sm:$0xff]  ;;  %vm242_vm0 = vcmask 392192   ;;  %vm417_vm1 = vcmask 1046528   ;;  %vm578_vm2 = vcmask 1045504  }
   0xc   : > { %275 = vmatpush.bf16.msra.mxu0 %v885_v0  ;;  %939 = vmatpush.bf16.msra.mxu3 %v885_v0  ;;  %v884_v3 = vld [vmem:[%s1158_s1 + $0x8] sm:$0xff]  ;;  %v887_v4 = vld [vmem:[%s1158_s1 + $0x20] sm:$0xff]  ;;  %v890_v5 = vld [vmem:[%s1158_s1 + $0x38] sm:$0xff]  ;;  %s1162_s11 = smov (!%p147_p3, %s762_s11), 271 }
   0xd   : > { %352 = vmatpush.bf16.msra.mxu1 %v888_v1  ;;  %513 = vmatpush.bf16.msra.mxu2 %v891_v2  ;;  %v883_v6 = vld [vmem:[%s1158_s1] sm:$0xff]  ;;  %v886_v7 = vld [vmem:[%s1158_s1 + $0x18] sm:$0xff]  ;;  %v889_v8 = vld [vmem:[%s1158_s1 + $0x30] sm:$0xff]  ;;  %s763_s13 = sshll.u32 %s1162_s11, 2 }
   0xe   : > { %v875_v9 = vld [vmem:[%s1019_s6] sm:$0xff]  ;;  %v882_v10 = vld [vmem:[%s1019_s6 + $0x38] sm:$0xff]  ;;  %v876_v13 = vld [vmem:[%s1019_s6 + $0x8] sm:$0xff]  ;;  %s1083_s18 = scalar_lea.vmem %s1160_s3, %s763_s13 }
   0xf   : > { %v174_v11 = vld [vmem:[%s1019_s6 + $0x40] sm:$0xf]  ;;  %v877_v15 = vld [vmem:[%s1019_s6 + $0x10] sm:$0xff]  ;;  %v878_v16 = vld [vmem:[%s1019_s6 + $0x18] sm:$0xff] }
  0x10   : > { %276 = vmatpush.bf16.msra.mxu0 %v884_v3  ;;  %940 = vmatpush.bf16.msra.mxu3 %v884_v3  ;;  %v214_v12 = vunpack.c.l.b16 %v174_v11  ;;  %v879_v17 = vld [vmem:[%s1019_s6 + $0x20] sm:$0xff]  ;;  %v880_v18 = vld [vmem:[%s1019_s6 + $0x28] sm:$0xff]  ;;  %v881_v19 = vld [vmem:[%s1019_s6 + $0x30] sm:$0xff] }
  0x11   : > { %353 = vmatpush.bf16.msra.mxu1 %v887_v4  ;;  %514 = vmatpush.bf16.msra.mxu2 %v890_v5  ;;  %v1075_v41 = vld [vmem:[%s1159_s2] ss:$0 sm:$0xff] }
  0x12   : > { %v223_v14 = vpack.c.b16 %v214_v12, %v214_v12 }
  0x14   : > { %277 = vmatpush.bf16.msra.mxu0 %v883_v6  ;;  %941 = vmatpush.bf16.msra.mxu3 %v883_v6 }
  0x15   : > { %354 = vmatpush.bf16.msra.mxu1 %v886_v7  ;;  %515 = vmatpush.bf16.msra.mxu2 %v889_v8 }
  0x17   : > { %810 = vmatmul.msk.bf16.vlgmr.msra.gmra.mxu0 %vm242_vm0, %v875_v9  ;;  %817 = vmatmul.msk.bf16.vlgmr.msra.gmra.mxu3 %vm242_vm0, %v882_v10 }
  0x18   : > { %942 = vmatpush.bf16.msrb.mxu3 %v888_v1  ;;  %837 = vmatmul.msk.bf16.vlgmr.msra.gmra.mxu1 %vm242_vm0, %v875_v9 }
  0x19   : > { %864 = vmatmul.msk.bf16.vlgmr.msra.gmra.mxu2 %vm242_vm0, %v875_v9 }
  0x1c   : > { %943 = vmatpush.bf16.msrb.mxu3 %v887_v4 }
  0x20   : > { %944 = vmatpush.bf16.msrb.mxu3 %v886_v7 }
  0x24   : > { %945 = vmatpush.bf16.msra.mxu3 %v891_v2 }
  0x27   : > { %811 = vmatmul.msk.bf16.gmra.mxu0 %vm242_vm0, %v876_v13  ;;  %818 = vmatmul.msk.bf16.gmra.mxu3 %vm242_vm0, %v223_v14 }
  0x28   : > { %946 = vmatpush.bf16.msra.mxu3 %v890_v5  ;;  %838 = vmatmul.msk.bf16.gmra.mxu1 %vm242_vm0, %v876_v13 }
  0x29   : > { %865 = vmatmul.msk.bf16.gmra.mxu2 %vm242_vm0, %v876_v13 }
  0x2c   : > { %947 = vmatpush.bf16.msra.mxu3 %v889_v8 }
  0x37   : > { %812 = vmatmul.msk.bf16.gmra.mxu0 %vm242_vm0, %v877_v15  ;;  %844 = vmatmul.msk.bf16.vlgmr.msrb.gmra.mxu3 %vm242_vm0, %v882_v10 }
  0x38   : > { %839 = vmatmul.msk.bf16.gmra.mxu1 %vm242_vm0, %v877_v15 }
  0x39   : > { %866 = vmatmul.msk.bf16.gmra.mxu2 %vm242_vm0, %v877_v15 }
  0x47   : > { %813 = vmatmul.msk.bf16.gmra.mxu0 %vm242_vm0, %v878_v16  ;;  %845 = vmatmul.msk.bf16.gmra.mxu3 %vm242_vm0, %v223_v14 }
  0x48   : > { %840 = vmatmul.msk.bf16.gmra.mxu1 %vm242_vm0, %v878_v16 }
  0x49   : > { %867 = vmatmul.msk.bf16.gmra.mxu2 %vm242_vm0, %v878_v16 }
  0x57   : > { %814 = vmatmul.msk.bf16.gmra.mxu0 %vm242_vm0, %v879_v17  ;;  %871 = vmatmul.msk.bf16.vlgmr.msra.gmra.mxu3 %vm242_vm0, %v882_v10 }
  0x58   : > { %841 = vmatmul.msk.bf16.gmra.mxu1 %vm242_vm0, %v879_v17 }
  0x59   : > { %868 = vmatmul.msk.bf16.gmra.mxu2 %vm242_vm0, %v879_v17 }
  0x67   : > { %815 = vmatmul.msk.bf16.gmra.mxu0 %vm242_vm0, %v880_v18  ;;  %872 = vmatmul.msk.bf16.gmra.mxu3 %vm242_vm0, %v223_v14 }
  0x68   : > { %842 = vmatmul.msk.bf16.gmra.mxu1 %vm242_vm0, %v880_v18 }
  0x69   : > { %869 = vmatmul.msk.bf16.gmra.mxu2 %vm242_vm0, %v880_v18 }
  0x77   : > { %816 = vmatmul.msk.bf16.gmra.mxu0 %vm242_vm0, %v881_v19 }
  0x78   : > { %843 = vmatmul.msk.bf16.gmra.mxu1 %vm242_vm0, %v881_v19 }
  0x79   : > { %870 = vmatmul.msk.bf16.gmra.mxu2 %vm242_vm0, %v881_v19 }
  0x94   : > { %v279_v20 = vpop.f32.mrf.mxu0 }
  0x95   : > { %v356_v21 = vpop.f32.mrf.mxu1 }
  0x96   : > { %v418_v29 = vrot.slane %v356_v21, 1 }
  0x9a   : > { %v1063_v22 = vpop.f32.mrf.mxu3 }
  0x9c   : > { %v517_v23 = vpop.f32.mrf.mxu2  ;;  %v281_v24 = vpop.f32.mrf.mxu0 }
  0x9d   : > { %v358_v25 = vpop.f32.mrf.mxu1  ;;  %v579_v33 = vrot.slane %v517_v23, 2 }
  0x9e   : > { %v419_v26 = vrot.slane %v358_v25, 1 }
  0xa0   : > { %v420_v34 = vsel %vm417_vm1, %v418_v29, %v419_v26 }
  0xa1   : > { %v467_v37 = vadd.f32 %v420_v34, %v279_v20 }
  0xa2   : > { %v1065_v27 = vpop.f32.mrf.mxu3 }
  0xa4   : > { %v519_v28 = vpop.f32.mrf.mxu2  ;;  %v284_v31 = vpop.f32.mrf.mxu0 }
  0xa5   : > { %v580_v30 = vrot.slane %v519_v28, 2  ;;  %v361_v32 = vpop.f32.mrf.mxu1 }
  0xa6   : > { %v421_v35 = vrot.slane %v361_v32, 1 }
  0xa7   : > { %v581_v36 = vsel %vm578_vm2, %v579_v33, %v580_v30 }
  0xa8   : > { %v422_v38 = vsel %vm417_vm1, %v419_v26, %v421_v35  ;;  %v628_v40 = vadd.f32 %v581_v36, %v467_v37 }
  0xa9   : > { %v468_v45 = vadd.f32 %v422_v38, %v281_v24 }
  0xaa   : > { %v319_v39 = vpop.f32.mrf.mxu3  ;;  %v648_v48 = vadd.f32 %v1075_v41, %v628_v40 }
  0xac   : > { %v522_v42 = vpop.f32.mrf.mxu2  ;;  %v286_v44 = vpop.f32.mrf.mxu0  ;;  %v664_v53 = vmax.f32 %v648_v48, 0.0 }
  0xad   : > { %v582_v43 = vrot.slane %v522_v42, 2  ;;  %v363_v46 = vpop.f32.mrf.mxu1 }
  0xae   : > { %v423_v51 = vrot.slane %v363_v46, 1 }
  0xaf   : > { %v583_v47 = vsel %vm578_vm2, %v580_v30, %v582_v43 }
  0xb0   : > { %v629_v49 = vadd.f32 %v583_v47, %v468_v45  ;;  %v424_v60 = vsel %vm417_vm1, %v421_v35, %v423_v51 }
  0xb1   : > { %v469_v63 = vadd.f32 %v424_v60, %v284_v31 }
  0xb2   : > { %v649_v50 = vadd.f32 %v1075_v41, %v629_v49  ;;  %v320_v52 = vpop.f32.mrf.mxu3 }
  0xb4   : > { %v665_v54 = vmax.f32 %v649_v50, 0.0  ;;  %v524_v55 = vpop.f32.mrf.mxu2  ;;  %v289_v57 = vpop.f32.mrf.mxu0 }
  0xb5   : > { %v584_v56 = vrot.slane %v524_v55, 2  ;;  %v366_v59 = vpop.f32.mrf.mxu1 }
  0xb6   : > { %v895_v58 = vpack.c.bf16 %v665_v54, %v664_v53  ;;  %v425_v61 = vrot.slane %v366_v59, 1 }
  0xb7   : > { %v585_v62 = vsel %vm578_vm2, %v582_v43, %v584_v56 }
  0xb8   : > { %896 = vst [vmem:[%s1083_s18] sm:$0xff] %v895_v58   ;;  %v426_v0 = vsel %vm417_vm1, %v423_v51, %v425_v61  ;;  %v630_v2 = vadd.f32 %v585_v62, %v469_v63 }
  0xb9   : > { %v470_v6 = vadd.f32 %v426_v0, %v286_v44 }
  0xba   : > { %v1089_v1 = vpop.f32.mrf.mxu3  ;;  %v650_v9 = vadd.f32 %v1075_v41, %v630_v2 }
  0xbb   : > { %v445_v0 = vrot.slane %v1089_v1, 1 }
  0xbc   : > { %v527_v3 = vpop.f32.mrf.mxu2  ;;  %v291_v5 = vpop.f32.mrf.mxu0  ;;  %v666_v14 = vmax.f32 %v650_v9, 0.0 }
  0xbd   : > { %v586_v4 = vrot.slane %v527_v3, 2  ;;  %v368_v7 = vpop.f32.mrf.mxu1 }
  0xbe   : > { %v427_v12 = vrot.slane %v368_v7, 1 }
  0xbf   : > { %v587_v8 = vsel %vm578_vm2, %v584_v56, %v586_v4 }
  0xc0   : > { %v631_v10 = vadd.f32 %v587_v8, %v470_v6  ;;  %v428_v21 = vsel %vm417_vm1, %v425_v61, %v427_v12 }
  0xc1   : > { %v471_v25 = vadd.f32 %v428_v21, %v289_v57 }
  0xc2   : > { %v651_v11 = vadd.f32 %v1075_v41, %v631_v10  ;;  %v1094_v13 = vpop.f32.mrf.mxu3 }
  0xc3   : > { %v447_v2 = vrot.slane %v1094_v13, 1 }
  0xc4   : > { %v667_v15 = vmax.f32 %v651_v11, 0.0  ;;  %v529_v16 = vpop.f32.mrf.mxu2  ;;  %v294_v18 = vpop.f32.mrf.mxu0 }
  0xc5   : > { %v588_v17 = vrot.slane %v529_v16, 2  ;;  %v371_v20 = vpop.f32.mrf.mxu1 }
  0xc6   : > { %v900_v19 = vpack.c.bf16 %v667_v15, %v666_v14  ;;  %v429_v23 = vrot.slane %v371_v20, 1 }
  0xc7   : > { %v589_v24 = vsel %vm578_vm2, %v586_v4, %v588_v17 }
  0xc8   : > { %932 = vst [vmem:[%s1083_s18 + $0x8] sm:$0xff] %v900_v19   ;;  %v430_v26 = vsel %vm417_vm1, %v427_v12, %v429_v23  ;;  %v632_v29 = vadd.f32 %v589_v24, %v471_v25  ;;  %v448_v12 = vsel %vm417_vm1, %v445_v0, %v447_v2 }
  0xc9   : > { %v472_v33 = vadd.f32 %v430_v26, %v291_v5  ;;  %v481_v20 = vadd.f32 %v448_v12, %v1063_v22 }
  0xca   : > { %v396_v28 = vpop.f32.mrf.mxu3  ;;  %v652_v36 = vadd.f32 %v1075_v41, %v632_v29 }
  0xcb   : > { %v449_v14 = vrot.slane %v396_v28, 1 }
  0xcc   : > { %v532_v30 = vpop.f32.mrf.mxu2  ;;  %v296_v32 = vpop.f32.mrf.mxu0  ;;  %v668_v42 = vmax.f32 %v652_v36, 0.0 }
  0xcd   : > { %v590_v31 = vrot.slane %v532_v30, 2  ;;  %v373_v34 = vpop.f32.mrf.mxu1 }
  0xce   : > { %v431_v39 = vrot.slane %v373_v34, 1 }
  0xcf   : > { %v591_v35 = vsel %vm578_vm2, %v588_v17, %v590_v31 }
  0xd0   : > { %v633_v37 = vadd.f32 %v591_v35, %v472_v33  ;;  %v432_v49 = vsel %vm417_vm1, %v429_v23, %v431_v39  ;;  %v450_v23 = vsel %vm417_vm1, %v447_v2, %v449_v14 }
  0xd1   : > { %v473_v52 = vadd.f32 %v432_v49, %v294_v18 }
  0xd2   : > { %v653_v38 = vadd.f32 %v1075_v41, %v633_v37  ;;  %v398_v40 = vpop.f32.mrf.mxu3 }
  0xd4   : > { %v669_v43 = vmax.f32 %v653_v38, 0.0  ;;  %v534_v44 = vpop.f32.mrf.mxu2  ;;  %v299_v46 = vpop.f32.mrf.mxu0 }
  0xd5   : > { %v592_v45 = vrot.slane %v534_v44, 2  ;;  %v376_v48 = vpop.f32.mrf.mxu1 }
  0xd6   : > { %v905_v47 = vpack.c.bf16 %v669_v43, %v668_v42  ;;  %v433_v50 = vrot.slane %v376_v48, 1 }
  0xd7   : > { %v593_v51 = vsel %vm578_vm2, %v590_v31, %v592_v45 }
  0xd8   : > { %933 = vst [vmem:[%s1083_s18 + $0x10] sm:$0xff] %v905_v47   ;;  %v434_v53 = vsel %vm417_vm1, %v431_v39, %v433_v50  ;;  %v634_v55 = vadd.f32 %v593_v51, %v473_v52 }
  0xd9   : > { %v474_v59 = vadd.f32 %v434_v53, %v296_v32  ;;  %v482_v32 = vadd.f32 %v450_v23, %v1065_v27 }
  0xda   : > { %v1107_v54 = vpop.f32.mrf.mxu3  ;;  %v654_v62 = vadd.f32 %v1075_v41, %v634_v55 }
  0xdb   : > { %v606_v8 = vrot.slane %v1107_v54, 2 }
  0xdc   : > { %v537_v56 = vpop.f32.mrf.mxu2  ;;  %v301_v58 = vpop.f32.mrf.mxu0  ;;  %v670_v6 = vmax.f32 %v654_v62, 0.0 }
  0xdd   : > { %v594_v57 = vrot.slane %v537_v56, 2  ;;  %v378_v60 = vpop.f32.mrf.mxu1 }
  0xde   : > { %v435_v4 = vrot.slane %v378_v60, 1 }
  0xdf   : > { %v595_v61 = vsel %vm578_vm2, %v592_v45, %v594_v57 }
  0xe0   : > { %v635_v63 = vadd.f32 %v595_v61, %v474_v59  ;;  %v436_v13 = vsel %vm417_vm1, %v433_v50, %v435_v4 }
  0xe1   : > { %v475_v24 = vadd.f32 %v436_v13, %v299_v46 }
  0xe2   : > { %v655_v3 = vadd.f32 %v1075_v41, %v635_v63  ;;  %v554_v5 = vpop.f32.mrf.mxu3 }
  0xe3   : > { %v608_v10 = vrot.slane %v554_v5, 2 }
  0xe4   : > { %v671_v7 = vmax.f32 %v655_v3, 0.0  ;;  %v539_v9 = vpop.f32.mrf.mxu2  ;;  %v304_v17 = vpop.f32.mrf.mxu0 }
  0xe5   : > { %v596_v11 = vrot.slane %v539_v9, 2  ;;  %v381_v16 = vpop.f32.mrf.mxu1  ;;  %v609_v19 = vsel %vm578_vm2, %v606_v8, %v608_v10 }
  0xe6   : > { %v910_v15 = vpack.c.bf16 %v671_v7, %v670_v6  ;;  %v437_v18 = vrot.slane %v381_v16, 1  ;;  %v642_v25 = vadd.f32 %v609_v19, %v481_v20 }
  0xe7   : > { %v597_v21 = vsel %vm578_vm2, %v594_v57, %v596_v11 }
  0xe8   : > { %934 = vst [vmem:[%s1083_s18 + $0x18] sm:$0xff] %v910_v15   ;;  %v438_v26 = vsel %vm417_vm1, %v435_v4, %v437_v18  ;;  %v636_v29 = vadd.f32 %v597_v21, %v475_v24  ;;  %v662_v22 = vadd.f32 %v1075_v41, %v642_v25 }
  0xe9   : > { %v476_v34 = vadd.f32 %v438_v26, %v301_v58 }
  0xea   : > { %v557_v28 = vpop.f32.mrf.mxu3  ;;  %v656_v39 = vadd.f32 %v1075_v41, %v636_v29  ;;  %v678_v44 = vmax.f32 %v662_v22, 0.0 }
  0xeb   : > { %v610_v31 = vrot.slane %v557_v28, 2 }
  0xec   : > { %v542_v30 = vpop.f32.mrf.mxu2  ;;  %v306_v43 = vpop.f32.mrf.mxu0  ;;  %v672_v48 = vmax.f32 %v656_v39, 0.0 }
  0xed   : > { %v598_v33 = vrot.slane %v542_v30, 2  ;;  %v611_v35 = vsel %vm578_vm2, %v608_v10, %v610_v31  ;;  %v383_v36 = vpop.f32.mrf.mxu1 }
  0xee   : > { %v643_v38 = vadd.f32 %v611_v35, %v482_v32  ;;  %v439_v46 = vrot.slane %v383_v36, 1 }
  0xef   : > { %v599_v37 = vsel %vm578_vm2, %v596_v11, %v598_v33 }
  0xf0   : > { %v637_v40 = vadd.f32 %v599_v37, %v476_v34  ;;  %v663_v42 = vadd.f32 %v1075_v41, %v643_v38  ;;  %v440_v56 = vsel %vm417_vm1, %v437_v18, %v439_v46 }
  0xf1   : > { %v477_v59 = vadd.f32 %v440_v56, %v304_v17 }
  0xf2   : > { %v657_v27 = vadd.f32 %v1075_v41, %v637_v40  ;;  %v679_v45 = vmax.f32 %v663_v42, 0.0  ;;  %v559_v47 = vpop.f32.mrf.mxu3 }
  0xf4   : > { %v673_v49 = vmax.f32 %v657_v27, 0.0  ;;  %v544_v50 = vpop.f32.mrf.mxu2  ;;  %v930_v51 = vpack.c.bf16 %v679_v45, %v678_v44  ;;  %v309_v60 = vpop.f32.mrf.mxu0 }
  0xf5   : > { %v600_v52 = vrot.slane %v544_v50, 2  ;;  %v386_v55 = vpop.f32.mrf.mxu1 }
  0xf6   : > { %v915_v53 = vpack.c.bf16 %v673_v49, %v672_v48  ;;  %938 = vst [vmem:[%s1083_s18 + $0x38] sm:$0xff] %v930_v51   ;;  %v441_v57 = vrot.slane %v386_v55, 1 }
  0xf7   : > { %v601_v58 = vsel %vm578_vm2, %v598_v33, %v600_v52 }
  0xf8   : > { %935 = vst [vmem:[%s1083_s18 + $0x20] sm:$0xff] %v915_v53   ;;  %v442_v61 = vsel %vm417_vm1, %v439_v46, %v441_v57  ;;  %v638_v62 = vadd.f32 %v601_v58, %v477_v59 }
  0xf9   : > { %v478_v3 = vadd.f32 %v442_v61, %v306_v43 }
  0xfa   : > { %v658_v7 = vadd.f32 %v1075_v41, %v638_v62 }
  0xfc   : > { %v547_v63 = vpop.f32.mrf.mxu2  ;;  %v674_v14 = vmax.f32 %v658_v7, 0.0  ;;  %v311_v13 = vpop.f32.mrf.mxu0 }
  0xfd   : > { %v602_v2 = vrot.slane %v547_v63, 2  ;;  %v388_v4 = vpop.f32.mrf.mxu1 }
  0xfe   : > { %v443_v6 = vrot.slane %v388_v4, 1 }
  0xff   : > { %v603_v5 = vsel %vm578_vm2, %v600_v52, %v602_v2 }
 0x100   : > { %v639_v9 = vadd.f32 %v603_v5, %v478_v3  ;;  %v444_v11 = vsel %vm417_vm1, %v441_v57, %v443_v6  ;;  %v446_v12 = vsel %vm417_vm1, %v443_v6, %v445_v0 }
 0x101   : > { %v479_v19 = vadd.f32 %v444_v11, %v309_v60  ;;  %v480_v20 = vadd.f32 %v446_v12, %v311_v13 }
 0x102   : > { %v659_v10 = vadd.f32 %v1075_v41, %v639_v9 }
 0x104   : > { %v675_v15 = vmax.f32 %v659_v10, 0.0  ;;  %v549_v16 = vpop.f32.mrf.mxu2 }
 0x105   : > { %v604_v17 = vrot.slane %v549_v16, 2 }
 0x106   : > { %v920_v18 = vpack.c.bf16 %v675_v15, %v674_v14 }
 0x107   : > { %v605_v21 = vsel %vm578_vm2, %v602_v2, %v604_v17  ;;  %v607_v23 = vsel %vm578_vm2, %v604_v17, %v606_v8 }
 0x108   : > { %936 = vst [vmem:[%s1083_s18 + $0x28] sm:$0xff] %v920_v18   ;;  %v640_v24 = vadd.f32 %v605_v21, %v479_v19  ;;  %v641_v1 = vadd.f32 %v607_v23, %v480_v20 }
 0x10a   : > { %v660_v0 = vadd.f32 %v1075_v41, %v640_v24  ;;  %v661_v25 = vadd.f32 %v1075_v41, %v641_v1 }
 0x10c   : > { %v676_v26 = vmax.f32 %v660_v0, 0.0  ;;  %v677_v28 = vmax.f32 %v661_v25, 0.0 }
 0x10e   : > { %v925_v29 = vpack.c.bf16 %v677_v28, %v676_v26 }
 0x110   : > { %937 = vst [vmem:[%s1083_s18 + $0x30] sm:$0xff] %v925_v29  }
 0x111 PF: > { %s13_s12 = sadd.s32 1, %s963_s12  }
 0x112   : > { %p10_p4 = scmp.ge.s32.totalorder %s13_s12, 19  }
 0x114   :  { %12 = sbr.rel (!%p10_p4) target bundleno = 1 (0x1), region = 62 }

// kernel: vgg16_features.21
= control target key start
LH: loop header
LB: loop body
LE: loop exit
PB: predicated region body
PF: predicated region fallthrough
CT: control target
= control target key end

     0   :  { %s2441_s0 = inlined_call_operand.vmem [shape: bf16[512,128], index: 0, kind: input, shape index: {}]   ;;  %s2442_s1 = inlined_call_operand.vmem [shape: bf16[512,128], index: 1, kind: input, shape index: {}]   ;;  %s2443_s2 = inlined_call_operand.vmem [shape: bf16[512,128], index: 2, kind: input, shape index: {}]   ;;  %s2444_s3 = inlined_call_operand.vmem [shape: bf16[512,128], index: 3, kind: input, shape index: {}]   ;;  %s2445_s4 = inlined_call_operand.vmem [shape: bf16[512,128], index: 4, kind: output, shape index: {}]  }
   0x1   :  { %v1110_v0 = vld [vmem:[%s2441_s0] sm:$0xff]   ;;  %v1781_v8 = vld [vmem:[%s2441_s0 + $0x8] sm:$0xff]   ;;  %v1782_v24 = vld [vmem:[%s2441_s0 + $0x10] sm:$0xff]  }
   0x2   :  { %v1238_v1 = vld [vmem:[%s2442_s1] sm:$0xff]   ;;  %v1111_v3 = vunpack.c.l.bf16 %v1110_v0  ;;  %v1112_v4 = vunpack.c.h.bf16 %v1110_v0  ;;  %v1812_v9 = vld [vmem:[%s2442_s1 + $0x8] sm:$0xff]   ;;  %v1115_v18 = vunpack.c.l.bf16 %v1781_v8  ;;  %v1116_v19 = vunpack.c.h.bf16 %v1781_v8  ;;  %v1813_v29 = vld [vmem:[%s2442_s1 + $0x10] sm:$0xff]  }
   0x3   :  { %v1366_v2 = vld [vmem:[%s2443_s2] sm:$0xff]   ;;  %v1239_v5 = vunpack.c.l.bf16 %v1238_v1  ;;  %v1240_v6 = vunpack.c.h.bf16 %v1238_v1  ;;  %v1843_v14 = vld [vmem:[%s2443_s2 + $0x8] sm:$0xff]   ;;  %v1243_v22 = vunpack.c.l.bf16 %v1812_v9  ;;  %v1244_v23 = vunpack.c.h.bf16 %v1812_v9  ;;  %v1844_v30 = vld [vmem:[%s2443_s2 + $0x10] sm:$0xff]  }
   0x4   :  { %v1494_v7 = vld [vmem:[%s2444_s3] sm:$0xff]   ;;  %v1367_v10 = vunpack.c.l.bf16 %v1366_v2  ;;  %v1368_v11 = vunpack.c.h.bf16 %v1366_v2  ;;  %v1874_v15 = vld [vmem:[%s2444_s3 + $0x8] sm:$0xff]   ;;  %v1371_v25 = vunpack.c.l.bf16 %v1843_v14  ;;  %v1372_v26 = vunpack.c.h.bf16 %v1843_v14  ;;  %v1875_v35 = vld [vmem:[%s2444_s3 + $0x10] sm:$0xff]  }
   0x5   :  { %v1495_v12 = vunpack.c.l.bf16 %v1494_v7  ;;  %v1496_v13 = vunpack.c.h.bf16 %v1494_v7  ;;  %v273_v16 = vmax.f32 %v1111_v3, %v1239_v5  ;;  %v274_v17 = vmax.f32 %v1112_v4, %v1240_v6  ;;  %v1783_v40 = vld [vmem:[%s2441_s0 + $0x18] sm:$0xff]   ;;  %v1784_v60 = vld [vmem:[%s2441_s0 + $0x20] sm:$0xff]  }
   0x6   :  { %v1499_v27 = vunpack.c.l.bf16 %v1874_v15  ;;  %v1500_v28 = vunpack.c.h.bf16 %v1874_v15  ;;  %v275_v33 = vmax.f32 %v1115_v18, %v1243_v22  ;;  %v276_v34 = vmax.f32 %v1116_v19, %v1244_v23  ;;  %v1814_v45 = vld [vmem:[%s2442_s1 + $0x18] sm:$0xff]   ;;  %v1815_v1 = vld [vmem:[%s2442_s1 + $0x20] sm:$0xff]   ;;  %v1847_v22 = vld [vmem:[%s2443_s2 + $0x28] sm:$0xff]  }
   0x7   :  { %v657_v20 = vmax.f32 %v1367_v10, %v1495_v12  ;;  %v658_v21 = vmax.f32 %v1368_v11, %v1496_v13  ;;  %v1119_v38 = vunpack.c.l.bf16 %v1782_v24  ;;  %v1120_v39 = vunpack.c.h.bf16 %v1782_v24  ;;  %v1845_v50 = vld [vmem:[%s2443_s2 + $0x18] sm:$0xff]   ;;  %v1846_v6 = vld [vmem:[%s2443_s2 + $0x20] sm:$0xff]  }
   0x8   :  { %v659_v36 = vmax.f32 %v1371_v25, %v1499_v27  ;;  %v660_v37 = vmax.f32 %v1372_v26, %v1500_v28  ;;  %v1247_v42 = vunpack.c.l.bf16 %v1813_v29  ;;  %v1248_v43 = vunpack.c.h.bf16 %v1813_v29  ;;  %v1876_v55 = vld [vmem:[%s2444_s3 + $0x18] sm:$0xff]   ;;  %v1877_v7 = vld [vmem:[%s2444_s3 + $0x20] sm:$0xff]   ;;  %v1878_v27 = vld [vmem:[%s2444_s3 + $0x28] sm:$0xff]  }
   0x9   :  { %v913_v31 = vmax.f32 %v273_v16, %v657_v20  ;;  %v914_v32 = vmax.f32 %v274_v17, %v658_v21  ;;  %v1375_v44 = vunpack.c.l.bf16 %v1844_v30  ;;  %v1376_v48 = vunpack.c.h.bf16 %v1844_v30  ;;  %v1785_v16 = vld [vmem:[%s2441_s0 + $0x28] sm:$0xff]  }
   0xa   :  { %v915_v46 = vmax.f32 %v275_v33, %v659_v36  ;;  %v916_v47 = vmax.f32 %v276_v34, %v660_v37  ;;  %v1503_v49 = vunpack.c.l.bf16 %v1875_v35  ;;  %v277_v51 = vmax.f32 %v1119_v38, %v1247_v42  ;;  %v1816_v21 = vld [vmem:[%s2442_s1 + $0x28] sm:$0xff]   ;;  %v1817_v37 = vld [vmem:[%s2442_s1 + $0x30] sm:$0xff]  }
   0xb   :  { %v1624_v41 = vpack.c.bf16 %v914_v32, %v913_v31  ;;  %v278_v52 = vmax.f32 %v1120_v39, %v1248_v43  ;;  %v1504_v53 = vunpack.c.h.bf16 %v1875_v35  ;;  %v1123_v54 = vunpack.c.l.bf16 %v1783_v40  ;;  %v1786_v32 = vld [vmem:[%s2441_s0 + $0x30] sm:$0xff]  }
   0xc   :  { %v1629_v56 = vpack.c.bf16 %v916_v47, %v915_v46  ;;  %v661_v57 = vmax.f32 %v1375_v44, %v1503_v49  ;;  %v1124_v58 = vunpack.c.h.bf16 %v1783_v40  ;;  %v1251_v59 = vunpack.c.l.bf16 %v1814_v45  ;;  %v1848_v42 = vld [vmem:[%s2443_s2 + $0x30] sm:$0xff]  }
   0xd   :  { %1625 = vst [vmem:[%s2445_s4] sm:$0xff] %v1624_v41   ;;  %v662_v61 = vmax.f32 %v1376_v48, %v1504_v53  ;;  %v1252_v62 = vunpack.c.h.bf16 %v1814_v45  ;;  %v1379_v63 = vunpack.c.l.bf16 %v1845_v50  ;;  %v1380_v0 = vunpack.c.h.bf16 %v1845_v50  ;;  %v1879_v47 = vld [vmem:[%s2444_s3 + $0x30] sm:$0xff]  }
   0xe   :  { %1905 = vst [vmem:[%s2445_s4 + $0x8] sm:$0xff] %v1629_v56   ;;  %v917_v2 = vmax.f32 %v277_v51, %v661_v57  ;;  %v279_v3 = vmax.f32 %v1123_v54, %v1251_v59  ;;  %v1507_v4 = vunpack.c.l.bf16 %v1876_v55  ;;  %v1508_v5 = vunpack.c.h.bf16 %v1876_v55  ;;  %v1818_v57 = vld [vmem:[%s2442_s1 + $0x38] sm:$0xff]  }
   0xf   :  { %v918_v8 = vmax.f32 %v278_v52, %v662_v61  ;;  %v280_v9 = vmax.f32 %v1124_v58, %v1252_v62  ;;  %v1127_v10 = vunpack.c.l.bf16 %v1784_v60  ;;  %v1128_v11 = vunpack.c.h.bf16 %v1784_v60  ;;  %v1787_v52 = vld [vmem:[%s2441_s0 + $0x38] sm:$0xff]  }
  0x10   :  { %v663_v12 = vmax.f32 %v1379_v63, %v1507_v4  ;;  %v664_v13 = vmax.f32 %v1380_v0, %v1508_v5  ;;  %v1255_v14 = vunpack.c.l.bf16 %v1815_v1  ;;  %v1256_v15 = vunpack.c.h.bf16 %v1815_v1  ;;  %v1849_v62 = vld [vmem:[%s2443_s2 + $0x38] sm:$0xff]  }
  0x11   :  { %v1634_v17 = vpack.c.bf16 %v918_v8, %v917_v2  ;;  %v1383_v18 = vunpack.c.l.bf16 %v1846_v6  ;;  %v1384_v19 = vunpack.c.h.bf16 %v1846_v6  ;;  %v1511_v20 = vunpack.c.l.bf16 %v1877_v7  ;;  %v1788_v8 = vld [vmem:[%s2441_s0 + $0x40] sm:$0xff]  }
  0x12   :  { %v919_v23 = vmax.f32 %v279_v3, %v663_v12  ;;  %v920_v24 = vmax.f32 %v280_v9, %v664_v13  ;;  %v281_v25 = vmax.f32 %v1127_v10, %v1255_v14  ;;  %v282_v26 = vmax.f32 %v1128_v11, %v1256_v15  ;;  %v1880_v3 = vld [vmem:[%s2444_s3 + $0x38] sm:$0xff]   ;;  %v1819_v13 = vld [vmem:[%s2442_s1 + $0x40] sm:$0xff]  }
  0x13   :  { %1906 = vst [vmem:[%s2445_s4 + $0x10] sm:$0xff] %v1634_v17   ;;  %v1512_v28 = vunpack.c.h.bf16 %v1877_v7  ;;  %v665_v29 = vmax.f32 %v1383_v18, %v1511_v20  ;;  %v1131_v30 = vunpack.c.l.bf16 %v1785_v16  ;;  %v1132_v31 = vunpack.c.h.bf16 %v1785_v16  ;;  %v1850_v14 = vld [vmem:[%s2443_s2 + $0x40] sm:$0xff]  }
  0x14   :  { %v1639_v33 = vpack.c.bf16 %v920_v24, %v919_v23  ;;  %v1259_v34 = vunpack.c.l.bf16 %v1816_v21  ;;  %v1260_v35 = vunpack.c.h.bf16 %v1816_v21  ;;  %v1387_v36 = vunpack.c.l.bf16 %v1847_v22 }
  0x15   :  { %v666_v38 = vmax.f32 %v1384_v19, %v1512_v28  ;;  %v921_v39 = vmax.f32 %v281_v25, %v665_v29  ;;  %v1388_v40 = vunpack.c.h.bf16 %v1847_v22  ;;  %v1515_v41 = vunpack.c.l.bf16 %v1878_v27  ;;  %v1881_v19 = vld [vmem:[%s2444_s3 + $0x40] sm:$0xff]   ;;  %v1789_v28 = vld [vmem:[%s2441_s0 + $0x48] sm:$0xff]  }
  0x16   :  { %1907 = vst [vmem:[%s2445_s4 + $0x18] sm:$0xff] %v1639_v33   ;;  %v283_v43 = vmax.f32 %v1131_v30, %v1259_v34  ;;  %v284_v44 = vmax.f32 %v1132_v31, %v1260_v35  ;;  %v1516_v45 = vunpack.c.h.bf16 %v1878_v27  ;;  %v1135_v46 = vunpack.c.l.bf16 %v1786_v32  ;;  %v1820_v33 = vld [vmem:[%s2442_s1 + $0x48] sm:$0xff]  }
  0x17   :  { %v922_v48 = vmax.f32 %v282_v26, %v666_v38  ;;  %v667_v49 = vmax.f32 %v1387_v36, %v1515_v41  ;;  %v1136_v50 = vunpack.c.h.bf16 %v1786_v32  ;;  %v1263_v51 = vunpack.c.l.bf16 %v1817_v37  ;;  %v1851_v34 = vld [vmem:[%s2443_s2 + $0x48] sm:$0xff]  }
  0x18   :  { %v668_v53 = vmax.f32 %v1388_v40, %v1516_v45  ;;  %v1264_v54 = vunpack.c.h.bf16 %v1817_v37  ;;  %v1391_v55 = vunpack.c.l.bf16 %v1848_v42  ;;  %v1392_v56 = vunpack.c.h.bf16 %v1848_v42 }
  0x19   :  { %v1644_v58 = vpack.c.bf16 %v922_v48, %v921_v39  ;;  %v923_v59 = vmax.f32 %v283_v43, %v667_v49  ;;  %v285_v60 = vmax.f32 %v1135_v46, %v1263_v51  ;;  %v1519_v61 = vunpack.c.l.bf16 %v1879_v47  ;;  %v1882_v39 = vld [vmem:[%s2444_s3 + $0x48] sm:$0xff]   ;;  %v1790_v48 = vld [vmem:[%s2441_s0 + $0x50] sm:$0xff]  }
  0x1a   :  { %v924_v63 = vmax.f32 %v284_v44, %v668_v53  ;;  %v286_v0 = vmax.f32 %v1136_v50, %v1264_v54  ;;  %v1520_v1 = vunpack.c.h.bf16 %v1879_v47  ;;  %v1139_v2 = vunpack.c.l.bf16 %v1787_v52  ;;  %v1821_v49 = vld [vmem:[%s2442_s1 + $0x50] sm:$0xff]  }
  0x1b   :  { %1908 = vst [vmem:[%s2445_s4 + $0x20] sm:$0xff] %v1644_v58   ;;  %v669_v4 = vmax.f32 %v1391_v55, %v1519_v61  ;;  %v1140_v5 = vunpack.c.h.bf16 %v1787_v52  ;;  %v1267_v6 = vunpack.c.l.bf16 %v1818_v57  ;;  %v1268_v7 = vunpack.c.h.bf16 %v1818_v57  ;;  %v1852_v54 = vld [vmem:[%s2443_s2 + $0x50] sm:$0xff]  }
  0x1c   :  { %v1649_v9 = vpack.c.bf16 %v924_v63, %v923_v59  ;;  %v670_v10 = vmax.f32 %v1392_v56, %v1520_v1  ;;  %v1395_v11 = vunpack.c.l.bf16 %v1849_v62  ;;  %v1396_v12 = vunpack.c.h.bf16 %v1849_v62  ;;  %v1883_v59 = vld [vmem:[%s2444_s3 + $0x50] sm:$0xff]  }
  0x1d   :  { %v925_v15 = vmax.f32 %v285_v60, %v669_v4  ;;  %v287_v16 = vmax.f32 %v1139_v2, %v1267_v6  ;;  %v288_v17 = vmax.f32 %v1140_v5, %v1268_v7  ;;  %v1523_v18 = vunpack.c.l.bf16 %v1880_v3  ;;  %v1822_v5 = vld [vmem:[%s2442_s1 + $0x58] sm:$0xff]  }
  0x1e   :  { %1909 = vst [vmem:[%s2445_s4 + $0x28] sm:$0xff] %v1649_v9   ;;  %v926_v20 = vmax.f32 %v286_v0, %v670_v10  ;;  %v1524_v21 = vunpack.c.h.bf16 %v1880_v3  ;;  %v1143_v22 = vunpack.c.l.bf16 %v1788_v8  ;;  %v1144_v23 = vunpack.c.h.bf16 %v1788_v8  ;;  %v1791_v0 = vld [vmem:[%s2441_s0 + $0x58] sm:$0xff]  }
  0x1f   :  { %v671_v24 = vmax.f32 %v1395_v11, %v1523_v18  ;;  %v1271_v25 = vunpack.c.l.bf16 %v1819_v13  ;;  %v1272_v26 = vunpack.c.h.bf16 %v1819_v13  ;;  %v1399_v27 = vunpack.c.l.bf16 %v1850_v14  ;;  %v1853_v10 = vld [vmem:[%s2443_s2 + $0x58] sm:$0xff]  }
  0x20   :  { %v1654_v29 = vpack.c.bf16 %v926_v20, %v925_v15  ;;  %v672_v30 = vmax.f32 %v1396_v12, %v1524_v21  ;;  %v1400_v31 = vunpack.c.h.bf16 %v1850_v14  ;;  %v1527_v32 = vunpack.c.l.bf16 %v1881_v19  ;;  %v1884_v15 = vld [vmem:[%s2444_s3 + $0x58] sm:$0xff]   ;;  %v1792_v20 = vld [vmem:[%s2441_s0 + $0x60] sm:$0xff]  }
  0x21   :  { %v927_v35 = vmax.f32 %v287_v16, %v671_v24  ;;  %v289_v36 = vmax.f32 %v1143_v22, %v1271_v25  ;;  %v290_v37 = vmax.f32 %v1144_v23, %v1272_v26  ;;  %v1528_v38 = vunpack.c.h.bf16 %v1881_v19  ;;  %v1823_v25 = vld [vmem:[%s2442_s1 + $0x60] sm:$0xff]  }
  0x22   :  { %1910 = vst [vmem:[%s2445_s4 + $0x30] sm:$0xff] %v1654_v29   ;;  %v928_v40 = vmax.f32 %v288_v17, %v672_v30  ;;  %v673_v41 = vmax.f32 %v1399_v27, %v1527_v32  ;;  %v1147_v42 = vunpack.c.l.bf16 %v1789_v28  ;;  %v1148_v43 = vunpack.c.h.bf16 %v1789_v28  ;;  %v1854_v26 = vld [vmem:[%s2443_s2 + $0x60] sm:$0xff]  }
  0x23   :  { %v674_v44 = vmax.f32 %v1400_v31, %v1528_v38  ;;  %v1275_v45 = vunpack.c.l.bf16 %v1820_v33  ;;  %v1276_v46 = vunpack.c.h.bf16 %v1820_v33  ;;  %v1403_v47 = vunpack.c.l.bf16 %v1851_v34  ;;  %v1885_v31 = vld [vmem:[%s2444_s3 + $0x60] sm:$0xff]  }
  0x24   :  { %v1659_v50 = vpack.c.bf16 %v928_v40, %v927_v35  ;;  %v929_v51 = vmax.f32 %v289_v36, %v673_v41  ;;  %v1404_v52 = vunpack.c.h.bf16 %v1851_v34  ;;  %v1531_v53 = vunpack.c.l.bf16 %v1882_v39  ;;  %v1793_v40 = vld [vmem:[%s2441_s0 + $0x68] sm:$0xff]  }
  0x25   :  { %v930_v55 = vmax.f32 %v290_v37, %v674_v44  ;;  %v291_v56 = vmax.f32 %v1147_v42, %v1275_v45  ;;  %v292_v57 = vmax.f32 %v1148_v43, %v1276_v46  ;;  %v1532_v58 = vunpack.c.h.bf16 %v1882_v39  ;;  %v1824_v45 = vld [vmem:[%s2442_s1 + $0x68] sm:$0xff]  }
  0x26   :  { %1911 = vst [vmem:[%s2445_s4 + $0x38] sm:$0xff] %v1659_v50   ;;  %v675_v60 = vmax.f32 %v1403_v47, %v1531_v53  ;;  %v1151_v61 = vunpack.c.l.bf16 %v1790_v48  ;;  %v1152_v62 = vunpack.c.h.bf16 %v1790_v48  ;;  %v1279_v63 = vunpack.c.l.bf16 %v1821_v49  ;;  %v1855_v46 = vld [vmem:[%s2443_s2 + $0x68] sm:$0xff]  }
  0x27   :  { %v1664_v1 = vpack.c.bf16 %v930_v55, %v929_v51  ;;  %v676_v2 = vmax.f32 %v1404_v52, %v1532_v58  ;;  %v1280_v3 = vunpack.c.h.bf16 %v1821_v49  ;;  %v1407_v4 = vunpack.c.l.bf16 %v1852_v54  ;;  %v1886_v51 = vld [vmem:[%s2444_s3 + $0x68] sm:$0xff]  }
  0x28   :  { %v931_v6 = vmax.f32 %v291_v56, %v675_v60  ;;  %v293_v7 = vmax.f32 %v1151_v61, %v1279_v63  ;;  %v1408_v8 = vunpack.c.h.bf16 %v1852_v54  ;;  %v1535_v9 = vunpack.c.l.bf16 %v1883_v59  ;;  %v1794_v60 = vld [vmem:[%s2441_s0 + $0x70] sm:$0xff]  }
  0x29   :  { %1912 = vst [vmem:[%s2445_s4 + $0x40] sm:$0xff] %v1664_v1   ;;  %v932_v11 = vmax.f32 %v292_v57, %v676_v2  ;;  %v294_v12 = vmax.f32 %v1152_v62, %v1280_v3  ;;  %v1536_v13 = vunpack.c.h.bf16 %v1883_v59  ;;  %v1155_v14 = vunpack.c.l.bf16 %v1791_v0  ;;  %v1825_v61 = vld [vmem:[%s2442_s1 + $0x70] sm:$0xff]  }
  0x2a   :  { %v677_v16 = vmax.f32 %v1407_v4, %v1535_v9  ;;  %v1156_v17 = vunpack.c.h.bf16 %v1791_v0  ;;  %v1283_v18 = vunpack.c.l.bf16 %v1822_v5  ;;  %v1284_v19 = vunpack.c.h.bf16 %v1822_v5  ;;  %v1856_v2 = vld [vmem:[%s2443_s2 + $0x70] sm:$0xff]  }
  0x2b   :  { %v1669_v21 = vpack.c.bf16 %v932_v11, %v931_v6  ;;  %v678_v22 = vmax.f32 %v1408_v8, %v1536_v13  ;;  %v1411_v23 = vunpack.c.l.bf16 %v1853_v10  ;;  %v1412_v24 = vunpack.c.h.bf16 %v1853_v10 }
  0x2c   :  { %v933_v27 = vmax.f32 %v293_v7, %v677_v16  ;;  %v295_v28 = vmax.f32 %v1155_v14, %v1283_v18  ;;  %v296_v29 = vmax.f32 %v1156_v17, %v1284_v19  ;;  %v1539_v30 = vunpack.c.l.bf16 %v1884_v15  ;;  %v1887_v7 = vld [vmem:[%s2444_s3 + $0x70] sm:$0xff]   ;;  %v1826_v17 = vld [vmem:[%s2442_s1 + $0x78] sm:$0xff]  }
  0x2d   :  { %1913 = vst [vmem:[%s2445_s4 + $0x48] sm:$0xff] %v1669_v21   ;;  %v934_v32 = vmax.f32 %v294_v12, %v678_v22  ;;  %v1540_v33 = vunpack.c.h.bf16 %v1884_v15  ;;  %v1159_v34 = vunpack.c.l.bf16 %v1792_v20  ;;  %v1160_v35 = vunpack.c.h.bf16 %v1792_v20  ;;  %v1795_v12 = vld [vmem:[%s2441_s0 + $0x78] sm:$0xff]  }
  0x2e   :  { %v679_v36 = vmax.f32 %v1411_v23, %v1539_v30  ;;  %v1287_v37 = vunpack.c.l.bf16 %v1823_v25  ;;  %v1288_v38 = vunpack.c.h.bf16 %v1823_v25  ;;  %v1415_v39 = vunpack.c.l.bf16 %v1854_v26  ;;  %v1857_v22 = vld [vmem:[%s2443_s2 + $0x78] sm:$0xff]  }
  0x2f   :  { %v1674_v41 = vpack.c.bf16 %v934_v32, %v933_v27  ;;  %v680_v42 = vmax.f32 %v1412_v24, %v1540_v33  ;;  %v1416_v43 = vunpack.c.h.bf16 %v1854_v26  ;;  %v1543_v44 = vunpack.c.l.bf16 %v1885_v31  ;;  %v1888_v27 = vld [vmem:[%s2444_s3 + $0x78] sm:$0xff]   ;;  %v1796_v32 = vld [vmem:[%s2441_s0 + $0x80] sm:$0xff]  }
  0x30   :  { %v935_v47 = vmax.f32 %v295_v28, %v679_v36  ;;  %v297_v48 = vmax.f32 %v1159_v34, %v1287_v37  ;;  %v298_v49 = vmax.f32 %v1160_v35, %v1288_v38  ;;  %v1544_v50 = vunpack.c.h.bf16 %v1885_v31  ;;  %v1827_v37 = vld [vmem:[%s2442_s1 + $0x80] sm:$0xff]  }
  0x31   :  { %1914 = vst [vmem:[%s2445_s4 + $0x50] sm:$0xff] %v1674_v41   ;;  %v936_v52 = vmax.f32 %v296_v29, %v680_v42  ;;  %v681_v53 = vmax.f32 %v1415_v39, %v1543_v44  ;;  %v1163_v54 = vunpack.c.l.bf16 %v1793_v40  ;;  %v1164_v55 = vunpack.c.h.bf16 %v1793_v40  ;;  %v1858_v38 = vld [vmem:[%s2443_s2 + $0x80] sm:$0xff]  }
  0x32   :  { %v682_v56 = vmax.f32 %v1416_v43, %v1544_v50  ;;  %v1291_v57 = vunpack.c.l.bf16 %v1824_v45  ;;  %v1292_v58 = vunpack.c.h.bf16 %v1824_v45  ;;  %v1419_v59 = vunpack.c.l.bf16 %v1855_v46  ;;  %v1889_v43 = vld [vmem:[%s2444_s3 + $0x80] sm:$0xff]  }
  0x33   :  { %v1679_v62 = vpack.c.bf16 %v936_v52, %v935_v47  ;;  %v937_v63 = vmax.f32 %v297_v48, %v681_v53  ;;  %v1420_v0 = vunpack.c.h.bf16 %v1855_v46  ;;  %v1547_v1 = vunpack.c.l.bf16 %v1886_v51  ;;  %v1797_v52 = vld [vmem:[%s2441_s0 + $0x88] sm:$0xff]  }
  0x34   :  { %v938_v3 = vmax.f32 %v298_v49, %v682_v56  ;;  %v299_v4 = vmax.f32 %v1163_v54, %v1291_v57  ;;  %v300_v5 = vmax.f32 %v1164_v55, %v1292_v58  ;;  %v1548_v6 = vunpack.c.h.bf16 %v1886_v51  ;;  %v1828_v57 = vld [vmem:[%s2442_s1 + $0x88] sm:$0xff]  }
  0x35   :  { %1915 = vst [vmem:[%s2445_s4 + $0x58] sm:$0xff] %v1679_v62   ;;  %v683_v8 = vmax.f32 %v1419_v59, %v1547_v1  ;;  %v1167_v9 = vunpack.c.l.bf16 %v1794_v60  ;;  %v1168_v10 = vunpack.c.h.bf16 %v1794_v60  ;;  %v1295_v11 = vunpack.c.l.bf16 %v1825_v61  ;;  %v1859_v58 = vld [vmem:[%s2443_s2 + $0x88] sm:$0xff]  }
  0x36   :  { %v1684_v13 = vpack.c.bf16 %v938_v3, %v937_v63  ;;  %v684_v14 = vmax.f32 %v1420_v0, %v1548_v6  ;;  %v1296_v15 = vunpack.c.h.bf16 %v1825_v61  ;;  %v1423_v16 = vunpack.c.l.bf16 %v1856_v2  ;;  %v1890_v63 = vld [vmem:[%s2444_s3 + $0x88] sm:$0xff]  }
  0x37   :  { %v939_v18 = vmax.f32 %v299_v4, %v683_v8  ;;  %v301_v19 = vmax.f32 %v1167_v9, %v1295_v11  ;;  %v1424_v20 = vunpack.c.h.bf16 %v1856_v2  ;;  %v1551_v21 = vunpack.c.l.bf16 %v1887_v7  ;;  %v1798_v8 = vld [vmem:[%s2441_s0 + $0x90] sm:$0xff]  }
  0x38   :  { %1916 = vst [vmem:[%s2445_s4 + $0x60] sm:$0xff] %v1684_v13   ;;  %v940_v23 = vmax.f32 %v300_v5, %v684_v14  ;;  %v302_v24 = vmax.f32 %v1168_v10, %v1296_v15  ;;  %v1552_v25 = vunpack.c.h.bf16 %v1887_v7  ;;  %v1171_v26 = vunpack.c.l.bf16 %v1795_v12  ;;  %v1829_v9 = vld [vmem:[%s2442_s1 + $0x90] sm:$0xff]  }
  0x39   :  { %v685_v28 = vmax.f32 %v1423_v16, %v1551_v21  ;;  %v1172_v29 = vunpack.c.h.bf16 %v1795_v12  ;;  %v1299_v30 = vunpack.c.l.bf16 %v1826_v17  ;;  %v1300_v31 = vunpack.c.h.bf16 %v1826_v17  ;;  %v1860_v14 = vld [vmem:[%s2443_s2 + $0x90] sm:$0xff]  }
  0x3a   :  { %v1689_v33 = vpack.c.bf16 %v940_v23, %v939_v18  ;;  %v686_v34 = vmax.f32 %v1424_v20, %v1552_v25  ;;  %v1427_v35 = vunpack.c.l.bf16 %v1857_v22  ;;  %v1428_v36 = vunpack.c.h.bf16 %v1857_v22 }
  0x3b   :  { %v941_v39 = vmax.f32 %v301_v19, %v685_v28  ;;  %v303_v40 = vmax.f32 %v1171_v26, %v1299_v30  ;;  %v304_v41 = vmax.f32 %v1172_v29, %v1300_v31  ;;  %v1555_v42 = vunpack.c.l.bf16 %v1888_v27  ;;  %v1891_v19 = vld [vmem:[%s2444_s3 + $0x90] sm:$0xff]   ;;  %v1830_v29 = vld [vmem:[%s2442_s1 + $0x98] sm:$0xff]  }
  0x3c   :  { %1917 = vst [vmem:[%s2445_s4 + $0x68] sm:$0xff] %v1689_v33   ;;  %v942_v44 = vmax.f32 %v302_v24, %v686_v34  ;;  %v1556_v45 = vunpack.c.h.bf16 %v1888_v27  ;;  %v1175_v46 = vunpack.c.l.bf16 %v1796_v32  ;;  %v1176_v47 = vunpack.c.h.bf16 %v1796_v32  ;;  %v1799_v24 = vld [vmem:[%s2441_s0 + $0x98] sm:$0xff]  }
  0x3d   :  { %v687_v48 = vmax.f32 %v1427_v35, %v1555_v42  ;;  %v1303_v49 = vunpack.c.l.bf16 %v1827_v37  ;;  %v1304_v50 = vunpack.c.h.bf16 %v1827_v37  ;;  %v1431_v51 = vunpack.c.l.bf16 %v1858_v38  ;;  %v1861_v34 = vld [vmem:[%s2443_s2 + $0x98] sm:$0xff]  }
  0x3e   :  { %v1694_v53 = vpack.c.bf16 %v942_v44, %v941_v39  ;;  %v688_v54 = vmax.f32 %v1428_v36, %v1556_v45  ;;  %v1432_v55 = vunpack.c.h.bf16 %v1858_v38  ;;  %v1559_v56 = vunpack.c.l.bf16 %v1889_v43  ;;  %v1892_v39 = vld [vmem:[%s2444_s3 + $0x98] sm:$0xff]   ;;  %v1800_v44 = vld [vmem:[%s2441_s0 + $0xa0] sm:$0xff]  }
  0x3f   :  { %v943_v59 = vmax.f32 %v303_v40, %v687_v48  ;;  %v305_v60 = vmax.f32 %v1175_v46, %v1303_v49  ;;  %v306_v61 = vmax.f32 %v1176_v47, %v1304_v50  ;;  %v1560_v62 = vunpack.c.h.bf16 %v1889_v43  ;;  %v1831_v49 = vld [vmem:[%s2442_s1 + $0xa0] sm:$0xff]  }
  0x40   :  { %1918 = vst [vmem:[%s2445_s4 + $0x70] sm:$0xff] %v1694_v53   ;;  %v944_v0 = vmax.f32 %v304_v41, %v688_v54  ;;  %v689_v1 = vmax.f32 %v1431_v51, %v1559_v56  ;;  %v1179_v2 = vunpack.c.l.bf16 %v1797_v52  ;;  %v1180_v3 = vunpack.c.h.bf16 %v1797_v52  ;;  %v1862_v50 = vld [vmem:[%s2443_s2 + $0xa0] sm:$0xff]  }
  0x41   :  { %v690_v4 = vmax.f32 %v1432_v55, %v1560_v62  ;;  %v1307_v5 = vunpack.c.l.bf16 %v1828_v57  ;;  %v1308_v6 = vunpack.c.h.bf16 %v1828_v57  ;;  %v1435_v7 = vunpack.c.l.bf16 %v1859_v58  ;;  %v1893_v55 = vld [vmem:[%s2444_s3 + $0xa0] sm:$0xff]  }
  0x42   :  { %v1699_v10 = vpack.c.bf16 %v944_v0, %v943_v59  ;;  %v945_v11 = vmax.f32 %v305_v60, %v689_v1  ;;  %v1436_v12 = vunpack.c.h.bf16 %v1859_v58  ;;  %v1563_v13 = vunpack.c.l.bf16 %v1890_v63  ;;  %v1801_v0 = vld [vmem:[%s2441_s0 + $0xa8] sm:$0xff]  }
  0x43   :  { %v946_v15 = vmax.f32 %v306_v61, %v690_v4  ;;  %v307_v16 = vmax.f32 %v1179_v2, %v1307_v5  ;;  %v308_v17 = vmax.f32 %v1180_v3, %v1308_v6  ;;  %v1564_v18 = vunpack.c.h.bf16 %v1890_v63  ;;  %v1832_v5 = vld [vmem:[%s2442_s1 + $0xa8] sm:$0xff]  }
  0x44   :  { %1919 = vst [vmem:[%s2445_s4 + $0x78] sm:$0xff] %v1699_v10   ;;  %v691_v20 = vmax.f32 %v1435_v7, %v1563_v13  ;;  %v1183_v21 = vunpack.c.l.bf16 %v1798_v8  ;;  %v1184_v22 = vunpack.c.h.bf16 %v1798_v8  ;;  %v1311_v23 = vunpack.c.l.bf16 %v1829_v9  ;;  %v1863_v6 = vld [vmem:[%s2443_s2 + $0xa8] sm:$0xff]  }
  0x45   :  { %v1704_v25 = vpack.c.bf16 %v946_v15, %v945_v11  ;;  %v692_v26 = vmax.f32 %v1436_v12, %v1564_v18  ;;  %v1312_v27 = vunpack.c.h.bf16 %v1829_v9  ;;  %v1439_v28 = vunpack.c.l.bf16 %v1860_v14  ;;  %v1894_v11 = vld [vmem:[%s2444_s3 + $0xa8] sm:$0xff]  }
  0x46   :  { %v947_v30 = vmax.f32 %v307_v16, %v691_v20  ;;  %v309_v31 = vmax.f32 %v1183_v21, %v1311_v23  ;;  %v1440_v32 = vunpack.c.h.bf16 %v1860_v14  ;;  %v1567_v33 = vunpack.c.l.bf16 %v1891_v19  ;;  %v1802_v20 = vld [vmem:[%s2441_s0 + $0xb0] sm:$0xff]  }
  0x47   :  { %1920 = vst [vmem:[%s2445_s4 + $0x80] sm:$0xff] %v1704_v25   ;;  %v948_v35 = vmax.f32 %v308_v17, %v692_v26  ;;  %v310_v36 = vmax.f32 %v1184_v22, %v1312_v27  ;;  %v1568_v37 = vunpack.c.h.bf16 %v1891_v19  ;;  %v1187_v38 = vunpack.c.l.bf16 %v1799_v24  ;;  %v1833_v21 = vld [vmem:[%s2442_s1 + $0xb0] sm:$0xff]  }
  0x48   :  { %v693_v40 = vmax.f32 %v1439_v28, %v1567_v33  ;;  %v1188_v41 = vunpack.c.h.bf16 %v1799_v24  ;;  %v1315_v42 = vunpack.c.l.bf16 %v1830_v29  ;;  %v1316_v43 = vunpack.c.h.bf16 %v1830_v29  ;;  %v1864_v26 = vld [vmem:[%s2443_s2 + $0xb0] sm:$0xff]  }
  0x49   :  { %v1709_v45 = vpack.c.bf16 %v948_v35, %v947_v30  ;;  %v694_v46 = vmax.f32 %v1440_v32, %v1568_v37  ;;  %v1443_v47 = vunpack.c.l.bf16 %v1861_v34  ;;  %v1444_v48 = vunpack.c.h.bf16 %v1861_v34 }
  0x4a   :  { %v949_v51 = vmax.f32 %v309_v31, %v693_v40  ;;  %v311_v52 = vmax.f32 %v1187_v38, %v1315_v42  ;;  %v312_v53 = vmax.f32 %v1188_v41, %v1316_v43  ;;  %v1571_v54 = vunpack.c.l.bf16 %v1892_v39  ;;  %v1895_v31 = vld [vmem:[%s2444_s3 + $0xb0] sm:$0xff]   ;;  %v1834_v41 = vld [vmem:[%s2442_s1 + $0xb8] sm:$0xff]  }
  0x4b   :  { %1921 = vst [vmem:[%s2445_s4 + $0x88] sm:$0xff] %v1709_v45   ;;  %v950_v56 = vmax.f32 %v310_v36, %v694_v46  ;;  %v1572_v57 = vunpack.c.h.bf16 %v1892_v39  ;;  %v1191_v58 = vunpack.c.l.bf16 %v1800_v44  ;;  %v1192_v59 = vunpack.c.h.bf16 %v1800_v44  ;;  %v1803_v36 = vld [vmem:[%s2441_s0 + $0xb8] sm:$0xff]  }
  0x4c   :  { %v695_v60 = vmax.f32 %v1443_v47, %v1571_v54  ;;  %v1319_v61 = vunpack.c.l.bf16 %v1831_v49  ;;  %v1320_v62 = vunpack.c.h.bf16 %v1831_v49  ;;  %v1447_v63 = vunpack.c.l.bf16 %v1862_v50  ;;  %v1865_v46 = vld [vmem:[%s2443_s2 + $0xb8] sm:$0xff]  }
  0x4d   :  { %v1714_v1 = vpack.c.bf16 %v950_v56, %v949_v51  ;;  %v696_v2 = vmax.f32 %v1444_v48, %v1572_v57  ;;  %v1448_v3 = vunpack.c.h.bf16 %v1862_v50  ;;  %v1575_v4 = vunpack.c.l.bf16 %v1893_v55  ;;  %v1896_v51 = vld [vmem:[%s2444_s3 + $0xb8] sm:$0xff]   ;;  %v1804_v56 = vld [vmem:[%s2441_s0 + $0xc0] sm:$0xff]  }
  0x4e   :  { %v951_v7 = vmax.f32 %v311_v52, %v695_v60  ;;  %v313_v8 = vmax.f32 %v1191_v58, %v1319_v61  ;;  %v314_v9 = vmax.f32 %v1192_v59, %v1320_v62  ;;  %v1576_v10 = vunpack.c.h.bf16 %v1893_v55  ;;  %v1835_v61 = vld [vmem:[%s2442_s1 + $0xc0] sm:$0xff]  }
  0x4f   :  { %1922 = vst [vmem:[%s2445_s4 + $0x90] sm:$0xff] %v1714_v1   ;;  %v952_v12 = vmax.f32 %v312_v53, %v696_v2  ;;  %v697_v13 = vmax.f32 %v1447_v63, %v1575_v4  ;;  %v1195_v14 = vunpack.c.l.bf16 %v1801_v0  ;;  %v1196_v15 = vunpack.c.h.bf16 %v1801_v0  ;;  %v1866_v62 = vld [vmem:[%s2443_s2 + $0xc0] sm:$0xff]  }
  0x50   :  { %v698_v16 = vmax.f32 %v1448_v3, %v1576_v10  ;;  %v1323_v17 = vunpack.c.l.bf16 %v1832_v5  ;;  %v1324_v18 = vunpack.c.h.bf16 %v1832_v5  ;;  %v1451_v19 = vunpack.c.l.bf16 %v1863_v6  ;;  %v1897_v3 = vld [vmem:[%s2444_s3 + $0xc0] sm:$0xff]  }
  0x51   :  { %v1719_v22 = vpack.c.bf16 %v952_v12, %v951_v7  ;;  %v953_v23 = vmax.f32 %v313_v8, %v697_v13  ;;  %v1452_v24 = vunpack.c.h.bf16 %v1863_v6  ;;  %v1579_v25 = vunpack.c.l.bf16 %v1894_v11  ;;  %v1805_v12 = vld [vmem:[%s2441_s0 + $0xc8] sm:$0xff]  }
  0x52   :  { %v954_v27 = vmax.f32 %v314_v9, %v698_v16  ;;  %v315_v28 = vmax.f32 %v1195_v14, %v1323_v17  ;;  %v316_v29 = vmax.f32 %v1196_v15, %v1324_v18  ;;  %v1580_v30 = vunpack.c.h.bf16 %v1894_v11  ;;  %v1836_v17 = vld [vmem:[%s2442_s1 + $0xc8] sm:$0xff]  }
  0x53   :  { %1923 = vst [vmem:[%s2445_s4 + $0x98] sm:$0xff] %v1719_v22   ;;  %v699_v32 = vmax.f32 %v1451_v19, %v1579_v25  ;;  %v1199_v33 = vunpack.c.l.bf16 %v1802_v20  ;;  %v1200_v34 = vunpack.c.h.bf16 %v1802_v20  ;;  %v1327_v35 = vunpack.c.l.bf16 %v1833_v21  ;;  %v1867_v18 = vld [vmem:[%s2443_s2 + $0xc8] sm:$0xff]  }
  0x54   :  { %v1724_v37 = vpack.c.bf16 %v954_v27, %v953_v23  ;;  %v700_v38 = vmax.f32 %v1452_v24, %v1580_v30  ;;  %v1328_v39 = vunpack.c.h.bf16 %v1833_v21  ;;  %v1455_v40 = vunpack.c.l.bf16 %v1864_v26  ;;  %v1898_v23 = vld [vmem:[%s2444_s3 + $0xc8] sm:$0xff]  }
  0x55   :  { %v955_v42 = vmax.f32 %v315_v28, %v699_v32  ;;  %v317_v43 = vmax.f32 %v1199_v33, %v1327_v35  ;;  %v1456_v44 = vunpack.c.h.bf16 %v1864_v26  ;;  %v1583_v45 = vunpack.c.l.bf16 %v1895_v31  ;;  %v1806_v32 = vld [vmem:[%s2441_s0 + $0xd0] sm:$0xff]  }
  0x56   :  { %1924 = vst [vmem:[%s2445_s4 + $0xa0] sm:$0xff] %v1724_v37   ;;  %v956_v47 = vmax.f32 %v316_v29, %v700_v38  ;;  %v318_v48 = vmax.f32 %v1200_v34, %v1328_v39  ;;  %v1584_v49 = vunpack.c.h.bf16 %v1895_v31  ;;  %v1203_v50 = vunpack.c.l.bf16 %v1803_v36  ;;  %v1837_v33 = vld [vmem:[%s2442_s1 + $0xd0] sm:$0xff]  }
  0x57   :  { %v701_v52 = vmax.f32 %v1455_v40, %v1583_v45  ;;  %v1204_v53 = vunpack.c.h.bf16 %v1803_v36  ;;  %v1331_v54 = vunpack.c.l.bf16 %v1834_v41  ;;  %v1332_v55 = vunpack.c.h.bf16 %v1834_v41  ;;  %v1868_v38 = vld [vmem:[%s2443_s2 + $0xd0] sm:$0xff]  }
  0x58   :  { %v1729_v57 = vpack.c.bf16 %v956_v47, %v955_v42  ;;  %v702_v58 = vmax.f32 %v1456_v44, %v1584_v49  ;;  %v1459_v59 = vunpack.c.l.bf16 %v1865_v46  ;;  %v1460_v60 = vunpack.c.h.bf16 %v1865_v46 }
  0x59   :  { %v957_v63 = vmax.f32 %v317_v43, %v701_v52  ;;  %v319_v0 = vmax.f32 %v1203_v50, %v1331_v54  ;;  %v320_v1 = vmax.f32 %v1204_v53, %v1332_v55  ;;  %v1587_v2 = vunpack.c.l.bf16 %v1896_v51  ;;  %v1899_v43 = vld [vmem:[%s2444_s3 + $0xd0] sm:$0xff]   ;;  %v1838_v53 = vld [vmem:[%s2442_s1 + $0xd8] sm:$0xff]  }
  0x5a   :  { %1925 = vst [vmem:[%s2445_s4 + $0xa8] sm:$0xff] %v1729_v57   ;;  %v958_v4 = vmax.f32 %v318_v48, %v702_v58  ;;  %v1588_v5 = vunpack.c.h.bf16 %v1896_v51  ;;  %v1207_v6 = vunpack.c.l.bf16 %v1804_v56  ;;  %v1208_v7 = vunpack.c.h.bf16 %v1804_v56  ;;  %v1807_v48 = vld [vmem:[%s2441_s0 + $0xd8] sm:$0xff]  }
  0x5b   :  { %v703_v8 = vmax.f32 %v1459_v59, %v1587_v2  ;;  %v1335_v9 = vunpack.c.l.bf16 %v1835_v61  ;;  %v1336_v10 = vunpack.c.h.bf16 %v1835_v61  ;;  %v1463_v11 = vunpack.c.l.bf16 %v1866_v62  ;;  %v1869_v58 = vld [vmem:[%s2443_s2 + $0xd8] sm:$0xff]  }
  0x5c   :  { %v1734_v13 = vpack.c.bf16 %v958_v4, %v957_v63  ;;  %v704_v14 = vmax.f32 %v1460_v60, %v1588_v5  ;;  %v1464_v15 = vunpack.c.h.bf16 %v1866_v62  ;;  %v1591_v16 = vunpack.c.l.bf16 %v1897_v3  ;;  %v1900_v63 = vld [vmem:[%s2444_s3 + $0xd8] sm:$0xff]   ;;  %v1808_v4 = vld [vmem:[%s2441_s0 + $0xe0] sm:$0xff]  }
  0x5d   :  { %v959_v19 = vmax.f32 %v319_v0, %v703_v8  ;;  %v321_v20 = vmax.f32 %v1207_v6, %v1335_v9  ;;  %v322_v21 = vmax.f32 %v1208_v7, %v1336_v10  ;;  %v1592_v22 = vunpack.c.h.bf16 %v1897_v3  ;;  %v1839_v9 = vld [vmem:[%s2442_s1 + $0xe0] sm:$0xff]  }
  0x5e   :  { %1926 = vst [vmem:[%s2445_s4 + $0xb0] sm:$0xff] %v1734_v13   ;;  %v960_v24 = vmax.f32 %v320_v1, %v704_v14  ;;  %v705_v25 = vmax.f32 %v1463_v11, %v1591_v16  ;;  %v1211_v26 = vunpack.c.l.bf16 %v1805_v12  ;;  %v1212_v27 = vunpack.c.h.bf16 %v1805_v12  ;;  %v1870_v10 = vld [vmem:[%s2443_s2 + $0xe0] sm:$0xff]  }
  0x5f   :  { %v706_v28 = vmax.f32 %v1464_v15, %v1592_v22  ;;  %v1339_v29 = vunpack.c.l.bf16 %v1836_v17  ;;  %v1340_v30 = vunpack.c.h.bf16 %v1836_v17  ;;  %v1467_v31 = vunpack.c.l.bf16 %v1867_v18  ;;  %v1901_v15 = vld [vmem:[%s2444_s3 + $0xe0] sm:$0xff]  }
  0x60   :  { %v1739_v34 = vpack.c.bf16 %v960_v24, %v959_v19  ;;  %v961_v35 = vmax.f32 %v321_v20, %v705_v25  ;;  %v1468_v36 = vunpack.c.h.bf16 %v1867_v18  ;;  %v1595_v37 = vunpack.c.l.bf16 %v1898_v23  ;;  %v1809_v24 = vld [vmem:[%s2441_s0 + $0xe8] sm:$0xff]  }
  0x61   :  { %v962_v39 = vmax.f32 %v322_v21, %v706_v28  ;;  %v323_v40 = vmax.f32 %v1211_v26, %v1339_v29  ;;  %v324_v41 = vmax.f32 %v1212_v27, %v1340_v30  ;;  %v1596_v42 = vunpack.c.h.bf16 %v1898_v23  ;;  %v1840_v29 = vld [vmem:[%s2442_s1 + $0xe8] sm:$0xff]  }
  0x62   :  { %1927 = vst [vmem:[%s2445_s4 + $0xb8] sm:$0xff] %v1739_v34   ;;  %v707_v44 = vmax.f32 %v1467_v31, %v1595_v37  ;;  %v1215_v45 = vunpack.c.l.bf16 %v1806_v32  ;;  %v1216_v46 = vunpack.c.h.bf16 %v1806_v32  ;;  %v1343_v47 = vunpack.c.l.bf16 %v1837_v33  ;;  %v1871_v30 = vld [vmem:[%s2443_s2 + $0xe8] sm:$0xff]  }
  0x63   :  { %v1744_v49 = vpack.c.bf16 %v962_v39, %v961_v35  ;;  %v708_v50 = vmax.f32 %v1468_v36, %v1596_v42  ;;  %v1344_v51 = vunpack.c.h.bf16 %v1837_v33  ;;  %v1471_v52 = vunpack.c.l.bf16 %v1868_v38  ;;  %v1902_v35 = vld [vmem:[%s2444_s3 + $0xe8] sm:$0xff]  }
  0x64   :  { %v963_v54 = vmax.f32 %v323_v40, %v707_v44  ;;  %v325_v55 = vmax.f32 %v1215_v45, %v1343_v47  ;;  %v1472_v56 = vunpack.c.h.bf16 %v1868_v38  ;;  %v1599_v57 = vunpack.c.l.bf16 %v1899_v43  ;;  %v1810_v44 = vld [vmem:[%s2441_s0 + $0xf0] sm:$0xff]  }
  0x65   :  { %1928 = vst [vmem:[%s2445_s4 + $0xc0] sm:$0xff] %v1744_v49   ;;  %v964_v59 = vmax.f32 %v324_v41, %v708_v50  ;;  %v326_v60 = vmax.f32 %v1216_v46, %v1344_v51  ;;  %v1600_v61 = vunpack.c.h.bf16 %v1899_v43  ;;  %v1219_v62 = vunpack.c.l.bf16 %v1807_v48  ;;  %v1841_v45 = vld [vmem:[%s2442_s1 + $0xf0] sm:$0xff]  }
  0x66   :  { %v709_v0 = vmax.f32 %v1471_v52, %v1599_v57  ;;  %v1220_v1 = vunpack.c.h.bf16 %v1807_v48  ;;  %v1347_v2 = vunpack.c.l.bf16 %v1838_v53  ;;  %v1348_v3 = vunpack.c.h.bf16 %v1838_v53  ;;  %v1872_v50 = vld [vmem:[%s2443_s2 + $0xf0] sm:$0xff]  }
  0x67   :  { %v1749_v5 = vpack.c.bf16 %v964_v59, %v963_v54  ;;  %v710_v6 = vmax.f32 %v1472_v56, %v1600_v61  ;;  %v1475_v7 = vunpack.c.l.bf16 %v1869_v58  ;;  %v1476_v8 = vunpack.c.h.bf16 %v1869_v58 }
  0x68   :  { %v965_v11 = vmax.f32 %v325_v55, %v709_v0  ;;  %v327_v12 = vmax.f32 %v1219_v62, %v1347_v2  ;;  %v328_v13 = vmax.f32 %v1220_v1, %v1348_v3  ;;  %v1603_v14 = vunpack.c.l.bf16 %v1900_v63  ;;  %v1903_v55 = vld [vmem:[%s2444_s3 + $0xf0] sm:$0xff]   ;;  %v1842_v1 = vld [vmem:[%s2442_s1 + $0xf8] sm:$0xff]  }
  0x69   :  { %1929 = vst [vmem:[%s2445_s4 + $0xc8] sm:$0xff] %v1749_v5   ;;  %v966_v16 = vmax.f32 %v326_v60, %v710_v6  ;;  %v1604_v17 = vunpack.c.h.bf16 %v1900_v63  ;;  %v1223_v18 = vunpack.c.l.bf16 %v1808_v4  ;;  %v1224_v19 = vunpack.c.h.bf16 %v1808_v4  ;;  %v1811_v60 = vld [vmem:[%s2441_s0 + $0xf8] sm:$0xff]  }
  0x6a   :  { %v711_v20 = vmax.f32 %v1475_v7, %v1603_v14  ;;  %v1351_v21 = vunpack.c.l.bf16 %v1839_v9  ;;  %v1352_v22 = vunpack.c.h.bf16 %v1839_v9  ;;  %v1479_v23 = vunpack.c.l.bf16 %v1870_v10  ;;  %v1873_v6 = vld [vmem:[%s2443_s2 + $0xf8] sm:$0xff]  }
  0x6b   :  { %v1754_v25 = vpack.c.bf16 %v966_v16, %v965_v11  ;;  %v712_v26 = vmax.f32 %v1476_v8, %v1604_v17  ;;  %v1480_v27 = vunpack.c.h.bf16 %v1870_v10  ;;  %v1607_v28 = vunpack.c.l.bf16 %v1901_v15  ;;  %v1904_v11 = vld [vmem:[%s2444_s3 + $0xf8] sm:$0xff]  }
  0x6c   :  { %v967_v31 = vmax.f32 %v327_v12, %v711_v20  ;;  %v329_v32 = vmax.f32 %v1223_v18, %v1351_v21  ;;  %v330_v33 = vmax.f32 %v1224_v19, %v1352_v22  ;;  %v1608_v34 = vunpack.c.h.bf16 %v1901_v15 }
  0x6d   :  { %1930 = vst [vmem:[%s2445_s4 + $0xd0] sm:$0xff] %v1754_v25   ;;  %v968_v36 = vmax.f32 %v328_v13, %v712_v26  ;;  %v713_v37 = vmax.f32 %v1479_v23, %v1607_v28  ;;  %v1227_v38 = vunpack.c.l.bf16 %v1809_v24  ;;  %v1228_v39 = vunpack.c.h.bf16 %v1809_v24 }
  0x6e   :  { %v714_v40 = vmax.f32 %v1480_v27, %v1608_v34  ;;  %v1355_v41 = vunpack.c.l.bf16 %v1840_v29  ;;  %v1356_v42 = vunpack.c.h.bf16 %v1840_v29  ;;  %v1483_v43 = vunpack.c.l.bf16 %v1871_v30 }
  0x6f   :  { %v1759_v46 = vpack.c.bf16 %v968_v36, %v967_v31  ;;  %v969_v47 = vmax.f32 %v329_v32, %v713_v37  ;;  %v1484_v48 = vunpack.c.h.bf16 %v1871_v30  ;;  %v1611_v49 = vunpack.c.l.bf16 %v1902_v35 }
  0x70   :  { %v970_v51 = vmax.f32 %v330_v33, %v714_v40  ;;  %v331_v52 = vmax.f32 %v1227_v38, %v1355_v41  ;;  %v332_v53 = vmax.f32 %v1228_v39, %v1356_v42  ;;  %v1612_v54 = vunpack.c.h.bf16 %v1902_v35 }
  0x71   :  { %1931 = vst [vmem:[%s2445_s4 + $0xd8] sm:$0xff] %v1759_v46   ;;  %v715_v56 = vmax.f32 %v1483_v43, %v1611_v49  ;;  %v1231_v57 = vunpack.c.l.bf16 %v1810_v44  ;;  %v1232_v58 = vunpack.c.h.bf16 %v1810_v44  ;;  %v1359_v59 = vunpack.c.l.bf16 %v1841_v45 }
  0x72   :  { %v1764_v61 = vpack.c.bf16 %v970_v51, %v969_v47  ;;  %v716_v62 = vmax.f32 %v1484_v48, %v1612_v54  ;;  %v1360_v63 = vunpack.c.h.bf16 %v1841_v45  ;;  %v1487_v0 = vunpack.c.l.bf16 %v1872_v50 }
  0x73   :  { %v971_v2 = vmax.f32 %v331_v52, %v715_v56  ;;  %v333_v3 = vmax.f32 %v1231_v57, %v1359_v59  ;;  %v1488_v4 = vunpack.c.h.bf16 %v1872_v50  ;;  %v1615_v5 = vunpack.c.l.bf16 %v1903_v55 }
  0x74   :  { %1932 = vst [vmem:[%s2445_s4 + $0xe0] sm:$0xff] %v1764_v61   ;;  %v972_v7 = vmax.f32 %v332_v53, %v716_v62  ;;  %v334_v8 = vmax.f32 %v1232_v58, %v1360_v63  ;;  %v1616_v9 = vunpack.c.h.bf16 %v1903_v55  ;;  %v1235_v10 = vunpack.c.l.bf16 %v1811_v60 }
  0x75   :  { %v717_v12 = vmax.f32 %v1487_v0, %v1615_v5  ;;  %v1236_v13 = vunpack.c.h.bf16 %v1811_v60  ;;  %v1363_v14 = vunpack.c.l.bf16 %v1842_v1  ;;  %v1364_v15 = vunpack.c.h.bf16 %v1842_v1 }
  0x76   :  { %v1769_v16 = vpack.c.bf16 %v972_v7, %v971_v2  ;;  %v718_v17 = vmax.f32 %v1488_v4, %v1616_v9  ;;  %v1491_v18 = vunpack.c.l.bf16 %v1873_v6  ;;  %v1492_v19 = vunpack.c.h.bf16 %v1873_v6 }
  0x77   :  { %v973_v20 = vmax.f32 %v333_v3, %v717_v12  ;;  %v335_v21 = vmax.f32 %v1235_v10, %v1363_v14  ;;  %v1619_v22 = vunpack.c.l.bf16 %v1904_v11  ;;  %v336_v24 = vmax.f32 %v1236_v13, %v1364_v15 }
  0x78   :  { %1933 = vst [vmem:[%s2445_s4 + $0xe8] sm:$0xff] %v1769_v16   ;;  %v974_v23 = vmax.f32 %v334_v8, %v718_v17  ;;  %v1620_v25 = vunpack.c.h.bf16 %v1904_v11 }
  0x79   :  { %v719_v26 = vmax.f32 %v1491_v18, %v1619_v22 }
  0x7a   :  { %v1774_v27 = vpack.c.bf16 %v974_v23, %v973_v20  ;;  %v720_v28 = vmax.f32 %v1492_v19, %v1620_v25 }
  0x7b   :  { %v975_v29 = vmax.f32 %v335_v21, %v719_v26 }
  0x7c   :  { %1934 = vst [vmem:[%s2445_s4 + $0xf0] sm:$0xff] %v1774_v27   ;;  %v976_v30 = vmax.f32 %v336_v24, %v720_v28 }
  0x7e   :  { %v1779_v31 = vpack.c.bf16 %v976_v30, %v975_v29 }
  0x80   :  { %1935 = vst [vmem:[%s2445_s4 + $0xf8] sm:$0xff] %v1779_v31  }

// kernel: vgg16_features.22
= control target key start
LH: loop header
LB: loop body
LE: loop exit
PB: predicated region body
PF: predicated region fallthrough
CT: control target
= control target key end

     0   :  { %s985_s12 = smov 0   ;;  %s1157_s0 = inlined_call_operand.vmem [shape: bf16[648,48], index: 0, kind: input, shape index: {}]   ;;  %s1158_s1 = inlined_call_operand.vmem [shape: bf16[3,48,128], index: 1, kind: input, shape index: {}]   ;;  %s1159_s2 = inlined_call_operand.vmem [shape: f32[1,128], index: 2, kind: input, shape index: {}]   ;;  %s1160_s3 = inlined_call_operand.vmem [shape: bf16[640,128], index: 3, kind: output, shape index: {}]  }
   0x1 LB: > { %s758_s13 = sadd.s32 4294967295, %s963_s12   ;;  %p761_p0 = scmp.ge.s32.totalorder %s963_s12, 1  ;;  %s963_s12 = sphi %s985_s12, %s13_s12  }
   0x2   : > { %p127_p1 = scmp.lt.s32.totalorder %s963_s12, 6 }
   0x4   : > { %p128_p2 = pnand %p761_p0, %p127_p1 }
   0x5   : > { %s764_s20 = sshll.u32 (!%p128_p2), %s758_s13, 7  ;;  %s762_s11 = sshll.u32 (!%p128_p2), %s758_s13, 4 }
   0x6   : > { %131 = sbr.rel (%p128_p2) target bundleno = 273 (0x111), region = 32  ;;  %s154_s21 = sshra.s32 (!%p128_p2), %s764_s20, 3 }
   0x7   : > { %s765_s28 = sshll.u32 (!%p128_p2), %s154_s21, 2  ;;  %p147_p3 = scmp.lt.s32.totalorder (!%p128_p2), %s762_s11, 79 }
   0x8   : > { %s1019_s6 = scalar_lea.vmem (!%p128_p2), %s1157_s0, %s765_s28 }
   0xb   : > { %v885_v0 = vld [vmem:[%s1158_s1 + $0x10] sm:$0xff]  ;;  %v888_v1 = vld [vmem:[%s1158_s1 + $0x28] sm:$0xff]  ;;  %v891_v2 = vld [vmem:[%s1158_s1 + $0x40] sm:$0xff]  ;;  %vm242_vm0 = vcmask 392192   ;;  %vm417_vm1 = vcmask 1046528   ;;  %vm578_vm2 = vcmask 1045504  }
   0xc   : > { %275 = vmatpush.bf16.msra.mxu0 %v885_v0  ;;  %939 = vmatpush.bf16.msra.mxu3 %v885_v0  ;;  %v884_v3 = vld [vmem:[%s1158_s1 + $0x8] sm:$0xff]  ;;  %v887_v4 = vld [vmem:[%s1158_s1 + $0x20] sm:$0xff]  ;;  %v890_v5 = vld [vmem:[%s1158_s1 + $0x38] sm:$0xff]  ;;  %s1162_s11 = smov (!%p147_p3, %s762_s11), 79 }
   0xd   : > { %352 = vmatpush.bf16.msra.mxu1 %v888_v1  ;;  %513 = vmatpush.bf16.msra.mxu2 %v891_v2  ;;  %v883_v6 = vld [vmem:[%s1158_s1] sm:$0xff]  ;;  %v886_v7 = vld [vmem:[%s1158_s1 + $0x18] sm:$0xff]  ;;  %v889_v8 = vld [vmem:[%s1158_s1 + $0x30] sm:$0xff]  ;;  %s763_s13 = sshll.u32 %s1162_s11, 2 }
   0xe   : > { %v875_v9 = vld [vmem:[%s1019_s6] sm:$0xff]  ;;  %v882_v10 = vld [vmem:[%s1019_s6 + $0x38] sm:$0xff]  ;;  %v876_v13 = vld [vmem:[%s1019_s6 + $0x8] sm:$0xff]  ;;  %s1083_s18 = scalar_lea.vmem %s1160_s3, %s763_s13 }
   0xf   : > { %v174_v11 = vld [vmem:[%s1019_s6 + $0x40] sm:$0xf]  ;;  %v877_v15 = vld [vmem:[%s1019_s6 + $0x10] sm:$0xff]  ;;  %v878_v16 = vld [vmem:[%s1019_s6 + $0x18] sm:$0xff] }
  0x10   : > { %276 = vmatpush.bf16.msra.mxu0 %v884_v3  ;;  %940 = vmatpush.bf16.msra.mxu3 %v884_v3  ;;  %v214_v12 = vunpack.c.l.b16 %v174_v11  ;;  %v879_v17 = vld [vmem:[%s1019_s6 + $0x20] sm:$0xff]  ;;  %v880_v18 = vld [vmem:[%s1019_s6 + $0x28] sm:$0xff]  ;;  %v881_v19 = vld [vmem:[%s1019_s6 + $0x30] sm:$0xff] }
  0x11   : > { %353 = vmatpush.bf16.msra.mxu1 %v887_v4  ;;  %514 = vmatpush.bf16.msra.mxu2 %v890_v5  ;;  %v1075_v41 = vld [vmem:[%s1159_s2] ss:$0 sm:$0xff] }
  0x12   : > { %v223_v14 = vpack.c.b16 %v214_v12, %v214_v12 }
  0x14   : > { %277 = vmatpush.bf16.msra.mxu0 %v883_v6  ;;  %941 = vmatpush.bf16.msra.mxu3 %v883_v6 }
  0x15   : > { %354 = vmatpush.bf16.msra.mxu1 %v886_v7  ;;  %515 = vmatpush.bf16.msra.mxu2 %v889_v8 }
  0x17   : > { %810 = vmatmul.msk.bf16.vlgmr.msra.gmra.mxu0 %vm242_vm0, %v875_v9  ;;  %817 = vmatmul.msk.bf16.vlgmr.msra.gmra.mxu3 %vm242_vm0, %v882_v10 }
  0x18   : > { %942 = vmatpush.bf16.msrb.mxu3 %v888_v1  ;;  %837 = vmatmul.msk.bf16.vlgmr.msra.gmra.mxu1 %vm242_vm0, %v875_v9 }
  0x19   : > { %864 = vmatmul.msk.bf16.vlgmr.msra.gmra.mxu2 %vm242_vm0, %v875_v9 }
  0x1c   : > { %943 = vmatpush.bf16.msrb.mxu3 %v887_v4 }
  0x20   : > { %944 = vmatpush.bf16.msrb.mxu3 %v886_v7 }
  0x24   : > { %945 = vmatpush.bf16.msra.mxu3 %v891_v2 }
  0x27   : > { %811 = vmatmul.msk.bf16.gmra.mxu0 %vm242_vm0, %v876_v13  ;;  %818 = vmatmul.msk.bf16.gmra.mxu3 %vm242_vm0, %v223_v14 }
  0x28   : > { %946 = vmatpush.bf16.msra.mxu3 %v890_v5  ;;  %838 = vmatmul.msk.bf16.gmra.mxu1 %vm242_vm0, %v876_v13 }
  0x29   : > { %865 = vmatmul.msk.bf16.gmra.mxu2 %vm242_vm0, %v876_v13 }
  0x2c   : > { %947 = vmatpush.bf16.msra.mxu3 %v889_v8 }
  0x37   : > { %812 = vmatmul.msk.bf16.gmra.mxu0 %vm242_vm0, %v877_v15  ;;  %844 = vmatmul.msk.bf16.vlgmr.msrb.gmra.mxu3 %vm242_vm0, %v882_v10 }
  0x38   : > { %839 = vmatmul.msk.bf16.gmra.mxu1 %vm242_vm0, %v877_v15 }
  0x39   : > { %866 = vmatmul.msk.bf16.gmra.mxu2 %vm242_vm0, %v877_v15 }
  0x47   : > { %813 = vmatmul.msk.bf16.gmra.mxu0 %vm242_vm0, %v878_v16  ;;  %845 = vmatmul.msk.bf16.gmra.mxu3 %vm242_vm0, %v223_v14 }
  0x48   : > { %840 = vmatmul.msk.bf16.gmra.mxu1 %vm242_vm0, %v878_v16 }
  0x49   : > { %867 = vmatmul.msk.bf16.gmra.mxu2 %vm242_vm0, %v878_v16 }
  0x57   : > { %814 = vmatmul.msk.bf16.gmra.mxu0 %vm242_vm0, %v879_v17  ;;  %871 = vmatmul.msk.bf16.vlgmr.msra.gmra.mxu3 %vm242_vm0, %v882_v10 }
  0x58   : > { %841 = vmatmul.msk.bf16.gmra.mxu1 %vm242_vm0, %v879_v17 }
  0x59   : > { %868 = vmatmul.msk.bf16.gmra.mxu2 %vm242_vm0, %v879_v17 }
  0x67   : > { %815 = vmatmul.msk.bf16.gmra.mxu0 %vm242_vm0, %v880_v18  ;;  %872 = vmatmul.msk.bf16.gmra.mxu3 %vm242_vm0, %v223_v14 }
  0x68   : > { %842 = vmatmul.msk.bf16.gmra.mxu1 %vm242_vm0, %v880_v18 }
  0x69   : > { %869 = vmatmul.msk.bf16.gmra.mxu2 %vm242_vm0, %v880_v18 }
  0x77   : > { %816 = vmatmul.msk.bf16.gmra.mxu0 %vm242_vm0, %v881_v19 }
  0x78   : > { %843 = vmatmul.msk.bf16.gmra.mxu1 %vm242_vm0, %v881_v19 }
  0x79   : > { %870 = vmatmul.msk.bf16.gmra.mxu2 %vm242_vm0, %v881_v19 }
  0x94   : > { %v279_v20 = vpop.f32.mrf.mxu0 }
  0x95   : > { %v356_v21 = vpop.f32.mrf.mxu1 }
  0x96   : > { %v418_v29 = vrot.slane %v356_v21, 1 }
  0x9a   : > { %v1063_v22 = vpop.f32.mrf.mxu3 }
  0x9c   : > { %v517_v23 = vpop.f32.mrf.mxu2  ;;  %v281_v24 = vpop.f32.mrf.mxu0 }
  0x9d   : > { %v358_v25 = vpop.f32.mrf.mxu1  ;;  %v579_v33 = vrot.slane %v517_v23, 2 }
  0x9e   : > { %v419_v26 = vrot.slane %v358_v25, 1 }
  0xa0   : > { %v420_v34 = vsel %vm417_vm1, %v418_v29, %v419_v26 }
  0xa1   : > { %v467_v37 = vadd.f32 %v420_v34, %v279_v20 }
  0xa2   : > { %v1065_v27 = vpop.f32.mrf.mxu3 }
  0xa4   : > { %v519_v28 = vpop.f32.mrf.mxu2  ;;  %v284_v31 = vpop.f32.mrf.mxu0 }
  0xa5   : > { %v580_v30 = vrot.slane %v519_v28, 2  ;;  %v361_v32 = vpop.f32.mrf.mxu1 }
  0xa6   : > { %v421_v35 = vrot.slane %v361_v32, 1 }
  0xa7   : > { %v581_v36 = vsel %vm578_vm2, %v579_v33, %v580_v30 }
  0xa8   : > { %v422_v38 = vsel %vm417_vm1, %v419_v26, %v421_v35  ;;  %v628_v40 = vadd.f32 %v581_v36, %v467_v37 }
  0xa9   : > { %v468_v45 = vadd.f32 %v422_v38, %v281_v24 }
  0xaa   : > { %v319_v39 = vpop.f32.mrf.mxu3  ;;  %v648_v48 = vadd.f32 %v1075_v41, %v628_v40 }
  0xac   : > { %v522_v42 = vpop.f32.mrf.mxu2  ;;  %v286_v44 = vpop.f32.mrf.mxu0  ;;  %v664_v53 = vmax.f32 %v648_v48, 0.0 }
  0xad   : > { %v582_v43 = vrot.slane %v522_v42, 2  ;;  %v363_v46 = vpop.f32.mrf.mxu1 }
  0xae   : > { %v423_v51 = vrot.slane %v363_v46, 1 }
  0xaf   : > { %v583_v47 = vsel %vm578_vm2, %v580_v30, %v582_v43 }
  0xb0   : > { %v629_v49 = vadd.f32 %v583_v47, %v468_v45  ;;  %v424_v60 = vsel %vm417_vm1, %v421_v35, %v423_v51 }
  0xb1   : > { %v469_v63 = vadd.f32 %v424_v60, %v284_v31 }
  0xb2   : > { %v649_v50 = vadd.f32 %v1075_v41, %v629_v49  ;;  %v320_v52 = vpop.f32.mrf.mxu3 }
  0xb4   : > { %v665_v54 = vmax.f32 %v649_v50, 0.0  ;;  %v524_v55 = vpop.f32.mrf.mxu2  ;;  %v289_v57 = vpop.f32.mrf.mxu0 }
  0xb5   : > { %v584_v56 = vrot.slane %v524_v55, 2  ;;  %v366_v59 = vpop.f32.mrf.mxu1 }
  0xb6   : > { %v895_v58 = vpack.c.bf16 %v665_v54, %v664_v53  ;;  %v425_v61 = vrot.slane %v366_v59, 1 }
  0xb7   : > { %v585_v62 = vsel %vm578_vm2, %v582_v43, %v584_v56 }
  0xb8   : > { %896 = vst [vmem:[%s1083_s18] sm:$0xff] %v895_v58   ;;  %v426_v0 = vsel %vm417_vm1, %v423_v51, %v425_v61  ;;  %v630_v2 = vadd.f32 %v585_v62, %v469_v63 }
  0xb9   : > { %v470_v6 = vadd.f32 %v426_v0, %v286_v44 }
  0xba   : > { %v1089_v1 = vpop.f32.mrf.mxu3  ;;  %v650_v9 = vadd.f32 %v1075_v41, %v630_v2 }
  0xbb   : > { %v445_v0 = vrot.slane %v1089_v1, 1 }
  0xbc   : > { %v527_v3 = vpop.f32.mrf.mxu2  ;;  %v291_v5 = vpop.f32.mrf.mxu0  ;;  %v666_v14 = vmax.f32 %v650_v9, 0.0 }
  0xbd   : > { %v586_v4 = vrot.slane %v527_v3, 2  ;;  %v368_v7 = vpop.f32.mrf.mxu1 }
  0xbe   : > { %v427_v12 = vrot.slane %v368_v7, 1 }
  0xbf   : > { %v587_v8 = vsel %vm578_vm2, %v584_v56, %v586_v4 }
  0xc0   : > { %v631_v10 = vadd.f32 %v587_v8, %v470_v6  ;;  %v428_v21 = vsel %vm417_vm1, %v425_v61, %v427_v12 }
  0xc1   : > { %v471_v25 = vadd.f32 %v428_v21, %v289_v57 }
  0xc2   : > { %v651_v11 = vadd.f32 %v1075_v41, %v631_v10  ;;  %v1094_v13 = vpop.f32.mrf.mxu3 }
  0xc3   : > { %v447_v2 = vrot.slane %v1094_v13, 1 }
  0xc4   : > { %v667_v15 = vmax.f32 %v651_v11, 0.0  ;;  %v529_v16 = vpop.f32.mrf.mxu2  ;;  %v294_v18 = vpop.f32.mrf.mxu0 }
  0xc5   : > { %v588_v17 = vrot.slane %v529_v16, 2  ;;  %v371_v20 = vpop.f32.mrf.mxu1 }
  0xc6   : > { %v900_v19 = vpack.c.bf16 %v667_v15, %v666_v14  ;;  %v429_v23 = vrot.slane %v371_v20, 1 }
  0xc7   : > { %v589_v24 = vsel %vm578_vm2, %v586_v4, %v588_v17 }
  0xc8   : > { %932 = vst [vmem:[%s1083_s18 + $0x8] sm:$0xff] %v900_v19   ;;  %v430_v26 = vsel %vm417_vm1, %v427_v12, %v429_v23  ;;  %v632_v29 = vadd.f32 %v589_v24, %v471_v25  ;;  %v448_v12 = vsel %vm417_vm1, %v445_v0, %v447_v2 }
  0xc9   : > { %v472_v33 = vadd.f32 %v430_v26, %v291_v5  ;;  %v481_v20 = vadd.f32 %v448_v12, %v1063_v22 }
  0xca   : > { %v396_v28 = vpop.f32.mrf.mxu3  ;;  %v652_v36 = vadd.f32 %v1075_v41, %v632_v29 }
  0xcb   : > { %v449_v14 = vrot.slane %v396_v28, 1 }
  0xcc   : > { %v532_v30 = vpop.f32.mrf.mxu2  ;;  %v296_v32 = vpop.f32.mrf.mxu0  ;;  %v668_v42 = vmax.f32 %v652_v36, 0.0 }
  0xcd   : > { %v590_v31 = vrot.slane %v532_v30, 2  ;;  %v373_v34 = vpop.f32.mrf.mxu1 }
  0xce   : > { %v431_v39 = vrot.slane %v373_v34, 1 }
  0xcf   : > { %v591_v35 = vsel %vm578_vm2, %v588_v17, %v590_v31 }
  0xd0   : > { %v633_v37 = vadd.f32 %v591_v35, %v472_v33  ;;  %v432_v49 = vsel %vm417_vm1, %v429_v23, %v431_v39  ;;  %v450_v23 = vsel %vm417_vm1, %v447_v2, %v449_v14 }
  0xd1   : > { %v473_v52 = vadd.f32 %v432_v49, %v294_v18 }
  0xd2   : > { %v653_v38 = vadd.f32 %v1075_v41, %v633_v37  ;;  %v398_v40 = vpop.f32.mrf.mxu3 }
  0xd4   : > { %v669_v43 = vmax.f32 %v653_v38, 0.0  ;;  %v534_v44 = vpop.f32.mrf.mxu2  ;;  %v299_v46 = vpop.f32.mrf.mxu0 }
  0xd5   : > { %v592_v45 = vrot.slane %v534_v44, 2  ;;  %v376_v48 = vpop.f32.mrf.mxu1 }
  0xd6   : > { %v905_v47 = vpack.c.bf16 %v669_v43, %v668_v42  ;;  %v433_v50 = vrot.slane %v376_v48, 1 }
  0xd7   : > { %v593_v51 = vsel %vm578_vm2, %v590_v31, %v592_v45 }
  0xd8   : > { %933 = vst [vmem:[%s1083_s18 + $0x10] sm:$0xff] %v905_v47   ;;  %v434_v53 = vsel %vm417_vm1, %v431_v39, %v433_v50  ;;  %v634_v55 = vadd.f32 %v593_v51, %v473_v52 }
  0xd9   : > { %v474_v59 = vadd.f32 %v434_v53, %v296_v32  ;;  %v482_v32 = vadd.f32 %v450_v23, %v1065_v27 }
  0xda   : > { %v1107_v54 = vpop.f32.mrf.mxu3  ;;  %v654_v62 = vadd.f32 %v1075_v41, %v634_v55 }
  0xdb   : > { %v606_v8 = vrot.slane %v1107_v54, 2 }
  0xdc   : > { %v537_v56 = vpop.f32.mrf.mxu2  ;;  %v301_v58 = vpop.f32.mrf.mxu0  ;;  %v670_v6 = vmax.f32 %v654_v62, 0.0 }
  0xdd   : > { %v594_v57 = vrot.slane %v537_v56, 2  ;;  %v378_v60 = vpop.f32.mrf.mxu1 }
  0xde   : > { %v435_v4 = vrot.slane %v378_v60, 1 }
  0xdf   : > { %v595_v61 = vsel %vm578_vm2, %v592_v45, %v594_v57 }
  0xe0   : > { %v635_v63 = vadd.f32 %v595_v61, %v474_v59  ;;  %v436_v13 = vsel %vm417_vm1, %v433_v50, %v435_v4 }
  0xe1   : > { %v475_v24 = vadd.f32 %v436_v13, %v299_v46 }
  0xe2   : > { %v655_v3 = vadd.f32 %v1075_v41, %v635_v63  ;;  %v554_v5 = vpop.f32.mrf.mxu3 }
  0xe3   : > { %v608_v10 = vrot.slane %v554_v5, 2 }
  0xe4   : > { %v671_v7 = vmax.f32 %v655_v3, 0.0  ;;  %v539_v9 = vpop.f32.mrf.mxu2  ;;  %v304_v17 = vpop.f32.mrf.mxu0 }
  0xe5   : > { %v596_v11 = vrot.slane %v539_v9, 2  ;;  %v381_v16 = vpop.f32.mrf.mxu1  ;;  %v609_v19 = vsel %vm578_vm2, %v606_v8, %v608_v10 }
  0xe6   : > { %v910_v15 = vpack.c.bf16 %v671_v7, %v670_v6  ;;  %v437_v18 = vrot.slane %v381_v16, 1  ;;  %v642_v25 = vadd.f32 %v609_v19, %v481_v20 }
  0xe7   : > { %v597_v21 = vsel %vm578_vm2, %v594_v57, %v596_v11 }
  0xe8   : > { %934 = vst [vmem:[%s1083_s18 + $0x18] sm:$0xff] %v910_v15   ;;  %v438_v26 = vsel %vm417_vm1, %v435_v4, %v437_v18  ;;  %v636_v29 = vadd.f32 %v597_v21, %v475_v24  ;;  %v662_v22 = vadd.f32 %v1075_v41, %v642_v25 }
  0xe9   : > { %v476_v34 = vadd.f32 %v438_v26, %v301_v58 }
  0xea   : > { %v557_v28 = vpop.f32.mrf.mxu3  ;;  %v656_v39 = vadd.f32 %v1075_v41, %v636_v29  ;;  %v678_v44 = vmax.f32 %v662_v22, 0.0 }
  0xeb   : > { %v610_v31 = vrot.slane %v557_v28, 2 }
  0xec   : > { %v542_v30 = vpop.f32.mrf.mxu2  ;;  %v306_v43 = vpop.f32.mrf.mxu0  ;;  %v672_v48 = vmax.f32 %v656_v39, 0.0 }
  0xed   : > { %v598_v33 = vrot.slane %v542_v30, 2  ;;  %v611_v35 = vsel %vm578_vm2, %v608_v10, %v610_v31  ;;  %v383_v36 = vpop.f32.mrf.mxu1 }
  0xee   : > { %v643_v38 = vadd.f32 %v611_v35, %v482_v32  ;;  %v439_v46 = vrot.slane %v383_v36, 1 }
  0xef   : > { %v599_v37 = vsel %vm578_vm2, %v596_v11, %v598_v33 }
  0xf0   : > { %v637_v40 = vadd.f32 %v599_v37, %v476_v34  ;;  %v663_v42 = vadd.f32 %v1075_v41, %v643_v38  ;;  %v440_v56 = vsel %vm417_vm1, %v437_v18, %v439_v46 }
  0xf1   : > { %v477_v59 = vadd.f32 %v440_v56, %v304_v17 }
  0xf2   : > { %v657_v27 = vadd.f32 %v1075_v41, %v637_v40  ;;  %v679_v45 = vmax.f32 %v663_v42, 0.0  ;;  %v559_v47 = vpop.f32.mrf.mxu3 }
  0xf4   : > { %v673_v49 = vmax.f32 %v657_v27, 0.0  ;;  %v544_v50 = vpop.f32.mrf.mxu2  ;;  %v930_v51 = vpack.c.bf16 %v679_v45, %v678_v44  ;;  %v309_v60 = vpop.f32.mrf.mxu0 }
  0xf5   : > { %v600_v52 = vrot.slane %v544_v50, 2  ;;  %v386_v55 = vpop.f32.mrf.mxu1 }
  0xf6   : > { %v915_v53 = vpack.c.bf16 %v673_v49, %v672_v48  ;;  %938 = vst [vmem:[%s1083_s18 + $0x38] sm:$0xff] %v930_v51   ;;  %v441_v57 = vrot.slane %v386_v55, 1 }
  0xf7   : > { %v601_v58 = vsel %vm578_vm2, %v598_v33, %v600_v52 }
  0xf8   : > { %935 = vst [vmem:[%s1083_s18 + $0x20] sm:$0xff] %v915_v53   ;;  %v442_v61 = vsel %vm417_vm1, %v439_v46, %v441_v57  ;;  %v638_v62 = vadd.f32 %v601_v58, %v477_v59 }
  0xf9   : > { %v478_v3 = vadd.f32 %v442_v61, %v306_v43 }
  0xfa   : > { %v658_v7 = vadd.f32 %v1075_v41, %v638_v62 }
  0xfc   : > { %v547_v63 = vpop.f32.mrf.mxu2  ;;  %v674_v14 = vmax.f32 %v658_v7, 0.0  ;;  %v311_v13 = vpop.f32.mrf.mxu0 }
  0xfd   : > { %v602_v2 = vrot.slane %v547_v63, 2  ;;  %v388_v4 = vpop.f32.mrf.mxu1 }
  0xfe   : > { %v443_v6 = vrot.slane %v388_v4, 1 }
  0xff   : > { %v603_v5 = vsel %vm578_vm2, %v600_v52, %v602_v2 }
 0x100   : > { %v639_v9 = vadd.f32 %v603_v5, %v478_v3  ;;  %v444_v11 = vsel %vm417_vm1, %v441_v57, %v443_v6  ;;  %v446_v12 = vsel %vm417_vm1, %v443_v6, %v445_v0 }
 0x101   : > { %v479_v19 = vadd.f32 %v444_v11, %v309_v60  ;;  %v480_v20 = vadd.f32 %v446_v12, %v311_v13 }
 0x102   : > { %v659_v10 = vadd.f32 %v1075_v41, %v639_v9 }
 0x104   : > { %v675_v15 = vmax.f32 %v659_v10, 0.0  ;;  %v549_v16 = vpop.f32.mrf.mxu2 }
 0x105   : > { %v604_v17 = vrot.slane %v549_v16, 2 }
 0x106   : > { %v920_v18 = vpack.c.bf16 %v675_v15, %v674_v14 }
 0x107   : > { %v605_v21 = vsel %vm578_vm2, %v602_v2, %v604_v17  ;;  %v607_v23 = vsel %vm578_vm2, %v604_v17, %v606_v8 }
 0x108   : > { %936 = vst [vmem:[%s1083_s18 + $0x28] sm:$0xff] %v920_v18   ;;  %v640_v24 = vadd.f32 %v605_v21, %v479_v19  ;;  %v641_v1 = vadd.f32 %v607_v23, %v480_v20 }
 0x10a   : > { %v660_v0 = vadd.f32 %v1075_v41, %v640_v24  ;;  %v661_v25 = vadd.f32 %v1075_v41, %v641_v1 }
 0x10c   : > { %v676_v26 = vmax.f32 %v660_v0, 0.0  ;;  %v677_v28 = vmax.f32 %v661_v25, 0.0 }
 0x10e   : > { %v925_v29 = vpack.c.bf16 %v677_v28, %v676_v26 }
 0x110   : > { %937 = vst [vmem:[%s1083_s18 + $0x30] sm:$0xff] %v925_v29  }
 0x111 PF: > { %s13_s12 = sadd.s32 1, %s963_s12  }
 0x112   : > { %p10_p4 = scmp.ge.s32.totalorder %s13_s12, 7  }
 0x114   :  { %12 = sbr.rel (!%p10_p4) target bundleno = 1 (0x1), region = 62 }

// kernel: vgg16_features.23
= control target key start
LH: loop header
LB: loop body
LE: loop exit
PB: predicated region body
PF: predicated region fallthrough
CT: control target
= control target key end

     0   :  { %s1123_s12 = smov 0   ;;  %s1326_s0 = inlined_call_operand.vmem [shape: bf16[648,96], index: 0, kind: input, shape index: {}]   ;;  %s1327_s1 = inlined_call_operand.vmem [shape: bf16[3,96,128], index: 1, kind: input, shape index: {}]   ;;  %s1328_s2 = inlined_call_operand.vmem [shape: f32[1,128], index: 2, kind: input, shape index: {}]   ;;  %s1329_s3 = inlined_call_operand.vmem [shape: bf16[640,128], index: 3, kind: output, shape index: {}]  }
   0x1 LB: > { %s830_s13 = sadd.s32 4294967295, %s1101_s12   ;;  %p833_p0 = scmp.ge.s32.totalorder %s1101_s12, 1  ;;  %s1101_s12 = sphi %s1123_s12, %s13_s12  }
   0x2   : > { %p127_p1 = scmp.lt.s32.totalorder %s1101_s12, 6 }
   0x4   : > { %p128_p2 = pnand %p833_p0, %p127_p1 }
   0x5   : > { %s836_s5 = sshll.u32 (!%p128_p2), %s830_s13, 7  ;;  %s834_s4 = sshll.u32 (!%p128_p2), %s830_s13, 4 }
   0x6   : > { %131 = sbr.rel (%p128_p2) target bundleno = 285 (0x11d), region = 32  ;;  %s154_s14 = sshra.s32 (!%p128_p2), %s836_s5, 3 }
   0x7   : > { %s837_s21 = sshll.u32 (!%p128_p2), %s154_s14, 2  ;;  %p147_p3 = scmp.lt.s32.totalorder (!%p128_p2), %s834_s4, 79 }
   0x8   : > { %s1187_s26 = scalar_lea.vmem (!%p128_p2), %s1326_s0, %s837_s21 }
   0xb   : > { %v1008_v0 = vld [vmem:[%s1327_s1 + $0x28] sm:$0xff]  ;;  %v1014_v1 = vld [vmem:[%s1327_s1 + $0x58] sm:$0xff]  ;;  %v1007_v3 = vld [vmem:[%s1327_s1 + $0x20] sm:$0xff]  ;;  %vm266_vm0 = vcmask 785408   ;;  %vm465_vm1 = vcmask 1046528   ;;  %vm650_vm2 = vcmask 1045504  }
   0xc   : > { %v1140_v2 = vld [vmem:[%s1327_s1 + $0x88] sm:$0xff]  ;;  %296 = vmatpush.bf16.msra.mxu0 %v1008_v0  ;;  %1068 = vmatpush.bf16.msra.mxu3 %v1008_v0  ;;  %v1013_v4 = vld [vmem:[%s1327_s1 + $0x50] sm:$0xff]  ;;  %v1019_v5 = vld [vmem:[%s1327_s1 + $0x80] sm:$0xff]  ;;  %s1331_s4 = smov (!%p147_p3, %s834_s4), 79 }
   0xd   : > { %397 = vmatpush.bf16.msra.mxu1 %v1014_v1  ;;  %582 = vmatpush.bf16.msra.mxu2 %v1140_v2  ;;  %v1006_v6 = vld [vmem:[%s1327_s1 + $0x18] sm:$0xff]  ;;  %v1012_v7 = vld [vmem:[%s1327_s1 + $0x48] sm:$0xff]  ;;  %v1005_v9 = vld [vmem:[%s1327_s1 + $0x10] sm:$0xff]  ;;  %s835_s13 = sshll.u32 %s1331_s4, 2 }
   0xe   : > { %v1018_v8 = vld [vmem:[%s1327_s1 + $0x78] sm:$0xff]  ;;  %v1011_v10 = vld [vmem:[%s1327_s1 + $0x40] sm:$0xff]  ;;  %v1017_v11 = vld [vmem:[%s1327_s1 + $0x70] sm:$0xff]  ;;  %s1252_s9 = scalar_lea.vmem %s1329_s3, %s835_s13 }
   0xf   : > { %v1004_v12 = vld [vmem:[%s1327_s1 + $0x8] sm:$0xff]  ;;  %v1010_v13 = vld [vmem:[%s1327_s1 + $0x38] sm:$0xff]  ;;  %v1003_v15 = vld [vmem:[%s1327_s1] sm:$0xff] }
  0x10   : > { %297 = vmatpush.bf16.msra.mxu0 %v1007_v3  ;;  %1069 = vmatpush.bf16.msra.mxu3 %v1007_v3  ;;  %v1016_v14 = vld [vmem:[%s1327_s1 + $0x68] sm:$0xff]  ;;  %v1009_v16 = vld [vmem:[%s1327_s1 + $0x30] sm:$0xff]  ;;  %v1015_v17 = vld [vmem:[%s1327_s1 + $0x60] sm:$0xff] }
  0x11   : > { %398 = vmatpush.bf16.msra.mxu1 %v1013_v4  ;;  %583 = vmatpush.bf16.msra.mxu2 %v1019_v5  ;;  %v995_v18 = vld [vmem:[%s1187_s26] sm:$0xff]  ;;  %v1002_v19 = vld [vmem:[%s1187_s26 + $0x38] sm:$0xff]  ;;  %v996_v22 = vld [vmem:[%s1187_s26 + $0x8] sm:$0xff] }
  0x12   : > { %v174_v20 = vld [vmem:[%s1187_s26 + $0x40] sm:$0xf]  ;;  %v997_v24 = vld [vmem:[%s1187_s26 + $0x10] sm:$0xff]  ;;  %v998_v25 = vld [vmem:[%s1187_s26 + $0x18] sm:$0xff] }
  0x13   : > { %v220_v21 = vunpack.c.l.b16 %v174_v20  ;;  %v999_v26 = vld [vmem:[%s1187_s26 + $0x20] sm:$0xff]  ;;  %v1000_v27 = vld [vmem:[%s1187_s26 + $0x28] sm:$0xff]  ;;  %v1001_v28 = vld [vmem:[%s1187_s26 + $0x30] sm:$0xff] }
  0x14   : > { %298 = vmatpush.bf16.msra.mxu0 %v1006_v6  ;;  %1070 = vmatpush.bf16.msra.mxu3 %v1006_v6  ;;  %v1244_v50 = vld [vmem:[%s1328_s2] ss:$0 sm:$0xff] }
  0x15   : > { %399 = vmatpush.bf16.msra.mxu1 %v1012_v7  ;;  %584 = vmatpush.bf16.msra.mxu2 %v1018_v8  ;;  %v229_v23 = vpack.c.b16 %v220_v21, %v220_v21 }
  0x18   : > { %299 = vmatpush.bf16.msra.mxu0 %v1005_v9  ;;  %1071 = vmatpush.bf16.msra.mxu3 %v1005_v9 }
  0x19   : > { %400 = vmatpush.bf16.msra.mxu1 %v1011_v10  ;;  %585 = vmatpush.bf16.msra.mxu2 %v1017_v11 }
  0x1c   : > { %300 = vmatpush.bf16.msra.mxu0 %v1004_v12  ;;  %1072 = vmatpush.bf16.msra.mxu3 %v1004_v12 }
  0x1d   : > { %401 = vmatpush.bf16.msra.mxu1 %v1010_v13  ;;  %586 = vmatpush.bf16.msra.mxu2 %v1016_v14 }
  0x20   : > { %301 = vmatpush.bf16.msra.mxu0 %v1003_v15  ;;  %1073 = vmatpush.bf16.msra.mxu3 %v1003_v15 }
  0x21   : > { %402 = vmatpush.bf16.msra.mxu1 %v1009_v16  ;;  %587 = vmatpush.bf16.msra.mxu2 %v1015_v17 }
  0x23   : > { %894 = vmatmul.msk.bf16.vlgmr.msra.gmra.mxu0 %vm266_vm0, %v995_v18  ;;  %901 = vmatmul.msk.bf16.vlgmr.msra.gmra.mxu3 %vm266_vm0, %v1002_v19 }
  0x24   : > { %1074 = vmatpush.bf16.msrb.mxu3 %v1014_v1  ;;  %939 = vmatmul.msk.bf16.vlgmr.msra.gmra.mxu1 %vm266_vm0, %v995_v18 }
  0x25   : > { %984 = vmatmul.msk.bf16.vlgmr.msra.gmra.mxu2 %vm266_vm0, %v995_v18 }
  0x28   : > { %1075 = vmatpush.bf16.msrb.mxu3 %v1013_v4 }
  0x2c   : > { %1076 = vmatpush.bf16.msrb.mxu3 %v1012_v7 }
  0x30   : > { %1077 = vmatpush.bf16.msrb.mxu3 %v1011_v10 }
  0x33   : > { %895 = vmatmul.msk.bf16.gmra.mxu0 %vm266_vm0, %v996_v22  ;;  %902 = vmatmul.msk.bf16.gmra.mxu3 %vm266_vm0, %v229_v23 }
  0x34   : > { %1078 = vmatpush.bf16.msrb.mxu3 %v1010_v13  ;;  %940 = vmatmul.msk.bf16.gmra.mxu1 %vm266_vm0, %v996_v22 }
  0x35   : > { %985 = vmatmul.msk.bf16.gmra.mxu2 %vm266_vm0, %v996_v22 }
  0x38   : > { %1079 = vmatpush.bf16.msrb.mxu3 %v1009_v16 }
  0x3c   : > { %1080 = vmatpush.bf16.msra.mxu3 %v1140_v2 }
  0x40   : > { %1081 = vmatpush.bf16.msra.mxu3 %v1019_v5 }
  0x43   : > { %896 = vmatmul.msk.bf16.gmra.mxu0 %vm266_vm0, %v997_v24  ;;  %946 = vmatmul.msk.bf16.vlgmr.msrb.gmra.mxu3 %vm266_vm0, %v1002_v19 }
  0x44   : > { %1082 = vmatpush.bf16.msra.mxu3 %v1018_v8  ;;  %941 = vmatmul.msk.bf16.gmra.mxu1 %vm266_vm0, %v997_v24 }
  0x45   : > { %986 = vmatmul.msk.bf16.gmra.mxu2 %vm266_vm0, %v997_v24 }
  0x48   : > { %1083 = vmatpush.bf16.msra.mxu3 %v1017_v11 }
  0x4c   : > { %1084 = vmatpush.bf16.msra.mxu3 %v1016_v14 }
  0x50   : > { %1085 = vmatpush.bf16.msra.mxu3 %v1015_v17 }
  0x53   : > { %897 = vmatmul.msk.bf16.gmra.mxu0 %vm266_vm0, %v998_v25  ;;  %947 = vmatmul.msk.bf16.gmra.mxu3 %vm266_vm0, %v229_v23 }
  0x54   : > { %942 = vmatmul.msk.bf16.gmra.mxu1 %vm266_vm0, %v998_v25 }
  0x55   : > { %987 = vmatmul.msk.bf16.gmra.mxu2 %vm266_vm0, %v998_v25 }
  0x63   : > { %898 = vmatmul.msk.bf16.gmra.mxu0 %vm266_vm0, %v999_v26  ;;  %991 = vmatmul.msk.bf16.vlgmr.msra.gmra.mxu3 %vm266_vm0, %v1002_v19 }
  0x64   : > { %943 = vmatmul.msk.bf16.gmra.mxu1 %vm266_vm0, %v999_v26 }
  0x65   : > { %988 = vmatmul.msk.bf16.gmra.mxu2 %vm266_vm0, %v999_v26 }
  0x73   : > { %899 = vmatmul.msk.bf16.gmra.mxu0 %vm266_vm0, %v1000_v27  ;;  %992 = vmatmul.msk.bf16.gmra.mxu3 %vm266_vm0, %v229_v23 }
  0x74   : > { %944 = vmatmul.msk.bf16.gmra.mxu1 %vm266_vm0, %v1000_v27 }
  0x75   : > { %989 = vmatmul.msk.bf16.gmra.mxu2 %vm266_vm0, %v1000_v27 }
  0x83   : > { %900 = vmatmul.msk.bf16.gmra.mxu0 %vm266_vm0, %v1001_v28 }
  0x84   : > { %945 = vmatmul.msk.bf16.gmra.mxu1 %vm266_vm0, %v1001_v28 }
  0x85   : > { %990 = vmatmul.msk.bf16.gmra.mxu2 %vm266_vm0, %v1001_v28 }
  0xa0   : > { %v303_v29 = vpop.f32.mrf.mxu0 }
  0xa1   : > { %v404_v30 = vpop.f32.mrf.mxu1 }
  0xa2   : > { %v466_v38 = vrot.slane %v404_v30, 1 }
  0xa6   : > { %v1232_v31 = vpop.f32.mrf.mxu3 }
  0xa8   : > { %v589_v32 = vpop.f32.mrf.mxu2  ;;  %v305_v33 = vpop.f32.mrf.mxu0 }
  0xa9   : > { %v406_v34 = vpop.f32.mrf.mxu1  ;;  %v651_v42 = vrot.slane %v589_v32, 2 }
  0xaa   : > { %v467_v35 = vrot.slane %v406_v34, 1 }
  0xac   : > { %v468_v43 = vsel %vm465_vm1, %v466_v38, %v467_v35 }
  0xad   : > { %v515_v46 = vadd.f32 %v468_v43, %v303_v29 }
  0xae   : > { %v1234_v36 = vpop.f32.mrf.mxu3 }
  0xb0   : > { %v591_v37 = vpop.f32.mrf.mxu2  ;;  %v308_v40 = vpop.f32.mrf.mxu0 }
  0xb1   : > { %v652_v39 = vrot.slane %v591_v37, 2  ;;  %v409_v41 = vpop.f32.mrf.mxu1 }
  0xb2   : > { %v469_v44 = vrot.slane %v409_v41, 1 }
  0xb3   : > { %v653_v45 = vsel %vm650_vm2, %v651_v42, %v652_v39 }
  0xb4   : > { %v470_v47 = vsel %vm465_vm1, %v467_v35, %v469_v44  ;;  %v700_v49 = vadd.f32 %v653_v45, %v515_v46 }
  0xb5   : > { %v516_v54 = vadd.f32 %v470_v47, %v305_v33 }
  0xb6   : > { %v343_v48 = vpop.f32.mrf.mxu3  ;;  %v720_v57 = vadd.f32 %v1244_v50, %v700_v49 }
  0xb8   : > { %v594_v51 = vpop.f32.mrf.mxu2  ;;  %v310_v53 = vpop.f32.mrf.mxu0  ;;  %v736_v62 = vmax.f32 %v720_v57, 0.0 }
  0xb9   : > { %v654_v52 = vrot.slane %v594_v51, 2  ;;  %v411_v55 = vpop.f32.mrf.mxu1 }
  0xba   : > { %v471_v60 = vrot.slane %v411_v55, 1 }
  0xbb   : > { %v655_v56 = vsel %vm650_vm2, %v652_v39, %v654_v52 }
  0xbc   : > { %v701_v58 = vadd.f32 %v655_v56, %v516_v54  ;;  %v472_v5 = vsel %vm465_vm1, %v469_v44, %v471_v60 }
  0xbd   : > { %v517_v8 = vadd.f32 %v472_v5, %v308_v40 }
  0xbe   : > { %v721_v59 = vadd.f32 %v1244_v50, %v701_v58  ;;  %v344_v61 = vpop.f32.mrf.mxu3 }
  0xc0   : > { %v737_v63 = vmax.f32 %v721_v59, 0.0  ;;  %v596_v0 = vpop.f32.mrf.mxu2  ;;  %v313_v2 = vpop.f32.mrf.mxu0 }
  0xc1   : > { %v656_v1 = vrot.slane %v596_v0, 2  ;;  %v414_v4 = vpop.f32.mrf.mxu1 }
  0xc2   : > { %v1024_v3 = vpack.c.bf16 %v737_v63, %v736_v62  ;;  %v473_v6 = vrot.slane %v414_v4, 1 }
  0xc3   : > { %v657_v7 = vsel %vm650_vm2, %v654_v52, %v656_v1 }
  0xc4   : > { %1025 = vst [vmem:[%s1252_s9] sm:$0xff] %v1024_v3   ;;  %v474_v9 = vsel %vm465_vm1, %v471_v60, %v473_v6  ;;  %v702_v11 = vadd.f32 %v657_v7, %v517_v8 }
  0xc5   : > { %v518_v15 = vadd.f32 %v474_v9, %v310_v53 }
  0xc6   : > { %v1258_v10 = vpop.f32.mrf.mxu3  ;;  %v722_v18 = vadd.f32 %v1244_v50, %v702_v11 }
  0xc7   : > { %v493_v9 = vrot.slane %v1258_v10, 1 }
  0xc8   : > { %v599_v12 = vpop.f32.mrf.mxu2  ;;  %v315_v14 = vpop.f32.mrf.mxu0  ;;  %v738_v23 = vmax.f32 %v722_v18, 0.0 }
  0xc9   : > { %v658_v13 = vrot.slane %v599_v12, 2  ;;  %v416_v16 = vpop.f32.mrf.mxu1 }
  0xca   : > { %v475_v21 = vrot.slane %v416_v16, 1 }
  0xcb   : > { %v659_v17 = vsel %vm650_vm2, %v656_v1, %v658_v13 }
  0xcc   : > { %v703_v19 = vadd.f32 %v659_v17, %v518_v15  ;;  %v476_v30 = vsel %vm465_vm1, %v473_v6, %v475_v21 }
  0xcd   : > { %v519_v34 = vadd.f32 %v476_v30, %v313_v2 }
  0xce   : > { %v723_v20 = vadd.f32 %v1244_v50, %v703_v19  ;;  %v1263_v22 = vpop.f32.mrf.mxu3 }
  0xcf   : > { %v495_v11 = vrot.slane %v1263_v22, 1 }
  0xd0   : > { %v739_v24 = vmax.f32 %v723_v20, 0.0  ;;  %v601_v25 = vpop.f32.mrf.mxu2  ;;  %v318_v27 = vpop.f32.mrf.mxu0 }
  0xd1   : > { %v660_v26 = vrot.slane %v601_v25, 2  ;;  %v419_v29 = vpop.f32.mrf.mxu1 }
  0xd2   : > { %v1029_v28 = vpack.c.bf16 %v739_v24, %v738_v23  ;;  %v477_v32 = vrot.slane %v419_v29, 1 }
  0xd3   : > { %v661_v33 = vsel %vm650_vm2, %v658_v13, %v660_v26 }
  0xd4   : > { %1061 = vst [vmem:[%s1252_s9 + $0x8] sm:$0xff] %v1029_v28   ;;  %v478_v35 = vsel %vm465_vm1, %v475_v21, %v477_v32  ;;  %v704_v38 = vadd.f32 %v661_v33, %v519_v34  ;;  %v496_v21 = vsel %vm465_vm1, %v493_v9, %v495_v11 }
  0xd5   : > { %v520_v42 = vadd.f32 %v478_v35, %v315_v14  ;;  %v529_v29 = vadd.f32 %v496_v21, %v1232_v31 }
  0xd6   : > { %v444_v37 = vpop.f32.mrf.mxu3  ;;  %v724_v45 = vadd.f32 %v1244_v50, %v704_v38 }
  0xd7   : > { %v497_v23 = vrot.slane %v444_v37, 1 }
  0xd8   : > { %v604_v39 = vpop.f32.mrf.mxu2  ;;  %v320_v41 = vpop.f32.mrf.mxu0  ;;  %v740_v51 = vmax.f32 %v724_v45, 0.0 }
  0xd9   : > { %v662_v40 = vrot.slane %v604_v39, 2  ;;  %v421_v43 = vpop.f32.mrf.mxu1 }
  0xda   : > { %v479_v48 = vrot.slane %v421_v43, 1 }
  0xdb   : > { %v663_v44 = vsel %vm650_vm2, %v660_v26, %v662_v40 }
  0xdc   : > { %v705_v46 = vadd.f32 %v663_v44, %v520_v42  ;;  %v480_v58 = vsel %vm465_vm1, %v477_v32, %v479_v48  ;;  %v498_v32 = vsel %vm465_vm1, %v495_v11, %v497_v23 }
  0xdd   : > { %v521_v61 = vadd.f32 %v480_v58, %v318_v27 }
  0xde   : > { %v725_v47 = vadd.f32 %v1244_v50, %v705_v46  ;;  %v446_v49 = vpop.f32.mrf.mxu3 }
  0xe0   : > { %v741_v52 = vmax.f32 %v725_v47, 0.0  ;;  %v606_v53 = vpop.f32.mrf.mxu2  ;;  %v323_v55 = vpop.f32.mrf.mxu0 }
  0xe1   : > { %v664_v54 = vrot.slane %v606_v53, 2  ;;  %v424_v57 = vpop.f32.mrf.mxu1 }
  0xe2   : > { %v1034_v56 = vpack.c.bf16 %v741_v52, %v740_v51  ;;  %v481_v59 = vrot.slane %v424_v57, 1 }
  0xe3   : > { %v665_v60 = vsel %vm650_vm2, %v662_v40, %v664_v54 }
  0xe4   : > { %1062 = vst [vmem:[%s1252_s9 + $0x10] sm:$0xff] %v1034_v56   ;;  %v482_v62 = vsel %vm465_vm1, %v479_v48, %v481_v59  ;;  %v706_v0 = vadd.f32 %v665_v60, %v521_v61 }
  0xe5   : > { %v522_v4 = vadd.f32 %v482_v62, %v320_v41  ;;  %v530_v41 = vadd.f32 %v498_v32, %v1234_v36 }
  0xe6   : > { %v1276_v63 = vpop.f32.mrf.mxu3  ;;  %v726_v7 = vadd.f32 %v1244_v50, %v706_v0 }
  0xe7   : > { %v678_v17 = vrot.slane %v1276_v63, 2 }
  0xe8   : > { %v609_v1 = vpop.f32.mrf.mxu2  ;;  %v325_v3 = vpop.f32.mrf.mxu0  ;;  %v742_v15 = vmax.f32 %v726_v7, 0.0 }
  0xe9   : > { %v666_v2 = vrot.slane %v609_v1, 2  ;;  %v426_v5 = vpop.f32.mrf.mxu1 }
  0xea   : > { %v483_v13 = vrot.slane %v426_v5, 1 }
  0xeb   : > { %v667_v6 = vsel %vm650_vm2, %v664_v54, %v666_v2 }
  0xec   : > { %v707_v8 = vadd.f32 %v667_v6, %v522_v4  ;;  %v484_v22 = vsel %vm465_vm1, %v481_v59, %v483_v13 }
  0xed   : > { %v523_v33 = vadd.f32 %v484_v22, %v323_v55 }
  0xee   : > { %v727_v12 = vadd.f32 %v1244_v50, %v707_v8  ;;  %v626_v14 = vpop.f32.mrf.mxu3 }
  0xef   : > { %v680_v19 = vrot.slane %v626_v14, 2 }
  0xf0   : > { %v743_v16 = vmax.f32 %v727_v12, 0.0  ;;  %v611_v18 = vpop.f32.mrf.mxu2  ;;  %v328_v26 = vpop.f32.mrf.mxu0 }
  0xf1   : > { %v668_v20 = vrot.slane %v611_v18, 2  ;;  %v429_v25 = vpop.f32.mrf.mxu1  ;;  %v681_v28 = vsel %vm650_vm2, %v678_v17, %v680_v19 }
  0xf2   : > { %v1039_v24 = vpack.c.bf16 %v743_v16, %v742_v15  ;;  %v485_v27 = vrot.slane %v429_v25, 1  ;;  %v714_v34 = vadd.f32 %v681_v28, %v529_v29 }
  0xf3   : > { %v669_v30 = vsel %vm650_vm2, %v666_v2, %v668_v20 }
  0xf4   : > { %1063 = vst [vmem:[%s1252_s9 + $0x18] sm:$0xff] %v1039_v24   ;;  %v486_v35 = vsel %vm465_vm1, %v483_v13, %v485_v27  ;;  %v708_v38 = vadd.f32 %v669_v30, %v523_v33  ;;  %v734_v31 = vadd.f32 %v1244_v50, %v714_v34 }
  0xf5   : > { %v524_v43 = vadd.f32 %v486_v35, %v325_v3 }
  0xf6   : > { %v629_v37 = vpop.f32.mrf.mxu3  ;;  %v728_v48 = vadd.f32 %v1244_v50, %v708_v38  ;;  %v750_v53 = vmax.f32 %v734_v31, 0.0 }
  0xf7   : > { %v682_v40 = vrot.slane %v629_v37, 2 }
  0xf8   : > { %v614_v39 = vpop.f32.mrf.mxu2  ;;  %v330_v52 = vpop.f32.mrf.mxu0  ;;  %v744_v57 = vmax.f32 %v728_v48, 0.0 }
  0xf9   : > { %v670_v42 = vrot.slane %v614_v39, 2  ;;  %v683_v44 = vsel %vm650_vm2, %v680_v19, %v682_v40  ;;  %v431_v45 = vpop.f32.mrf.mxu1 }
  0xfa   : > { %v715_v47 = vadd.f32 %v683_v44, %v530_v41  ;;  %v487_v55 = vrot.slane %v431_v45, 1 }
  0xfb   : > { %v671_v46 = vsel %vm650_vm2, %v668_v20, %v670_v42 }
  0xfc   : > { %v709_v49 = vadd.f32 %v671_v46, %v524_v43  ;;  %v735_v51 = vadd.f32 %v1244_v50, %v715_v47  ;;  %v488_v1 = vsel %vm465_vm1, %v485_v27, %v487_v55 }
  0xfd   : > { %v525_v4 = vadd.f32 %v488_v1, %v328_v26 }
  0xfe   : > { %v729_v36 = vadd.f32 %v1244_v50, %v709_v49  ;;  %v751_v54 = vmax.f32 %v735_v51, 0.0  ;;  %v631_v56 = vpop.f32.mrf.mxu3 }
 0x100   : > { %v745_v58 = vmax.f32 %v729_v36, 0.0  ;;  %v616_v59 = vpop.f32.mrf.mxu2  ;;  %v1059_v60 = vpack.c.bf16 %v751_v54, %v750_v53  ;;  %v333_v5 = vpop.f32.mrf.mxu0 }
 0x101   : > { %v672_v61 = vrot.slane %v616_v59, 2  ;;  %v434_v0 = vpop.f32.mrf.mxu1 }
 0x102   : > { %v1044_v62 = vpack.c.bf16 %v745_v58, %v744_v57  ;;  %1067 = vst [vmem:[%s1252_s9 + $0x38] sm:$0xff] %v1059_v60   ;;  %v489_v2 = vrot.slane %v434_v0, 1 }
 0x103   : > { %v673_v3 = vsel %vm650_vm2, %v670_v42, %v672_v61 }
 0x104   : > { %1064 = vst [vmem:[%s1252_s9 + $0x20] sm:$0xff] %v1044_v62   ;;  %v490_v6 = vsel %vm465_vm1, %v487_v55, %v489_v2  ;;  %v710_v7 = vadd.f32 %v673_v3, %v525_v4 }
 0x105   : > { %v526_v12 = vadd.f32 %v490_v6, %v330_v52 }
 0x106   : > { %v730_v16 = vadd.f32 %v1244_v50, %v710_v7 }
 0x108   : > { %v619_v8 = vpop.f32.mrf.mxu2  ;;  %v746_v23 = vmax.f32 %v730_v16, 0.0  ;;  %v335_v22 = vpop.f32.mrf.mxu0 }
 0x109   : > { %v674_v11 = vrot.slane %v619_v8, 2  ;;  %v436_v13 = vpop.f32.mrf.mxu1 }
 0x10a   : > { %v491_v15 = vrot.slane %v436_v13, 1 }
 0x10b   : > { %v675_v14 = vsel %vm650_vm2, %v672_v61, %v674_v11 }
 0x10c   : > { %v711_v18 = vadd.f32 %v675_v14, %v526_v12  ;;  %v492_v20 = vsel %vm465_vm1, %v489_v2, %v491_v15  ;;  %v494_v21 = vsel %vm465_vm1, %v491_v15, %v493_v9 }
 0x10d   : > { %v527_v28 = vadd.f32 %v492_v20, %v333_v5  ;;  %v528_v29 = vadd.f32 %v494_v21, %v335_v22 }
 0x10e   : > { %v731_v19 = vadd.f32 %v1244_v50, %v711_v18 }
 0x110   : > { %v747_v24 = vmax.f32 %v731_v19, 0.0  ;;  %v621_v25 = vpop.f32.mrf.mxu2 }
 0x111   : > { %v676_v26 = vrot.slane %v621_v25, 2 }
 0x112   : > { %v1049_v27 = vpack.c.bf16 %v747_v24, %v746_v23 }
 0x113   : > { %v677_v30 = vsel %vm650_vm2, %v674_v11, %v676_v26  ;;  %v679_v32 = vsel %vm650_vm2, %v676_v26, %v678_v17 }
 0x114   : > { %1065 = vst [vmem:[%s1252_s9 + $0x28] sm:$0xff] %v1049_v27   ;;  %v712_v33 = vadd.f32 %v677_v30, %v527_v28  ;;  %v713_v10 = vadd.f32 %v679_v32, %v528_v29 }
 0x116   : > { %v732_v9 = vadd.f32 %v1244_v50, %v712_v33  ;;  %v733_v34 = vadd.f32 %v1244_v50, %v713_v10 }
 0x118   : > { %v748_v35 = vmax.f32 %v732_v9, 0.0  ;;  %v749_v37 = vmax.f32 %v733_v34, 0.0 }
 0x11a   : > { %v1054_v38 = vpack.c.bf16 %v749_v37, %v748_v35 }
 0x11c   : > { %1066 = vst [vmem:[%s1252_s9 + $0x30] sm:$0xff] %v1054_v38  }
 0x11d PF: > { %s13_s12 = sadd.s32 1, %s1101_s12  }
 0x11e   : > { %p10_p4 = scmp.ge.s32.totalorder %s13_s12, 7  }
 0x120   :  { %12 = sbr.rel (!%p10_p4) target bundleno = 1 (0x1), region = 62 }

// kernel: vgg16_features.24
= control target key start
LH: loop header
LB: loop body
LE: loop exit
PB: predicated region body
PF: predicated region fallthrough
CT: control target
= control target key end

     0   :  { %s641_s0 = inlined_call_operand.vmem [shape: bf16[128,128], index: 0, kind: input, shape index: {}]   ;;  %s642_s1 = inlined_call_operand.vmem [shape: bf16[128,128], index: 1, kind: input, shape index: {}]   ;;  %s643_s2 = inlined_call_operand.vmem [shape: bf16[128,128], index: 2, kind: input, shape index: {}]   ;;  %s644_s3 = inlined_call_operand.vmem [shape: bf16[128,128], index: 3, kind: input, shape index: {}]   ;;  %s645_s4 = inlined_call_operand.vmem [shape: bf16[128,128], index: 4, kind: output, shape index: {}]  }
   0x1   :  { %v294_v0 = vld [vmem:[%s641_s0] sm:$0xff]   ;;  %v461_v8 = vld [vmem:[%s641_s0 + $0x8] sm:$0xff]   ;;  %v462_v24 = vld [vmem:[%s641_s0 + $0x10] sm:$0xff]  }
   0x2   :  { %v326_v1 = vld [vmem:[%s642_s1] sm:$0xff]   ;;  %v295_v3 = vunpack.c.l.bf16 %v294_v0  ;;  %v296_v4 = vunpack.c.h.bf16 %v294_v0  ;;  %v468_v9 = vld [vmem:[%s642_s1 + $0x8] sm:$0xff]   ;;  %v299_v18 = vunpack.c.l.bf16 %v461_v8  ;;  %v300_v19 = vunpack.c.h.bf16 %v461_v8  ;;  %v469_v29 = vld [vmem:[%s642_s1 + $0x10] sm:$0xff]  }
   0x3   :  { %v358_v2 = vld [vmem:[%s643_s2] sm:$0xff]   ;;  %v327_v5 = vunpack.c.l.bf16 %v326_v1  ;;  %v328_v6 = vunpack.c.h.bf16 %v326_v1  ;;  %v475_v14 = vld [vmem:[%s643_s2 + $0x8] sm:$0xff]   ;;  %v331_v22 = vunpack.c.l.bf16 %v468_v9  ;;  %v332_v23 = vunpack.c.h.bf16 %v468_v9  ;;  %v476_v30 = vld [vmem:[%s643_s2 + $0x10] sm:$0xff]  }
   0x4   :  { %v390_v7 = vld [vmem:[%s644_s3] sm:$0xff]   ;;  %v359_v10 = vunpack.c.l.bf16 %v358_v2  ;;  %v360_v11 = vunpack.c.h.bf16 %v358_v2  ;;  %v482_v15 = vld [vmem:[%s644_s3 + $0x8] sm:$0xff]   ;;  %v363_v25 = vunpack.c.l.bf16 %v475_v14  ;;  %v364_v26 = vunpack.c.h.bf16 %v475_v14  ;;  %v483_v35 = vld [vmem:[%s644_s3 + $0x10] sm:$0xff]  }
   0x5   :  { %v391_v12 = vunpack.c.l.bf16 %v390_v7  ;;  %v392_v13 = vunpack.c.h.bf16 %v390_v7  ;;  %v81_v16 = vmax.f32 %v295_v3, %v327_v5  ;;  %v82_v17 = vmax.f32 %v296_v4, %v328_v6  ;;  %v463_v40 = vld [vmem:[%s641_s0 + $0x18] sm:$0xff]   ;;  %v464_v60 = vld [vmem:[%s641_s0 + $0x20] sm:$0xff]  }
   0x6   :  { %v395_v27 = vunpack.c.l.bf16 %v482_v15  ;;  %v396_v28 = vunpack.c.h.bf16 %v482_v15  ;;  %v83_v33 = vmax.f32 %v299_v18, %v331_v22  ;;  %v84_v34 = vmax.f32 %v300_v19, %v332_v23  ;;  %v470_v45 = vld [vmem:[%s642_s1 + $0x18] sm:$0xff]   ;;  %v471_v1 = vld [vmem:[%s642_s1 + $0x20] sm:$0xff]   ;;  %v479_v22 = vld [vmem:[%s643_s2 + $0x28] sm:$0xff]  }
   0x7   :  { %v177_v20 = vmax.f32 %v359_v10, %v391_v12  ;;  %v178_v21 = vmax.f32 %v360_v11, %v392_v13  ;;  %v303_v38 = vunpack.c.l.bf16 %v462_v24  ;;  %v304_v39 = vunpack.c.h.bf16 %v462_v24  ;;  %v477_v50 = vld [vmem:[%s643_s2 + $0x18] sm:$0xff]   ;;  %v478_v6 = vld [vmem:[%s643_s2 + $0x20] sm:$0xff]  }
   0x8   :  { %v179_v36 = vmax.f32 %v363_v25, %v395_v27  ;;  %v180_v37 = vmax.f32 %v364_v26, %v396_v28  ;;  %v335_v42 = vunpack.c.l.bf16 %v469_v29  ;;  %v336_v43 = vunpack.c.h.bf16 %v469_v29  ;;  %v484_v55 = vld [vmem:[%s644_s3 + $0x18] sm:$0xff]   ;;  %v485_v7 = vld [vmem:[%s644_s3 + $0x20] sm:$0xff]   ;;  %v486_v27 = vld [vmem:[%s644_s3 + $0x28] sm:$0xff]  }
   0x9   :  { %v241_v31 = vmax.f32 %v81_v16, %v177_v20  ;;  %v242_v32 = vmax.f32 %v82_v17, %v178_v21  ;;  %v367_v44 = vunpack.c.l.bf16 %v476_v30  ;;  %v368_v48 = vunpack.c.h.bf16 %v476_v30  ;;  %v465_v16 = vld [vmem:[%s641_s0 + $0x28] sm:$0xff]  }
   0xa   :  { %v243_v46 = vmax.f32 %v83_v33, %v179_v36  ;;  %v244_v47 = vmax.f32 %v84_v34, %v180_v37  ;;  %v399_v49 = vunpack.c.l.bf16 %v483_v35  ;;  %v85_v51 = vmax.f32 %v303_v38, %v335_v42  ;;  %v472_v21 = vld [vmem:[%s642_s1 + $0x28] sm:$0xff]   ;;  %v473_v37 = vld [vmem:[%s642_s1 + $0x30] sm:$0xff]  }
   0xb   :  { %v424_v41 = vpack.c.bf16 %v242_v32, %v241_v31  ;;  %v86_v52 = vmax.f32 %v304_v39, %v336_v43  ;;  %v400_v53 = vunpack.c.h.bf16 %v483_v35  ;;  %v307_v54 = vunpack.c.l.bf16 %v463_v40  ;;  %v466_v32 = vld [vmem:[%s641_s0 + $0x30] sm:$0xff]  }
   0xc   :  { %v429_v56 = vpack.c.bf16 %v244_v47, %v243_v46  ;;  %v181_v57 = vmax.f32 %v367_v44, %v399_v49  ;;  %v308_v58 = vunpack.c.h.bf16 %v463_v40  ;;  %v339_v59 = vunpack.c.l.bf16 %v470_v45  ;;  %v480_v42 = vld [vmem:[%s643_s2 + $0x30] sm:$0xff]  }
   0xd   :  { %425 = vst [vmem:[%s645_s4] sm:$0xff] %v424_v41   ;;  %v182_v61 = vmax.f32 %v368_v48, %v400_v53  ;;  %v340_v62 = vunpack.c.h.bf16 %v470_v45  ;;  %v371_v63 = vunpack.c.l.bf16 %v477_v50  ;;  %v372_v0 = vunpack.c.h.bf16 %v477_v50  ;;  %v487_v47 = vld [vmem:[%s644_s3 + $0x30] sm:$0xff]  }
   0xe   :  { %489 = vst [vmem:[%s645_s4 + $0x8] sm:$0xff] %v429_v56   ;;  %v245_v2 = vmax.f32 %v85_v51, %v181_v57  ;;  %v87_v3 = vmax.f32 %v307_v54, %v339_v59  ;;  %v403_v4 = vunpack.c.l.bf16 %v484_v55  ;;  %v404_v5 = vunpack.c.h.bf16 %v484_v55  ;;  %v474_v57 = vld [vmem:[%s642_s1 + $0x38] sm:$0xff]  }
   0xf   :  { %v246_v8 = vmax.f32 %v86_v52, %v182_v61  ;;  %v88_v9 = vmax.f32 %v308_v58, %v340_v62  ;;  %v311_v10 = vunpack.c.l.bf16 %v464_v60  ;;  %v312_v11 = vunpack.c.h.bf16 %v464_v60  ;;  %v467_v52 = vld [vmem:[%s641_s0 + $0x38] sm:$0xff]  }
  0x10   :  { %v183_v12 = vmax.f32 %v371_v63, %v403_v4  ;;  %v184_v13 = vmax.f32 %v372_v0, %v404_v5  ;;  %v343_v14 = vunpack.c.l.bf16 %v471_v1  ;;  %v344_v15 = vunpack.c.h.bf16 %v471_v1  ;;  %v481_v62 = vld [vmem:[%s643_s2 + $0x38] sm:$0xff]  }
  0x11   :  { %v434_v17 = vpack.c.bf16 %v246_v8, %v245_v2  ;;  %v375_v18 = vunpack.c.l.bf16 %v478_v6  ;;  %v376_v19 = vunpack.c.h.bf16 %v478_v6  ;;  %v407_v20 = vunpack.c.l.bf16 %v485_v7 }
  0x12   :  { %v247_v23 = vmax.f32 %v87_v3, %v183_v12  ;;  %v248_v24 = vmax.f32 %v88_v9, %v184_v13  ;;  %v89_v25 = vmax.f32 %v311_v10, %v343_v14  ;;  %v90_v26 = vmax.f32 %v312_v11, %v344_v15  ;;  %v488_v3 = vld [vmem:[%s644_s3 + $0x38] sm:$0xff]  }
  0x13   :  { %490 = vst [vmem:[%s645_s4 + $0x10] sm:$0xff] %v434_v17   ;;  %v408_v28 = vunpack.c.h.bf16 %v485_v7  ;;  %v185_v29 = vmax.f32 %v375_v18, %v407_v20  ;;  %v315_v30 = vunpack.c.l.bf16 %v465_v16  ;;  %v316_v31 = vunpack.c.h.bf16 %v465_v16 }
  0x14   :  { %v439_v33 = vpack.c.bf16 %v248_v24, %v247_v23  ;;  %v347_v34 = vunpack.c.l.bf16 %v472_v21  ;;  %v348_v35 = vunpack.c.h.bf16 %v472_v21  ;;  %v379_v36 = vunpack.c.l.bf16 %v479_v22 }
  0x15   :  { %v186_v38 = vmax.f32 %v376_v19, %v408_v28  ;;  %v249_v39 = vmax.f32 %v89_v25, %v185_v29  ;;  %v380_v40 = vunpack.c.h.bf16 %v479_v22  ;;  %v411_v41 = vunpack.c.l.bf16 %v486_v27 }
  0x16   :  { %491 = vst [vmem:[%s645_s4 + $0x18] sm:$0xff] %v439_v33   ;;  %v91_v43 = vmax.f32 %v315_v30, %v347_v34  ;;  %v92_v44 = vmax.f32 %v316_v31, %v348_v35  ;;  %v412_v45 = vunpack.c.h.bf16 %v486_v27  ;;  %v319_v46 = vunpack.c.l.bf16 %v466_v32 }
  0x17   :  { %v250_v48 = vmax.f32 %v90_v26, %v186_v38  ;;  %v187_v49 = vmax.f32 %v379_v36, %v411_v41  ;;  %v320_v50 = vunpack.c.h.bf16 %v466_v32  ;;  %v351_v51 = vunpack.c.l.bf16 %v473_v37 }
  0x18   :  { %v188_v53 = vmax.f32 %v380_v40, %v412_v45  ;;  %v352_v54 = vunpack.c.h.bf16 %v473_v37  ;;  %v383_v55 = vunpack.c.l.bf16 %v480_v42  ;;  %v384_v56 = vunpack.c.h.bf16 %v480_v42 }
  0x19   :  { %v444_v58 = vpack.c.bf16 %v250_v48, %v249_v39  ;;  %v251_v59 = vmax.f32 %v91_v43, %v187_v49  ;;  %v93_v60 = vmax.f32 %v319_v46, %v351_v51  ;;  %v415_v61 = vunpack.c.l.bf16 %v487_v47 }
  0x1a   :  { %v252_v63 = vmax.f32 %v92_v44, %v188_v53  ;;  %v94_v0 = vmax.f32 %v320_v50, %v352_v54  ;;  %v416_v1 = vunpack.c.h.bf16 %v487_v47  ;;  %v323_v2 = vunpack.c.l.bf16 %v467_v52 }
  0x1b   :  { %492 = vst [vmem:[%s645_s4 + $0x20] sm:$0xff] %v444_v58   ;;  %v189_v4 = vmax.f32 %v383_v55, %v415_v61  ;;  %v324_v5 = vunpack.c.h.bf16 %v467_v52  ;;  %v355_v6 = vunpack.c.l.bf16 %v474_v57  ;;  %v356_v7 = vunpack.c.h.bf16 %v474_v57 }
  0x1c   :  { %v449_v8 = vpack.c.bf16 %v252_v63, %v251_v59  ;;  %v190_v9 = vmax.f32 %v384_v56, %v416_v1  ;;  %v387_v10 = vunpack.c.l.bf16 %v481_v62  ;;  %v388_v11 = vunpack.c.h.bf16 %v481_v62 }
  0x1d   :  { %v253_v12 = vmax.f32 %v93_v60, %v189_v4  ;;  %v95_v13 = vmax.f32 %v323_v2, %v355_v6  ;;  %v419_v14 = vunpack.c.l.bf16 %v488_v3  ;;  %v96_v16 = vmax.f32 %v324_v5, %v356_v7 }
  0x1e   :  { %493 = vst [vmem:[%s645_s4 + $0x28] sm:$0xff] %v449_v8   ;;  %v254_v15 = vmax.f32 %v94_v0, %v190_v9  ;;  %v420_v17 = vunpack.c.h.bf16 %v488_v3 }
  0x1f   :  { %v191_v18 = vmax.f32 %v387_v10, %v419_v14 }
  0x20   :  { %v454_v19 = vpack.c.bf16 %v254_v15, %v253_v12  ;;  %v192_v20 = vmax.f32 %v388_v11, %v420_v17 }
  0x21   :  { %v255_v21 = vmax.f32 %v95_v13, %v191_v18 }
  0x22   :  { %494 = vst [vmem:[%s645_s4 + $0x30] sm:$0xff] %v454_v19   ;;  %v256_v22 = vmax.f32 %v96_v16, %v192_v20 }
  0x24   :  { %v459_v23 = vpack.c.bf16 %v256_v22, %v255_v21 }
  0x26   :  { %495 = vst [vmem:[%s645_s4 + $0x38] sm:$0xff] %v459_v23  }

// kernel: vgg16_features.25
= control target key start
LH: loop header
LB: loop body
LE: loop exit
PB: predicated region body
PF: predicated region fallthrough
CT: control target
= control target key end

     0   :  { %s1123_s12 = smov 0   ;;  %s1326_s0 = inlined_call_operand.vmem [shape: bf16[264,96], index: 0, kind: input, shape index: {}]   ;;  %s1327_s1 = inlined_call_operand.vmem [shape: bf16[3,96,128], index: 1, kind: input, shape index: {}]   ;;  %s1328_s2 = inlined_call_operand.vmem [shape: f32[1,128], index: 2, kind: input, shape index: {}]   ;;  %s1329_s3 = inlined_call_operand.vmem [shape: bf16[256,128], index: 3, kind: output, shape index: {}]  }
   0x1 LB: > { %s830_s13 = sadd.s32 4294967295, %s1101_s12   ;;  %p833_p0 = scmp.ge.s32.totalorder %s1101_s12, 1  ;;  %s1101_s12 = sphi %s1123_s12, %s13_s12  }
   0x2   : > { %p127_p1 = scmp.lt.s32.totalorder %s1101_s12, 3 }
   0x4   : > { %p128_p2 = pnand %p833_p0, %p127_p1 }
   0x5   : > { %s836_s5 = sshll.u32 (!%p128_p2), %s830_s13, 7  ;;  %s834_s4 = sshll.u32 (!%p128_p2), %s830_s13, 4 }
   0x6   : > { %131 = sbr.rel (%p128_p2) target bundleno = 285 (0x11d), region = 32  ;;  %s154_s14 = sshra.s32 (!%p128_p2), %s836_s5, 3 }
   0x7   : > { %s837_s21 = sshll.u32 (!%p128_p2), %s154_s14, 2  ;;  %p147_p3 = scmp.lt.s32.totalorder (!%p128_p2), %s834_s4, 31 }
   0x8   : > { %s1187_s26 = scalar_lea.vmem (!%p128_p2), %s1326_s0, %s837_s21 }
   0xb   : > { %v1008_v0 = vld [vmem:[%s1327_s1 + $0x28] sm:$0xff]  ;;  %v1014_v1 = vld [vmem:[%s1327_s1 + $0x58] sm:$0xff]  ;;  %v1007_v3 = vld [vmem:[%s1327_s1 + $0x20] sm:$0xff]  ;;  %vm266_vm0 = vcmask 785408   ;;  %vm465_vm1 = vcmask 1046528   ;;  %vm650_vm2 = vcmask 1045504  }
   0xc   : > { %v1140_v2 = vld [vmem:[%s1327_s1 + $0x88] sm:$0xff]  ;;  %296 = vmatpush.bf16.msra.mxu0 %v1008_v0  ;;  %1068 = vmatpush.bf16.msra.mxu3 %v1008_v0  ;;  %v1013_v4 = vld [vmem:[%s1327_s1 + $0x50] sm:$0xff]  ;;  %v1019_v5 = vld [vmem:[%s1327_s1 + $0x80] sm:$0xff]  ;;  %s1331_s4 = smov (!%p147_p3, %s834_s4), 31 }
   0xd   : > { %397 = vmatpush.bf16.msra.mxu1 %v1014_v1  ;;  %582 = vmatpush.bf16.msra.mxu2 %v1140_v2  ;;  %v1006_v6 = vld [vmem:[%s1327_s1 + $0x18] sm:$0xff]  ;;  %v1012_v7 = vld [vmem:[%s1327_s1 + $0x48] sm:$0xff]  ;;  %v1005_v9 = vld [vmem:[%s1327_s1 + $0x10] sm:$0xff]  ;;  %s835_s13 = sshll.u32 %s1331_s4, 2 }
   0xe   : > { %v1018_v8 = vld [vmem:[%s1327_s1 + $0x78] sm:$0xff]  ;;  %v1011_v10 = vld [vmem:[%s1327_s1 + $0x40] sm:$0xff]  ;;  %v1017_v11 = vld [vmem:[%s1327_s1 + $0x70] sm:$0xff]  ;;  %s1252_s9 = scalar_lea.vmem %s1329_s3, %s835_s13 }
   0xf   : > { %v1004_v12 = vld [vmem:[%s1327_s1 + $0x8] sm:$0xff]  ;;  %v1010_v13 = vld [vmem:[%s1327_s1 + $0x38] sm:$0xff]  ;;  %v1003_v15 = vld [vmem:[%s1327_s1] sm:$0xff] }
  0x10   : > { %297 = vmatpush.bf16.msra.mxu0 %v1007_v3  ;;  %1069 = vmatpush.bf16.msra.mxu3 %v1007_v3  ;;  %v1016_v14 = vld [vmem:[%s1327_s1 + $0x68] sm:$0xff]  ;;  %v1009_v16 = vld [vmem:[%s1327_s1 + $0x30] sm:$0xff]  ;;  %v1015_v17 = vld [vmem:[%s1327_s1 + $0x60] sm:$0xff] }
  0x11   : > { %398 = vmatpush.bf16.msra.mxu1 %v1013_v4  ;;  %583 = vmatpush.bf16.msra.mxu2 %v1019_v5  ;;  %v995_v18 = vld [vmem:[%s1187_s26] sm:$0xff]  ;;  %v1002_v19 = vld [vmem:[%s1187_s26 + $0x38] sm:$0xff]  ;;  %v996_v22 = vld [vmem:[%s1187_s26 + $0x8] sm:$0xff] }
  0x12   : > { %v174_v20 = vld [vmem:[%s1187_s26 + $0x40] sm:$0xf]  ;;  %v997_v24 = vld [vmem:[%s1187_s26 + $0x10] sm:$0xff]  ;;  %v998_v25 = vld [vmem:[%s1187_s26 + $0x18] sm:$0xff] }
  0x13   : > { %v220_v21 = vunpack.c.l.b16 %v174_v20  ;;  %v999_v26 = vld [vmem:[%s1187_s26 + $0x20] sm:$0xff]  ;;  %v1000_v27 = vld [vmem:[%s1187_s26 + $0x28] sm:$0xff]  ;;  %v1001_v28 = vld [vmem:[%s1187_s26 + $0x30] sm:$0xff] }
  0x14   : > { %298 = vmatpush.bf16.msra.mxu0 %v1006_v6  ;;  %1070 = vmatpush.bf16.msra.mxu3 %v1006_v6  ;;  %v1244_v50 = vld [vmem:[%s1328_s2] ss:$0 sm:$0xff] }
  0x15   : > { %399 = vmatpush.bf16.msra.mxu1 %v1012_v7  ;;  %584 = vmatpush.bf16.msra.mxu2 %v1018_v8  ;;  %v229_v23 = vpack.c.b16 %v220_v21, %v220_v21 }
  0x18   : > { %299 = vmatpush.bf16.msra.mxu0 %v1005_v9  ;;  %1071 = vmatpush.bf16.msra.mxu3 %v1005_v9 }
  0x19   : > { %400 = vmatpush.bf16.msra.mxu1 %v1011_v10  ;;  %585 = vmatpush.bf16.msra.mxu2 %v1017_v11 }
  0x1c   : > { %300 = vmatpush.bf16.msra.mxu0 %v1004_v12  ;;  %1072 = vmatpush.bf16.msra.mxu3 %v1004_v12 }
  0x1d   : > { %401 = vmatpush.bf16.msra.mxu1 %v1010_v13  ;;  %586 = vmatpush.bf16.msra.mxu2 %v1016_v14 }
  0x20   : > { %301 = vmatpush.bf16.msra.mxu0 %v1003_v15  ;;  %1073 = vmatpush.bf16.msra.mxu3 %v1003_v15 }
  0x21   : > { %402 = vmatpush.bf16.msra.mxu1 %v1009_v16  ;;  %587 = vmatpush.bf16.msra.mxu2 %v1015_v17 }
  0x23   : > { %894 = vmatmul.msk.bf16.vlgmr.msra.gmra.mxu0 %vm266_vm0, %v995_v18  ;;  %901 = vmatmul.msk.bf16.vlgmr.msra.gmra.mxu3 %vm266_vm0, %v1002_v19 }
  0x24   : > { %1074 = vmatpush.bf16.msrb.mxu3 %v1014_v1  ;;  %939 = vmatmul.msk.bf16.vlgmr.msra.gmra.mxu1 %vm266_vm0, %v995_v18 }
  0x25   : > { %984 = vmatmul.msk.bf16.vlgmr.msra.gmra.mxu2 %vm266_vm0, %v995_v18 }
  0x28   : > { %1075 = vmatpush.bf16.msrb.mxu3 %v1013_v4 }
  0x2c   : > { %1076 = vmatpush.bf16.msrb.mxu3 %v1012_v7 }
  0x30   : > { %1077 = vmatpush.bf16.msrb.mxu3 %v1011_v10 }
  0x33   : > { %895 = vmatmul.msk.bf16.gmra.mxu0 %vm266_vm0, %v996_v22  ;;  %902 = vmatmul.msk.bf16.gmra.mxu3 %vm266_vm0, %v229_v23 }
  0x34   : > { %1078 = vmatpush.bf16.msrb.mxu3 %v1010_v13  ;;  %940 = vmatmul.msk.bf16.gmra.mxu1 %vm266_vm0, %v996_v22 }
  0x35   : > { %985 = vmatmul.msk.bf16.gmra.mxu2 %vm266_vm0, %v996_v22 }
  0x38   : > { %1079 = vmatpush.bf16.msrb.mxu3 %v1009_v16 }
  0x3c   : > { %1080 = vmatpush.bf16.msra.mxu3 %v1140_v2 }
  0x40   : > { %1081 = vmatpush.bf16.msra.mxu3 %v1019_v5 }
  0x43   : > { %896 = vmatmul.msk.bf16.gmra.mxu0 %vm266_vm0, %v997_v24  ;;  %946 = vmatmul.msk.bf16.vlgmr.msrb.gmra.mxu3 %vm266_vm0, %v1002_v19 }
  0x44   : > { %1082 = vmatpush.bf16.msra.mxu3 %v1018_v8  ;;  %941 = vmatmul.msk.bf16.gmra.mxu1 %vm266_vm0, %v997_v24 }
  0x45   : > { %986 = vmatmul.msk.bf16.gmra.mxu2 %vm266_vm0, %v997_v24 }
  0x48   : > { %1083 = vmatpush.bf16.msra.mxu3 %v1017_v11 }
  0x4c   : > { %1084 = vmatpush.bf16.msra.mxu3 %v1016_v14 }
  0x50   : > { %1085 = vmatpush.bf16.msra.mxu3 %v1015_v17 }
  0x53   : > { %897 = vmatmul.msk.bf16.gmra.mxu0 %vm266_vm0, %v998_v25  ;;  %947 = vmatmul.msk.bf16.gmra.mxu3 %vm266_vm0, %v229_v23 }
  0x54   : > { %942 = vmatmul.msk.bf16.gmra.mxu1 %vm266_vm0, %v998_v25 }
  0x55   : > { %987 = vmatmul.msk.bf16.gmra.mxu2 %vm266_vm0, %v998_v25 }
  0x63   : > { %898 = vmatmul.msk.bf16.gmra.mxu0 %vm266_vm0, %v999_v26  ;;  %991 = vmatmul.msk.bf16.vlgmr.msra.gmra.mxu3 %vm266_vm0, %v1002_v19 }
  0x64   : > { %943 = vmatmul.msk.bf16.gmra.mxu1 %vm266_vm0, %v999_v26 }
  0x65   : > { %988 = vmatmul.msk.bf16.gmra.mxu2 %vm266_vm0, %v999_v26 }
  0x73   : > { %899 = vmatmul.msk.bf16.gmra.mxu0 %vm266_vm0, %v1000_v27  ;;  %992 = vmatmul.msk.bf16.gmra.mxu3 %vm266_vm0, %v229_v23 }
  0x74   : > { %944 = vmatmul.msk.bf16.gmra.mxu1 %vm266_vm0, %v1000_v27 }
  0x75   : > { %989 = vmatmul.msk.bf16.gmra.mxu2 %vm266_vm0, %v1000_v27 }
  0x83   : > { %900 = vmatmul.msk.bf16.gmra.mxu0 %vm266_vm0, %v1001_v28 }
  0x84   : > { %945 = vmatmul.msk.bf16.gmra.mxu1 %vm266_vm0, %v1001_v28 }
  0x85   : > { %990 = vmatmul.msk.bf16.gmra.mxu2 %vm266_vm0, %v1001_v28 }
  0xa0   : > { %v303_v29 = vpop.f32.mrf.mxu0 }
  0xa1   : > { %v404_v30 = vpop.f32.mrf.mxu1 }
  0xa2   : > { %v466_v38 = vrot.slane %v404_v30, 1 }
  0xa6   : > { %v1232_v31 = vpop.f32.mrf.mxu3 }
  0xa8   : > { %v589_v32 = vpop.f32.mrf.mxu2  ;;  %v305_v33 = vpop.f32.mrf.mxu0 }
  0xa9   : > { %v406_v34 = vpop.f32.mrf.mxu1  ;;  %v651_v42 = vrot.slane %v589_v32, 2 }
  0xaa   : > { %v467_v35 = vrot.slane %v406_v34, 1 }
  0xac   : > { %v468_v43 = vsel %vm465_vm1, %v466_v38, %v467_v35 }
  0xad   : > { %v515_v46 = vadd.f32 %v468_v43, %v303_v29 }
  0xae   : > { %v1234_v36 = vpop.f32.mrf.mxu3 }
  0xb0   : > { %v591_v37 = vpop.f32.mrf.mxu2  ;;  %v308_v40 = vpop.f32.mrf.mxu0 }
  0xb1   : > { %v652_v39 = vrot.slane %v591_v37, 2  ;;  %v409_v41 = vpop.f32.mrf.mxu1 }
  0xb2   : > { %v469_v44 = vrot.slane %v409_v41, 1 }
  0xb3   : > { %v653_v45 = vsel %vm650_vm2, %v651_v42, %v652_v39 }
  0xb4   : > { %v470_v47 = vsel %vm465_vm1, %v467_v35, %v469_v44  ;;  %v700_v49 = vadd.f32 %v653_v45, %v515_v46 }
  0xb5   : > { %v516_v54 = vadd.f32 %v470_v47, %v305_v33 }
  0xb6   : > { %v343_v48 = vpop.f32.mrf.mxu3  ;;  %v720_v57 = vadd.f32 %v1244_v50, %v700_v49 }
  0xb8   : > { %v594_v51 = vpop.f32.mrf.mxu2  ;;  %v310_v53 = vpop.f32.mrf.mxu0  ;;  %v736_v62 = vmax.f32 %v720_v57, 0.0 }
  0xb9   : > { %v654_v52 = vrot.slane %v594_v51, 2  ;;  %v411_v55 = vpop.f32.mrf.mxu1 }
  0xba   : > { %v471_v60 = vrot.slane %v411_v55, 1 }
  0xbb   : > { %v655_v56 = vsel %vm650_vm2, %v652_v39, %v654_v52 }
  0xbc   : > { %v701_v58 = vadd.f32 %v655_v56, %v516_v54  ;;  %v472_v5 = vsel %vm465_vm1, %v469_v44, %v471_v60 }
  0xbd   : > { %v517_v8 = vadd.f32 %v472_v5, %v308_v40 }
  0xbe   : > { %v721_v59 = vadd.f32 %v1244_v50, %v701_v58  ;;  %v344_v61 = vpop.f32.mrf.mxu3 }
  0xc0   : > { %v737_v63 = vmax.f32 %v721_v59, 0.0  ;;  %v596_v0 = vpop.f32.mrf.mxu2  ;;  %v313_v2 = vpop.f32.mrf.mxu0 }
  0xc1   : > { %v656_v1 = vrot.slane %v596_v0, 2  ;;  %v414_v4 = vpop.f32.mrf.mxu1 }
  0xc2   : > { %v1024_v3 = vpack.c.bf16 %v737_v63, %v736_v62  ;;  %v473_v6 = vrot.slane %v414_v4, 1 }
  0xc3   : > { %v657_v7 = vsel %vm650_vm2, %v654_v52, %v656_v1 }
  0xc4   : > { %1025 = vst [vmem:[%s1252_s9] sm:$0xff] %v1024_v3   ;;  %v474_v9 = vsel %vm465_vm1, %v471_v60, %v473_v6  ;;  %v702_v11 = vadd.f32 %v657_v7, %v517_v8 }
  0xc5   : > { %v518_v15 = vadd.f32 %v474_v9, %v310_v53 }
  0xc6   : > { %v1258_v10 = vpop.f32.mrf.mxu3  ;;  %v722_v18 = vadd.f32 %v1244_v50, %v702_v11 }
  0xc7   : > { %v493_v9 = vrot.slane %v1258_v10, 1 }
  0xc8   : > { %v599_v12 = vpop.f32.mrf.mxu2  ;;  %v315_v14 = vpop.f32.mrf.mxu0  ;;  %v738_v23 = vmax.f32 %v722_v18, 0.0 }
  0xc9   : > { %v658_v13 = vrot.slane %v599_v12, 2  ;;  %v416_v16 = vpop.f32.mrf.mxu1 }
  0xca   : > { %v475_v21 = vrot.slane %v416_v16, 1 }
  0xcb   : > { %v659_v17 = vsel %vm650_vm2, %v656_v1, %v658_v13 }
  0xcc   : > { %v703_v19 = vadd.f32 %v659_v17, %v518_v15  ;;  %v476_v30 = vsel %vm465_vm1, %v473_v6, %v475_v21 }
  0xcd   : > { %v519_v34 = vadd.f32 %v476_v30, %v313_v2 }
  0xce   : > { %v723_v20 = vadd.f32 %v1244_v50, %v703_v19  ;;  %v1263_v22 = vpop.f32.mrf.mxu3 }
  0xcf   : > { %v495_v11 = vrot.slane %v1263_v22, 1 }
  0xd0   : > { %v739_v24 = vmax.f32 %v723_v20, 0.0  ;;  %v601_v25 = vpop.f32.mrf.mxu2  ;;  %v318_v27 = vpop.f32.mrf.mxu0 }
  0xd1   : > { %v660_v26 = vrot.slane %v601_v25, 2  ;;  %v419_v29 = vpop.f32.mrf.mxu1 }
  0xd2   : > { %v1029_v28 = vpack.c.bf16 %v739_v24, %v738_v23  ;;  %v477_v32 = vrot.slane %v419_v29, 1 }
  0xd3   : > { %v661_v33 = vsel %vm650_vm2, %v658_v13, %v660_v26 }
  0xd4   : > { %1061 = vst [vmem:[%s1252_s9 + $0x8] sm:$0xff] %v1029_v28   ;;  %v478_v35 = vsel %vm465_vm1, %v475_v21, %v477_v32  ;;  %v704_v38 = vadd.f32 %v661_v33, %v519_v34  ;;  %v496_v21 = vsel %vm465_vm1, %v493_v9, %v495_v11 }
  0xd5   : > { %v520_v42 = vadd.f32 %v478_v35, %v315_v14  ;;  %v529_v29 = vadd.f32 %v496_v21, %v1232_v31 }
  0xd6   : > { %v444_v37 = vpop.f32.mrf.mxu3  ;;  %v724_v45 = vadd.f32 %v1244_v50, %v704_v38 }
  0xd7   : > { %v497_v23 = vrot.slane %v444_v37, 1 }
  0xd8   : > { %v604_v39 = vpop.f32.mrf.mxu2  ;;  %v320_v41 = vpop.f32.mrf.mxu0  ;;  %v740_v51 = vmax.f32 %v724_v45, 0.0 }
  0xd9   : > { %v662_v40 = vrot.slane %v604_v39, 2  ;;  %v421_v43 = vpop.f32.mrf.mxu1 }
  0xda   : > { %v479_v48 = vrot.slane %v421_v43, 1 }
  0xdb   : > { %v663_v44 = vsel %vm650_vm2, %v660_v26, %v662_v40 }
  0xdc   : > { %v705_v46 = vadd.f32 %v663_v44, %v520_v42  ;;  %v480_v58 = vsel %vm465_vm1, %v477_v32, %v479_v48  ;;  %v498_v32 = vsel %vm465_vm1, %v495_v11, %v497_v23 }
  0xdd   : > { %v521_v61 = vadd.f32 %v480_v58, %v318_v27 }
  0xde   : > { %v725_v47 = vadd.f32 %v1244_v50, %v705_v46  ;;  %v446_v49 = vpop.f32.mrf.mxu3 }
  0xe0   : > { %v741_v52 = vmax.f32 %v725_v47, 0.0  ;;  %v606_v53 = vpop.f32.mrf.mxu2  ;;  %v323_v55 = vpop.f32.mrf.mxu0 }
  0xe1   : > { %v664_v54 = vrot.slane %v606_v53, 2  ;;  %v424_v57 = vpop.f32.mrf.mxu1 }
  0xe2   : > { %v1034_v56 = vpack.c.bf16 %v741_v52, %v740_v51  ;;  %v481_v59 = vrot.slane %v424_v57, 1 }
  0xe3   : > { %v665_v60 = vsel %vm650_vm2, %v662_v40, %v664_v54 }
  0xe4   : > { %1062 = vst [vmem:[%s1252_s9 + $0x10] sm:$0xff] %v1034_v56   ;;  %v482_v62 = vsel %vm465_vm1, %v479_v48, %v481_v59  ;;  %v706_v0 = vadd.f32 %v665_v60, %v521_v61 }
  0xe5   : > { %v522_v4 = vadd.f32 %v482_v62, %v320_v41  ;;  %v530_v41 = vadd.f32 %v498_v32, %v1234_v36 }
  0xe6   : > { %v1276_v63 = vpop.f32.mrf.mxu3  ;;  %v726_v7 = vadd.f32 %v1244_v50, %v706_v0 }
  0xe7   : > { %v678_v17 = vrot.slane %v1276_v63, 2 }
  0xe8   : > { %v609_v1 = vpop.f32.mrf.mxu2  ;;  %v325_v3 = vpop.f32.mrf.mxu0  ;;  %v742_v15 = vmax.f32 %v726_v7, 0.0 }
  0xe9   : > { %v666_v2 = vrot.slane %v609_v1, 2  ;;  %v426_v5 = vpop.f32.mrf.mxu1 }
  0xea   : > { %v483_v13 = vrot.slane %v426_v5, 1 }
  0xeb   : > { %v667_v6 = vsel %vm650_vm2, %v664_v54, %v666_v2 }
  0xec   : > { %v707_v8 = vadd.f32 %v667_v6, %v522_v4  ;;  %v484_v22 = vsel %vm465_vm1, %v481_v59, %v483_v13 }
  0xed   : > { %v523_v33 = vadd.f32 %v484_v22, %v323_v55 }
  0xee   : > { %v727_v12 = vadd.f32 %v1244_v50, %v707_v8  ;;  %v626_v14 = vpop.f32.mrf.mxu3 }
  0xef   : > { %v680_v19 = vrot.slane %v626_v14, 2 }
  0xf0   : > { %v743_v16 = vmax.f32 %v727_v12, 0.0  ;;  %v611_v18 = vpop.f32.mrf.mxu2  ;;  %v328_v26 = vpop.f32.mrf.mxu0 }
  0xf1   : > { %v668_v20 = vrot.slane %v611_v18, 2  ;;  %v429_v25 = vpop.f32.mrf.mxu1  ;;  %v681_v28 = vsel %vm650_vm2, %v678_v17, %v680_v19 }
  0xf2   : > { %v1039_v24 = vpack.c.bf16 %v743_v16, %v742_v15  ;;  %v485_v27 = vrot.slane %v429_v25, 1  ;;  %v714_v34 = vadd.f32 %v681_v28, %v529_v29 }
  0xf3   : > { %v669_v30 = vsel %vm650_vm2, %v666_v2, %v668_v20 }
  0xf4   : > { %1063 = vst [vmem:[%s1252_s9 + $0x18] sm:$0xff] %v1039_v24   ;;  %v486_v35 = vsel %vm465_vm1, %v483_v13, %v485_v27  ;;  %v708_v38 = vadd.f32 %v669_v30, %v523_v33  ;;  %v734_v31 = vadd.f32 %v1244_v50, %v714_v34 }
  0xf5   : > { %v524_v43 = vadd.f32 %v486_v35, %v325_v3 }
  0xf6   : > { %v629_v37 = vpop.f32.mrf.mxu3  ;;  %v728_v48 = vadd.f32 %v1244_v50, %v708_v38  ;;  %v750_v53 = vmax.f32 %v734_v31, 0.0 }
  0xf7   : > { %v682_v40 = vrot.slane %v629_v37, 2 }
  0xf8   : > { %v614_v39 = vpop.f32.mrf.mxu2  ;;  %v330_v52 = vpop.f32.mrf.mxu0  ;;  %v744_v57 = vmax.f32 %v728_v48, 0.0 }
  0xf9   : > { %v670_v42 = vrot.slane %v614_v39, 2  ;;  %v683_v44 = vsel %vm650_vm2, %v680_v19, %v682_v40  ;;  %v431_v45 = vpop.f32.mrf.mxu1 }
  0xfa   : > { %v715_v47 = vadd.f32 %v683_v44, %v530_v41  ;;  %v487_v55 = vrot.slane %v431_v45, 1 }
  0xfb   : > { %v671_v46 = vsel %vm650_vm2, %v668_v20, %v670_v42 }
  0xfc   : > { %v709_v49 = vadd.f32 %v671_v46, %v524_v43  ;;  %v735_v51 = vadd.f32 %v1244_v50, %v715_v47  ;;  %v488_v1 = vsel %vm465_vm1, %v485_v27, %v487_v55 }
  0xfd   : > { %v525_v4 = vadd.f32 %v488_v1, %v328_v26 }
  0xfe   : > { %v729_v36 = vadd.f32 %v1244_v50, %v709_v49  ;;  %v751_v54 = vmax.f32 %v735_v51, 0.0  ;;  %v631_v56 = vpop.f32.mrf.mxu3 }
 0x100   : > { %v745_v58 = vmax.f32 %v729_v36, 0.0  ;;  %v616_v59 = vpop.f32.mrf.mxu2  ;;  %v1059_v60 = vpack.c.bf16 %v751_v54, %v750_v53  ;;  %v333_v5 = vpop.f32.mrf.mxu0 }
 0x101   : > { %v672_v61 = vrot.slane %v616_v59, 2  ;;  %v434_v0 = vpop.f32.mrf.mxu1 }
 0x102   : > { %v1044_v62 = vpack.c.bf16 %v745_v58, %v744_v57  ;;  %1067 = vst [vmem:[%s1252_s9 + $0x38] sm:$0xff] %v1059_v60   ;;  %v489_v2 = vrot.slane %v434_v0, 1 }
 0x103   : > { %v673_v3 = vsel %vm650_vm2, %v670_v42, %v672_v61 }
 0x104   : > { %1064 = vst [vmem:[%s1252_s9 + $0x20] sm:$0xff] %v1044_v62   ;;  %v490_v6 = vsel %vm465_vm1, %v487_v55, %v489_v2  ;;  %v710_v7 = vadd.f32 %v673_v3, %v525_v4 }
 0x105   : > { %v526_v12 = vadd.f32 %v490_v6, %v330_v52 }
 0x106   : > { %v730_v16 = vadd.f32 %v1244_v50, %v710_v7 }
 0x108   : > { %v619_v8 = vpop.f32.mrf.mxu2  ;;  %v746_v23 = vmax.f32 %v730_v16, 0.0  ;;  %v335_v22 = vpop.f32.mrf.mxu0 }
 0x109   : > { %v674_v11 = vrot.slane %v619_v8, 2  ;;  %v436_v13 = vpop.f32.mrf.mxu1 }
 0x10a   : > { %v491_v15 = vrot.slane %v436_v13, 1 }
 0x10b   : > { %v675_v14 = vsel %vm650_vm2, %v672_v61, %v674_v11 }
 0x10c   : > { %v711_v18 = vadd.f32 %v675_v14, %v526_v12  ;;  %v492_v20 = vsel %vm465_vm1, %v489_v2, %v491_v15  ;;  %v494_v21 = vsel %vm465_vm1, %v491_v15, %v493_v9 }
 0x10d   : > { %v527_v28 = vadd.f32 %v492_v20, %v333_v5  ;;  %v528_v29 = vadd.f32 %v494_v21, %v335_v22 }
 0x10e   : > { %v731_v19 = vadd.f32 %v1244_v50, %v711_v18 }
 0x110   : > { %v747_v24 = vmax.f32 %v731_v19, 0.0  ;;  %v621_v25 = vpop.f32.mrf.mxu2 }
 0x111   : > { %v676_v26 = vrot.slane %v621_v25, 2 }
 0x112   : > { %v1049_v27 = vpack.c.bf16 %v747_v24, %v746_v23 }
 0x113   : > { %v677_v30 = vsel %vm650_vm2, %v674_v11, %v676_v26  ;;  %v679_v32 = vsel %vm650_vm2, %v676_v26, %v678_v17 }
 0x114   : > { %1065 = vst [vmem:[%s1252_s9 + $0x28] sm:$0xff] %v1049_v27   ;;  %v712_v33 = vadd.f32 %v677_v30, %v527_v28  ;;  %v713_v10 = vadd.f32 %v679_v32, %v528_v29 }
 0x116   : > { %v732_v9 = vadd.f32 %v1244_v50, %v712_v33  ;;  %v733_v34 = vadd.f32 %v1244_v50, %v713_v10 }
 0x118   : > { %v748_v35 = vmax.f32 %v732_v9, 0.0  ;;  %v749_v37 = vmax.f32 %v733_v34, 0.0 }
 0x11a   : > { %v1054_v38 = vpack.c.bf16 %v749_v37, %v748_v35 }
 0x11c   : > { %1066 = vst [vmem:[%s1252_s9 + $0x30] sm:$0xff] %v1054_v38  }
 0x11d PF: > { %s13_s12 = sadd.s32 1, %s1101_s12  }
 0x11e   : > { %p10_p4 = scmp.ge.s32.totalorder %s13_s12, 4  }
 0x120   :  { %12 = sbr.rel (!%p10_p4) target bundleno = 1 (0x1), region = 62 }

// kernel: vgg16_features.28
= control target key start
LH: loop header
LB: loop body
LE: loop exit
PB: predicated region body
PF: predicated region fallthrough
CT: control target
= control target key end

     0   :  { %s191_s0 = inlined_call_operand.vmem [shape: bf16[32,128], index: 0, kind: input, shape index: {}]   ;;  %s192_s1 = inlined_call_operand.vmem [shape: bf16[32,128], index: 1, kind: input, shape index: {}]   ;;  %s193_s2 = inlined_call_operand.vmem [shape: bf16[32,128], index: 2, kind: input, shape index: {}]   ;;  %s194_s3 = inlined_call_operand.vmem [shape: bf16[32,128], index: 3, kind: input, shape index: {}]   ;;  %s195_s4 = inlined_call_operand.vmem [shape: bf16[32,128], index: 4, kind: output, shape index: {}]  }
   0x1   :  { %v90_v0 = vld [vmem:[%s191_s0] sm:$0xff]   ;;  %v131_v8 = vld [vmem:[%s191_s0 + $0x8] sm:$0xff]  }
   0x2   :  { %v98_v1 = vld [vmem:[%s192_s1] sm:$0xff]   ;;  %v91_v3 = vunpack.c.l.bf16 %v90_v0  ;;  %v92_v4 = vunpack.c.h.bf16 %v90_v0  ;;  %v132_v9 = vld [vmem:[%s192_s1 + $0x8] sm:$0xff]   ;;  %v95_v18 = vunpack.c.l.bf16 %v131_v8  ;;  %v96_v19 = vunpack.c.h.bf16 %v131_v8 }
   0x3   :  { %v106_v2 = vld [vmem:[%s193_s2] sm:$0xff]   ;;  %v99_v5 = vunpack.c.l.bf16 %v98_v1  ;;  %v100_v6 = vunpack.c.h.bf16 %v98_v1  ;;  %v133_v14 = vld [vmem:[%s193_s2 + $0x8] sm:$0xff]   ;;  %v103_v22 = vunpack.c.l.bf16 %v132_v9  ;;  %v104_v23 = vunpack.c.h.bf16 %v132_v9 }
   0x4   :  { %v114_v7 = vld [vmem:[%s194_s3] sm:$0xff]   ;;  %v107_v10 = vunpack.c.l.bf16 %v106_v2  ;;  %v108_v11 = vunpack.c.h.bf16 %v106_v2  ;;  %v134_v15 = vld [vmem:[%s194_s3 + $0x8] sm:$0xff]   ;;  %v111_v24 = vunpack.c.l.bf16 %v133_v14  ;;  %v112_v25 = vunpack.c.h.bf16 %v133_v14 }
   0x5   :  { %v115_v12 = vunpack.c.l.bf16 %v114_v7  ;;  %v116_v13 = vunpack.c.h.bf16 %v114_v7  ;;  %v33_v16 = vmax.f32 %v91_v3, %v99_v5  ;;  %v34_v17 = vmax.f32 %v92_v4, %v100_v6 }
   0x6   :  { %v119_v26 = vunpack.c.l.bf16 %v134_v15  ;;  %v120_v27 = vunpack.c.h.bf16 %v134_v15  ;;  %v35_v30 = vmax.f32 %v95_v18, %v103_v22  ;;  %v36_v31 = vmax.f32 %v96_v19, %v104_v23 }
   0x7   :  { %v57_v20 = vmax.f32 %v107_v10, %v115_v12  ;;  %v58_v21 = vmax.f32 %v108_v11, %v116_v13 }
   0x8   :  { %v59_v32 = vmax.f32 %v111_v24, %v119_v26  ;;  %v60_v33 = vmax.f32 %v112_v25, %v120_v27 }
   0x9   :  { %v73_v28 = vmax.f32 %v33_v16, %v57_v20  ;;  %v74_v29 = vmax.f32 %v34_v17, %v58_v21 }
   0xa   :  { %v75_v35 = vmax.f32 %v35_v30, %v59_v32  ;;  %v76_v36 = vmax.f32 %v36_v31, %v60_v33 }
   0xb   :  { %v124_v34 = vpack.c.bf16 %v74_v29, %v73_v28 }
   0xc   :  { %v129_v37 = vpack.c.bf16 %v76_v36, %v75_v35 }
   0xd   :  { %125 = vst [vmem:[%s195_s4] sm:$0xff] %v124_v34  }
   0xe   :  { %135 = vst [vmem:[%s195_s4 + $0x8] sm:$0xff] %v129_v37  }

// kernel: vgg16_features.26
= control target key start
LH: loop header
LB: loop body
LE: loop exit
PB: predicated region body
PF: predicated region fallthrough
CT: control target
= control target key end

     0   :  { %s1607_s12 = smov 0   ;;  %s2084_s0 = inlined_call_operand.vmem [shape: bf16[264,192], index: 0, kind: input, shape index: {}]   ;;  %s2085_s1 = inlined_call_operand.vmem [shape: bf16[3,192,128], index: 1, kind: input, shape index: {}]   ;;  %s2086_s2 = inlined_call_operand.vmem [shape: f32[1,128], index: 2, kind: input, shape index: {}]   ;;  %s2087_s3 = inlined_call_operand.vmem [shape: bf16[256,128], index: 3, kind: output, shape index: {}]  }
   0x1 LB: > { %s1168_s13 = sadd.s32 4294967295, %s1585_s12   ;;  %p1171_p0 = scmp.ge.s32.totalorder %s1585_s12, 1  ;;  %s1585_s12 = sphi %s1607_s12, %s13_s12  }
   0x2   : > { %p127_p1 = scmp.lt.s32.totalorder %s1585_s12, 3 }
   0x4   : > { %p128_p2 = pnand %p1171_p0, %p127_p1 }
   0x5   : > { %s1174_s30 = sshll.u32 (!%p128_p2), %s1168_s13, 7 }
   0x6   : > { %131 = sbr.rel (%p128_p2) target bundleno = 392 (0x188), region = 32  ;;  %s1672_s16 = scalar_lea.vmem (!%p128_p2), %s2084_s0, %s1174_s30 }
   0xb   : > { %v1486_v0 = vld [vmem:[%s2085_s1 + $0x38] sm:$0xff]  ;;  %v1485_v3 = vld [vmem:[%s2085_s1 + $0x30] sm:$0xff]  ;;  %v1484_v8 = vld [vmem:[%s2085_s1 + $0x28] sm:$0xff]  ;;  %vm350_vm0 = vcmask 523264   ;;  %vm702_vm1 = vcmask 1046528   ;;  %vm988_vm2 = vcmask 1045504  }
   0xc   : > { %v1498_v1 = vld [vmem:[%s2085_s1 + $0x98] sm:$0xff]  ;;  %378 = vmatpush.bf16.msra.mxu0 %v1486_v0  ;;  %v1497_v4 = vld [vmem:[%s2085_s1 + $0x90] sm:$0xff]  ;;  %v1496_v9 = vld [vmem:[%s2085_s1 + $0x88] sm:$0xff] }
   0xd   : > { %v1624_v2 = vld [vmem:[%s2085_s1 + $0xb8] sm:$0xff]  ;;  %579 = vmatpush.bf16.msra.mxu2 %v1498_v1  ;;  %v1641_v6 = vld [vmem:[%s2085_s1 + $0xb0] sm:$0xff]  ;;  %v1661_v10 = vld [vmem:[%s2085_s1 + $0xa8] sm:$0xff] }
   0xe   : > { %v1635_v5 = vld [vmem:[%s2085_s1 + $0x58] sm:$0xff]  ;;  %1566 = vmatpush.bf16.msra.mxu3 %v1624_v2  ;;  %v1647_v7 = vld [vmem:[%s2085_s1 + $0x50] sm:$0xff]  ;;  %v1667_v11 = vld [vmem:[%s2085_s1 + $0x48] sm:$0xff] }
   0xf   : > { %1562 = vmatpush.bf16.msra.mxu1 %v1635_v5  ;;  %v1483_v12 = vld [vmem:[%s2085_s1 + $0x20] sm:$0xff]  ;;  %v1213_v16 = vld [vmem:[%s1672_s16 + $0x48] sm:$0xf0]  ;;  %v1514_v18 = vld [vmem:[%s2085_s1 + $0x118] sm:$0xff] }
  0x10   : > { %379 = vmatpush.bf16.msra.mxu0 %v1485_v3  ;;  %v1495_v13 = vld [vmem:[%s2085_s1 + $0x80] sm:$0xff]  ;;  %v1510_v19 = vld [vmem:[%s2085_s1 + $0xf8] sm:$0xff]  ;;  %v1513_v23 = vld [vmem:[%s2085_s1 + $0x110] sm:$0xff] }
  0x11   : > { %580 = vmatpush.bf16.msra.mxu2 %v1497_v4  ;;  %v1684_v14 = vld [vmem:[%s2085_s1 + $0xa0] sm:$0xff]  ;;  %v1482_v21 = vld [vmem:[%s2085_s1 + $0x18] sm:$0xff]  ;;  %v1509_v24 = vld [vmem:[%s2085_s1 + $0xf0] sm:$0xff] }
  0x12   : > { %1567 = vmatpush.bf16.msra.mxu3 %v1641_v6  ;;  %v1471_v15 = vld [vmem:[%s1672_s16 + $0x44] sm:$0xf]  ;;  %v1494_v22 = vld [vmem:[%s2085_s1 + $0x78] sm:$0xff]  ;;  %v1481_v25 = vld [vmem:[%s2085_s1 + $0x10] sm:$0xff] }
  0x13   : > { %1563 = vmatpush.bf16.msra.mxu1 %v1647_v7  ;;  %v1487_v17 = vld [vmem:[%s2085_s1 + $0x40] sm:$0xff]  ;;  %v1698_v20 = vor.u32 %v1471_v15, %v1213_v16  ;;  %v1493_v26 = vld [vmem:[%s2085_s1 + $0x70] sm:$0xff]  ;;  %v1508_v27 = vld [vmem:[%s2085_s1 + $0xe8] sm:$0xff] }
  0x14   : > { %380 = vmatpush.bf16.msra.mxu0 %v1484_v8  ;;  %v1480_v28 = vld [vmem:[%s2085_s1 + $0x8] sm:$0xff]  ;;  %v1507_v30 = vld [vmem:[%s2085_s1 + $0xe0] sm:$0xff]  ;;  %v1473_v35 = vld [vmem:[%s1672_s16 + $0x54] sm:$0xf] }
  0x15   : > { %581 = vmatpush.bf16.msra.mxu2 %v1496_v9  ;;  %v1492_v29 = vld [vmem:[%s2085_s1 + $0x68] sm:$0xff]  ;;  %v1479_v31 = vld [vmem:[%s2085_s1] sm:$0xff]  ;;  %v1221_v36 = vld [vmem:[%s1672_s16 + $0x58] sm:$0xf0] }
  0x16   : > { %1568 = vmatpush.bf16.msra.mxu3 %v1661_v10  ;;  %v1179_v32 = vld [vmem:[%s1672_s16] sm:$0xf]  ;;  %v1464_v33 = vld [vmem:[%s1672_s16 + $0x4] sm:$0xf0]  ;;  %v1747_v38 = vor.u32 %v1473_v35, %v1221_v36  ;;  %v1506_v40 = vld [vmem:[%s2085_s1 + $0xd8] sm:$0xff] }
  0x17   : > { %1564 = vmatpush.bf16.msra.mxu1 %v1667_v11  ;;  %v1491_v34 = vld [vmem:[%s2085_s1 + $0x60] sm:$0xff]  ;;  %v1745_v37 = vor.u32 %v1464_v33, %v1179_v32  ;;  %v1512_v39 = vld [vmem:[%s2085_s1 + $0x108] sm:$0xff]  ;;  %v1187_v41 = vld [vmem:[%s1672_s16 + $0x10] sm:$0xf] }
  0x18   : > { %381 = vmatpush.bf16.msra.mxu0 %v1483_v12  ;;  %v1466_v42 = vld [vmem:[%s1672_s16 + $0x14] sm:$0xf0]  ;;  %v1475_v43 = vld [vmem:[%s1672_s16 + $0x64] sm:$0xf]  ;;  %v1229_v44 = vld [vmem:[%s1672_s16 + $0x68] sm:$0xf0] }
  0x19   : > { %582 = vmatpush.bf16.msra.mxu2 %v1495_v13  ;;  %v1188_v45 = vor.u32 %v1466_v42, %v1187_v41  ;;  %v1772_v46 = vor.u32 %v1475_v43, %v1229_v44  ;;  %v1505_v47 = vld [vmem:[%s2085_s1 + $0xd0] sm:$0xff]  ;;  %v1511_v48 = vld [vmem:[%s2085_s1 + $0x100] sm:$0xff]  ;;  %v1504_v49 = vld [vmem:[%s2085_s1 + $0xc8] sm:$0xff] }
  0x1a   : > { %1569 = vmatpush.bf16.msra.mxu3 %v1684_v14  ;;  %v1195_v50 = vld [vmem:[%s1672_s16 + $0x20] sm:$0xf]  ;;  %v1468_v51 = vld [vmem:[%s1672_s16 + $0x24] sm:$0xf0]  ;;  %v1477_v52 = vld [vmem:[%s1672_s16 + $0x74] sm:$0xf] }
  0x1b   : > { %1565 = vmatpush.bf16.msra.mxu1 %v1487_v17  ;;  %v1237_v53 = vld [vmem:[%s1672_s16 + $0x78] sm:$0xf0]  ;;  %v1196_v54 = vor.u32 %v1468_v51, %v1195_v50  ;;  %v1503_v56 = vld [vmem:[%s2085_s1 + $0xc0] sm:$0xff]  ;;  %v1203_v58 = vld [vmem:[%s1672_s16 + $0x30] sm:$0xf] }
  0x1c   : > { %382 = vmatpush.bf16.msra.mxu0 %v1482_v21  ;;  %v1791_v55 = vor.u32 %v1477_v52, %v1237_v53  ;;  %v175_v57 = vld [vmem:[%s1672_s16 + $0x80] sm:$0xff]  ;;  %v1470_v59 = vld [vmem:[%s1672_s16 + $0x34] sm:$0xf0]  ;;  %v1472_v0 = vld [vmem:[%s1672_s16 + $0x44] sm:$0xf0] }
  0x1d   : > { %1374 = vmatmul.msk.bf16.vlgmr.msra.gmra.mxu3 %vm350_vm0, %v1698_v20  ;;  %583 = vmatpush.bf16.msra.mxu2 %v1494_v22  ;;  %v250_v60 = vunpack.c.h.b16 %v175_v57  ;;  %v1204_v61 = vor.u32 %v1470_v59, %v1203_v58  ;;  %v1211_v63 = vld [vmem:[%s1672_s16 + $0x40] sm:$0xf]  ;;  %v1463_v1 = vld [vmem:[%s1672_s16 + $0x4] sm:$0xf]  ;;  %v1189_v8 = vld [vmem:[%s1672_s16 + $0x18] sm:$0xf0] }
  0x1e   : > { %922 = vmatpush.bf16.msrb.mxu3 %v1514_v18  ;;  %1293 = vmatmul.msk.bf16.vlgmr.msra.gmra.mxu1 %vm350_vm0, %v1698_v20  ;;  %v1212_v3 = vor.u32 %v1472_v0, %v1211_v63  ;;  %v1476_v12 = vld [vmem:[%s1672_s16 + $0x64] sm:$0xf0]  ;;  %v1467_v13 = vld [vmem:[%s1672_s16 + $0x24] sm:$0xf]  ;;  %v1478_v18 = vld [vmem:[%s1672_s16 + $0x74] sm:$0xf0] }
  0x1f   : > { %865 = vmatpush.bf16.msrb.mxu1 %v1510_v19  ;;  %v1803_v62 = vpack.c.b16 %v250_v60, %v250_v60  ;;  %v1469_v19 = vld [vmem:[%s1672_s16 + $0x34] sm:$0xf]  ;;  %v1205_v21 = vld [vmem:[%s1672_s16 + $0x38] sm:$0xf0] }
  0x20   : > { %383 = vmatpush.bf16.msra.mxu0 %v1481_v25 }
  0x21   : > { %584 = vmatpush.bf16.msra.mxu2 %v1493_v26 }
  0x22   : > { %923 = vmatpush.bf16.msrb.mxu3 %v1513_v23  ;;  %v1208_v23 = vor.u32 %v1469_v19, %v1205_v21 }
  0x23   : > { %866 = vmatpush.bf16.msrb.mxu1 %v1509_v24 }
  0x24   : > { %384 = vmatpush.bf16.msra.mxu0 %v1480_v28 }
  0x25   : > { %585 = vmatpush.bf16.msra.mxu2 %v1492_v29 }
  0x26   : > { %924 = vmatpush.bf16.msrb.mxu3 %v1512_v39 }
  0x27   : > { %867 = vmatpush.bf16.msrb.mxu1 %v1508_v27  ;;  %v249_v27 = vunpack.c.l.b16 %v175_v57 }
  0x28   : > { %385 = vmatpush.bf16.msra.mxu0 %v1479_v31 }
  0x29   : > { %586 = vmatpush.bf16.msra.mxu2 %v1491_v34  ;;  %v267_v29 = vpack.c.b16 %v249_v27, %v249_v27 }
  0x2a   : > { %925 = vmatpush.bf16.msrb.mxu3 %v1511_v48 }
  0x2b   : > { %868 = vmatpush.bf16.msrb.mxu1 %v1507_v30  ;;  %386 = vmatmul.bf16.vlgmr.msra.gmra.mxu0 %v1745_v37 }
  0x2c   : > { %434 = vmatpush.bf16.msrb.mxu0 %v1635_v5  ;;  %587 = vmatmul.bf16.vlgmr.msra.gmra.mxu2 %v1745_v37  ;;  %v1219_v5 = vld [vmem:[%s1672_s16 + $0x50] sm:$0xf] }
  0x2d   : > { %636 = vmatpush.bf16.msrb.mxu2 %v1624_v2  ;;  %1375 = vmatmul.msk.bf16.gmra.mxu3 %vm350_vm0, %v1747_v38  ;;  %v1181_v2 = vld [vmem:[%s1672_s16 + $0x8] sm:$0xf0] }
  0x2e   : > { %1294 = vmatmul.msk.bf16.gmra.mxu1 %vm350_vm0, %v1747_v38  ;;  %v1184_v4 = vor.u32 %v1463_v1, %v1181_v2 }
  0x2f   : > { %869 = vmatpush.bf16.msrb.mxu1 %v1506_v40 }
  0x30   : > { %435 = vmatpush.bf16.msrb.mxu0 %v1647_v7  ;;  %v1465_v7 = vld [vmem:[%s1672_s16 + $0x14] sm:$0xf] }
  0x31   : > { %637 = vmatpush.bf16.msrb.mxu2 %v1641_v6  ;;  %v1474_v6 = vld [vmem:[%s1672_s16 + $0x54] sm:$0xf0] }
  0x32   : > { %v1220_v9 = vor.u32 %v1474_v6, %v1219_v5 }
  0x33   : > { %870 = vmatpush.bf16.msrb.mxu1 %v1505_v47 }
  0x34   : > { %436 = vmatpush.bf16.msrb.mxu0 %v1667_v11  ;;  %v1227_v11 = vld [vmem:[%s1672_s16 + $0x60] sm:$0xf] }
  0x35   : > { %638 = vmatpush.bf16.msrb.mxu2 %v1661_v10  ;;  %v1192_v10 = vor.u32 %v1465_v7, %v1189_v8  ;;  %v1228_v15 = vor.u32 %v1476_v12, %v1227_v11 }
  0x37   : > { %871 = vmatpush.bf16.msrb.mxu1 %v1504_v49 }
  0x38   : > { %437 = vmatpush.bf16.msrb.mxu0 %v1487_v17  ;;  %v1235_v17 = vld [vmem:[%s1672_s16 + $0x70] sm:$0xf] }
  0x39   : > { %639 = vmatpush.bf16.msrb.mxu2 %v1684_v14  ;;  %v1197_v14 = vld [vmem:[%s1672_s16 + $0x28] sm:$0xf0]  ;;  %v1236_v22 = vor.u32 %v1478_v18, %v1235_v17  ;;  %s1172_s16 = sshll.u32 %s1168_s13, 4 }
  0x3a   : > { %v1200_v16 = vor.u32 %v1467_v13, %v1197_v14  ;;  %p147_p3 = scmp.lt.s32.totalorder %s1172_s16, 31 }
  0x3b   : > { %391 = vmatmul.bf16.gmra.mxu0 %v1188_v45  ;;  %872 = vmatpush.bf16.msrb.mxu1 %v1503_v56 }
  0x3c   : > { %592 = vmatmul.bf16.gmra.mxu2 %v1188_v45  ;;  %s2089_s16 = smov (!%p147_p3, %s1172_s16), 31 }
  0x3d   : > { %1376 = vmatmul.msk.bf16.gmra.mxu3 %vm350_vm0, %v1772_v46  ;;  %s1173_s13 = sshll.u32 %s2089_s16, 2 }
  0x3e   : > { %1295 = vmatmul.msk.bf16.gmra.mxu1 %vm350_vm0, %v1772_v46  ;;  %s2009_s21 = scalar_lea.vmem %s2087_s3, %s1173_s13 }
  0x4b   : > { %396 = vmatmul.bf16.gmra.mxu0 %v1196_v54 }
  0x4c   : > { %597 = vmatmul.bf16.gmra.mxu2 %v1196_v54 }
  0x4d   : > { %1377 = vmatmul.msk.bf16.gmra.mxu3 %vm350_vm0, %v1791_v55 }
  0x4e   : > { %1296 = vmatmul.msk.bf16.gmra.mxu1 %vm350_vm0, %v1791_v55 }
  0x5b   : > { %401 = vmatmul.bf16.gmra.mxu0 %v1204_v61 }
  0x5c   : > { %602 = vmatmul.bf16.gmra.mxu2 %v1204_v61 }
  0x5d   : > { %1378 = vmatmul.msk.bf16.gmra.mxu3 %vm350_vm0, %v1803_v62 }
  0x5e   : > { %1297 = vmatmul.msk.bf16.gmra.mxu1 %vm350_vm0, %v1803_v62 }
  0x6b   : > { %406 = vmatmul.bf16.gmra.mxu0 %v1212_v3 }
  0x6c   : > { %607 = vmatmul.bf16.gmra.mxu2 %v1212_v3 }
  0x6d   : > { %1451 = vmatmul.msk.bf16.vlgmr.msrb.gmra.mxu3 %vm350_vm0, %v1184_v4 }
  0x6e   : > { %873 = vmatmul.bf16.vlgmr.msrb.gmra.mxu1 %v1745_v37 }
  0x7b   : > { %411 = vmatmul.bf16.gmra.mxu0 %v1220_v9 }
  0x7c   : > { %612 = vmatmul.bf16.gmra.mxu2 %v1220_v9 }
  0x7d   : > { %1452 = vmatmul.msk.bf16.gmra.mxu3 %vm350_vm0, %v1192_v10 }
  0x7e   : > { %878 = vmatmul.bf16.gmra.mxu1 %v1188_v45 }
  0x8b   : > { %416 = vmatmul.bf16.gmra.mxu0 %v1228_v15 }
  0x8c   : > { %617 = vmatmul.bf16.gmra.mxu2 %v1228_v15 }
  0x8d   : > { %1453 = vmatmul.msk.bf16.gmra.mxu3 %vm350_vm0, %v1200_v16 }
  0x8e   : > { %883 = vmatmul.bf16.gmra.mxu1 %v1196_v54 }
  0x9b   : > { %v1829_v24 = vpop.f32.mrf.mxu1  ;;  %421 = vmatmul.bf16.gmra.mxu0 %v1236_v22 }
  0x9c   : > { %622 = vmatmul.bf16.gmra.mxu2 %v1236_v22 }
  0x9d   : > { %1454 = vmatmul.msk.bf16.gmra.mxu3 %vm350_vm0, %v1208_v23 }
  0x9e   : > { %888 = vmatmul.bf16.gmra.mxu1 %v1204_v61 }
  0xa0   : > { %v1832_v25 = vpop.f32.mrf.mxu3 }
  0xa3   : > { %v1834_v26 = vpop.f32.mrf.mxu1 }
  0xa8   : > { %v1836_v28 = vpop.f32.mrf.mxu3  ;;  %v1838_v30 = vpop.f32.mrf.mxu0 }
  0xab   : > { %v1840_v31 = vpop.f32.mrf.mxu1  ;;  %426 = vmatmul.bf16.gmra.mxu0 %v267_v29 }
  0xac   : > { %627 = vmatmul.bf16.gmra.mxu2 %v267_v29 }
  0xad   : > { %1455 = vmatmul.msk.bf16.gmra.mxu3 %vm350_vm0, %v1698_v20 }
  0xae   : > { %893 = vmatmul.bf16.gmra.mxu1 %v1212_v3 }
  0xaf   : > { %v1844_v32 = vpop.f32.mrf.mxu2 }
  0xb0   : > { %v1846_v33 = vpop.f32.mrf.mxu3  ;;  %v1848_v34 = vpop.f32.mrf.mxu0 }
  0xb3   : > { %v1850_v35 = vpop.f32.mrf.mxu1 }
  0xb7   : > { %v1852_v36 = vpop.f32.mrf.mxu2 }
  0xb8   : > { %v1854_v37 = vpop.f32.mrf.mxu3  ;;  %v1856_v39 = vpop.f32.mrf.mxu0 }
  0xbb   : > { %v1858_v40 = vpop.f32.mrf.mxu1  ;;  %1289 = vmatmul.msk.bf16.vlgmr.msrb.gmra.mxu0 %vm350_vm0, %v1184_v4 }
  0xbc   : > { %1370 = vmatmul.msk.bf16.vlgmr.msrb.gmra.mxu2 %vm350_vm0, %v1184_v4 }
  0xbd   : > { %1456 = vmatmul.msk.bf16.gmra.mxu3 %vm350_vm0, %v1747_v38 }
  0xbe   : > { %898 = vmatmul.bf16.gmra.mxu1 %v1220_v9 }
  0xbf   : > { %v1864_v20 = vpop.f32.mrf.mxu2 }
  0xc0   : > { %v1866_v41 = vpop.f32.mrf.mxu3  ;;  %v1868_v42 = vpop.f32.mrf.mxu0 }
  0xc3   : > { %v1870_v43 = vpop.f32.mrf.mxu1 }
  0xc7   : > { %v1872_v44 = vpop.f32.mrf.mxu2 }
  0xc8   : > { %v1874_v45 = vpop.f32.mrf.mxu3  ;;  %v1876_v47 = vpop.f32.mrf.mxu0 }
  0xcb   : > { %v1878_v48 = vpop.f32.mrf.mxu1  ;;  %1290 = vmatmul.msk.bf16.gmra.mxu0 %vm350_vm0, %v1192_v10 }
  0xcc   : > { %1371 = vmatmul.msk.bf16.gmra.mxu2 %vm350_vm0, %v1192_v10 }
  0xcd   : > { %1457 = vmatmul.msk.bf16.gmra.mxu3 %vm350_vm0, %v1772_v46 }
  0xce   : > { %903 = vmatmul.bf16.gmra.mxu1 %v1228_v15 }
  0xcf   : > { %v1884_v38 = vpop.f32.mrf.mxu2 }
  0xd0   : > { %v1886_v49 = vpop.f32.mrf.mxu3  ;;  %v1888_v50 = vpop.f32.mrf.mxu0 }
  0xd3   : > { %v1890_v51 = vpop.f32.mrf.mxu1 }
  0xd7   : > { %v1892_v52 = vpop.f32.mrf.mxu2 }
  0xd8   : > { %v1894_v53 = vpop.f32.mrf.mxu3  ;;  %v1896_v54 = vpop.f32.mrf.mxu0 }
  0xdb   : > { %v479_v56 = vpop.f32.mrf.mxu1  ;;  %1291 = vmatmul.msk.bf16.gmra.mxu0 %vm350_vm0, %v1200_v16 }
  0xdc   : > { %1372 = vmatmul.msk.bf16.gmra.mxu2 %vm350_vm0, %v1200_v16 }
  0xdd   : > { %1458 = vmatmul.msk.bf16.gmra.mxu3 %vm350_vm0, %v1791_v55 }
  0xde   : > { %908 = vmatmul.bf16.gmra.mxu1 %v1236_v22 }
  0xdf   : > { %v1902_v46 = vpop.f32.mrf.mxu2 }
  0xe0   : > { %v1904_v57 = vpop.f32.mrf.mxu3  ;;  %v1906_v58 = vpop.f32.mrf.mxu0 }
  0xe3   : > { %v480_v59 = vpop.f32.mrf.mxu1 }
  0xe7   : > { %v1908_v60 = vpop.f32.mrf.mxu2 }
  0xe8   : > { %v683_v61 = vpop.f32.mrf.mxu3  ;;  %v407_v63 = vpop.f32.mrf.mxu0 }
  0xe9   : > { %v460_v15 = vadd.f32 %v1829_v24, %v407_v63 }
  0xeb   : > { %v874_v0 = vpop.f32.mrf.mxu1  ;;  %1292 = vmatmul.msk.bf16.gmra.mxu0 %vm350_vm0, %v1208_v23 }
  0xec   : > { %1373 = vmatmul.msk.bf16.gmra.mxu2 %vm350_vm0, %v1208_v23 }
  0xed   : > { %1459 = vmatmul.msk.bf16.gmra.mxu3 %vm350_vm0, %v1803_v62 }
  0xee   : > { %913 = vmatmul.bf16.gmra.mxu1 %v267_v29 }
  0xef   : > { %v608_v55 = vpop.f32.mrf.mxu2 }
  0xf0   : > { %v927_v1 = vpop.f32.mrf.mxu3  ;;  %v409_v3 = vpop.f32.mrf.mxu0  ;;  %v1915_v5 = vadd.f32 %v1832_v25, %v608_v55 }
  0xf1   : > { %v928_v2 = vadd.f32 %v927_v1, %v874_v0  ;;  %v462_v24 = vadd.f32 %v1834_v26, %v409_v3 }
  0xf2   : > { %v718_v62 = vrot.slane %v1915_v5, 1 }
  0xf3   : > { %v876_v4 = vpop.f32.mrf.mxu1  ;;  %v989_v8 = vrot.slane %v928_v2, 2 }
  0xf7   : > { %v610_v6 = vpop.f32.mrf.mxu2 }
  0xf8   : > { %v929_v7 = vpop.f32.mrf.mxu3  ;;  %v664_v9 = vadd.f32 %v1836_v28, %v610_v6  ;;  %v412_v11 = vpop.f32.mrf.mxu0 }
  0xf9   : > { %v930_v10 = vadd.f32 %v929_v7, %v876_v4  ;;  %v465_v7 = vadd.f32 %v1840_v31, %v412_v11 }
  0xfa   : > { %v720_v12 = vrot.slane %v664_v9, 1 }
  0xfb   : > { %v990_v13 = vrot.slane %v930_v10, 2  ;;  %v879_v14 = vpop.f32.mrf.mxu1 }
  0xfc   : > { %v721_v16 = vsel %vm702_vm1, %v718_v62, %v720_v12 }
  0xfd   : > { %v1924_v17 = vsel %vm988_vm2, %v989_v8, %v990_v13  ;;  %v1926_v18 = vadd.f32 %v721_v16, %v460_v15 }
  0xff   : > { %v613_v19 = vpop.f32.mrf.mxu2 }
 0x100   : > { %v932_v21 = vpop.f32.mrf.mxu3  ;;  %v667_v22 = vadd.f32 %v1846_v33, %v613_v19  ;;  %v414_v25 = vpop.f32.mrf.mxu0 }
 0x101   : > { %v933_v23 = vadd.f32 %v932_v21, %v879_v14  ;;  %v467_v19 = vadd.f32 %v1850_v35, %v414_v25 }
 0x102   : > { %v722_v27 = vrot.slane %v667_v22, 1 }
 0x103   : > { %v992_v28 = vrot.slane %v933_v23, 2  ;;  %v881_v29 = vpop.f32.mrf.mxu1 }
 0x104   : > { %v723_v56 = vsel %vm702_vm1, %v720_v12, %v722_v27 }
 0x105   : > { %v1932_v59 = vsel %vm988_vm2, %v990_v13, %v992_v28  ;;  %v1934_v61 = vadd.f32 %v723_v56, %v462_v24 }
 0x107   : > { %v615_v63 = vpop.f32.mrf.mxu2 }
 0x108   : > { %v934_v0 = vpop.f32.mrf.mxu3  ;;  %v669_v55 = vadd.f32 %v1854_v37, %v615_v63  ;;  %v417_v33 = vpop.f32.mrf.mxu0 }
 0x109   : > { %v935_v1 = vadd.f32 %v934_v0, %v881_v29  ;;  %v470_v63 = vadd.f32 %v1858_v40, %v417_v33 }
 0x10a   : > { %v724_v2 = vrot.slane %v669_v55, 1 }
 0x10b   : > { %v994_v4 = vrot.slane %v935_v1, 2  ;;  %v884_v6 = vpop.f32.mrf.mxu1 }
 0x10c   : > { %v725_v26 = vsel %vm702_vm1, %v722_v27, %v724_v2 }
 0x10d   : > { %v1940_v3 = vsel %vm988_vm2, %v992_v28, %v994_v4  ;;  %v1942_v8 = vadd.f32 %v725_v26, %v465_v7 }
 0x10f   : > { %v618_v9 = vpop.f32.mrf.mxu2 }
 0x110   : > { %v937_v10 = vpop.f32.mrf.mxu3  ;;  %v672_v12 = vadd.f32 %v1866_v41, %v618_v9  ;;  %v419_v37 = vpop.f32.mrf.mxu0 }
 0x111   : > { %v938_v13 = vadd.f32 %v937_v10, %v884_v6  ;;  %v472_v9 = vadd.f32 %v1870_v43, %v419_v37 }
 0x112   : > { %v726_v14 = vrot.slane %v672_v12, 1 }
 0x113   : > { %v996_v15 = vrot.slane %v938_v13, 2  ;;  %v886_v16 = vpop.f32.mrf.mxu1 }
 0x114   : > { %v727_v31 = vsel %vm702_vm1, %v724_v2, %v726_v14 }
 0x115   : > { %v1948_v11 = vsel %vm988_vm2, %v994_v4, %v996_v15  ;;  %v1950_v21 = vadd.f32 %v727_v31, %v467_v19 }
 0x117   : > { %v620_v22 = vpop.f32.mrf.mxu2 }
 0x118   : > { %v939_v23 = vpop.f32.mrf.mxu3  ;;  %v674_v27 = vadd.f32 %v1874_v45, %v620_v22  ;;  %v422_v41 = vpop.f32.mrf.mxu0 }
 0x119   : > { %v940_v28 = vadd.f32 %v939_v23, %v886_v16  ;;  %v475_v43 = vadd.f32 %v1878_v48, %v422_v41 }
 0x11a   : > { %v728_v29 = vrot.slane %v674_v27, 1 }
 0x11b   : > { %v998_v24 = vrot.slane %v940_v28, 2  ;;  %v889_v56 = vpop.f32.mrf.mxu1 }
 0x11c   : > { %v729_v35 = vsel %vm702_vm1, %v726_v14, %v728_v29 }
 0x11d   : > { %v1956_v25 = vsel %vm988_vm2, %v996_v15, %v998_v24  ;;  %v1958_v0 = vadd.f32 %v729_v35, %v470_v63 }
 0x11f   : > { %v623_v55 = vpop.f32.mrf.mxu2 }
 0x120   : > { %v942_v1 = vpop.f32.mrf.mxu3  ;;  %v677_v2 = vadd.f32 %v1886_v49, %v623_v55  ;;  %v424_v45 = vpop.f32.mrf.mxu0 }
 0x121   : > { %v943_v4 = vadd.f32 %v942_v1, %v889_v56  ;;  %v477_v63 = vadd.f32 %v1890_v51, %v424_v45 }
 0x122   : > { %v730_v6 = vrot.slane %v677_v2, 1 }
 0x123   : > { %v1000_v7 = vrot.slane %v943_v4, 2  ;;  %v891_v26 = vpop.f32.mrf.mxu1 }
 0x124   : > { %v731_v40 = vsel %vm702_vm1, %v728_v29, %v730_v6 }
 0x125   : > { %v1964_v33 = vsel %vm988_vm2, %v998_v24, %v1000_v7  ;;  %v1966_v10 = vadd.f32 %v731_v40, %v472_v9 }
 0x127   : > { %v625_v12 = vpop.f32.mrf.mxu2 }
 0x128   : > { %v944_v13 = vpop.f32.mrf.mxu3  ;;  %v679_v14 = vadd.f32 %v1894_v53, %v625_v12  ;;  %v427_v49 = vpop.f32.mrf.mxu0 }
 0x129   : > { %v1969_v15 = vadd.f32 %v944_v13, %v891_v26  ;;  %v1998_v13 = vld [vmem:[%s2086_s2] ss:$0 sm:$0xff] }
 0x12a   : > { %v732_v16 = vrot.slane %v679_v14, 1 }
 0x12b   : > { %v1002_v19 = vrot.slane %v1969_v15, 2  ;;  %v894_v31 = vpop.f32.mrf.mxu1 }
 0x12c   : > { %v733_v37 = vsel %vm702_vm1, %v730_v6, %v732_v16 }
 0x12d   : > { %v1977_v22 = vsel %vm988_vm2, %v1000_v7, %v1002_v19  ;;  %v1979_v23 = vadd.f32 %v733_v37, %v475_v43 }
 0x12f   : > { %v628_v27 = vpop.f32.mrf.mxu2 }
 0x130   : > { %v947_v53 = vpop.f32.mrf.mxu3  ;;  %v682_v28 = vadd.f32 %v1904_v57, %v628_v27  ;;  %v428_v29 = vpop.f32.mrf.mxu0 }
 0x131   : > { %v1986_v1 = vadd.f32 %v947_v53, %v894_v31 }
 0x132   : > { %v734_v24 = vrot.slane %v682_v28, 1 }
 0x133   : > { %v896_v56 = vpop.f32.mrf.mxu1  ;;  %v1004_v26 = vrot.slane %v1986_v1, 2 }
 0x134   : > { %v735_v48 = vsel %vm702_vm1, %v732_v16, %v734_v24 }
 0x135   : > { %v1984_v41 = vadd.f32 %v735_v48, %v477_v63 }
 0x137   : > { %v630_v35 = vpop.f32.mrf.mxu2 }
 0x138   : > { %v949_v55 = vpop.f32.mrf.mxu3  ;;  %v439_v4 = vpop.f32.mrf.mxu0 }
 0x139   : > { %v950_v2 = vadd.f32 %v949_v55, %v896_v56 }
 0x13b   : > { %v1006_v6 = vrot.slane %v950_v2, 2  ;;  %v899_v7 = vpop.f32.mrf.mxu1 }
 0x13d   : > { %v1007_v51 = vsel %vm988_vm2, %v1004_v26, %v1006_v6 }
 0x13e   : > { %v1046_v12 = vadd.f32 %v1007_v51, %v1926_v18 }
 0x13f   : > { %v641_v57 = vpop.f32.mrf.mxu2 }
 0x140   : > { %v952_v45 = vpop.f32.mrf.mxu3  ;;  %v441_v40 = vpop.f32.mrf.mxu0  ;;  %v1066_v31 = vadd.f32 %v1998_v13, %v1046_v12  ;;  %v642_v37 = vadd.f32 %v641_v57, %v1844_v32 }
 0x141   : > { %v953_v9 = vadd.f32 %v952_v45, %v899_v7 }
 0x142   : > { %v1082_v56 = vmax.f32 %v1066_v31, 0.0  ;;  %v703_v48 = vrot.slane %v642_v37, 1  ;;  %v442_v37 = vadd.f32 %v441_v40, %v1848_v34 }
 0x143   : > { %v1008_v14 = vrot.slane %v953_v9, 2  ;;  %v901_v49 = vpop.f32.mrf.mxu1 }
 0x145   : > { %v1009_v16 = vsel %vm988_vm2, %v1006_v6, %v1008_v14  ;;  %v440_v6 = vadd.f32 %v439_v4, %v1838_v30 }
 0x146   : > { %v1047_v43 = vadd.f32 %v1009_v16, %v1934_v61 }
 0x147   : > { %v643_v18 = vpop.f32.mrf.mxu2 }
 0x148   : > { %v1067_v27 = vadd.f32 %v1998_v13, %v1047_v43  ;;  %v954_v53 = vpop.f32.mrf.mxu3  ;;  %v644_v28 = vadd.f32 %v643_v18, %v1852_v36  ;;  %v444_v24 = vpop.f32.mrf.mxu0 }
 0x149   : > { %v955_v29 = vadd.f32 %v954_v53, %v901_v49 }
 0x14a   : > { %v1083_v63 = vmax.f32 %v1067_v27, 0.0  ;;  %v704_v61 = vrot.slane %v644_v28, 1 }
 0x14b   : > { %v1010_v32 = vrot.slane %v955_v29, 2  ;;  %v904_v35 = vpop.f32.mrf.mxu1 }
 0x14c   : > { %v1538_v55 = vpack.c.bf16 %v1083_v63, %v1082_v56  ;;  %v705_v2 = vsel %vm702_vm1, %v703_v48, %v704_v61 }
 0x14d   : > { %v1011_v36 = vsel %vm988_vm2, %v1008_v14, %v1010_v32  ;;  %v752_v7 = vadd.f32 %v705_v2, %v440_v6 }
 0x14e   : > { %1558 = vst [vmem:[%s2009_s21 + $0x20] sm:$0xff] %v1538_v55   ;;  %v1048_v49 = vadd.f32 %v1011_v36, %v1942_v8  ;;  %v445_v36 = vadd.f32 %v444_v24, %v1856_v39 }
 0x14f   : > { %v646_v51 = vpop.f32.mrf.mxu2  ;;  %v1038_v27 = vadd.f32 %v1924_v17, %v752_v7 }
 0x150   : > { %v957_v57 = vpop.f32.mrf.mxu3  ;;  %v647_v45 = vadd.f32 %v646_v51, %v1864_v20  ;;  %v446_v12 = vpop.f32.mrf.mxu0  ;;  %v1068_v14 = vadd.f32 %v1998_v13, %v1048_v49 }
 0x151   : > { %v958_v9 = vadd.f32 %v957_v57, %v904_v35  ;;  %v1058_v53 = vadd.f32 %v1998_v13, %v1038_v27 }
 0x152   : > { %v706_v16 = vrot.slane %v647_v45, 1  ;;  %v1084_v40 = vmax.f32 %v1068_v14, 0.0 }
 0x153   : > { %v1012_v31 = vrot.slane %v958_v9, 2  ;;  %v906_v43 = vpop.f32.mrf.mxu1  ;;  %v1074_v55 = vmax.f32 %v1058_v53, 0.0 }
 0x154   : > { %v707_v30 = vsel %vm702_vm1, %v704_v61, %v706_v16 }
 0x155   : > { %v1013_v4 = vsel %vm988_vm2, %v1010_v32, %v1012_v31  ;;  %v753_v18 = vadd.f32 %v707_v30, %v442_v37 }
 0x156   : > { %v1049_v20 = vadd.f32 %v1013_v4, %v1950_v21 }
 0x157   : > { %v1039_v8 = vadd.f32 %v1932_v59, %v753_v18  ;;  %v648_v29 = vpop.f32.mrf.mxu2 }
 0x158   : > { %v1069_v28 = vadd.f32 %v1998_v13, %v1049_v20  ;;  %v959_v56 = vpop.f32.mrf.mxu3  ;;  %v649_v34 = vadd.f32 %v648_v29, %v1872_v44  ;;  %v449_v21 = vpop.f32.mrf.mxu0 }
 0x159   : > { %v960_v17 = vadd.f32 %v959_v56, %v906_v43  ;;  %v1059_v63 = vadd.f32 %v1998_v13, %v1039_v8 }
 0x15a   : > { %v1085_v48 = vmax.f32 %v1069_v28, 0.0  ;;  %v708_v61 = vrot.slane %v649_v34, 1 }
 0x15b   : > { %v1014_v32 = vrot.slane %v960_v17, 2  ;;  %v909_v35 = vpop.f32.mrf.mxu1  ;;  %v1075_v2 = vmax.f32 %v1059_v63, 0.0 }
 0x15c   : > { %v1543_v59 = vpack.c.bf16 %v1085_v48, %v1084_v40  ;;  %v709_v6 = vsel %vm702_vm1, %v706_v16, %v708_v61  ;;  %v447_v16 = vadd.f32 %v446_v12, %v1868_v42 }
 0x15d   : > { %v1518_v7 = vpack.c.bf16 %v1075_v2, %v1074_v55  ;;  %v1015_v44 = vsel %vm988_vm2, %v1012_v31, %v1014_v32  ;;  %v754_v51 = vadd.f32 %v709_v6, %v445_v36 }
 0x15e   : > { %1559 = vst [vmem:[%s2009_s21 + $0x28] sm:$0xff] %v1543_v59   ;;  %v1050_v43 = vadd.f32 %v1015_v44, %v1958_v0 }
 0x15f   : > { %1519 = vst [vmem:[%s2009_s21] sm:$0xff] %v1518_v7   ;;  %v651_v57 = vpop.f32.mrf.mxu2  ;;  %v1040_v39 = vadd.f32 %v1940_v3, %v754_v51 }
 0x160   : > { %v962_v45 = vpop.f32.mrf.mxu3  ;;  %v652_v9 = vadd.f32 %v651_v57, %v1884_v38  ;;  %v451_v4 = vpop.f32.mrf.mxu0  ;;  %v1070_v14 = vadd.f32 %v1998_v13, %v1050_v43 }
 0x161   : > { %v963_v49 = vadd.f32 %v962_v45, %v909_v35  ;;  %v1060_v20 = vadd.f32 %v1998_v13, %v1040_v39  ;;  %v452_v45 = vadd.f32 %v451_v4, %v1888_v50 }
 0x162   : > { %v710_v37 = vrot.slane %v652_v9, 1  ;;  %v1086_v28 = vmax.f32 %v1070_v14, 0.0 }
 0x163   : > { %v1016_v27 = vrot.slane %v963_v49, 2  ;;  %v911_v30 = vpop.f32.mrf.mxu1  ;;  %v1076_v40 = vmax.f32 %v1060_v20, 0.0 }
 0x164   : > { %v711_v24 = vsel %vm702_vm1, %v708_v61, %v710_v37  ;;  %v450_v61 = vadd.f32 %v449_v21, %v1876_v47 }
 0x165   : > { %v1017_v31 = vsel %vm988_vm2, %v1014_v32, %v1016_v27  ;;  %v755_v18 = vadd.f32 %v711_v24, %v447_v16 }
 0x166   : > { %v1051_v38 = vadd.f32 %v1017_v31, %v1966_v10 }
 0x167   : > { %v1041_v0 = vadd.f32 %v1948_v11, %v755_v18  ;;  %v653_v8 = vpop.f32.mrf.mxu2 }
 0x168   : > { %v1071_v53 = vadd.f32 %v1998_v13, %v1051_v38  ;;  %v964_v42 = vpop.f32.mrf.mxu3  ;;  %v654_v3 = vadd.f32 %v653_v8, %v1892_v52  ;;  %v454_v35 = vpop.f32.mrf.mxu0 }
 0x169   : > { %v965_v12 = vadd.f32 %v964_v42, %v911_v30  ;;  %v1061_v29 = vadd.f32 %v1998_v13, %v1041_v0  ;;  %v455_v4 = vadd.f32 %v454_v35, %v1896_v54  ;;  %v1005_v54 = vsel %vm988_vm2, %v1002_v19, %v1004_v26 }
 0x16a   : > { %v1087_v56 = vmax.f32 %v1071_v53, 0.0  ;;  %v712_v34 = vrot.slane %v654_v3, 1 }
 0x16b   : > { %v1018_v17 = vrot.slane %v965_v12, 2  ;;  %v914_v10 = vpop.f32.mrf.mxu1  ;;  %v1077_v63 = vmax.f32 %v1061_v29, 0.0 }
 0x16c   : > { %v1548_v48 = vpack.c.bf16 %v1087_v56, %v1086_v28  ;;  %v713_v11 = vsel %vm702_vm1, %v710_v37, %v712_v34 }
 0x16d   : > { %v1523_v32 = vpack.c.bf16 %v1077_v63, %v1076_v40  ;;  %v1019_v52 = vsel %vm988_vm2, %v1016_v27, %v1018_v17  ;;  %v756_v55 = vadd.f32 %v713_v11, %v450_v61 }
 0x16e   : > { %1560 = vst [vmem:[%s2009_s21 + $0x30] sm:$0xff] %v1548_v48   ;;  %v1052_v7 = vadd.f32 %v1019_v52, %v1979_v23 }
 0x16f   : > { %1555 = vst [vmem:[%s2009_s21 + $0x8] sm:$0xff] %v1523_v32   ;;  %v656_v2 = vpop.f32.mrf.mxu2  ;;  %v1042_v47 = vadd.f32 %v1956_v25, %v756_v55 }
 0x170   : > { %v967_v59 = vpop.f32.mrf.mxu3  ;;  %v657_v6 = vadd.f32 %v656_v2, %v1902_v46  ;;  %v1072_v49 = vadd.f32 %v1998_v13, %v1052_v7  ;;  %v456_v16 = vpop.f32.mrf.mxu0 }
 0x171   : > { %v968_v36 = vadd.f32 %v967_v59, %v914_v10  ;;  %v1062_v46 = vadd.f32 %v1998_v13, %v1042_v47 }
 0x172   : > { %v714_v44 = vrot.slane %v657_v6, 1  ;;  %v1088_v39 = vmax.f32 %v1072_v49, 0.0 }
 0x173   : > { %v1020_v51 = vrot.slane %v968_v36, 2  ;;  %v916_v57 = vpop.f32.mrf.mxu1  ;;  %v1078_v14 = vmax.f32 %v1062_v46, 0.0 }
 0x174   : > { %v715_v21 = vsel %vm702_vm1, %v712_v34, %v714_v44 }
 0x175   : > { %v1021_v9 = vsel %vm988_vm2, %v1018_v17, %v1020_v51  ;;  %v757_v43 = vadd.f32 %v715_v21, %v452_v45 }
 0x176   : > { %v1053_v37 = vadd.f32 %v1021_v9, %v1984_v41 }
 0x177   : > { %v1043_v23 = vadd.f32 %v1964_v33, %v757_v43  ;;  %v658_v30 = vpop.f32.mrf.mxu2  ;;  %v457_v33 = vadd.f32 %v456_v16, %v1906_v58 }
 0x178   : > { %v1073_v27 = vadd.f32 %v1998_v13, %v1053_v37  ;;  %v969_v50 = vpop.f32.mrf.mxu3  ;;  %v659_v25 = vadd.f32 %v658_v30, %v1908_v60 }
 0x179   : > { %v1063_v24 = vadd.f32 %v1998_v13, %v1043_v23 }
 0x17a   : > { %v1089_v31 = vmax.f32 %v1073_v27, 0.0  ;;  %v716_v41 = vrot.slane %v659_v25, 1 }
 0x17b   : > { %v1079_v18 = vmax.f32 %v1063_v24, 0.0 }
 0x17c   : > { %v1553_v38 = vpack.c.bf16 %v1089_v31, %v1088_v39  ;;  %v717_v20 = vsel %vm702_vm1, %v714_v44, %v716_v41  ;;  %v719_v60 = vsel %vm702_vm1, %v716_v41, %v718_v62 }
 0x17d   : > { %v1528_v0 = vpack.c.bf16 %v1079_v18, %v1078_v14  ;;  %v758_v53 = vadd.f32 %v717_v20, %v455_v4  ;;  %v759_v8 = vadd.f32 %v719_v60, %v457_v33 }
 0x17e   : > { %1561 = vst [vmem:[%s2009_s21 + $0x38] sm:$0xff] %v1553_v38  }
 0x17f   : > { %1556 = vst [vmem:[%s2009_s21 + $0x10] sm:$0xff] %v1528_v0   ;;  %v1044_v58 = vadd.f32 %v1977_v22, %v758_v53  ;;  %v1045_v42 = vadd.f32 %v1005_v54, %v759_v8 }
 0x181   : > { %v1064_v3 = vadd.f32 %v1998_v13, %v1044_v58  ;;  %v1065_v5 = vadd.f32 %v1998_v13, %v1045_v42 }
 0x183   : > { %v1080_v12 = vmax.f32 %v1064_v3, 0.0  ;;  %v1081_v62 = vmax.f32 %v1065_v5, 0.0 }
 0x185   : > { %v1533_v28 = vpack.c.bf16 %v1081_v62, %v1080_v12 }
 0x187   : > { %1557 = vst [vmem:[%s2009_s21 + $0x18] sm:$0xff] %v1533_v28  }
 0x188 PF: > { %s13_s12 = sadd.s32 1, %s1585_s12  }
 0x189   : > { %p10_p4 = scmp.ge.s32.totalorder %s13_s12, 4  }
 0x18b   :  { %12 = sbr.rel (!%p10_p4) target bundleno = 1 (0x1), region = 62 }

// kernel: vgg16_features.32
= control target key start
LH: loop header
LB: loop body
LE: loop exit
PB: predicated region body
PF: predicated region fallthrough
CT: control target
= control target key end

     0   :  { %s78_s0 = inlined_call_operand.vmem [shape: bf16[8,128], index: 0, kind: input, shape index: {}]   ;;  %s79_s1 = inlined_call_operand.vmem [shape: bf16[8,128], index: 1, kind: input, shape index: {}]   ;;  %s80_s2 = inlined_call_operand.vmem [shape: bf16[8,128], index: 2, kind: input, shape index: {}]   ;;  %s81_s3 = inlined_call_operand.vmem [shape: bf16[8,128], index: 3, kind: input, shape index: {}]   ;;  %s82_s4 = inlined_call_operand.vmem [shape: bf16[8,128], index: 4, kind: output, shape index: {}]  }
   0x1   :  { %v17_v0 = vld [vmem:[%s78_s0] sm:$0xf] }
   0x2   :  { %v18_v1 = vld [vmem:[%s79_s1] sm:$0xf]  ;;  %v19_v3 = vunpack.c.l.bf16 %v17_v0 }
   0x3   :  { %v23_v2 = vld [vmem:[%s80_s2] sm:$0xf]  ;;  %v20_v4 = vunpack.c.l.bf16 %v18_v1 }
   0x4   :  { %v24_v5 = vld [vmem:[%s81_s3] sm:$0xf]  ;;  %v25_v6 = vunpack.c.l.bf16 %v23_v2 }
   0x5   :  { %v26_v7 = vunpack.c.l.bf16 %v24_v5  ;;  %v21_v8 = vmax.f32 %v19_v3, %v20_v4 }
   0x7   :  { %v27_v9 = vmax.f32 %v25_v6, %v26_v7 }
   0x9   :  { %v31_v10 = vmax.f32 %v21_v8, %v27_v9 }
   0xb   :  { %v32_v11 = vpack.c.bf16 %v31_v10, %v31_v10 }
   0xd   :  { %33 = vst [vmem:[%s82_s4] sm:$0xf] %v32_v11 }

// kernel: vgg16_features.29
= control target key start
LH: loop header
LB: loop body
LE: loop exit
PB: predicated region body
PF: predicated region fallthrough
CT: control target
= control target key end

     0   :  { %vm157_vm0 = vcmask 523264   ;;  %vm384_vm1 = vcmask 1046528   ;;  %vm570_vm2 = vcmask 1045504   ;;  %s1182_s1 = inlined_call_operand.vmem [shape: bf16[3,192,128], index: 1, kind: input, shape index: {}]   ;;  %s1183_s0 = inlined_call_operand.vmem [shape: bf16[56,192], index: 0, kind: input, shape index: {}]   ;;  %s1184_s2 = inlined_call_operand.vmem [shape: f32[1,128], index: 2, kind: input, shape index: {}]   ;;  %s1185_s3 = inlined_call_operand.vmem [shape: bf16[48,128], index: 3, kind: output, shape index: {}]  }
   0x1   :  { %v871_v0 = vld [vmem:[%s1182_s1 + $0x38] sm:$0xff]  ;;  %v870_v3 = vld [vmem:[%s1182_s1 + $0x30] sm:$0xff]  ;;  %v869_v7 = vld [vmem:[%s1182_s1 + $0x28] sm:$0xff] }
   0x2   :  { %v883_v1 = vld [vmem:[%s1182_s1 + $0x98] sm:$0xff]  ;;  %170 = vmatpush.bf16.msra.mxu0 %v871_v0  ;;  %v882_v4 = vld [vmem:[%s1182_s1 + $0x90] sm:$0xff]  ;;  %v881_v8 = vld [vmem:[%s1182_s1 + $0x88] sm:$0xff] }
   0x3   :  { %v955_v2 = vld [vmem:[%s1182_s1 + $0xb8] sm:$0xff]  ;;  %321 = vmatpush.bf16.msra.mxu2 %v883_v1  ;;  %v967_v5 = vld [vmem:[%s1182_s1 + $0xb0] sm:$0xff]  ;;  %v984_v9 = vld [vmem:[%s1182_s1 + $0xa8] sm:$0xff] }
   0x4   :  { %921 = vmatpush.bf16.msra.mxu3 %v955_v2  ;;  %v972_v6 = vld [vmem:[%s1182_s1 + $0x58] sm:$0xff]  ;;  %v990_v10 = vld [vmem:[%s1182_s1 + $0x50] sm:$0xff]  ;;  %v868_v11 = vld [vmem:[%s1182_s1 + $0x20] sm:$0xff] }
   0x5   :  { %917 = vmatpush.bf16.msra.mxu1 %v972_v6  ;;  %v880_v12 = vld [vmem:[%s1182_s1 + $0x80] sm:$0xff]  ;;  %v860_v14 = vld [vmem:[%s1183_s0 + $0x14] sm:$0xf]  ;;  %v642_v15 = vld [vmem:[%s1183_s0 + $0x18] sm:$0xf0] }
   0x6   :  { %171 = vmatpush.bf16.msra.mxu0 %v870_v3  ;;  %v1001_v13 = vld [vmem:[%s1182_s1 + $0xa0] sm:$0xff]  ;;  %v1014_v16 = vld [vmem:[%s1182_s1 + $0x48] sm:$0xff]  ;;  %v899_v17 = vld [vmem:[%s1182_s1 + $0x118] sm:$0xff]  ;;  %v1019_v18 = vor.u32 %v860_v14, %v642_v15 }
   0x7   :  { %322 = vmatpush.bf16.msra.mxu2 %v882_v4  ;;  %v867_v19 = vld [vmem:[%s1182_s1 + $0x18] sm:$0xff]  ;;  %v872_v21 = vld [vmem:[%s1182_s1 + $0x40] sm:$0xff]  ;;  %v650_v23 = vld [vmem:[%s1183_s0 + $0x28] sm:$0xf0] }
   0x8   :  { %922 = vmatpush.bf16.msra.mxu3 %v967_v5  ;;  %v879_v20 = vld [vmem:[%s1182_s1 + $0x78] sm:$0xff]  ;;  %v862_v22 = vld [vmem:[%s1183_s0 + $0x24] sm:$0xf]  ;;  %v898_v24 = vld [vmem:[%s1182_s1 + $0x110] sm:$0xff] }
   0x9   :  { %918 = vmatpush.bf16.msra.mxu1 %v990_v10  ;;  %v895_v25 = vld [vmem:[%s1182_s1 + $0xf8] sm:$0xff]  ;;  %v866_v26 = vld [vmem:[%s1182_s1 + $0x10] sm:$0xff]  ;;  %v1049_v27 = vor.u32 %v862_v22, %v650_v23  ;;  %v897_v30 = vld [vmem:[%s1182_s1 + $0x108] sm:$0xff] }
   0xa   :  { %172 = vmatpush.bf16.msra.mxu0 %v869_v7  ;;  %v878_v28 = vld [vmem:[%s1182_s1 + $0x70] sm:$0xff]  ;;  %v865_v31 = vld [vmem:[%s1182_s1 + $0x8] sm:$0xff]  ;;  %v896_v34 = vld [vmem:[%s1182_s1 + $0x100] sm:$0xff] }
   0xb   :  { %323 = vmatpush.bf16.msra.mxu2 %v881_v8  ;;  %v894_v29 = vld [vmem:[%s1182_s1 + $0xf0] sm:$0xff]  ;;  %v877_v32 = vld [vmem:[%s1182_s1 + $0x68] sm:$0xff]  ;;  %v864_v35 = vld [vmem:[%s1182_s1] sm:$0xff] }
   0xc   :  { %923 = vmatpush.bf16.msra.mxu3 %v984_v9  ;;  %v893_v33 = vld [vmem:[%s1182_s1 + $0xe8] sm:$0xff]  ;;  %v632_v36 = vld [vmem:[%s1183_s0] sm:$0xf]  ;;  %v27_v39 = vld [vmem:[%s1183_s0 + $0x30] sm:$0xff] }
   0xd   :  { %919 = vmatpush.bf16.msra.mxu1 %v1014_v16  ;;  %v859_v37 = vld [vmem:[%s1183_s0 + $0x4] sm:$0xf0]  ;;  %v876_v38 = vld [vmem:[%s1182_s1 + $0x60] sm:$0xff]  ;;  %v72_v42 = vunpack.c.h.b16 %v27_v39  ;;  %v891_v43 = vld [vmem:[%s1182_s1 + $0xd8] sm:$0xff]  ;;  %v71_v57 = vunpack.c.l.b16 %v27_v39 }
   0xe   :  { %173 = vmatpush.bf16.msra.mxu0 %v868_v11  ;;  %v892_v40 = vld [vmem:[%s1182_s1 + $0xe0] sm:$0xff]  ;;  %v633_v41 = vor.u32 %v859_v37, %v632_v36  ;;  %v890_v45 = vld [vmem:[%s1182_s1 + $0xd0] sm:$0xff]  ;;  %v889_v46 = vld [vmem:[%s1182_s1 + $0xc8] sm:$0xff] }
   0xf   :  { %324 = vmatpush.bf16.msra.mxu2 %v880_v12  ;;  %v80_v44 = vpack.c.b16 %v72_v42, %v72_v42  ;;  %v640_v47 = vld [vmem:[%s1183_s0 + $0x10] sm:$0xf]  ;;  %v861_v48 = vld [vmem:[%s1183_s0 + $0x14] sm:$0xf0]  ;;  %v888_v49 = vld [vmem:[%s1182_s1 + $0xc0] sm:$0xff]  ;;  %v79_v58 = vpack.c.b16 %v71_v57, %v71_v57 }
  0x10   :  { %924 = vmatpush.bf16.msra.mxu3 %v1001_v13  ;;  %v641_v50 = vor.u32 %v861_v48, %v640_v47  ;;  %v648_v51 = vld [vmem:[%s1183_s0 + $0x20] sm:$0xf]  ;;  %v863_v52 = vld [vmem:[%s1183_s0 + $0x24] sm:$0xf0]  ;;  %v858_v53 = vld [vmem:[%s1183_s0 + $0x4] sm:$0xf] }
  0x11   :  { %920 = vmatpush.bf16.msra.mxu1 %v872_v21  ;;  %v634_v54 = vld [vmem:[%s1183_s0 + $0x8] sm:$0xf0]  ;;  %v649_v55 = vor.u32 %v863_v52, %v648_v51 }
  0x12   :  { %174 = vmatpush.bf16.msra.mxu0 %v867_v19  ;;  %v637_v56 = vor.u32 %v858_v53, %v634_v54 }
  0x13   :  { %779 = vmatmul.msk.bf16.vlgmr.msra.gmra.mxu3 %vm157_vm0, %v1019_v18  ;;  %325 = vmatpush.bf16.msra.mxu2 %v879_v20 }
  0x14   :  { %539 = vmatpush.bf16.msrb.mxu3 %v899_v17  ;;  %704 = vmatmul.msk.bf16.vlgmr.msra.gmra.mxu1 %vm157_vm0, %v1049_v27 }
  0x15   :  { %507 = vmatpush.bf16.msrb.mxu1 %v895_v25 }
  0x16   :  { %175 = vmatpush.bf16.msra.mxu0 %v866_v26 }
  0x17   :  { %326 = vmatpush.bf16.msra.mxu2 %v878_v28 }
  0x18   :  { %540 = vmatpush.bf16.msrb.mxu3 %v898_v24 }
  0x19   :  { %508 = vmatpush.bf16.msrb.mxu1 %v894_v29 }
  0x1a   :  { %176 = vmatpush.bf16.msra.mxu0 %v865_v31 }
  0x1b   :  { %327 = vmatpush.bf16.msra.mxu2 %v877_v32 }
  0x1c   :  { %541 = vmatpush.bf16.msrb.mxu3 %v897_v30 }
  0x1d   :  { %509 = vmatpush.bf16.msrb.mxu1 %v893_v33 }
  0x1e   :  { %177 = vmatpush.bf16.msra.mxu0 %v864_v35 }
  0x1f   :  { %328 = vmatpush.bf16.msra.mxu2 %v876_v38 }
  0x20   :  { %542 = vmatpush.bf16.msrb.mxu3 %v896_v34 }
  0x21   :  { %510 = vmatpush.bf16.msrb.mxu1 %v892_v40  ;;  %178 = vmatmul.bf16.vlgmr.msra.gmra.mxu0 %v633_v41 }
  0x22   :  { %201 = vmatpush.bf16.msrb.mxu0 %v972_v6  ;;  %329 = vmatmul.bf16.vlgmr.msra.gmra.mxu2 %v633_v41 }
  0x23   :  { %353 = vmatpush.bf16.msrb.mxu2 %v955_v2  ;;  %780 = vmatmul.msk.bf16.gmra.mxu3 %vm157_vm0, %v1049_v27 }
  0x24   :  { %705 = vmatmul.msk.bf16.gmra.mxu1 %vm157_vm0, %v80_v44 }
  0x25   :  { %511 = vmatpush.bf16.msrb.mxu1 %v891_v43 }
  0x26   :  { %202 = vmatpush.bf16.msrb.mxu0 %v990_v10 }
  0x27   :  { %354 = vmatpush.bf16.msrb.mxu2 %v967_v5 }
  0x29   :  { %512 = vmatpush.bf16.msrb.mxu1 %v890_v45 }
  0x2a   :  { %203 = vmatpush.bf16.msrb.mxu0 %v1014_v16 }
  0x2b   :  { %355 = vmatpush.bf16.msrb.mxu2 %v984_v9 }
  0x2d   :  { %513 = vmatpush.bf16.msrb.mxu1 %v889_v46 }
  0x2e   :  { %204 = vmatpush.bf16.msrb.mxu0 %v872_v21 }
  0x2f   :  { %356 = vmatpush.bf16.msrb.mxu2 %v1001_v13 }
  0x31   :  { %514 = vmatpush.bf16.msrb.mxu1 %v888_v49  ;;  %183 = vmatmul.bf16.gmra.mxu0 %v641_v50 }
  0x32   :  { %334 = vmatmul.bf16.gmra.mxu2 %v641_v50 }
  0x33   :  { %781 = vmatmul.msk.bf16.gmra.mxu3 %vm157_vm0, %v80_v44 }
  0x34   :  { %515 = vmatmul.bf16.vlgmr.msrb.gmra.mxu1 %v633_v41 }
  0x41   :  { %188 = vmatmul.bf16.gmra.mxu0 %v649_v55 }
  0x42   :  { %339 = vmatmul.bf16.gmra.mxu2 %v649_v55 }
  0x43   :  { %854 = vmatmul.msk.bf16.vlgmr.msrb.gmra.mxu3 %vm157_vm0, %v637_v56 }
  0x44   :  { %520 = vmatmul.bf16.gmra.mxu1 %v641_v50 }
  0x51   :  { %193 = vmatmul.bf16.gmra.mxu0 %v79_v58 }
  0x52   :  { %344 = vmatmul.bf16.gmra.mxu2 %v79_v58 }
  0x53   :  { %855 = vmatmul.msk.bf16.gmra.mxu3 %vm157_vm0, %v1019_v18 }
  0x54   :  { %525 = vmatmul.bf16.gmra.mxu1 %v649_v55 }
  0x61   :  { %702 = vmatmul.msk.bf16.vlgmr.msrb.gmra.mxu0 %vm157_vm0, %v637_v56 }
  0x62   :  { %778 = vmatmul.msk.bf16.vlgmr.msrb.gmra.mxu2 %vm157_vm0, %v637_v56 }
  0x63   :  { %856 = vmatmul.msk.bf16.gmra.mxu3 %vm157_vm0, %v1049_v27 }
  0x64   :  { %530 = vmatmul.bf16.gmra.mxu1 %v79_v58 }
  0x71   :  { %703 = vmatmul.msk.bf16.gmra.mxu0 %vm157_vm0, %v1019_v18 }
  0x73   :  { %857 = vmatmul.msk.bf16.gmra.mxu3 %vm157_vm0, %v80_v44 }
  0x91   :  { %v216_v59 = vpop.f32.mrf.mxu1 }
  0x96   :  { %v363_v60 = vpop.f32.mrf.mxu3 }
  0x99   :  { %v218_v61 = vpop.f32.mrf.mxu1 }
  0x9e   :  { %v365_v62 = vpop.f32.mrf.mxu3  ;;  %v1143_v63 = vpop.f32.mrf.mxu0 }
  0xa1   :  { %v221_v0 = vpop.f32.mrf.mxu1 }
  0xa5   :  { %v330_v1 = vpop.f32.mrf.mxu2 }
  0xa6   :  { %v368_v2 = vpop.f32.mrf.mxu3  ;;  %v1145_v3 = vpop.f32.mrf.mxu0 }
  0xa9   :  { %v222_v4 = vpop.f32.mrf.mxu1 }
  0xad   :  { %v332_v5 = vpop.f32.mrf.mxu2 }
  0xae   :  { %v370_v6 = vpop.f32.mrf.mxu3  ;;  %v184_v7 = vpop.f32.mrf.mxu0 }
  0xb1   :  { %v516_v8 = vpop.f32.mrf.mxu1 }
  0xb5   :  { %v335_v9 = vpop.f32.mrf.mxu2 }
  0xb6   :  { %v373_v10 = vpop.f32.mrf.mxu3  ;;  %v1147_v11 = vpop.f32.mrf.mxu0  ;;  %v1149_v13 = vadd.f32 %v363_v60, %v335_v9 }
  0xb8   :  { %v388_v18 = vrot.slane %v1149_v13, 1 }
  0xb9   :  { %v518_v12 = vpop.f32.mrf.mxu1 }
  0xbd   :  { %v337_v14 = vpop.f32.mrf.mxu2 }
  0xbe   :  { %v375_v15 = vpop.f32.mrf.mxu3  ;;  %v366_v16 = vadd.f32 %v365_v62, %v337_v14  ;;  %v189_v17 = vpop.f32.mrf.mxu0 }
  0xbf   :  { %v217_v34 = vadd.f32 %v216_v59, %v189_v17 }
  0xc0   :  { %v390_v19 = vrot.slane %v366_v16, 1 }
  0xc1   :  { %v521_v21 = vpop.f32.mrf.mxu1 }
  0xc2   :  { %v391_v20 = vsel %vm384_vm1, %v388_v18, %v390_v19 }
  0xc5   :  { %v340_v22 = vpop.f32.mrf.mxu2 }
  0xc6   :  { %v544_v23 = vpop.f32.mrf.mxu3  ;;  %v369_v24 = vadd.f32 %v368_v2, %v340_v22  ;;  %v191_v25 = vpop.f32.mrf.mxu0 }
  0xc7   :  { %v219_v43 = vadd.f32 %v218_v61, %v191_v25  ;;  %v545_v60 = vadd.f32 %v544_v23, %v516_v8 }
  0xc8   :  { %v392_v26 = vrot.slane %v369_v24, 1 }
  0xc9   :  { %v523_v28 = vpop.f32.mrf.mxu1  ;;  %v571_v17 = vrot.slane %v545_v60, 2 }
  0xca   :  { %v1154_v27 = vsel %vm384_vm1, %v390_v19, %v392_v26 }
  0xcd   :  { %v342_v29 = vpop.f32.mrf.mxu2 }
  0xce   :  { %v546_v30 = vpop.f32.mrf.mxu3  ;;  %v371_v31 = vadd.f32 %v370_v6, %v342_v29  ;;  %v194_v32 = vpop.f32.mrf.mxu0 }
  0xcf   :  { %v547_v54 = vadd.f32 %v546_v30, %v518_v12 }
  0xd0   :  { %v394_v33 = vrot.slane %v371_v31, 1 }
  0xd1   :  { %v526_v37 = vpop.f32.mrf.mxu1  ;;  %v572_v4 = vrot.slane %v547_v54, 2 }
  0xd2   :  { %v395_v35 = vsel %vm384_vm1, %v392_v26, %v394_v33 }
  0xd3   :  { %v408_v36 = vadd.f32 %v395_v35, %v217_v34 }
  0xd5   :  { %v345_v38 = vpop.f32.mrf.mxu2 }
  0xd6   :  { %v549_v39 = vpop.f32.mrf.mxu3  ;;  %v374_v40 = vadd.f32 %v373_v10, %v345_v38  ;;  %v195_v41 = vpop.f32.mrf.mxu0 }
  0xd7   :  { %v550_v56 = vadd.f32 %v549_v39, %v521_v21 }
  0xd8   :  { %v396_v42 = vrot.slane %v374_v40, 1 }
  0xd9   :  { %v528_v46 = vpop.f32.mrf.mxu1  ;;  %v574_v10 = vrot.slane %v550_v56, 2 }
  0xda   :  { %v397_v44 = vsel %vm384_vm1, %v394_v33, %v396_v42 }
  0xdb   :  { %v409_v45 = vadd.f32 %v397_v44, %v219_v43  ;;  %v575_v24 = vsel %vm570_vm2, %v572_v4, %v574_v10 }
  0xdd   :  { %v347_v47 = vpop.f32.mrf.mxu2 }
  0xde   :  { %v551_v48 = vpop.f32.mrf.mxu3  ;;  %v206_v49 = vpop.f32.mrf.mxu0 }
  0xdf   :  { %v552_v6 = vadd.f32 %v551_v48, %v523_v28  ;;  %v207_v12 = vadd.f32 %v206_v49, %v1143_v63 }
  0xe1   :  { %v531_v50 = vpop.f32.mrf.mxu1  ;;  %v576_v21 = vrot.slane %v552_v6, 2 }
  0xe3   :  { %v577_v32 = vsel %vm570_vm2, %v574_v10, %v576_v21 }
  0xe5   :  { %v358_v51 = vpop.f32.mrf.mxu2 }
  0xe6   :  { %v554_v52 = vpop.f32.mrf.mxu3  ;;  %v208_v53 = vpop.f32.mrf.mxu0  ;;  %v359_v57 = vadd.f32 %v358_v51, %v330_v1 }
  0xe7   :  { %v555_v62 = vadd.f32 %v554_v52, %v526_v37  ;;  %v209_v16 = vadd.f32 %v208_v53, %v1145_v3  ;;  %v925_v3 = vld [vmem:[%s1184_s2] ss:$0 sm:$0xff] }
  0xe8   :  { %v385_v13 = vrot.slane %v359_v57, 1 }
  0xe9   :  { %v533_v55 = vpop.f32.mrf.mxu1  ;;  %v578_v19 = vrot.slane %v555_v62, 2 }
  0xeb   :  { %v579_v44 = vsel %vm570_vm2, %v576_v21, %v578_v19 }
  0xed   :  { %v360_v58 = vpop.f32.mrf.mxu2 }
  0xee   :  { %v556_v59 = vpop.f32.mrf.mxu3  ;;  %v361_v61 = vadd.f32 %v360_v58, %v332_v5  ;;  %v211_v2 = vpop.f32.mrf.mxu0 }
  0xef   :  { %v557_v0 = vadd.f32 %v556_v59, %v528_v46  ;;  %v212_v9 = vadd.f32 %v211_v2, %v184_v7  ;;  %v573_v7 = vsel %vm570_vm2, %v571_v17, %v572_v4 }
  0xf0   :  { %v386_v14 = vrot.slane %v361_v61, 1 }
  0xf1   :  { %v580_v15 = vrot.slane %v557_v0, 2  ;;  %v406_v1 = vadd.f32 %v391_v20, %v212_v9 }
  0xf2   :  { %v387_v8 = vsel %vm384_vm1, %v385_v13, %v386_v14  ;;  %v389_v5 = vsel %vm384_vm1, %v386_v14, %v388_v18 }
  0xf3   :  { %v404_v22 = vadd.f32 %v387_v8, %v207_v12  ;;  %v405_v23 = vadd.f32 %v389_v5, %v209_v16  ;;  %v581_v25 = vsel %vm570_vm2, %v578_v19, %v580_v15  ;;  %v592_v33 = vadd.f32 %v577_v32, %v406_v1 }
  0xf4   :  { %v594_v31 = vadd.f32 %v581_v25, %v408_v36 }
  0xf5   :  { %v590_v26 = vadd.f32 %v573_v7, %v404_v22  ;;  %v591_v63 = vadd.f32 %v575_v24, %v405_v23  ;;  %v602_v46 = vadd.f32 %v925_v3, %v592_v33 }
  0xf6   :  { %v559_v20 = vpop.f32.mrf.mxu3  ;;  %v213_v29 = vpop.f32.mrf.mxu0  ;;  %v604_v42 = vadd.f32 %v925_v3, %v594_v31 }
  0xf7   :  { %v560_v28 = vadd.f32 %v559_v20, %v531_v50  ;;  %v600_v30 = vadd.f32 %v925_v3, %v590_v26  ;;  %v601_v18 = vadd.f32 %v925_v3, %v591_v63  ;;  %v214_v35 = vadd.f32 %v213_v29, %v1147_v11 }
  0xf8   :  { %v610_v49 = vmax.f32 %v604_v42, 0.0  ;;  %v608_v51 = vmax.f32 %v602_v46, 0.0 }
  0xf9   :  { %v582_v34 = vrot.slane %v560_v28, 2  ;;  %v606_v37 = vmax.f32 %v600_v30, 0.0  ;;  %v607_v38 = vmax.f32 %v601_v18, 0.0  ;;  %v407_v40 = vadd.f32 %v1154_v27, %v214_v35 }
  0xfb   :  { %v583_v39 = vsel %vm570_vm2, %v580_v15, %v582_v34  ;;  %v903_v41 = vpack.c.bf16 %v607_v38, %v606_v37  ;;  %v593_v47 = vadd.f32 %v579_v44, %v407_v40 }
  0xfc   :  { %v595_v43 = vadd.f32 %v583_v39, %v409_v45 }
  0xfd   :  { %904 = vst [vmem:[%s1185_s3] sm:$0xff] %v903_v41   ;;  %v603_v11 = vadd.f32 %v925_v3, %v593_v47 }
  0xfe   :  { %v605_v36 = vadd.f32 %v925_v3, %v595_v43  ;;  %v561_v48 = vpop.f32.mrf.mxu3 }
  0xff   :  { %v609_v52 = vmax.f32 %v603_v11, 0.0 }
 0x100   :  { %v611_v50 = vmax.f32 %v605_v36, 0.0 }
 0x101   :  { %v908_v27 = vpack.c.bf16 %v609_v52, %v608_v51 }
 0x102   :  { %v913_v53 = vpack.c.bf16 %v611_v50, %v610_v49 }
 0x103   :  { %915 = vst [vmem:[%s1185_s3 + $0x8] sm:$0xff] %v908_v27  }
 0x104   :  { %916 = vst [vmem:[%s1185_s3 + $0x10] sm:$0xff] %v913_v53  }

// kernel: vgg16_features.33
= control target key start
LH: loop header
LB: loop body
LE: loop exit
PB: predicated region body
PF: predicated region fallthrough
CT: control target
= control target key end

     0   :  { %vm135_vm0 = vcmask 523264   ;;  %vm312_vm1 = vcmask 1046528   ;;  %vm458_vm2 = vcmask 1045504   ;;  %s893_s1 = inlined_call_operand.vmem [shape: bf16[3,192,128], index: 1, kind: input, shape index: {}]   ;;  %s894_s0 = inlined_call_operand.vmem [shape: bf16[24,192], index: 0, kind: input, shape index: {}]   ;;  %s895_s2 = inlined_call_operand.vmem [shape: f32[1,128], index: 2, kind: input, shape index: {}]   ;;  %s896_s3 = inlined_call_operand.vmem [shape: bf16[16,128], index: 3, kind: output, shape index: {}]  }
   0x1   :  { %v701_v0 = vld [vmem:[%s893_s1 + $0x38] sm:$0xff]  ;;  %v700_v4 = vld [vmem:[%s893_s1 + $0x30] sm:$0xff]  ;;  %v699_v8 = vld [vmem:[%s893_s1 + $0x28] sm:$0xff] }
   0x2   :  { %v705_v1 = vld [vmem:[%s893_s1 + $0x58] sm:$0xff]  ;;  %142 = vmatpush.bf16.msra.mxu0 %v701_v0  ;;  %v704_v5 = vld [vmem:[%s893_s1 + $0x50] sm:$0xff]  ;;  %v703_v9 = vld [vmem:[%s893_s1 + $0x48] sm:$0xff] }
   0x3   :  { %v713_v2 = vld [vmem:[%s893_s1 + $0x98] sm:$0xff]  ;;  %163 = vmatpush.bf16.msra.mxu1 %v705_v1  ;;  %v712_v6 = vld [vmem:[%s893_s1 + $0x90] sm:$0xff]  ;;  %v711_v10 = vld [vmem:[%s893_s1 + $0x88] sm:$0xff] }
   0x4   :  { %v717_v3 = vld [vmem:[%s893_s1 + $0xb8] sm:$0xff]  ;;  %273 = vmatpush.bf16.msra.mxu2 %v713_v2  ;;  %v716_v7 = vld [vmem:[%s893_s1 + $0xb0] sm:$0xff]  ;;  %v715_v11 = vld [vmem:[%s893_s1 + $0xa8] sm:$0xff] }
   0x5   :  { %295 = vmatpush.bf16.msra.mxu3 %v717_v3  ;;  %v698_v12 = vld [vmem:[%s893_s1 + $0x20] sm:$0xff]  ;;  %v490_v15 = vld [vmem:[%s894_s0 + $0x8] sm:$0xf0]  ;;  %v729_v18 = vld [vmem:[%s893_s1 + $0x118] sm:$0xff] }
   0x6   :  { %143 = vmatpush.bf16.msra.mxu0 %v700_v4  ;;  %v702_v13 = vld [vmem:[%s893_s1 + $0x40] sm:$0xff]  ;;  %v725_v19 = vld [vmem:[%s893_s1 + $0xf8] sm:$0xff]  ;;  %v724_v23 = vld [vmem:[%s893_s1 + $0xf0] sm:$0xff] }
   0x7   :  { %164 = vmatpush.bf16.msra.mxu1 %v704_v5  ;;  %v692_v14 = vld [vmem:[%s894_s0 + $0x4] sm:$0xf]  ;;  %v697_v21 = vld [vmem:[%s893_s1 + $0x18] sm:$0xff]  ;;  %v728_v24 = vld [vmem:[%s893_s1 + $0x110] sm:$0xff] }
   0x8   :  { %274 = vmatpush.bf16.msra.mxu2 %v712_v6  ;;  %v710_v16 = vld [vmem:[%s893_s1 + $0x80] sm:$0xff]  ;;  %v493_v20 = vor.u32 %v692_v14, %v490_v15  ;;  %v709_v22 = vld [vmem:[%s893_s1 + $0x78] sm:$0xff]  ;;  %v696_v25 = vld [vmem:[%s893_s1 + $0x10] sm:$0xff] }
   0x9   :  { %296 = vmatpush.bf16.msra.mxu3 %v716_v7  ;;  %v714_v17 = vld [vmem:[%s893_s1 + $0xa0] sm:$0xff]  ;;  %v708_v26 = vld [vmem:[%s893_s1 + $0x70] sm:$0xff]  ;;  %v723_v27 = vld [vmem:[%s893_s1 + $0xe8] sm:$0xff] }
   0xa   :  { %144 = vmatpush.bf16.msra.mxu0 %v699_v8  ;;  %v727_v28 = vld [vmem:[%s893_s1 + $0x108] sm:$0xff]  ;;  %v23_v30 = vld [vmem:[%s894_s0 + $0x10] sm:$0xff]  ;;  %v722_v32 = vld [vmem:[%s893_s1 + $0xe0] sm:$0xff] }
   0xb   :  { %165 = vmatpush.bf16.msra.mxu1 %v703_v9  ;;  %v695_v29 = vld [vmem:[%s893_s1 + $0x8] sm:$0xff]  ;;  %v726_v33 = vld [vmem:[%s893_s1 + $0x100] sm:$0xff]  ;;  %v56_v34 = vunpack.c.h.b16 %v23_v30  ;;  %v721_v39 = vld [vmem:[%s893_s1 + $0xd8] sm:$0xff]  ;;  %v55_v45 = vunpack.c.l.b16 %v23_v30 }
   0xc   :  { %275 = vmatpush.bf16.msra.mxu2 %v711_v10  ;;  %v707_v31 = vld [vmem:[%s893_s1 + $0x68] sm:$0xff]  ;;  %v694_v35 = vld [vmem:[%s893_s1] sm:$0xff]  ;;  %v720_v42 = vld [vmem:[%s893_s1 + $0xd0] sm:$0xff] }
   0xd   :  { %297 = vmatpush.bf16.msra.mxu3 %v715_v11  ;;  %v488_v36 = vld [vmem:[%s894_s0] sm:$0xf]  ;;  %v693_v37 = vld [vmem:[%s894_s0 + $0x4] sm:$0xf0]  ;;  %v60_v41 = vpack.c.b16 %v56_v34, %v56_v34  ;;  %v59_v46 = vpack.c.b16 %v55_v45, %v55_v45 }
   0xe   :  { %145 = vmatpush.bf16.msra.mxu0 %v698_v12  ;;  %v706_v38 = vld [vmem:[%s893_s1 + $0x60] sm:$0xff]  ;;  %v489_v40 = vor.u32 %v693_v37, %v488_v36  ;;  %v719_v43 = vld [vmem:[%s893_s1 + $0xc8] sm:$0xff] }
   0xf   :  { %166 = vmatpush.bf16.msra.mxu1 %v702_v13  ;;  %v718_v44 = vld [vmem:[%s893_s1 + $0xc0] sm:$0xff] }
  0x10   :  { %276 = vmatpush.bf16.msra.mxu2 %v710_v16 }
  0x11   :  { %298 = vmatpush.bf16.msra.mxu3 %v714_v17 }
  0x12   :  { %542 = vmatmul.msk.bf16.vlgmr.msra.gmra.mxu1 %vm135_vm0, %v493_v20  ;;  %146 = vmatpush.bf16.msra.mxu0 %v697_v21 }
  0x13   :  { %419 = vmatpush.bf16.msrb.mxu1 %v725_v19 }
  0x14   :  { %616 = vmatmul.msk.bf16.vlgmr.msra.gmra.mxu3 %vm135_vm0, %v493_v20  ;;  %277 = vmatpush.bf16.msra.mxu2 %v709_v22 }
  0x15   :  { %441 = vmatpush.bf16.msrb.mxu3 %v729_v18 }
  0x16   :  { %147 = vmatpush.bf16.msra.mxu0 %v696_v25 }
  0x17   :  { %420 = vmatpush.bf16.msrb.mxu1 %v724_v23 }
  0x18   :  { %278 = vmatpush.bf16.msra.mxu2 %v708_v26 }
  0x19   :  { %442 = vmatpush.bf16.msrb.mxu3 %v728_v24  ;;  %v735_v24 = vld [vmem:[%s895_s2] ss:$0 sm:$0xff] }
  0x1a   :  { %148 = vmatpush.bf16.msra.mxu0 %v695_v29 }
  0x1b   :  { %421 = vmatpush.bf16.msrb.mxu1 %v723_v27 }
  0x1c   :  { %279 = vmatpush.bf16.msra.mxu2 %v707_v31 }
  0x1d   :  { %443 = vmatpush.bf16.msrb.mxu3 %v727_v28 }
  0x1e   :  { %149 = vmatpush.bf16.msra.mxu0 %v694_v35 }
  0x1f   :  { %422 = vmatpush.bf16.msrb.mxu1 %v722_v32 }
  0x20   :  { %280 = vmatpush.bf16.msra.mxu2 %v706_v38 }
  0x21   :  { %444 = vmatpush.bf16.msrb.mxu3 %v726_v33  ;;  %150 = vmatmul.bf16.vlgmr.msra.gmra.mxu0 %v489_v40 }
  0x22   :  { %543 = vmatmul.msk.bf16.gmra.mxu1 %vm135_vm0, %v60_v41 }
  0x23   :  { %423 = vmatpush.bf16.msrb.mxu1 %v721_v39  ;;  %281 = vmatmul.bf16.vlgmr.msra.gmra.mxu2 %v489_v40 }
  0x24   :  { %617 = vmatmul.msk.bf16.gmra.mxu3 %vm135_vm0, %v60_v41 }
  0x27   :  { %424 = vmatpush.bf16.msrb.mxu1 %v720_v42 }
  0x2b   :  { %425 = vmatpush.bf16.msrb.mxu1 %v719_v43 }
  0x2f   :  { %426 = vmatpush.bf16.msrb.mxu1 %v718_v44 }
  0x31   :  { %155 = vmatmul.bf16.gmra.mxu0 %v59_v46 }
  0x32   :  { %427 = vmatmul.bf16.vlgmr.msrb.gmra.mxu1 %v489_v40 }
  0x33   :  { %286 = vmatmul.bf16.gmra.mxu2 %v59_v46 }
  0x34   :  { %690 = vmatmul.msk.bf16.vlgmr.msrb.gmra.mxu3 %vm135_vm0, %v493_v20 }
  0x42   :  { %432 = vmatmul.bf16.gmra.mxu1 %v59_v46 }
  0x44   :  { %691 = vmatmul.msk.bf16.gmra.mxu3 %vm135_vm0, %v60_v41 }
  0x8f   :  { %v168_v47 = vpop.f32.mrf.mxu1 }
  0x97   :  { %v300_v48 = vpop.f32.mrf.mxu3  ;;  %v170_v49 = vpop.f32.mrf.mxu1 }
  0x9e   :  { %v151_v51 = vpop.f32.mrf.mxu0 }
  0x9f   :  { %v302_v50 = vpop.f32.mrf.mxu3  ;;  %v173_v52 = vpop.f32.mrf.mxu1  ;;  %v169_v15 = vadd.f32 %v168_v47, %v151_v51 }
  0xa6   :  { %v282_v53 = vpop.f32.mrf.mxu2  ;;  %v153_v55 = vpop.f32.mrf.mxu0 }
  0xa7   :  { %v305_v54 = vpop.f32.mrf.mxu3  ;;  %v174_v56 = vpop.f32.mrf.mxu1  ;;  %v301_v2 = vadd.f32 %v300_v48, %v282_v53  ;;  %v171_v22 = vadd.f32 %v170_v49, %v153_v55 }
  0xa9   :  { %v313_v10 = vrot.slane %v301_v2, 1 }
  0xae   :  { %v284_v57 = vpop.f32.mrf.mxu2  ;;  %v156_v60 = vpop.f32.mrf.mxu0 }
  0xaf   :  { %v307_v58 = vpop.f32.mrf.mxu3  ;;  %v428_v59 = vpop.f32.mrf.mxu1  ;;  %v303_v1 = vadd.f32 %v302_v50, %v284_v57 }
  0xb1   :  { %v314_v5 = vrot.slane %v303_v1, 1 }
  0xb3   :  { %v315_v12 = vsel %vm312_vm1, %v313_v10, %v314_v5 }
  0xb4   :  { %v320_v17 = vadd.f32 %v315_v12, %v169_v15 }
  0xb6   :  { %v287_v61 = vpop.f32.mrf.mxu2  ;;  %v157_v0 = vpop.f32.mrf.mxu0 }
  0xb7   :  { %v446_v62 = vpop.f32.mrf.mxu3  ;;  %v430_v63 = vpop.f32.mrf.mxu1  ;;  %v306_v6 = vadd.f32 %v305_v54, %v287_v61 }
  0xb8   :  { %v447_v7 = vadd.f32 %v446_v62, %v428_v59 }
  0xb9   :  { %v316_v13 = vrot.slane %v306_v6, 1 }
  0xba   :  { %v459_v14 = vrot.slane %v447_v7, 2 }
  0xbb   :  { %v317_v19 = vsel %vm312_vm1, %v314_v5, %v316_v13 }
  0xbc   :  { %v321_v26 = vadd.f32 %v317_v19, %v171_v22 }
  0xbe   :  { %v289_v4 = vpop.f32.mrf.mxu2 }
  0xbf   :  { %v448_v3 = vpop.f32.mrf.mxu3  ;;  %v433_v9 = vpop.f32.mrf.mxu1 }
  0xc0   :  { %v449_v8 = vadd.f32 %v448_v3, %v430_v63 }
  0xc2   :  { %v460_v11 = vrot.slane %v449_v8, 2 }
  0xc4   :  { %v461_v16 = vsel %vm458_vm2, %v459_v14, %v460_v11 }
  0xc5   :  { %v466_v23 = vadd.f32 %v461_v16, %v320_v17 }
  0xc7   :  { %v451_v18 = vpop.f32.mrf.mxu3  ;;  %v435_v21 = vpop.f32.mrf.mxu1  ;;  %v472_v28 = vadd.f32 %v735_v24, %v466_v23 }
  0xc8   :  { %v452_v20 = vadd.f32 %v451_v18, %v433_v9 }
  0xc9   :  { %v474_v32 = vmax.f32 %v472_v28, 0.0 }
  0xca   :  { %v462_v25 = vrot.slane %v452_v20, 2 }
  0xcc   :  { %v463_v27 = vsel %vm458_vm2, %v460_v11, %v462_v25 }
  0xcd   :  { %v467_v29 = vadd.f32 %v463_v27, %v321_v26 }
  0xcf   :  { %v473_v30 = vadd.f32 %v735_v24, %v467_v29  ;;  %v453_v31 = vpop.f32.mrf.mxu3 }
  0xd1   :  { %v475_v33 = vmax.f32 %v473_v30, 0.0 }
  0xd3   :  { %v733_v34 = vpack.c.bf16 %v475_v33, %v474_v32 }
  0xd5   :  { %734 = vst [vmem:[%s896_s3] sm:$0xff] %v733_v34  }

// kernel: vgg16_features.37
= control target key start
LH: loop header
LB: loop body
LE: loop exit
PB: predicated region body
PF: predicated region fallthrough
CT: control target
= control target key end

     0   :  { %15 = vsyncpa [#allocation3], 0  ;;  %s4078_s0 = inlined_call_operand.vmem [shape: bf16[2,3136], index: 0, kind: input, shape index: {}]   ;;  %s4079_s1 = inlined_call_operand.vmem [shape: bf16[3136,128], index: 1, kind: input, shape index: {}]   ;;  %s4080_s2 = inlined_call_operand.vmem [shape: f32[1,128], index: 2, kind: input, shape index: {}]   ;;  %s4081_s3 = inlined_call_operand.vmem [shape: bf16[128,128], index: 3, kind: input, shape index: {}]   ;;  %s4082_s4 = inlined_call_operand.vmem [shape: f32[1,128], index: 4, kind: input, shape index: {}]   ;;  %s4083_s5 = inlined_call_operand.vmem [shape: bf16[128,128], index: 5, kind: input, shape index: {}]   ;;  %s4084_s6 = inlined_call_operand.vmem [shape: f32[1,128], index: 6, kind: input, shape index: {}]   ;;  %s4085_s7 = inlined_call_operand.hbm [shape: f32[2,128], index: 7, kind: output, shape index: {0}]   ;;  %s4086_s8 = inlined_call_operand.hbm [shape: f32[2,128], index: 8, kind: output, shape index: {1}]   ;;  %s4087_s9 = inlined_call_operand.vmem [shape: f32[2,128], index: 9, kind: output, shape index: {2}]  }
   0x1   :  { %v3079_v0 = vld [vmem:[%s4079_s1 + $0x38] sm:$0xff]  ;;  %v3078_v4 = vld [vmem:[%s4079_s1 + $0x30] sm:$0xff]  ;;  %v3077_v8 = vld [vmem:[%s4079_s1 + $0x28] sm:$0xff] }
   0x2   :  { %v3095_v1 = vld [vmem:[%s4079_s1 + $0xb8] sm:$0xff]  ;;  %1668 = vmatpush.bf16.msra.mxu0 %v3079_v0  ;;  %v3094_v5 = vld [vmem:[%s4079_s1 + $0xb0] sm:$0xff]  ;;  %v3093_v9 = vld [vmem:[%s4079_s1 + $0xa8] sm:$0xff] }
   0x3   :  { %v3103_v2 = vld [vmem:[%s4079_s1 + $0xf8] sm:$0xff]  ;;  %1694 = vmatpush.bf16.msra.mxu2 %v3095_v1  ;;  %v3102_v6 = vld [vmem:[%s4079_s1 + $0xf0] sm:$0xff]  ;;  %v3101_v10 = vld [vmem:[%s4079_s1 + $0xe8] sm:$0xff] }
   0x4   :  { %v3087_v3 = vld [vmem:[%s4079_s1 + $0x78] sm:$0xff]  ;;  %1707 = vmatpush.bf16.msra.mxu3 %v3103_v2  ;;  %v3086_v7 = vld [vmem:[%s4079_s1 + $0x70] sm:$0xff]  ;;  %v3085_v11 = vld [vmem:[%s4079_s1 + $0x68] sm:$0xff] }
   0x5   :  { %1681 = vmatpush.bf16.msra.mxu1 %v3087_v3  ;;  %v3076_v12 = vld [vmem:[%s4079_s1 + $0x20] sm:$0xff]  ;;  %v3075_v16 = vld [vmem:[%s4079_s1 + $0x18] sm:$0xff]  ;;  %v3074_v20 = vld [vmem:[%s4079_s1 + $0x10] sm:$0xff] }
   0x6   :  { %1669 = vmatpush.bf16.msra.mxu0 %v3078_v4  ;;  %v3092_v13 = vld [vmem:[%s4079_s1 + $0xa0] sm:$0xff]  ;;  %v3091_v17 = vld [vmem:[%s4079_s1 + $0x98] sm:$0xff]  ;;  %v3090_v22 = vld [vmem:[%s4079_s1 + $0x90] sm:$0xff] }
   0x7   :  { %1695 = vmatpush.bf16.msra.mxu2 %v3094_v5  ;;  %v3100_v14 = vld [vmem:[%s4079_s1 + $0xe0] sm:$0xff]  ;;  %v3099_v18 = vld [vmem:[%s4079_s1 + $0xd8] sm:$0xff]  ;;  %v3098_v23 = vld [vmem:[%s4079_s1 + $0xd0] sm:$0xff] }
   0x8   :  { %1708 = vmatpush.bf16.msra.mxu3 %v3102_v6  ;;  %v3084_v15 = vld [vmem:[%s4079_s1 + $0x60] sm:$0xff]  ;;  %v3083_v19 = vld [vmem:[%s4079_s1 + $0x58] sm:$0xff]  ;;  %v3082_v24 = vld [vmem:[%s4079_s1 + $0x50] sm:$0xff] }
   0x9   :  { %1682 = vmatpush.bf16.msra.mxu1 %v3086_v7  ;;  %v32_v21 = vld [vmem:[%s4078_s0] sm:$0xff] }
   0xa   :  { %1670 = vmatpush.bf16.msra.mxu0 %v3077_v8  ;;  %433 = vst [vmem:[#allocation1] ss:$9 sm:$0xff] %v32_v21 }
   0xb   :  { %1696 = vmatpush.bf16.msra.mxu2 %v3093_v9 }
   0xc   :  { %1709 = vmatpush.bf16.msra.mxu3 %v3101_v10 }
   0xd   :  { %1683 = vmatpush.bf16.msra.mxu1 %v3085_v11 }
   0xe   :  { %1671 = vmatpush.bf16.msra.mxu0 %v3076_v12 }
   0xf   :  { %1697 = vmatpush.bf16.msra.mxu2 %v3092_v13 }
  0x10   :  { %1710 = vmatpush.bf16.msra.mxu3 %v3100_v14 }
  0x11   :  { %1684 = vmatpush.bf16.msra.mxu1 %v3084_v15 }
  0x12   :  { %1672 = vmatpush.bf16.msra.mxu0 %v3075_v16 }
  0x13   :  { %1698 = vmatpush.bf16.msra.mxu2 %v3091_v17 }
  0x14   :  { %1711 = vmatpush.bf16.msra.mxu3 %v3099_v18 }
  0x15   :  { %1685 = vmatpush.bf16.msra.mxu1 %v3083_v19 }
  0x16   :  { %16 = vsyncpa [#allocation5], 0  ;;  %1673 = vmatpush.bf16.msra.mxu0 %v3074_v20  ;;  %v3073_v25 = vld [vmem:[%s4079_s1 + $0x8] sm:$0xff]  ;;  %v3072_v29 = vld [vmem:[%s4079_s1] sm:$0xff]  ;;  %vm1665_vm0 = vcmask 523264   ;;  %vm2161_vm1 = vcmask 1041408  }
  0x17   :  { %1699 = vmatpush.bf16.msra.mxu2 %v3090_v22  ;;  %v3089_v26 = vld [vmem:[%s4079_s1 + $0x88] sm:$0xff]  ;;  %v3088_v30 = vld [vmem:[%s4079_s1 + $0x80] sm:$0xff]  ;;  %v3111_v32 = vld [vmem:[%s4079_s1 + $0x138] sm:$0xff]  ;;  %s2194_s18 = sshll.u32 %s4085_s7, 4  ;;  %s2205_s22 = sshll.u32 %s4086_s8, 4  ;;  %s2195_s18 = int_to_ptr.hbm [resolvable:$true] %s2194_s18  ;;  %s2206_s22 = int_to_ptr.hbm [resolvable:$true] %s2205_s22 }
  0x18   :  { %1712 = vmatpush.bf16.msra.mxu3 %v3098_v23  ;;  %v3097_v27 = vld [vmem:[%s4079_s1 + $0xc8] sm:$0xff]  ;;  %v3096_v31 = vld [vmem:[%s4079_s1 + $0xc0] sm:$0xff]  ;;  %v3127_v33 = vld [vmem:[%s4079_s1 + $0x1b8] sm:$0xff] }
  0x19   :  { %1686 = vmatpush.bf16.msra.mxu1 %v3082_v24  ;;  %v3081_v28 = vld [vmem:[%s4079_s1 + $0x48] sm:$0xff]  ;;  %v3135_v34 = vld [vmem:[%s4079_s1 + $0x1f8] sm:$0xff]  ;;  %v3080_v35 = vld [vmem:[%s4079_s1 + $0x40] sm:$0xff] }
  0x1a   :  { %1674 = vmatpush.bf16.msra.mxu0 %v3073_v25  ;;  %v3119_v36 = vld [vmem:[%s4079_s1 + $0x178] sm:$0xff]  ;;  %v3110_v38 = vld [vmem:[%s4079_s1 + $0x130] sm:$0xff]  ;;  %v434_v39 = vld [vmem:[#allocation1] sm:$0xff] }
  0x1b   :  { %1700 = vmatpush.bf16.msra.mxu2 %v3089_v26  ;;  %v436_v37 = vld [vmem:[#allocation1 + $0x12] sm:$0xff]  ;;  %v437_v42 = vld [vmem:[#allocation1 + $0x1b] sm:$0xff]  ;;  %v435_v44 = vld [vmem:[#allocation1 + $0x9] sm:$0xff] }
  0x1c   :  { %1713 = vmatpush.bf16.msra.mxu3 %v3097_v27  ;;  %v3126_v40 = vld [vmem:[%s4079_s1 + $0x1b0] sm:$0xff]  ;;  %v3109_v45 = vld [vmem:[%s4079_s1 + $0x128] sm:$0xff]  ;;  %v441_v51 = vld [vmem:[#allocation1 + $0x3f] sm:$0xff] }
  0x1d   :  { %1687 = vmatpush.bf16.msra.mxu1 %v3081_v28  ;;  %v3134_v41 = vld [vmem:[%s4079_s1 + $0x1f0] sm:$0xff]  ;;  %v3125_v46 = vld [vmem:[%s4079_s1 + $0x1a8] sm:$0xff]  ;;  %v3108_v54 = vld [vmem:[%s4079_s1 + $0x120] sm:$0xff] }
  0x1e   :  { %1675 = vmatpush.bf16.msra.mxu0 %v3072_v29  ;;  %v3118_v43 = vld [vmem:[%s4079_s1 + $0x170] sm:$0xff]  ;;  %v3133_v47 = vld [vmem:[%s4079_s1 + $0x1e8] sm:$0xff]  ;;  %v3124_v55 = vld [vmem:[%s4079_s1 + $0x1a0] sm:$0xff] }
  0x1f   :  { %1701 = vmatpush.bf16.msra.mxu2 %v3088_v30  ;;  %v3117_v48 = vld [vmem:[%s4079_s1 + $0x168] sm:$0xff]  ;;  %v440_v49 = vld [vmem:[#allocation1 + $0x36] sm:$0xff]  ;;  %v3132_v56 = vld [vmem:[%s4079_s1 + $0x1e0] sm:$0xff] }
  0x20   :  { %1714 = vmatpush.bf16.msra.mxu3 %v3096_v31  ;;  %v438_v50 = vld [vmem:[#allocation1 + $0x24] sm:$0xff]  ;;  %v3535_v53 = vld [vmem:[#allocation1 + $0x2d] sm:$0xff]  ;;  %v3107_v58 = vld [vmem:[%s4079_s1 + $0x118] sm:$0xff] }
  0x21   :  { %1688 = vmatpush.bf16.msra.mxu1 %v3080_v35  ;;  %1676 = vmatmul.bf16.vlgmr.msra.gmra.mxu0 %v434_v39  ;;  %v33_v52 = vld [vmem:[%s4078_s0 + $0x8] sm:$0xff]  ;;  %v3116_v57 = vld [vmem:[%s4079_s1 + $0x160] sm:$0xff]  ;;  %v3123_v59 = vld [vmem:[%s4079_s1 + $0x198] sm:$0xff] }
  0x22   :  { %1720 = vmatpush.bf16.msrb.mxu0 %v3111_v32  ;;  %1702 = vmatmul.bf16.vlgmr.msra.gmra.mxu2 %v436_v37  ;;  %443 = vst [vmem:[#allocation1] ss:$9 sm:$0xff] %v33_v52  ;;  %v3131_v60 = vld [vmem:[%s4079_s1 + $0x1d8] sm:$0xff]  ;;  %v3106_v62 = vld [vmem:[%s4079_s1 + $0x110] sm:$0xff]  ;;  %v3105_v2 = vld [vmem:[%s4079_s1 + $0x108] sm:$0xff] }
  0x23   :  { %1746 = vmatpush.bf16.msrb.mxu2 %v3127_v33  ;;  %1715 = vmatmul.bf16.vlgmr.msra.gmra.mxu3 %v437_v42  ;;  %v3115_v61 = vld [vmem:[%s4079_s1 + $0x158] sm:$0xff]  ;;  %v3122_v63 = vld [vmem:[%s4079_s1 + $0x190] sm:$0xff]  ;;  %v3121_v3 = vld [vmem:[%s4079_s1 + $0x188] sm:$0xff] }
  0x24   :  { %1759 = vmatpush.bf16.msrb.mxu3 %v3135_v34  ;;  %1689 = vmatmul.bf16.vlgmr.msra.gmra.mxu1 %v435_v44  ;;  %v3130_v0 = vld [vmem:[%s4079_s1 + $0x1d0] sm:$0xff]  ;;  %v3129_v4 = vld [vmem:[%s4079_s1 + $0x1c8] sm:$0xff]  ;;  %v3104_v6 = vld [vmem:[%s4079_s1 + $0x100] sm:$0xff] }
  0x25   :  { %1733 = vmatpush.bf16.msrb.mxu1 %v3119_v36  ;;  %v3114_v1 = vld [vmem:[%s4079_s1 + $0x150] sm:$0xff]  ;;  %v3113_v5 = vld [vmem:[%s4079_s1 + $0x148] sm:$0xff]  ;;  %v3120_v7 = vld [vmem:[%s4079_s1 + $0x180] sm:$0xff] }
  0x26   :  { %1721 = vmatpush.bf16.msrb.mxu0 %v3110_v38  ;;  %v3128_v8 = vld [vmem:[%s4079_s1 + $0x1c0] sm:$0xff]  ;;  %v3143_v9 = vld [vmem:[%s4079_s1 + $0x238] sm:$0xff]  ;;  %v3142_v14 = vld [vmem:[%s4079_s1 + $0x230] sm:$0xff] }
  0x27   :  { %1747 = vmatpush.bf16.msrb.mxu2 %v3126_v40  ;;  %v3159_v10 = vld [vmem:[%s4079_s1 + $0x2b8] sm:$0xff]  ;;  %v3112_v12 = vld [vmem:[%s4079_s1 + $0x140] sm:$0xff]  ;;  %v3158_v15 = vld [vmem:[%s4079_s1 + $0x2b0] sm:$0xff] }
  0x28   :  { %1760 = vmatpush.bf16.msrb.mxu3 %v3134_v41  ;;  %v3167_v11 = vld [vmem:[%s4079_s1 + $0x2f8] sm:$0xff]  ;;  %v3166_v16 = vld [vmem:[%s4079_s1 + $0x2f0] sm:$0xff]  ;;  %v3141_v18 = vld [vmem:[%s4079_s1 + $0x228] sm:$0xff] }
  0x29   :  { %1734 = vmatpush.bf16.msrb.mxu1 %v3118_v43  ;;  %v3151_v13 = vld [vmem:[%s4079_s1 + $0x278] sm:$0xff]  ;;  %v3150_v17 = vld [vmem:[%s4079_s1 + $0x270] sm:$0xff]  ;;  %v3157_v19 = vld [vmem:[%s4079_s1 + $0x2a8] sm:$0xff] }
  0x2a   :  { %1722 = vmatpush.bf16.msrb.mxu0 %v3109_v45  ;;  %v3165_v20 = vld [vmem:[%s4079_s1 + $0x2e8] sm:$0xff]  ;;  %v3140_v22 = vld [vmem:[%s4079_s1 + $0x220] sm:$0xff]  ;;  %v3139_v26 = vld [vmem:[%s4079_s1 + $0x218] sm:$0xff] }
  0x2b   :  { %1748 = vmatpush.bf16.msrb.mxu2 %v3125_v46  ;;  %v3149_v21 = vld [vmem:[%s4079_s1 + $0x268] sm:$0xff]  ;;  %v3156_v23 = vld [vmem:[%s4079_s1 + $0x2a0] sm:$0xff]  ;;  %v3155_v27 = vld [vmem:[%s4079_s1 + $0x298] sm:$0xff] }
  0x2c   :  { %1761 = vmatpush.bf16.msrb.mxu3 %v3133_v47  ;;  %v3164_v24 = vld [vmem:[%s4079_s1 + $0x2e0] sm:$0xff]  ;;  %v3163_v28 = vld [vmem:[%s4079_s1 + $0x2d8] sm:$0xff]  ;;  %v3138_v30 = vld [vmem:[%s4079_s1 + $0x210] sm:$0xff] }
  0x2d   :  { %1735 = vmatpush.bf16.msrb.mxu1 %v3117_v48  ;;  %v3148_v25 = vld [vmem:[%s4079_s1 + $0x260] sm:$0xff]  ;;  %v3147_v29 = vld [vmem:[%s4079_s1 + $0x258] sm:$0xff]  ;;  %v3154_v31 = vld [vmem:[%s4079_s1 + $0x290] sm:$0xff] }
  0x2e   :  { %1723 = vmatpush.bf16.msrb.mxu0 %v3108_v54  ;;  %v3162_v32 = vld [vmem:[%s4079_s1 + $0x2d0] sm:$0xff]  ;;  %v3137_v34 = vld [vmem:[%s4079_s1 + $0x208] sm:$0xff]  ;;  %v3136_v38 = vld [vmem:[%s4079_s1 + $0x200] sm:$0xff] }
  0x2f   :  { %1749 = vmatpush.bf16.msrb.mxu2 %v3124_v55  ;;  %v3146_v33 = vld [vmem:[%s4079_s1 + $0x250] sm:$0xff]  ;;  %v3153_v35 = vld [vmem:[%s4079_s1 + $0x288] sm:$0xff]  ;;  %v3152_v39 = vld [vmem:[%s4079_s1 + $0x280] sm:$0xff] }
  0x30   :  { %1762 = vmatpush.bf16.msrb.mxu3 %v3132_v56  ;;  %v3161_v36 = vld [vmem:[%s4079_s1 + $0x2c8] sm:$0xff]  ;;  %v3160_v40 = vld [vmem:[%s4079_s1 + $0x2c0] sm:$0xff]  ;;  %v3175_v41 = vld [vmem:[%s4079_s1 + $0x338] sm:$0xff] }
  0x31   :  { %1736 = vmatpush.bf16.msrb.mxu1 %v3116_v57  ;;  %v3145_v37 = vld [vmem:[%s4079_s1 + $0x248] sm:$0xff]  ;;  %v3191_v42 = vld [vmem:[%s4079_s1 + $0x3b8] sm:$0xff]  ;;  %v3144_v44 = vld [vmem:[%s4079_s1 + $0x240] sm:$0xff] }
  0x32   :  { %1724 = vmatpush.bf16.msrb.mxu0 %v3107_v58  ;;  %v3199_v43 = vld [vmem:[%s4079_s1 + $0x3f8] sm:$0xff]  ;;  %v444_v45 = vld [vmem:[#allocation1] sm:$0xff]  ;;  %v3174_v48 = vld [vmem:[%s4079_s1 + $0x330] sm:$0xff] }
  0x33   :  { %1750 = vmatpush.bf16.msrb.mxu2 %v3123_v59  ;;  %v3183_v46 = vld [vmem:[%s4079_s1 + $0x378] sm:$0xff]  ;;  %v3198_v52 = vld [vmem:[%s4079_s1 + $0x3f0] sm:$0xff]  ;;  %v3173_v54 = vld [vmem:[%s4079_s1 + $0x328] sm:$0xff] }
  0x34   :  { %1763 = vmatpush.bf16.msrb.mxu3 %v3131_v60  ;;  %v446_v47 = vld [vmem:[#allocation1 + $0x12] sm:$0xff]  ;;  %v3189_v55 = vld [vmem:[%s4079_s1 + $0x3a8] sm:$0xff]  ;;  %v3172_v58 = vld [vmem:[%s4079_s1 + $0x320] sm:$0xff] }
  0x35   :  { %1737 = vmatpush.bf16.msrb.mxu1 %v3115_v61  ;;  %v3197_v56 = vld [vmem:[%s4079_s1 + $0x3e8] sm:$0xff]  ;;  %v3188_v59 = vld [vmem:[%s4079_s1 + $0x3a0] sm:$0xff] }
  0x36   :  { %1725 = vmatpush.bf16.msrb.mxu0 %v3106_v62  ;;  %v3181_v57 = vld [vmem:[%s4079_s1 + $0x368] sm:$0xff]  ;;  %v3196_v60 = vld [vmem:[%s4079_s1 + $0x3e0] sm:$0xff]  ;;  %v3171_v62 = vld [vmem:[%s4079_s1 + $0x318] sm:$0xff] }
  0x37   :  { %1751 = vmatpush.bf16.msrb.mxu2 %v3122_v63  ;;  %v3180_v61 = vld [vmem:[%s4079_s1 + $0x360] sm:$0xff]  ;;  %v3187_v63 = vld [vmem:[%s4079_s1 + $0x398] sm:$0xff] }
  0x38   :  { %1764 = vmatpush.bf16.msrb.mxu3 %v3130_v0  ;;  %v3195_v0 = vld [vmem:[%s4079_s1 + $0x3d8] sm:$0xff] }
  0x39   :  { %1738 = vmatpush.bf16.msrb.mxu1 %v3114_v1  ;;  %v3179_v1 = vld [vmem:[%s4079_s1 + $0x358] sm:$0xff] }
  0x3a   :  { %1726 = vmatpush.bf16.msrb.mxu0 %v3105_v2  ;;  %v3170_v2 = vld [vmem:[%s4079_s1 + $0x310] sm:$0xff] }
  0x3b   :  { %1752 = vmatpush.bf16.msrb.mxu2 %v3121_v3  ;;  %v3186_v3 = vld [vmem:[%s4079_s1 + $0x390] sm:$0xff] }
  0x3c   :  { %1765 = vmatpush.bf16.msrb.mxu3 %v3129_v4  ;;  %v3194_v4 = vld [vmem:[%s4079_s1 + $0x3d0] sm:$0xff] }
  0x3d   :  { %1739 = vmatpush.bf16.msrb.mxu1 %v3113_v5  ;;  %v3178_v5 = vld [vmem:[%s4079_s1 + $0x350] sm:$0xff] }
  0x3e   :  { %1727 = vmatpush.bf16.msrb.mxu0 %v3104_v6  ;;  %v3169_v6 = vld [vmem:[%s4079_s1 + $0x308] sm:$0xff] }
  0x3f   :  { %1753 = vmatpush.bf16.msrb.mxu2 %v3120_v7  ;;  %v3185_v7 = vld [vmem:[%s4079_s1 + $0x388] sm:$0xff] }
  0x40   :  { %1766 = vmatpush.bf16.msrb.mxu3 %v3128_v8  ;;  %v3193_v8 = vld [vmem:[%s4079_s1 + $0x3c8] sm:$0xff] }
  0x41   :  { %1740 = vmatpush.bf16.msrb.mxu1 %v3112_v12  ;;  %1728 = vmatmul.bf16.vlgmr.msrb.gmra.mxu0 %v438_v50  ;;  %v3190_v50 = vld [vmem:[%s4079_s1 + $0x3b0] sm:$0xff]  ;;  %v451_v12 = vld [vmem:[#allocation1 + $0x3f] sm:$0xff] }
  0x42   :  { %1772 = vmatpush.bf16.msra.mxu0 %v3143_v9  ;;  %1754 = vmatmul.bf16.vlgmr.msrb.gmra.mxu2 %v440_v49  ;;  %v447_v49 = vld [vmem:[#allocation1 + $0x1b] sm:$0xff]  ;;  %v448_v9 = vld [vmem:[#allocation1 + $0x24] sm:$0xff] }
  0x43   :  { %1798 = vmatpush.bf16.msra.mxu2 %v3159_v10  ;;  %1767 = vmatmul.bf16.vlgmr.msrb.gmra.mxu3 %v441_v51  ;;  %v445_v51 = vld [vmem:[#allocation1 + $0x9] sm:$0xff]  ;;  %v450_v10 = vld [vmem:[#allocation1 + $0x36] sm:$0xff] }
  0x44   :  { %1811 = vmatpush.bf16.msra.mxu3 %v3167_v11  ;;  %1741 = vmatmul.bf16.vlgmr.msrb.gmra.mxu1 %v3535_v53  ;;  %v3182_v53 = vld [vmem:[%s4079_s1 + $0x370] sm:$0xff] }
  0x45   :  { %1785 = vmatpush.bf16.msra.mxu1 %v3151_v13  ;;  %v449_v11 = vld [vmem:[#allocation1 + $0x2d] sm:$0xff] }
  0x46   :  { %1773 = vmatpush.bf16.msra.mxu0 %v3142_v14  ;;  %v34_v13 = vld [vmem:[%s4078_s0 + $0x10] sm:$0xff]  ;;  %v3177_v14 = vld [vmem:[%s4079_s1 + $0x348] sm:$0xff] }
  0x47   :  { %1799 = vmatpush.bf16.msra.mxu2 %v3158_v15  ;;  %453 = vst [vmem:[#allocation1] ss:$9 sm:$0xff] %v34_v13  ;;  %v3168_v15 = vld [vmem:[%s4079_s1 + $0x300] sm:$0xff] }
  0x48   :  { %1812 = vmatpush.bf16.msra.mxu3 %v3166_v16  ;;  %v3184_v16 = vld [vmem:[%s4079_s1 + $0x380] sm:$0xff] }
  0x49   :  { %1786 = vmatpush.bf16.msra.mxu1 %v3150_v17  ;;  %v3207_v17 = vld [vmem:[%s4079_s1 + $0x438] sm:$0xff] }
  0x4a   :  { %1774 = vmatpush.bf16.msra.mxu0 %v3141_v18  ;;  %v3192_v18 = vld [vmem:[%s4079_s1 + $0x3c0] sm:$0xff] }
  0x4b   :  { %1800 = vmatpush.bf16.msra.mxu2 %v3157_v19  ;;  %v3223_v19 = vld [vmem:[%s4079_s1 + $0x4b8] sm:$0xff] }
  0x4c   :  { %1813 = vmatpush.bf16.msra.mxu3 %v3165_v20  ;;  %v3231_v20 = vld [vmem:[%s4079_s1 + $0x4f8] sm:$0xff] }
  0x4d   :  { %1787 = vmatpush.bf16.msra.mxu1 %v3149_v21  ;;  %v3176_v21 = vld [vmem:[%s4079_s1 + $0x340] sm:$0xff] }
  0x4e   :  { %1775 = vmatpush.bf16.msra.mxu0 %v3140_v22  ;;  %v3215_v22 = vld [vmem:[%s4079_s1 + $0x478] sm:$0xff] }
  0x4f   :  { %1801 = vmatpush.bf16.msra.mxu2 %v3156_v23  ;;  %v3206_v23 = vld [vmem:[%s4079_s1 + $0x430] sm:$0xff] }
  0x50   :  { %1814 = vmatpush.bf16.msra.mxu3 %v3164_v24  ;;  %v3222_v24 = vld [vmem:[%s4079_s1 + $0x4b0] sm:$0xff] }
  0x51   :  { %1788 = vmatpush.bf16.msra.mxu1 %v3148_v25  ;;  %v3230_v25 = vld [vmem:[%s4079_s1 + $0x4f0] sm:$0xff] }
  0x52   :  { %1776 = vmatpush.bf16.msra.mxu0 %v3139_v26  ;;  %v3214_v26 = vld [vmem:[%s4079_s1 + $0x470] sm:$0xff] }
  0x53   :  { %1802 = vmatpush.bf16.msra.mxu2 %v3155_v27  ;;  %v3205_v27 = vld [vmem:[%s4079_s1 + $0x428] sm:$0xff] }
  0x54   :  { %1815 = vmatpush.bf16.msra.mxu3 %v3163_v28  ;;  %v3221_v28 = vld [vmem:[%s4079_s1 + $0x4a8] sm:$0xff] }
  0x55   :  { %1789 = vmatpush.bf16.msra.mxu1 %v3147_v29  ;;  %v3229_v29 = vld [vmem:[%s4079_s1 + $0x4e8] sm:$0xff] }
  0x56   :  { %1777 = vmatpush.bf16.msra.mxu0 %v3138_v30  ;;  %v3213_v30 = vld [vmem:[%s4079_s1 + $0x468] sm:$0xff] }
  0x57   :  { %1803 = vmatpush.bf16.msra.mxu2 %v3154_v31  ;;  %v3204_v31 = vld [vmem:[%s4079_s1 + $0x420] sm:$0xff] }
  0x58   :  { %1816 = vmatpush.bf16.msra.mxu3 %v3162_v32  ;;  %v3220_v32 = vld [vmem:[%s4079_s1 + $0x4a0] sm:$0xff] }
  0x59   :  { %1790 = vmatpush.bf16.msra.mxu1 %v3146_v33  ;;  %v3228_v33 = vld [vmem:[%s4079_s1 + $0x4e0] sm:$0xff] }
  0x5a   :  { %1778 = vmatpush.bf16.msra.mxu0 %v3137_v34  ;;  %v3212_v34 = vld [vmem:[%s4079_s1 + $0x460] sm:$0xff] }
  0x5b   :  { %1804 = vmatpush.bf16.msra.mxu2 %v3153_v35  ;;  %v3203_v35 = vld [vmem:[%s4079_s1 + $0x418] sm:$0xff] }
  0x5c   :  { %1817 = vmatpush.bf16.msra.mxu3 %v3161_v36  ;;  %v3219_v36 = vld [vmem:[%s4079_s1 + $0x498] sm:$0xff] }
  0x5d   :  { %1791 = vmatpush.bf16.msra.mxu1 %v3145_v37  ;;  %v3227_v37 = vld [vmem:[%s4079_s1 + $0x4d8] sm:$0xff] }
  0x5e   :  { %1779 = vmatpush.bf16.msra.mxu0 %v3136_v38  ;;  %v3211_v38 = vld [vmem:[%s4079_s1 + $0x458] sm:$0xff] }
  0x5f   :  { %1805 = vmatpush.bf16.msra.mxu2 %v3152_v39  ;;  %v3202_v39 = vld [vmem:[%s4079_s1 + $0x410] sm:$0xff] }
  0x60   :  { %1818 = vmatpush.bf16.msra.mxu3 %v3160_v40  ;;  %v3218_v40 = vld [vmem:[%s4079_s1 + $0x490] sm:$0xff] }
  0x61   :  { %1792 = vmatpush.bf16.msra.mxu1 %v3144_v44  ;;  %1780 = vmatmul.bf16.vlgmr.msra.gmra.mxu0 %v444_v45  ;;  %v3217_v44 = vld [vmem:[%s4079_s1 + $0x488] sm:$0xff] }
  0x62   :  { %1824 = vmatpush.bf16.msrb.mxu0 %v3175_v41  ;;  %1806 = vmatmul.bf16.vlgmr.msra.gmra.mxu2 %v446_v47  ;;  %v3226_v41 = vld [vmem:[%s4079_s1 + $0x4d0] sm:$0xff]  ;;  %v3225_v45 = vld [vmem:[%s4079_s1 + $0x4c8] sm:$0xff]  ;;  %v3200_v47 = vld [vmem:[%s4079_s1 + $0x400] sm:$0xff] }
  0x63   :  { %1850 = vmatpush.bf16.msrb.mxu2 %v3191_v42  ;;  %1819 = vmatmul.bf16.vlgmr.msra.gmra.mxu3 %v447_v49  ;;  %v3210_v42 = vld [vmem:[%s4079_s1 + $0x450] sm:$0xff]  ;;  %v3224_v49 = vld [vmem:[%s4079_s1 + $0x4c0] sm:$0xff] }
  0x64   :  { %1863 = vmatpush.bf16.msrb.mxu3 %v3199_v43  ;;  %1793 = vmatmul.bf16.vlgmr.msra.gmra.mxu1 %v445_v51  ;;  %v3201_v43 = vld [vmem:[%s4079_s1 + $0x408] sm:$0xff]  ;;  %v3255_v51 = vld [vmem:[%s4079_s1 + $0x5b8] sm:$0xff] }
  0x65   :  { %1837 = vmatpush.bf16.msrb.mxu1 %v3183_v46  ;;  %v3209_v46 = vld [vmem:[%s4079_s1 + $0x448] sm:$0xff] }
  0x66   :  { %1825 = vmatpush.bf16.msrb.mxu0 %v3174_v48  ;;  %v3216_v48 = vld [vmem:[%s4079_s1 + $0x480] sm:$0xff] }
  0x67   :  { %1851 = vmatpush.bf16.msrb.mxu2 %v3190_v50  ;;  %v3239_v50 = vld [vmem:[%s4079_s1 + $0x538] sm:$0xff] }
  0x68   :  { %1864 = vmatpush.bf16.msrb.mxu3 %v3198_v52  ;;  %v3263_v52 = vld [vmem:[%s4079_s1 + $0x5f8] sm:$0xff] }
  0x69   :  { %1838 = vmatpush.bf16.msrb.mxu1 %v3182_v53  ;;  %v3208_v53 = vld [vmem:[%s4079_s1 + $0x440] sm:$0xff] }
  0x6a   :  { %1826 = vmatpush.bf16.msrb.mxu0 %v3173_v54  ;;  %v454_v54 = vld [vmem:[#allocation1] sm:$0xff] }
  0x6b   :  { %1852 = vmatpush.bf16.msrb.mxu2 %v3189_v55  ;;  %v456_v55 = vld [vmem:[#allocation1 + $0x12] sm:$0xff] }
  0x6c   :  { %1865 = vmatpush.bf16.msrb.mxu3 %v3197_v56  ;;  %v3247_v56 = vld [vmem:[%s4079_s1 + $0x578] sm:$0xff] }
  0x6d   :  { %1839 = vmatpush.bf16.msrb.mxu1 %v3181_v57  ;;  %v457_v57 = vld [vmem:[#allocation1 + $0x1b] sm:$0xff] }
  0x6e   :  { %1827 = vmatpush.bf16.msrb.mxu0 %v3172_v58  ;;  %v3238_v58 = vld [vmem:[%s4079_s1 + $0x530] sm:$0xff] }
  0x6f   :  { %1853 = vmatpush.bf16.msrb.mxu2 %v3188_v59  ;;  %v455_v59 = vld [vmem:[#allocation1 + $0x9] sm:$0xff] }
  0x70   :  { %1866 = vmatpush.bf16.msrb.mxu3 %v3196_v60  ;;  %v3254_v60 = vld [vmem:[%s4079_s1 + $0x5b0] sm:$0xff] }
  0x71   :  { %1840 = vmatpush.bf16.msrb.mxu1 %v3180_v61  ;;  %v3262_v61 = vld [vmem:[%s4079_s1 + $0x5f0] sm:$0xff] }
  0x72   :  { %1828 = vmatpush.bf16.msrb.mxu0 %v3171_v62  ;;  %v3246_v62 = vld [vmem:[%s4079_s1 + $0x570] sm:$0xff] }
  0x73   :  { %1854 = vmatpush.bf16.msrb.mxu2 %v3187_v63  ;;  %v3237_v63 = vld [vmem:[%s4079_s1 + $0x528] sm:$0xff] }
  0x74   :  { %1867 = vmatpush.bf16.msrb.mxu3 %v3195_v0  ;;  %v3253_v0 = vld [vmem:[%s4079_s1 + $0x5a8] sm:$0xff] }
  0x75   :  { %1841 = vmatpush.bf16.msrb.mxu1 %v3179_v1  ;;  %v3261_v1 = vld [vmem:[%s4079_s1 + $0x5e8] sm:$0xff] }
  0x76   :  { %1829 = vmatpush.bf16.msrb.mxu0 %v3170_v2  ;;  %v3245_v2 = vld [vmem:[%s4079_s1 + $0x568] sm:$0xff] }
  0x77   :  { %1855 = vmatpush.bf16.msrb.mxu2 %v3186_v3  ;;  %v3286_v3 = vld [vmem:[%s4080_s2] ss:$0 sm:$0xff] }
  0x78   :  { %1868 = vmatpush.bf16.msrb.mxu3 %v3194_v4  ;;  %v3928_v4 = vld [vmem:[#allocation1 + $0x24] sm:$0xff] }
  0x79   :  { %1842 = vmatpush.bf16.msrb.mxu1 %v3178_v5  ;;  %v3930_v5 = vld [vmem:[#allocation1 + $0x36] sm:$0xff] }
  0x7a   :  { %1830 = vmatpush.bf16.msrb.mxu0 %v3169_v6  ;;  %v3932_v6 = vld [vmem:[#allocation1 + $0x3f] sm:$0xff] }
  0x7b   :  { %1856 = vmatpush.bf16.msrb.mxu2 %v3185_v7  ;;  %v3934_v7 = vld [vmem:[#allocation1 + $0x2d] sm:$0xff] }
  0x7c   :  { %1869 = vmatpush.bf16.msrb.mxu3 %v3193_v8  ;;  %v35_v8 = vld [vmem:[%s4078_s0 + $0x18] sm:$0x1] }
  0x7d   :  { %1843 = vmatpush.bf16.msrb.mxu1 %v3177_v14  ;;  %463 = vst [vmem:[#allocation1] ss:$9 sm:$0xff] %v35_v8  ;;  %v3244_v14 = vld [vmem:[%s4079_s1 + $0x560] sm:$0xff] }
  0x7e   :  { %1831 = vmatpush.bf16.msrb.mxu0 %v3168_v15  ;;  %v3235_v15 = vld [vmem:[%s4079_s1 + $0x518] sm:$0xff] }
  0x7f   :  { %1857 = vmatpush.bf16.msrb.mxu2 %v3184_v16 }
  0x80   :  { %1870 = vmatpush.bf16.msrb.mxu3 %v3192_v18  ;;  %v3259_v18 = vld [vmem:[%s4079_s1 + $0x5d8] sm:$0xff] }
  0x81   :  { %1844 = vmatpush.bf16.msrb.mxu1 %v3176_v21  ;;  %1832 = vmatmul.bf16.vlgmr.msrb.gmra.mxu0 %v448_v9  ;;  %v3236_v9 = vld [vmem:[%s4079_s1 + $0x520] sm:$0xff]  ;;  %v3243_v21 = vld [vmem:[%s4079_s1 + $0x558] sm:$0xff] }
  0x82   :  { %1876 = vmatpush.bf16.msra.mxu0 %v3207_v17  ;;  %1858 = vmatmul.bf16.vlgmr.msrb.gmra.mxu2 %v450_v10  ;;  %v3252_v10 = vld [vmem:[%s4079_s1 + $0x5a0] sm:$0xff]  ;;  %v3251_v17 = vld [vmem:[%s4079_s1 + $0x598] sm:$0xff] }
  0x83   :  { %1902 = vmatpush.bf16.msra.mxu2 %v3223_v19  ;;  %1871 = vmatmul.bf16.vlgmr.msrb.gmra.mxu3 %v451_v12 }
  0x84   :  { %1915 = vmatpush.bf16.msra.mxu3 %v3231_v20  ;;  %1845 = vmatmul.bf16.vlgmr.msrb.gmra.mxu1 %v449_v11  ;;  %v3260_v11 = vld [vmem:[%s4079_s1 + $0x5e0] sm:$0xff] }
  0x85   :  { %1889 = vmatpush.bf16.msra.mxu1 %v3215_v22 }
  0x86   :  { %1877 = vmatpush.bf16.msra.mxu0 %v3206_v23  ;;  %v3234_v23 = vld [vmem:[%s4079_s1 + $0x510] sm:$0xff] }
  0x87   :  { %1903 = vmatpush.bf16.msra.mxu2 %v3222_v24 }
  0x88   :  { %1916 = vmatpush.bf16.msra.mxu3 %v3230_v25  ;;  %v3250_v25 = vld [vmem:[%s4079_s1 + $0x590] sm:$0xff] }
  0x89   :  { %1890 = vmatpush.bf16.msra.mxu1 %v3214_v26  ;;  %v3258_v26 = vld [vmem:[%s4079_s1 + $0x5d0] sm:$0xff] }
  0x8a   :  { %1878 = vmatpush.bf16.msra.mxu0 %v3205_v27 }
  0x8b   :  { %1904 = vmatpush.bf16.msra.mxu2 %v3221_v28 }
  0x8c   :  { %1917 = vmatpush.bf16.msra.mxu3 %v3229_v29  ;;  %v3242_v29 = vld [vmem:[%s4079_s1 + $0x550] sm:$0xff] }
  0x8d   :  { %1891 = vmatpush.bf16.msra.mxu1 %v3213_v30  ;;  %v3233_v30 = vld [vmem:[%s4079_s1 + $0x508] sm:$0xff] }
  0x8e   :  { %1879 = vmatpush.bf16.msra.mxu0 %v3204_v31 }
  0x8f   :  { %1905 = vmatpush.bf16.msra.mxu2 %v3220_v32  ;;  %v3249_v32 = vld [vmem:[%s4079_s1 + $0x588] sm:$0xff] }
  0x90   :  { %1918 = vmatpush.bf16.msra.mxu3 %v3228_v33  ;;  %v3257_v33 = vld [vmem:[%s4079_s1 + $0x5c8] sm:$0xff] }
  0x91   :  { %1892 = vmatpush.bf16.msra.mxu1 %v3212_v34 }
  0x92   :  { %1880 = vmatpush.bf16.msra.mxu0 %v3203_v35  ;;  %v3241_v35 = vld [vmem:[%s4079_s1 + $0x548] sm:$0xff] }
  0x93   :  { %1906 = vmatpush.bf16.msra.mxu2 %v3219_v36  ;;  %v3232_v36 = vld [vmem:[%s4079_s1 + $0x500] sm:$0xff] }
  0x94   :  { %1919 = vmatpush.bf16.msra.mxu3 %v3227_v37 }
  0x95   :  { %1893 = vmatpush.bf16.msra.mxu1 %v3211_v38  ;;  %v3248_v38 = vld [vmem:[%s4079_s1 + $0x580] sm:$0xff] }
  0x96   :  { %1881 = vmatpush.bf16.msra.mxu0 %v3202_v39  ;;  %v3256_v39 = vld [vmem:[%s4079_s1 + $0x5c0] sm:$0xff] }
  0x97   :  { %1907 = vmatpush.bf16.msra.mxu2 %v3218_v40  ;;  %v3267_v40 = vld [vmem:[%s4079_s1 + $0x618] sm:$0xff] }
  0x98   :  { %1920 = vmatpush.bf16.msra.mxu3 %v3226_v41  ;;  %v3240_v41 = vld [vmem:[%s4079_s1 + $0x540] sm:$0xff] }
  0x99   :  { %1894 = vmatpush.bf16.msra.mxu1 %v3210_v42  ;;  %v3266_v42 = vld [vmem:[%s4079_s1 + $0x610] sm:$0xff] }
  0x9a   :  { %1882 = vmatpush.bf16.msra.mxu0 %v3201_v43  ;;  %v3265_v43 = vld [vmem:[%s4079_s1 + $0x608] sm:$0xff] }
  0x9b   :  { %1908 = vmatpush.bf16.msra.mxu2 %v3217_v44  ;;  %v3264_v44 = vld [vmem:[%s4079_s1 + $0x600] sm:$0xff] }
  0x9c   :  { %1921 = vmatpush.bf16.msra.mxu3 %v3225_v45 }
  0x9d   :  { %1895 = vmatpush.bf16.msra.mxu1 %v3209_v46 }
  0x9e   :  { %1883 = vmatpush.bf16.msra.mxu0 %v3200_v47  ;;  %v1677_v12 = vpop.f32.mrf.mxu0 }
  0x9f   :  { %1909 = vmatpush.bf16.msra.mxu2 %v3216_v48  ;;  %v1678_v13 = vadd.f32 %v3286_v3, %v1677_v12 }
  0xa0   :  { %1922 = vmatpush.bf16.msra.mxu3 %v3224_v49  ;;  %v464_v49 = vld [vmem:[#allocation1] sm:$0xff] }
  0xa1   :  { %1896 = vmatpush.bf16.msra.mxu1 %v3208_v53  ;;  %1884 = vmatmul.bf16.vlgmr.msra.gmra.mxu0 %v454_v54  ;;  %v1690_v16 = vpop.f32.mrf.mxu1 }
  0xa2   :  { %1928 = vmatpush.bf16.msrb.mxu0 %v3239_v50  ;;  %1910 = vmatmul.bf16.vlgmr.msra.gmra.mxu2 %v456_v55  ;;  %v1691_v19 = vadd.f32 %v1690_v16, %v1678_v13  ;;  %v3274_v13 = vld [vmem:[%s4081_s3 + $0x30] sm:$0xff]  ;;  %v3273_v16 = vld [vmem:[%s4081_s3 + $0x28] sm:$0xff] }
  0xa3   :  { %1954 = vmatpush.bf16.msrb.mxu2 %v3255_v51  ;;  %1923 = vmatmul.bf16.vlgmr.msra.gmra.mxu3 %v457_v57 }
  0xa4   :  { %1967 = vmatpush.bf16.msrb.mxu3 %v3263_v52  ;;  %1897 = vmatmul.bf16.vlgmr.msra.gmra.mxu1 %v455_v59 }
  0xa5   :  { %1941 = vmatpush.bf16.msrb.mxu1 %v3247_v56  ;;  %v1703_v20 = vpop.f32.mrf.mxu2 }
  0xa6   :  { %1929 = vmatpush.bf16.msrb.mxu0 %v3238_v58  ;;  %v1704_v22 = vadd.f32 %v1703_v20, %v1691_v19  ;;  %v1716_v24 = vpop.f32.mrf.mxu3  ;;  %v1679_v28 = vpop.f32.mrf.mxu0  ;;  %v3271_v20 = vld [vmem:[%s4081_s3 + $0x18] sm:$0xff] }
  0xa7   :  { %1955 = vmatpush.bf16.msrb.mxu2 %v3254_v60 }
  0xa8   :  { %1968 = vmatpush.bf16.msrb.mxu3 %v3262_v61  ;;  %v1717_v27 = vadd.f32 %v1716_v24, %v1704_v22  ;;  %v3270_v24 = vld [vmem:[%s4081_s3 + $0x10] sm:$0xff] }
  0xa9   :  { %1942 = vmatpush.bf16.msrb.mxu1 %v3246_v62  ;;  %v1692_v31 = vpop.f32.mrf.mxu1 }
  0xaa   :  { %1930 = vmatpush.bf16.msrb.mxu0 %v3237_v63 }
  0xab   :  { %1956 = vmatpush.bf16.msrb.mxu2 %v3253_v0 }
  0xac   :  { %1969 = vmatpush.bf16.msrb.mxu3 %v3261_v1 }
  0xad   :  { %1943 = vmatpush.bf16.msrb.mxu1 %v3245_v2  ;;  %v1705_v34 = vpop.f32.mrf.mxu2 }
  0xae   :  { %1931 = vmatpush.bf16.msrb.mxu0 %v3236_v9  ;;  %v1718_v37 = vpop.f32.mrf.mxu3  ;;  %v3283_v34 = vld [vmem:[%s4083_s5 + $0x38] sm:$0xff] }
  0xaf   :  { %1957 = vmatpush.bf16.msrb.mxu2 %v3252_v10  ;;  %v3275_v10 = vld [vmem:[%s4081_s3 + $0x38] sm:$0xff] }
  0xb0   :  { %1970 = vmatpush.bf16.msrb.mxu3 %v3260_v11 }
  0xb1   :  { %1944 = vmatpush.bf16.msrb.mxu1 %v3244_v14 }
  0xb2   :  { %1932 = vmatpush.bf16.msrb.mxu0 %v3235_v15 }
  0xb3   :  { %1958 = vmatpush.bf16.msrb.mxu2 %v3251_v17 }
  0xb4   :  { %1971 = vmatpush.bf16.msrb.mxu3 %v3259_v18  ;;  %v3272_v18 = vld [vmem:[%s4081_s3 + $0x20] sm:$0xff] }
  0xb5   :  { %1945 = vmatpush.bf16.msrb.mxu1 %v3243_v21 }
  0xb6   :  { %1933 = vmatpush.bf16.msrb.mxu0 %v3234_v23 }
  0xb7   :  { %1959 = vmatpush.bf16.msrb.mxu2 %v3250_v25 }
  0xb8   :  { %1972 = vmatpush.bf16.msrb.mxu3 %v3258_v26 }
  0xb9   :  { %1946 = vmatpush.bf16.msrb.mxu1 %v3242_v29 }
  0xba   :  { %1934 = vmatpush.bf16.msrb.mxu0 %v3233_v30 }
  0xbb   :  { %1960 = vmatpush.bf16.msrb.mxu2 %v3249_v32  ;;  %v3268_v32 = vld [vmem:[%s4081_s3] sm:$0xff] }
  0xbc   :  { %1973 = vmatpush.bf16.msrb.mxu3 %v3257_v33 }
  0xbd   :  { %1947 = vmatpush.bf16.msrb.mxu1 %v3241_v35 }
  0xbe   :  { %1935 = vmatpush.bf16.msrb.mxu0 %v3232_v36  ;;  %v1729_v45 = vpop.f32.mrf.mxu0  ;;  %v3282_v36 = vld [vmem:[%s4083_s5 + $0x30] sm:$0xff] }
  0xbf   :  { %1961 = vmatpush.bf16.msrb.mxu2 %v3248_v38  ;;  %v1730_v46 = vadd.f32 %v1729_v45, %v1717_v27  ;;  %v3269_v27 = vld [vmem:[%s4081_s3 + $0x8] sm:$0xff]  ;;  %v3279_v45 = vld [vmem:[%s4083_s5 + $0x18] sm:$0xff] }
  0xc0   :  { %1974 = vmatpush.bf16.msrb.mxu3 %v3256_v39  ;;  %v3281_v38 = vld [vmem:[%s4083_s5 + $0x28] sm:$0xff] }
  0xc1   :  { %1948 = vmatpush.bf16.msrb.mxu1 %v3240_v41  ;;  %1936 = vmatmul.bf16.vlgmr.msrb.gmra.mxu0 %v3928_v4  ;;  %v1742_v47 = vpop.f32.mrf.mxu1  ;;  %v3280_v41 = vld [vmem:[%s4083_s5 + $0x20] sm:$0xff] }
  0xc2   :  { %1984 = vmatpush.bf16.msra.mxu0 %v3267_v40  ;;  %1962 = vmatmul.bf16.vlgmr.msrb.gmra.mxu2 %v3930_v5  ;;  %v1743_v48 = vadd.f32 %v1742_v47, %v1730_v46 }
  0xc3   :  { %1975 = vmatmul.bf16.vlgmr.msrb.gmra.mxu3 %v3932_v6  ;;  %2148 = vmatpush.bf16.msra.mxu2 %v3283_v34 }
  0xc4   :  { %1949 = vmatmul.bf16.vlgmr.msrb.gmra.mxu1 %v3934_v7 }
  0xc5   :  { %v1755_v50 = vpop.f32.mrf.mxu2  ;;  %2064 = vmatpush.bf16.msra.mxu1 %v3275_v10 }
  0xc6   :  { %1985 = vmatpush.bf16.msra.mxu0 %v3266_v42  ;;  %v1756_v51 = vadd.f32 %v1755_v50, %v1743_v48  ;;  %v1768_v52 = vpop.f32.mrf.mxu3  ;;  %v1731_v54 = vpop.f32.mrf.mxu0  ;;  %v3278_v50 = vld [vmem:[%s4083_s5 + $0x10] sm:$0xff] }
  0xc7   :  { %2149 = vmatpush.bf16.msra.mxu2 %v3282_v36 }
  0xc8   :  { %v1769_v53 = vadd.f32 %v1768_v52, %v1756_v51 }
  0xc9   :  { %v1744_v55 = vpop.f32.mrf.mxu1  ;;  %2065 = vmatpush.bf16.msra.mxu1 %v3274_v13 }
  0xca   :  { %1986 = vmatpush.bf16.msra.mxu0 %v3265_v43 }
  0xcb   :  { %2150 = vmatpush.bf16.msra.mxu2 %v3281_v38 }
  0xcd   :  { %v1757_v56 = vpop.f32.mrf.mxu2  ;;  %2066 = vmatpush.bf16.msra.mxu1 %v3273_v16 }
  0xce   :  { %1987 = vmatpush.bf16.msra.mxu0 %v3264_v44  ;;  %v1770_v57 = vpop.f32.mrf.mxu3 }
  0xcf   :  { %2151 = vmatpush.bf16.msra.mxu2 %v3280_v41 }
  0xd1   :  { %3007 = vmatmul.msk.bf16.vlgmr.msra.gmra.mxu0 %vm1665_vm0, %v464_v49  ;;  %2067 = vmatpush.bf16.msra.mxu1 %v3272_v18 }
  0xd3   :  { %2152 = vmatpush.bf16.msra.mxu2 %v3279_v45 }
  0xd5   :  { %2068 = vmatpush.bf16.msra.mxu1 %v3271_v20 }
  0xd7   :  { %2153 = vmatpush.bf16.msra.mxu2 %v3278_v50 }
  0xd9   :  { %2069 = vmatpush.bf16.msra.mxu1 %v3270_v24 }
  0xdd   :  { %2070 = vmatpush.bf16.msra.mxu1 %v3269_v27 }
  0xde   :  { %v1781_v58 = vpop.f32.mrf.mxu0 }
  0xdf   :  { %v1782_v59 = vadd.f32 %v1781_v58, %v1769_v53 }
  0xe1   :  { %v1794_v60 = vpop.f32.mrf.mxu1  ;;  %2071 = vmatpush.bf16.msra.mxu1 %v3268_v32 }
  0xe2   :  { %v1795_v61 = vadd.f32 %v1794_v60, %v1782_v59 }
  0xe5   :  { %v1807_v62 = vpop.f32.mrf.mxu2 }
  0xe6   :  { %v1808_v63 = vadd.f32 %v1807_v62, %v1795_v61  ;;  %v1820_v0 = vpop.f32.mrf.mxu3  ;;  %v1783_v1 = vpop.f32.mrf.mxu0  ;;  %v3277_v61 = vld [vmem:[%s4083_s5 + $0x8] sm:$0xff]  ;;  %v3276_v62 = vld [vmem:[%s4083_s5] sm:$0xff] }
  0xe7   :  { %2154 = vmatpush.bf16.msra.mxu2 %v3277_v61 }
  0xe8   :  { %v1821_v2 = vadd.f32 %v1820_v0, %v1808_v63  ;;  %v3287_v63 = vld [vmem:[%s4082_s4] ss:$0 sm:$0xff]  ;;  %s3345_s4 = smov [#allocation2]  }
  0xe9   :  { %v1796_v3 = vpop.f32.mrf.mxu1  ;;  %s2192_s5 = sshll.u32 %s3345_s4, 4  ;;  %s2193_s5 = int_to_ptr.vmem [resolvable:$true] %s2192_s5 }
  0xeb   :  { %2155 = vmatpush.bf16.msra.mxu2 %v3276_v62 }
  0xed   :  { %v1809_v4 = vpop.f32.mrf.mxu2 }
  0xee   :  { %v1822_v5 = vpop.f32.mrf.mxu3 }
  0xef   :  { %v3288_v5 = vld [vmem:[%s4084_s6] ss:$0 sm:$0xff]  ;;  %s3346_s6 = smov [#allocation4]  }
  0xf0   :  { %s2203_s19 = sshll.u32 %s3346_s6, 4  ;;  %s2204_s19 = int_to_ptr.vmem [resolvable:$true] %s2203_s19 }
  0xfe   :  { %v1833_v6 = vpop.f32.mrf.mxu0 }
  0xff   :  { %v1834_v25 = vadd.f32 %v1833_v6, %v1821_v2 }
 0x101   :  { %v1846_v7 = vpop.f32.mrf.mxu1 }
 0x102   :  { %v1847_v28 = vadd.f32 %v1846_v7, %v1834_v25 }
 0x105   :  { %v1859_v8 = vpop.f32.mrf.mxu2 }
 0x106   :  { %v1872_v9 = vpop.f32.mrf.mxu3  ;;  %v1835_v11 = vpop.f32.mrf.mxu0  ;;  %v1860_v31 = vadd.f32 %v1859_v8, %v1847_v28 }
 0x108   :  { %v1873_v33 = vadd.f32 %v1872_v9, %v1860_v31 }
 0x109   :  { %v1848_v12 = vpop.f32.mrf.mxu1 }
 0x10d   :  { %v1861_v14 = vpop.f32.mrf.mxu2 }
 0x10e   :  { %v1874_v15 = vpop.f32.mrf.mxu3 }
 0x11e   :  { %v1885_v17 = vpop.f32.mrf.mxu0 }
 0x11f   :  { %v1886_v35 = vadd.f32 %v1885_v17, %v1873_v33 }
 0x121   :  { %v1898_v19 = vpop.f32.mrf.mxu1 }
 0x122   :  { %v1899_v37 = vadd.f32 %v1898_v19, %v1886_v35 }
 0x125   :  { %v1911_v21 = vpop.f32.mrf.mxu2 }
 0x126   :  { %v1924_v22 = vpop.f32.mrf.mxu3  ;;  %v1887_v23 = vpop.f32.mrf.mxu0  ;;  %v1912_v39 = vadd.f32 %v1911_v21, %v1899_v37 }
 0x128   :  { %v1925_v42 = vadd.f32 %v1924_v22, %v1912_v39 }
 0x129   :  { %v1900_v26 = vpop.f32.mrf.mxu1 }
 0x12d   :  { %v1913_v29 = vpop.f32.mrf.mxu2 }
 0x12e   :  { %v1926_v30 = vpop.f32.mrf.mxu3 }
 0x13e   :  { %v1937_v40 = vpop.f32.mrf.mxu0 }
 0x13f   :  { %v1938_v44 = vadd.f32 %v1937_v40, %v1925_v42 }
 0x141   :  { %v1950_v43 = vpop.f32.mrf.mxu1 }
 0x142   :  { %v1951_v49 = vadd.f32 %v1950_v43, %v1938_v44 }
 0x145   :  { %v1963_v46 = vpop.f32.mrf.mxu2 }
 0x146   :  { %v1976_v47 = vpop.f32.mrf.mxu3  ;;  %v1939_v48 = vpop.f32.mrf.mxu0  ;;  %v1964_v51 = vadd.f32 %v1963_v46, %v1951_v49 }
 0x148   :  { %v1977_v53 = vadd.f32 %v1976_v47, %v1964_v51 }
 0x149   :  { %v1952_v52 = vpop.f32.mrf.mxu1 }
 0x14d   :  { %v1965_v54 = vpop.f32.mrf.mxu2 }
 0x14e   :  { %v1978_v55 = vpop.f32.mrf.mxu3  ;;  %v1989_v56 = vpop.f32.mrf.mxu0 }
 0x14f   :  { %v1990_v57 = vadd.f32 %v1989_v56, %v1977_v53 }
 0x151   :  { %v1993_v58 = vmax.f32 %v1990_v57, 0.0 }
 0x153   :  { %v1995_v59 = vpack.c.bf16 %v1993_v58, %v1993_v58  ;;  %1994 = vst [vmem:[#allocation2] sm:$0x3] %v1993_v58 }
 0x154   :  { %2197 = dma.vmem_to_hbm [thread:$0]  %s2193_s5, 32, %s2195_s18, [#allocation3]  }
 0x155   :  { %2072 = vmatmul.bf16.vlgmr.msra.gmra.mxu1 %v1995_v59 }
 0x156   :  { %v1991_v60 = vpop.f32.mrf.mxu0 }
 0x1d2   :  { %v2073_v0 = vpop.f32.mrf.mxu1 }
 0x1d3   :  { %v2074_v1 = vadd.f32 %v3287_v63, %v2073_v0 }
 0x1d5   :  { %v2077_v2 = vmax.f32 %v2074_v1, 0.0 }
 0x1d7   :  { %2078 = vst [vmem:[#allocation4] sm:$0x3] %v2077_v2  ;;  %v2079_v3 = vpack.c.bf16 %v2077_v2, %v2077_v2 }
 0x1d8   :  { %2208 = dma.vmem_to_hbm [thread:$0]  %s2204_s19, 32, %s2206_s22, [#allocation5]  }
 0x1d9   :  { %2156 = vmatmul.bf16.vlgmr.msra.gmra.mxu2 %v2079_v3 }
 0x1da   :  { %v2075_v4 = vpop.f32.mrf.mxu1 }
 0x25c   :  { %v2157_v6 = vpop.f32.mrf.mxu2 }
 0x25d   :  { %v2158_v7 = vadd.f32 %v3288_v5, %v2157_v6 }
 0x25f   :  { %v2162_v8 = vsel %vm2161_vm1, %v2158_v7, -inf }
 0x260   :  { %2163 = vmax.xlane.f32.xlu0 %v2162_v8 }
 0x264   :  { %v2159_v9 = vpop.f32.mrf.mxu2 }
 0x2d3   :  { %v2164_v10 = vpop.xlane.xlu0 %2163 }
 0x2d4   :  { %v2165_v11 = vsub.f32 %v2158_v7, %v2164_v10 }
 0x2d6   :  { %v2166_v12 = vmul.f32 1.442695, %v2165_v11 }
 0x2d8   :  { %3289 = vpow2.f32 %v2166_v12 }
 0x2de   :  { %v3290_v13 = vpop.eup %3289 }
 0x2df   :  { %v2168_v14 = vsel %vm2161_vm1, %v3290_v13, 0.0 }
 0x2e0   :  { %2169 = vadd.xlane.f32.xlu0 %v2168_v14 }
 0x353   :  { %v2170_v15 = vpop.xlane.xlu0 %2169 }
 0x354   :  { %3291 = vrcp.f32 %v2170_v15  ;;  %v2182_v19 = vand.u32 2147483648, %v2170_v15  ;;  %v2180_v21 = vand.u32 2147483647, %v2170_v15  ;;  %vm2176_vm3 = vweird.f32 %v2170_v15 }
 0x356   :  { %v2183_v23 = vor.u32 1.1754944e-38, %v2182_v19  ;;  %vm2181_vm5 = vcmp.eq.f32.partialorder %v2180_v21, 8.507059e+37 }
 0x35a   :  { %v3292_v16 = vpop.eup %3291 }
 0x35b   :  { %v2172_v17 = vmul.f32 %v3292_v16, %v2170_v15  ;;  %vm2177_vm2 = vweird.f32 %v3292_v16 }
 0x35c   :  { %vm2178_vm4 = vmor %vm2176_vm3, %vm2177_vm2 }
 0x35d   :  { %v2173_v18 = vsub.f32 1.0, %v2172_v17 }
 0x35f   :  { %v2174_v20 = vmul.f32 %v3292_v16, %v2173_v18 }
 0x361   :  { %v2175_v22 = vadd.f32 %v3292_v16, %v2174_v20 }
 0x363   :  { %v2179_v24 = vsel %vm2178_vm4, %v3292_v16, %v2175_v22 }
 0x364   :  { %v2184_v25 = vsel %vm2181_vm5, %v2183_v23, %v2179_v24 }
 0x365   :  { %v2185_v26 = vmul.f32 %v3290_v13, %v2184_v25 }
 0x367   :  { %2186 = vst [vmem:[%s4087_s9] sm:$0x3] %v2185_v26 }
 0x368   :  { %3341 = dma.done.wait [#allocation3], 32  }
 0x369   :  { %3342 = vsyncadd [#allocation3], 4294967264 }
 0x36a   :  { %3343 = dma.done.wait [#allocation5], 32  }
 0x36b   :  { %3344 = vsyncadd [#allocation5], 4294967264 }
 0x36c   :  { %2221 = vsyncpa [#allocation3], 1 }
 0x36d   :  { %2222 = vsyncpa [#allocation5], 1 }

</bundles_post_ra>
